<compile_context>
chip_gen: v5e
topology: v5e:2x2
jax: 0.10.0
libtpu: 0.0.40
codegen_flags: <defaults>
</compile_context>

<pallas_src>
import jax
import jax.numpy as jnp
from jax.experimental import pallas as pl
from jax.experimental.pallas import tpu as pltpu


def _round_up(x, m):
    return (x + m - 1) // m * m


# ----------------------------------------------------------------------------
# Pallas kernels
# ----------------------------------------------------------------------------
def _make_conv_stats_kernel(taps, rows_out, w_inner, wo_valid, pool_width):
    """Per-image conv as a sum of tap matmuls + per-channel (sum, sum_sq) stats.

    taps : static list of (row_offset, chan_offset, weight_row_offset, k_width)
    refs : x (1, R_in, C_total) bf16 | w (K_total, Cp) bf16
           y (1, rows_out, Cp) bf16  | stats (1, 2, Cp) f32
           [pool (1, rows_out, pool_width) bf16]  (fused 3x3/s2 max-pool)
           acc (rows_out, Cp) f32 VMEM scratch accumulator
    """
    need_mask = wo_valid < w_inner

    def body(x_ref, w_ref, y_ref, stats_ref, pool_ref, acc_ref):
        first_mm = True
        first_pool = True
        for (roff, coff, woff, kw) in taps:                 # static, unrolled (<=9)
            tap = x_ref[0, roff:roff + rows_out, coff:coff + kw]
            part = jnp.dot(tap, w_ref[woff:woff + kw, :],
                           preferred_element_type=jnp.float32)
            if first_mm:
                acc_ref[...] = part                         # init from first tap
                first_mm = False
            else:
                acc_ref[...] += part                        # accumulate in VMEM scratch
            if pool_width is not None:
                # Fused max-pool: reuse the already-loaded tap slice (VPU filler
                # that hides under the MXU work; saves one full HBM read of x).
                for j in range(kw // pool_width):
                    chunk = tap[:, j * pool_width:(j + 1) * pool_width]
                    if first_pool:
                        pool_ref[0] = chunk
                        first_pool = False
                    else:
                        pool_ref[0] = jnp.maximum(pool_ref[0], chunk)

        acc = acc_ref[...]
        if need_mask:
            # In-kernel junk-column mask (row % w_inner < wo_valid): no mask DMA.
            rid = jax.lax.broadcasted_iota(jnp.int32, (rows_out, acc.shape[-1]), 0)
            av = jnp.where(rid % w_inner < wo_valid, acc, 0.0)
        else:
            av = acc
        stats_ref[0, 0:1, :] = jnp.sum(av, axis=0, keepdims=True)
        stats_ref[0, 1:2, :] = jnp.sum(av * acc, axis=0, keepdims=True)
        y_ref[0] = acc.astype(y_ref.dtype)

    if pool_width is None:
        def kernel(x_ref, w_ref, y_ref, stats_ref, acc_ref):
            body(x_ref, w_ref, y_ref, stats_ref, None, acc_ref)
        return kernel

    return body


def _bn_relu_kernel(y_ref, scale_ref, bias_ref, o_ref):
    """Fused per-channel FMA (folded BatchNorm) + ReLU, lane-dense output."""
    y = y_ref[...].astype(jnp.float32)
    o_ref[...] = jnp.maximum(y * scale_ref[...] + bias_ref[...], 0.0).astype(o_ref.dtype)


# ----------------------------------------------------------------------------
# pallas_call wrappers
# ----------------------------------------------------------------------------
def _conv_call(x_flat, w_packed, taps, rows_out, w_inner, wo_valid, pool_width):
    n, r_in, ctot = x_flat.shape
    k_total, cp = w_packed.shape
    kernel = _make_conv_stats_kernel(taps, rows_out, w_inner, wo_valid, pool_width)

    out_shape = [jax.ShapeDtypeStruct((n, rows_out, cp), jnp.bfloat16),
                 jax.ShapeDtypeStruct((n, 2, cp), jnp.float32)]
    out_specs = [pl.BlockSpec((1, rows_out, cp), lambda i: (i, 0, 0)),
                 pl.BlockSpec((1, 2, cp), lambda i: (i, 0, 0))]
    if pool_width is not None:
        out_shape.append(jax.ShapeDtypeStruct((n, rows_out, pool_width), jnp.bfloat16))
        out_specs.append(pl.BlockSpec((1, rows_out, pool_width), lambda i: (i, 0, 0)))

    # Explicit VMEM ceiling: double-buffered in/out blocks + resident weights
    # + f32 accumulator, with headroom.  Clamped to stay below v7x's 64 MiB.
    pool_bytes = rows_out * pool_width * 2 if pool_width is not None else 0
    per_step = (2 * r_in * ctot * 2 + 2 * k_total * cp * 2
                + 2 * rows_out * cp * 2 + 2 * 2 * cp * 4
                + 2 * pool_bytes + rows_out * cp * 4)
    vmem_limit = int(min(max(2 * per_step, 32 << 20), 60 << 20))

    flops = 2 * n * rows_out * k_total * cp
    bytes_accessed = (x_flat.size * x_flat.dtype.itemsize
                      + w_packed.size * w_packed.dtype.itemsize
                      + n * rows_out * cp * 2 + n * 2 * cp * 4 + n * pool_bytes)

    return pl.pallas_call(
        kernel,
        grid=(n,),
        in_specs=[
            pl.BlockSpec((1, r_in, ctot), lambda i: (i, 0, 0)),
            pl.BlockSpec((k_total, cp), lambda i: (0, 0)),   # VMEM-resident weights
        ],
        out_specs=tuple(out_specs),
        out_shape=tuple(out_shape),
        scratch_shapes=[pltpu.VMEM((rows_out, cp), jnp.float32)],
        compiler_params=pltpu.CompilerParams(
            dimension_semantics=("parallel",),
            vmem_limit_bytes=vmem_limit),
        cost_estimate=pl.CostEstimate(flops=flops, transcendentals=0,
                                      bytes_accessed=bytes_accessed),
    )(x_flat, w_packed)


def _bn_relu_call(y, scale, bias, out_dtype):
    n, r, cp = y.shape
    return pl.pallas_call(
        _bn_relu_kernel,
        grid=(n,),
        in_specs=[
            pl.BlockSpec((1, r, cp), lambda i: (i, 0, 0)),
            pl.BlockSpec((1, 1, cp), lambda i: (0, 0, 0)),
            pl.BlockSpec((1, 1, cp), lambda i: (0, 0, 0)),
        ],
        out_specs=pl.BlockSpec((1, r, cp), lambda i: (i, 0, 0)),
        out_shape=jax.ShapeDtypeStruct((n, r, cp), out_dtype),
        compiler_params=pltpu.CompilerParams(dimension_semantics=("parallel",)),
    )(y, scale, bias)


# ----------------------------------------------------------------------------
# Glue (plain JAX): layout prep, tap plans, weight packing, BN folding
# ----------------------------------------------------------------------------
def _space_to_depth2(x4):
    """(N,H,W,C) -> (N,ceil(H/2),ceil(W/2),4C); phase order (dh,dw)=(0,0),(0,1),(1,0),(1,1)."""
    n, h, w, c = x4.shape
    he, we = h + (h & 1), w + (w & 1)
    if (he, we) != (h, w):
        x4 = jnp.pad(x4, ((0, 0), (0, he - h), (0, we - w), (0, 0)))
    x4 = x4.reshape(n, he // 2, 2, we // 2, 2, c)
    x4 = jnp.transpose(x4, (0, 1, 3, 2, 4, 5))
    return x4.reshape(n, he // 2, we // 2, 4 * c)


def _flatten_pad_rows(x4, extra):
    n, h, w, c = x4.shape
    xf = x4.reshape(n, h * w, c)
    if extra:
        xf = jnp.pad(xf, ((0, 0), (0, extra), (0, 0)))
    return xf


def _plan_3x3_s2_s2d(w2, cin_pad):
    """Tap plan for 3x3/stride-2 conv on a space-to-depth(2) layout.

    Pairs taps that share a row offset and contiguous channel phases into
    single K=2*cin_pad matmuls (kw=0,1), leaving kw=2 as K=cin_pad singles.
    """
    plan = []                                       # (roff, coff, [(kh, kw), ...])
    for kh in range(3):
        base_phase = (kh % 2) * 2
        rbase = (kh // 2) * w2
        plan.append((rbase, base_phase * cin_pad, [(kh, 0), (kh, 1)]))
        plan.append((rbase + 1, base_phase * cin_pad, [(kh, 2)]))
    return plan


def _plan_3x3_s1(wp):
    return [(kh * wp + kw, 0, [(kh, kw)]) for kh in range(3) for kw in range(3)]


def _plan_1x1():
    return [(0, 0, [(0, 0)])]


def _pack_weights(w_oihw, plan, cin_pad, cout_pad):
    """OIHW -> ((sum K), cout_pad) bf16 packed per tap plan + kernel tap list."""
    cout, cin, _, _ = w_oihw.shape
    slabs, taps = [], []
    woff = 0
    for (roff, coff, kws) in plan:
        for (kh, kw) in kws:
            slab = jnp.transpose(w_oihw[:, :, kh, kw], (1, 0))      # (cin, cout)
            slab = jnp.pad(slab, ((0, cin_pad - cin), (0, cout_pad - cout)))
            slabs.append(slab)
        kwidth = len(kws) * cin_pad
        taps.append((roff, coff, woff, kwidth))
        woff += kwidth
    w_packed = jnp.concatenate(slabs, axis=0).astype(jnp.bfloat16)
    return w_packed, taps


def _basic_conv(x_flat, w_oihw, gamma, beta, plan, rows_out, w_inner, wo_valid,
                cin_pad, cout_pad, out_dtype, pool_width=None):
    """BasicConv2d: conv (tap matmuls) -> BatchNorm(batch stats, eps=1e-3) -> ReLU."""
    n = x_flat.shape[0]
    w_packed, taps = _pack_weights(w_oihw, plan, cin_pad, cout_pad)

    outs = _conv_call(x_flat, w_packed, taps, rows_out, w_inner, wo_valid, pool_width)
    y, stats = outs[0], outs[1]
    pool = outs[2] if pool_width is not None else None

    ho_rows = rows_out // w_inner
    count = float(n * ho_rows * wo_valid)
    s = jnp.sum(stats[:, 0, :], axis=0)
    ss = jnp.sum(stats[:, 1, :], axis=0)
    mean = s / count
    # Biased variance (matches nn.BatchNorm2d train mode); clamp guards tiny
    # negative values from single-pass E[x^2]-E[x]^2 cancellation in f32.
    var = jnp.maximum(ss / count - mean * mean, 0.0)
    g = jnp.pad(gamma.astype(jnp.float32), (0, cout_pad - gamma.shape[0]))
    b = jnp.pad(beta.astype(jnp.float32), (0, cout_pad - beta.shape[0]))
    scale = g * jax.lax.rsqrt(var + 1e-3)
    bias = b - mean * scale

    out = _bn_relu_call(y, scale.reshape(1, 1, cout_pad),
                        bias.reshape(1, 1, cout_pad), out_dtype)
    if pool_width is None:
        return out
    return out, pool


# ----------------------------------------------------------------------------
# InceptionB
# ----------------------------------------------------------------------------
def init_inception_b_params(key, in_channels):
    """Deterministic params (conv weights ~N(0, 0.1), BN gamma=1, beta=0)."""

    def conv_block_params(k, cout, cin, ksize):
        w = 0.1 * jax.random.normal(k, (cout, cin, ksize, ksize), jnp.float32)
        return {"w": w,
                "gamma": jnp.ones((cout,), jnp.float32),
                "beta": jnp.zeros((cout,), jnp.float32)}

    k1, k2, k3, k4 = jax.random.split(key, 4)
    return {
        "branch3x3": conv_block_params(k1, 384, in_channels, 3),
        "branch3x3dbl_1": conv_block_params(k2, 64, in_channels, 1),
        "branch3x3dbl_2": conv_block_params(k3, 96, 64, 3),
        "branch3x3dbl_3": conv_block_params(k4, 96, 96, 3),
    }


@jax.jit
def inception_b_forward(params, x_nchw):
    """InceptionB forward. Input NCHW, output NCHW (channels = 384 + 96 + Cin)."""
    x = jnp.transpose(x_nchw, (0, 2, 3, 1))                          # NCHW -> NHWC
    n, h, w, c = x.shape
    ho = (h - 3) // 2 + 1
    wo = (w - 3) // 2 + 1
    cin_pad = _round_up(c, 128)

    # One bf16, channel-padded copy of x shared by branch3x3, dbl_1 and the pool.
    xb = x.astype(jnp.bfloat16)
    if cin_pad != c:
        xb = jnp.pad(xb, ((0, 0), (0, 0), (0, 0), (0, cin_pad - c)))

    xs = _space_to_depth2(xb)                                        # (n, h2, w2, 4*cin_pad)
    _, h2, w2, _ = xs.shape
    xs_flat = _flatten_pad_rows(xs, extra=1)

    # ---- branch3x3: 3x3 / stride 2 -> 384, fused with the 3x3/s2 max-pool ----
    p = params["branch3x3"]
    b3, pool = _basic_conv(xs_flat, p["w"], p["gamma"], p["beta"],
                           _plan_3x3_s2_s2d(w2, cin_pad),
                           ho * w2, w2, wo, cin_pad=cin_pad, cout_pad=384,
                           out_dtype=jnp.float32, pool_width=cin_pad)
    b3 = b3.reshape(n, ho, w2, 384)[:, :, :wo, :]
    pool = pool.reshape(n, ho, w2, cin_pad)[:, :, :wo, :c].astype(jnp.float32)

    # ---- branch3x3dbl_1: 1x1 -> 64 (padded to 128 lanes) ----
    p = params["branch3x3dbl_1"]
    x_flat = xb.reshape(n, h * w, cin_pad)
    a1 = _basic_conv(x_flat, p["w"], p["gamma"], p["beta"], _plan_1x1(),
                     h * w, w, w, cin_pad=cin_pad, cout_pad=128,
                     out_dtype=jnp.bfloat16)
    a1 = a1.reshape(n, h, w, 128)

    # ---- branch3x3dbl_2: 3x3 / pad 1 -> 96 (padded to 128 lanes) ----
    p = params["branch3x3dbl_2"]
    a1p = jnp.pad(a1, ((0, 0), (1, 1), (1, 1), (0, 0)))
    wp = w + 2
    a1pf = _flatten_pad_rows(a1p, extra=2)
    a2 = _basic_conv(a1pf, p["w"], p["gamma"], p["beta"], _plan_3x3_s1(wp),
                     h * wp, wp, w, cin_pad=128, cout_pad=128,
                     out_dtype=jnp.bfloat16)
    a2 = a2.reshape(n, h, wp, 128)[:, :, :w, :]                      # (n, h, w, 128)

    # ---- branch3x3dbl_3: 3x3 / stride 2 -> 96 (padded to 128 lanes) ----
    p = params["branch3x3dbl_3"]
    a2s = _space_to_depth2(a2)                                       # (n, h2, w2, 512)
    a2sf = _flatten_pad_rows(a2s, extra=1)
    d3 = _basic_conv(a2sf, p["w"], p["gamma"], p["beta"],
                     _plan_3x3_s2_s2d(w2, 128),
                     ho * w2, w2, wo, cin_pad=128, cout_pad=128,
                     out_dtype=jnp.float32)
    d3 = d3.reshape(n, ho, w2, 128)[:, :, :wo, :96]

    # TODO(synk): write b3/d3/pool directly into channel slices of one concat
    # buffer from the BN/conv kernels to drop this extra output pass.
    out = jnp.concatenate([b3, d3, pool], axis=-1)                   # == dim=1 in NCHW
    return jnp.transpose(out, (0, 3, 1, 2))                          # NHWC -> NCHW


# ----------------------------------------------------------------------------
# Pure-JAX reference with the SAME reduced-precision points as the kernels:
# bf16 conv inputs, f32 accumulation / BN statistics, bf16 storage of the raw
# conv output between the conv and BN passes, bf16 pool input.
# ----------------------------------------------------------------------------
@jax.jit
def _reference_forward(params, x_nchw):
    x = jnp.transpose(x_nchw, (0, 2, 3, 1)).astype(jnp.float32)

    def conv_bn_relu(inp, p, stride, padding):
        w = jnp.transpose(p["w"], (2, 3, 1, 0)).astype(jnp.bfloat16)  # HWIO
        out = jax.lax.conv_general_dilated(
            inp.astype(jnp.bfloat16), w,
            window_strides=(stride, stride),
            padding=((padding, padding), (padding, padding)),
            dimension_numbers=("NHWC", "HWIO", "NHWC"),
            preferred_element_type=jnp.float32)
        mean = jnp.mean(out, axis=(0, 1, 2))
        var = jnp.mean((out - mean) ** 2, axis=(0, 1, 2))
        yq = out.astype(jnp.bfloat16).astype(jnp.float32)   # kernels store y in bf16
        out = (yq - mean) * jax.lax.rsqrt(var + 1e-3) * p["gamma"] + p["beta"]
        return jnp.maximum(out, 0.0)

    b3 = conv_bn_relu(x, params["branch3x3"], 2, 0)
    d = conv_bn_relu(x, params["branch3x3dbl_1"], 1, 0)
    d = conv_bn_relu(d, params["branch3x3dbl_2"], 1, 1)
    d = conv_bn_relu(d, params["branch3x3dbl_3"], 2, 0)
    pool = jax.lax.reduce_window(
        x.astype(jnp.bfloat16).astype(jnp.float32), -jnp.inf, jax.lax.max,
        (1, 3, 3, 1), (1, 2, 2, 1), "VALID")
    out = jnp.concatenate([b3, d, pool], axis=-1)
    return jnp.transpose(out, (0, 3, 1, 2))


if __name__ == "__main__":
    key = jax.random.PRNGKey(0)
    k_params, k_x = jax.random.split(key)

    N, C, H, W = 2, 4, 16, 16
    x = jax.random.normal(k_x, (N, C, H, W), jnp.float32)
    params = init_inception_b_params(k_params, C)

    out = jax.block_until_ready(inception_b_forward(params, x))

    ho = (H - 3) // 2 + 1
    assert out.shape == (N, 384 + 96 + C, ho, ho), out.shape
    assert bool(jnp.all(jnp.isfinite(out)))

    ref = jax.block_until_ready(_reference_forward(params, x))
    err = float(jnp.max(jnp.abs(out - ref)))
    assert err < 3e-2, f"max abs diff vs reference = {err}"

    print("KERNEL_OK")
</pallas_src>

<mosaic_0001>
module attributes {stable_mosaic.version = 11 : i64} {
  func.func @body(%arg0: i32, %arg1: memref<1x65x512xbf16, #tpu.memory_space<vmem>>, %arg2: memref<1152x384xbf16, #tpu.memory_space<vmem>>, %arg3: memref<1x56x384xbf16, #tpu.memory_space<vmem>>, %arg4: memref<1x2x384xf32, #tpu.memory_space<vmem>>, %arg5: memref<1x56x128xbf16, #tpu.memory_space<vmem>>, %arg6: memref<56x384xf32, #tpu.memory_space<vmem>>) attributes {dimension_semantics = [#tpu.dimension_semantics<parallel>], iteration_bounds = array<i64: 2>, scalar_prefetch = 0 : i64, scratch_operands = 1 : i64, tpu.core_type = #tpu.core_type<tc>, window_params = [{transform_indices = @transform_0, window_bounds = array<i64: 1, 65, 512>}, {pipeline_mode = #tpu.pipeline_mode<synchronous>, transform_indices = @transform_1, window_bounds = array<i64: 1152, 384>}, {transform_indices = @transform_2, window_bounds = array<i64: 1, 56, 384>}, {transform_indices = @transform_3, window_bounds = array<i64: 1, 2, 384>}, {transform_indices = @transform_4, window_bounds = array<i64: 1, 56, 128>}]} {
    %c0 = arith.constant 0 : index
    %c0_0 = arith.constant 0 : index
    %c0_1 = arith.constant 0 : index
    %0 = vector.load %arg1[%c0, %c0_0, %c0_1] : memref<1x65x512xbf16, #tpu.memory_space<vmem>>, vector<1x56x256xbf16>
    %1 = vector.shape_cast %0 : vector<1x56x256xbf16> to vector<56x256xbf16>
    %c0_2 = arith.constant 0 : index
    %c0_3 = arith.constant 0 : index
    %2 = vector.load %arg2[%c0_2, %c0_3] : memref<1152x384xbf16, #tpu.memory_space<vmem>>, vector<256x384xbf16>
    %cst = arith.constant dense<0.000000e+00> : vector<56x384xf32>
    %3 = tpu.matmul %1, %2, %cst {dimension_numbers = #tpu.dot_dimension_numbers<[1], [0], [0], [1], [0, 0, 1, 1], [], []>} : vector<56x256xbf16>, vector<256x384xbf16>, vector<56x384xf32> -> vector<56x384xf32>
    %c0_4 = arith.constant 0 : index
    %c0_5 = arith.constant 0 : index
    %4 = vector.load %arg6[%c0_4, %c0_5] : memref<56x384xf32, #tpu.memory_space<vmem>>, vector<56x384xf32>
    tpu.vector_store %arg6[%c0_4, %c0_5], %3 {strides = array<i32>} : memref<56x384xf32, #tpu.memory_space<vmem>>, vector<56x384xf32>,
    %5 = vector.extract_strided_slice %1 {offsets = [0, 0], sizes = [56, 128], strides = [1, 1]} : vector<56x256xbf16> to vector<56x128xbf16>
    %c0_6 = arith.constant 0 : index
    %c0_7 = arith.constant 0 : index
    %c0_8 = arith.constant 0 : index
    %6 = vector.load %arg5[%c0_6, %c0_7, %c0_8] : memref<1x56x128xbf16, #tpu.memory_space<vmem>>, vector<1x56x128xbf16>
    %7 = vector.shape_cast %6 : vector<1x56x128xbf16> to vector<56x128xbf16>
    %8 = vector.shape_cast %5 : vector<56x128xbf16> to vector<1x56x128xbf16>
    tpu.vector_store %arg5[%c0_6, %c0_7, %c0_8], %8 {strides = array<i32>} : memref<1x56x128xbf16, #tpu.memory_space<vmem>>, vector<1x56x128xbf16>,
    %9 = vector.extract_strided_slice %1 {offsets = [0, 128], sizes = [56, 128], strides = [1, 1]} : vector<56x256xbf16> to vector<56x128xbf16>
    %c0_9 = arith.constant 0 : index
    %c0_10 = arith.constant 0 : index
    %c0_11 = arith.constant 0 : index
    %10 = vector.load %arg5[%c0_9, %c0_10, %c0_11] : memref<1x56x128xbf16, #tpu.memory_space<vmem>>, vector<1x56x128xbf16>
    %11 = vector.shape_cast %10 : vector<1x56x128xbf16> to vector<56x128xbf16>
    %12 = arith.maximumf %11, %9 : vector<56x128xbf16>
    %c0_12 = arith.constant 0 : index
    %c0_13 = arith.constant 0 : index
    %c0_14 = arith.constant 0 : index
    %13 = vector.load %arg5[%c0_12, %c0_13, %c0_14] : memref<1x56x128xbf16, #tpu.memory_space<vmem>>, vector<1x56x128xbf16>
    %14 = vector.shape_cast %13 : vector<1x56x128xbf16> to vector<56x128xbf16>
    %15 = vector.shape_cast %12 : vector<56x128xbf16> to vector<1x56x128xbf16>
    tpu.vector_store %arg5[%c0_12, %c0_13, %c0_14], %15 {strides = array<i32>} : memref<1x56x128xbf16, #tpu.memory_space<vmem>>, vector<1x56x128xbf16>,
    %c0_15 = arith.constant 0 : index
    %c1 = arith.constant 1 : index
    %c0_16 = arith.constant 0 : index
    %16 = vector.load %arg1[%c0_15, %c1, %c0_16] : memref<1x65x512xbf16, #tpu.memory_space<vmem>>, vector<1x56x128xbf16>
    %17 = vector.shape_cast %16 : vector<1x56x128xbf16> to vector<56x128xbf16>
    %c256 = arith.constant 256 : index
    %c0_17 = arith.constant 0 : index
    %18 = vector.load %arg2[%c256, %c0_17] : memref<1152x384xbf16, #tpu.memory_space<vmem>>, vector<128x384xbf16>
    %cst_18 = arith.constant dense<0.000000e+00> : vector<56x384xf32>
    %19 = tpu.matmul %17, %18, %cst_18 {dimension_numbers = #tpu.dot_dimension_numbers<[1], [0], [0], [1], [0, 0, 1, 1], [], []>} : vector<56x128xbf16>, vector<128x384xbf16>, vector<56x384xf32> -> vector<56x384xf32>
    %c0_19 = arith.constant 0 : index
    %c0_20 = arith.constant 0 : index
    %20 = vector.load %arg6[%c0_19, %c0_20] : memref<56x384xf32, #tpu.memory_space<vmem>>, vector<56x384xf32>
    %21 = arith.addf %20, %19 : vector<56x384xf32>
    %c0_21 = arith.constant 0 : index
    %c0_22 = arith.constant 0 : index
    %22 = vector.load %arg6[%c0_21, %c0_22] : memref<56x384xf32, #tpu.memory_space<vmem>>, vector<56x384xf32>
    tpu.vector_store %arg6[%c0_21, %c0_22], %21 {strides = array<i32>} : memref<56x384xf32, #tpu.memory_space<vmem>>, vector<56x384xf32>,
    %c0_23 = arith.constant 0 : index
    %c0_24 = arith.constant 0 : index
    %c0_25 = arith.constant 0 : index
    %23 = vector.load %arg5[%c0_23, %c0_24, %c0_25] : memref<1x56x128xbf16, #tpu.memory_space<vmem>>, vector<1x56x128xbf16>
    %24 = vector.shape_cast %23 : vector<1x56x128xbf16> to vector<56x128xbf16>
    %25 = arith.maximumf %24, %17 : vector<56x128xbf16>
    %c0_26 = arith.constant 0 : index
    %c0_27 = arith.constant 0 : index
    %c0_28 = arith.constant 0 : index
    %26 = vector.load %arg5[%c0_26, %c0_27, %c0_28] : memref<1x56x128xbf16, #tpu.memory_space<vmem>>, vector<1x56x128xbf16>
    %27 = vector.shape_cast %26 : vector<1x56x128xbf16> to vector<56x128xbf16>
    %28 = vector.shape_cast %25 : vector<56x128xbf16> to vector<1x56x128xbf16>
    tpu.vector_store %arg5[%c0_26, %c0_27, %c0_28], %28 {strides = array<i32>} : memref<1x56x128xbf16, #tpu.memory_space<vmem>>, vector<1x56x128xbf16>,
    %c0_29 = arith.constant 0 : index
    %c0_30 = arith.constant 0 : index
    %c256_31 = arith.constant 256 : index
    %29 = vector.load %arg1[%c0_29, %c0_30, %c256_31] : memref<1x65x512xbf16, #tpu.memory_space<vmem>>, vector<1x56x256xbf16>
    %30 = vector.shape_cast %29 : vector<1x56x256xbf16> to vector<56x256xbf16>
    %c384 = arith.constant 384 : index
    %c0_32 = arith.constant 0 : index
    %31 = vector.load %arg2[%c384, %c0_32] : memref<1152x384xbf16, #tpu.memory_space<vmem>>, vector<256x384xbf16>
    %cst_33 = arith.constant dense<0.000000e+00> : vector<56x384xf32>
    %32 = tpu.matmul %30, %31, %cst_33 {dimension_numbers = #tpu.dot_dimension_numbers<[1], [0], [0], [1], [0, 0, 1, 1], [], []>} : vector<56x256xbf16>, vector<256x384xbf16>, vector<56x384xf32> -> vector<56x384xf32>
    %c0_34 = arith.constant 0 : index
    %c0_35 = arith.constant 0 : index
    %33 = vector.load %arg6[%c0_34, %c0_35] : memref<56x384xf32, #tpu.memory_space<vmem>>, vector<56x384xf32>
    %34 = arith.addf %33, %32 : vector<56x384xf32>
    %c0_36 = arith.constant 0 : index
    %c0_37 = arith.constant 0 : index
    %35 = vector.load %arg6[%c0_36, %c0_37] : memref<56x384xf32, #tpu.memory_space<vmem>>, vector<56x384xf32>
    tpu.vector_store %arg6[%c0_36, %c0_37], %34 {strides = array<i32>} : memref<56x384xf32, #tpu.memory_space<vmem>>, vector<56x384xf32>,
    %36 = vector.extract_strided_slice %30 {offsets = [0, 0], sizes = [56, 128], strides = [1, 1]} : vector<56x256xbf16> to vector<56x128xbf16>
    %c0_38 = arith.constant 0 : index
    %c0_39 = arith.constant 0 : index
    %c0_40 = arith.constant 0 : index
    %37 = vector.load %arg5[%c0_38, %c0_39, %c0_40] : memref<1x56x128xbf16, #tpu.memory_space<vmem>>, vector<1x56x128xbf16>
    %38 = vector.shape_cast %37 : vector<1x56x128xbf16> to vector<56x128xbf16>
    %39 = arith.maximumf %38, %36 : vector<56x128xbf16>
    %c0_41 = arith.constant 0 : index
    %c0_42 = arith.constant 0 : index
    %c0_43 = arith.constant 0 : index
    %40 = vector.load %arg5[%c0_41, %c0_42, %c0_43] : memref<1x56x128xbf16, #tpu.memory_space<vmem>>, vector<1x56x128xbf16>
    %41 = vector.shape_cast %40 : vector<1x56x128xbf16> to vector<56x128xbf16>
    %42 = vector.shape_cast %39 : vector<56x128xbf16> to vector<1x56x128xbf16>
    tpu.vector_store %arg5[%c0_41, %c0_42, %c0_43], %42 {strides = array<i32>} : memref<1x56x128xbf16, #tpu.memory_space<vmem>>, vector<1x56x128xbf16>,
    %43 = vector.extract_strided_slice %30 {offsets = [0, 128], sizes = [56, 128], strides = [1, 1]} : vector<56x256xbf16> to vector<56x128xbf16>
    %c0_44 = arith.constant 0 : index
    %c0_45 = arith.constant 0 : index
    %c0_46 = arith.constant 0 : index
    %44 = vector.load %arg5[%c0_44, %c0_45, %c0_46] : memref<1x56x128xbf16, #tpu.memory_space<vmem>>, vector<1x56x128xbf16>
    %45 = vector.shape_cast %44 : vector<1x56x128xbf16> to vector<56x128xbf16>
    %46 = arith.maximumf %45, %43 : vector<56x128xbf16>
    %c0_47 = arith.constant 0 : index
    %c0_48 = arith.constant 0 : index
    %c0_49 = arith.constant 0 : index
    %47 = vector.load %arg5[%c0_47, %c0_48, %c0_49] : memref<1x56x128xbf16, #tpu.memory_space<vmem>>, vector<1x56x128xbf16>
    %48 = vector.shape_cast %47 : vector<1x56x128xbf16> to vector<56x128xbf16>
    %49 = vector.shape_cast %46 : vector<56x128xbf16> to vector<1x56x128xbf16>
    tpu.vector_store %arg5[%c0_47, %c0_48, %c0_49], %49 {strides = array<i32>} : memref<1x56x128xbf16, #tpu.memory_space<vmem>>, vector<1x56x128xbf16>,
    %c0_50 = arith.constant 0 : index
    %c1_51 = arith.constant 1 : index
    %c256_52 = arith.constant 256 : index
    %50 = vector.load %arg1[%c0_50, %c1_51, %c256_52] : memref<1x65x512xbf16, #tpu.memory_space<vmem>>, vector<1x56x128xbf16>
    %51 = vector.shape_cast %50 : vector<1x56x128xbf16> to vector<56x128xbf16>
    %c640 = arith.constant 640 : index
    %c0_53 = arith.constant 0 : index
    %52 = vector.load %arg2[%c640, %c0_53] : memref<1152x384xbf16, #tpu.memory_space<vmem>>, vector<128x384xbf16>
    %cst_54 = arith.constant dense<0.000000e+00> : vector<56x384xf32>
    %53 = tpu.matmul %51, %52, %cst_54 {dimension_numbers = #tpu.dot_dimension_numbers<[1], [0], [0], [1], [0, 0, 1, 1], [], []>} : vector<56x128xbf16>, vector<128x384xbf16>, vector<56x384xf32> -> vector<56x384xf32>
    %c0_55 = arith.constant 0 : index
    %c0_56 = arith.constant 0 : index
    %54 = vector.load %arg6[%c0_55, %c0_56] : memref<56x384xf32, #tpu.memory_space<vmem>>, vector<56x384xf32>
    %55 = arith.addf %54, %53 : vector<56x384xf32>
    %c0_57 = arith.constant 0 : index
    %c0_58 = arith.constant 0 : index
    %56 = vector.load %arg6[%c0_57, %c0_58] : memref<56x384xf32, #tpu.memory_space<vmem>>, vector<56x384xf32>
    tpu.vector_store %arg6[%c0_57, %c0_58], %55 {strides = array<i32>} : memref<56x384xf32, #tpu.memory_space<vmem>>, vector<56x384xf32>,
    %c0_59 = arith.constant 0 : index
    %c0_60 = arith.constant 0 : index
    %c0_61 = arith.constant 0 : index
    %57 = vector.load %arg5[%c0_59, %c0_60, %c0_61] : memref<1x56x128xbf16, #tpu.memory_space<vmem>>, vector<1x56x128xbf16>
    %58 = vector.shape_cast %57 : vector<1x56x128xbf16> to vector<56x128xbf16>
    %59 = arith.maximumf %58, %51 : vector<56x128xbf16>
    %c0_62 = arith.constant 0 : index
    %c0_63 = arith.constant 0 : index
    %c0_64 = arith.constant 0 : index
    %60 = vector.load %arg5[%c0_62, %c0_63, %c0_64] : memref<1x56x128xbf16, #tpu.memory_space<vmem>>, vector<1x56x128xbf16>
    %61 = vector.shape_cast %60 : vector<1x56x128xbf16> to vector<56x128xbf16>
    %62 = vector.shape_cast %59 : vector<56x128xbf16> to vector<1x56x128xbf16>
    tpu.vector_store %arg5[%c0_62, %c0_63, %c0_64], %62 {strides = array<i32>} : memref<1x56x128xbf16, #tpu.memory_space<vmem>>, vector<1x56x128xbf16>,
    %c0_65 = arith.constant 0 : index
    %c8 = arith.constant 8 : index
    %c0_66 = arith.constant 0 : index
    %63 = vector.load %arg1[%c0_65, %c8, %c0_66] : memref<1x65x512xbf16, #tpu.memory_space<vmem>>, vector<1x56x256xbf16>
    %64 = vector.shape_cast %63 : vector<1x56x256xbf16> to vector<56x256xbf16>
    %c768 = arith.constant 768 : index
    %c0_67 = arith.constant 0 : index
    %65 = vector.load %arg2[%c768, %c0_67] : memref<1152x384xbf16, #tpu.memory_space<vmem>>, vector<256x384xbf16>
    %cst_68 = arith.constant dense<0.000000e+00> : vector<56x384xf32>
    %66 = tpu.matmul %64, %65, %cst_68 {dimension_numbers = #tpu.dot_dimension_numbers<[1], [0], [0], [1], [0, 0, 1, 1], [], []>} : vector<56x256xbf16>, vector<256x384xbf16>, vector<56x384xf32> -> vector<56x384xf32>
    %c0_69 = arith.constant 0 : index
    %c0_70 = arith.constant 0 : index
    %67 = vector.load %arg6[%c0_69, %c0_70] : memref<56x384xf32, #tpu.memory_space<vmem>>, vector<56x384xf32>
    %68 = arith.addf %67, %66 : vector<56x384xf32>
    %c0_71 = arith.constant 0 : index
    %c0_72 = arith.constant 0 : index
    %69 = vector.load %arg6[%c0_71, %c0_72] : memref<56x384xf32, #tpu.memory_space<vmem>>, vector<56x384xf32>
    tpu.vector_store %arg6[%c0_71, %c0_72], %68 {strides = array<i32>} : memref<56x384xf32, #tpu.memory_space<vmem>>, vector<56x384xf32>,
    %70 = vector.extract_strided_slice %64 {offsets = [0, 0], sizes = [56, 128], strides = [1, 1]} : vector<56x256xbf16> to vector<56x128xbf16>
    %c0_73 = arith.constant 0 : index
    %c0_74 = arith.constant 0 : index
    %c0_75 = arith.constant 0 : index
    %71 = vector.load %arg5[%c0_73, %c0_74, %c0_75] : memref<1x56x128xbf16, #tpu.memory_space<vmem>>, vector<1x56x128xbf16>
    %72 = vector.shape_cast %71 : vector<1x56x128xbf16> to vector<56x128xbf16>
    %73 = arith.maximumf %72, %70 : vector<56x128xbf16>
    %c0_76 = arith.constant 0 : index
    %c0_77 = arith.constant 0 : index
    %c0_78 = arith.constant 0 : index
    %74 = vector.load %arg5[%c0_76, %c0_77, %c0_78] : memref<1x56x128xbf16, #tpu.memory_space<vmem>>, vector<1x56x128xbf16>
    %75 = vector.shape_cast %74 : vector<1x56x128xbf16> to vector<56x128xbf16>
    %76 = vector.shape_cast %73 : vector<56x128xbf16> to vector<1x56x128xbf16>
    tpu.vector_store %arg5[%c0_76, %c0_77, %c0_78], %76 {strides = array<i32>} : memref<1x56x128xbf16, #tpu.memory_space<vmem>>, vector<1x56x128xbf16>,
    %77 = vector.extract_strided_slice %64 {offsets = [0, 128], sizes = [56, 128], strides = [1, 1]} : vector<56x256xbf16> to vector<56x128xbf16>
    %c0_79 = arith.constant 0 : index
    %c0_80 = arith.constant 0 : index
    %c0_81 = arith.constant 0 : index
    %78 = vector.load %arg5[%c0_79, %c0_80, %c0_81] : memref<1x56x128xbf16, #tpu.memory_space<vmem>>, vector<1x56x128xbf16>
    %79 = vector.shape_cast %78 : vector<1x56x128xbf16> to vector<56x128xbf16>
    %80 = arith.maximumf %79, %77 : vector<56x128xbf16>
    %c0_82 = arith.constant 0 : index
    %c0_83 = arith.constant 0 : index
    %c0_84 = arith.constant 0 : index
    %81 = vector.load %arg5[%c0_82, %c0_83, %c0_84] : memref<1x56x128xbf16, #tpu.memory_space<vmem>>, vector<1x56x128xbf16>
    %82 = vector.shape_cast %81 : vector<1x56x128xbf16> to vector<56x128xbf16>
    %83 = vector.shape_cast %80 : vector<56x128xbf16> to vector<1x56x128xbf16>
    tpu.vector_store %arg5[%c0_82, %c0_83, %c0_84], %83 {strides = array<i32>} : memref<1x56x128xbf16, #tpu.memory_space<vmem>>, vector<1x56x128xbf16>,
    %c0_85 = arith.constant 0 : index
    %c9 = arith.constant 9 : index
    %c0_86 = arith.constant 0 : index
    %84 = vector.load %arg1[%c0_85, %c9, %c0_86] : memref<1x65x512xbf16, #tpu.memory_space<vmem>>, vector<1x56x128xbf16>
    %85 = vector.shape_cast %84 : vector<1x56x128xbf16> to vector<56x128xbf16>
    %c1024 = arith.constant 1024 : index
    %c0_87 = arith.constant 0 : index
    %86 = vector.load %arg2[%c1024, %c0_87] : memref<1152x384xbf16, #tpu.memory_space<vmem>>, vector<128x384xbf16>
    %cst_88 = arith.constant dense<0.000000e+00> : vector<56x384xf32>
    %87 = tpu.matmul %85, %86, %cst_88 {dimension_numbers = #tpu.dot_dimension_numbers<[1], [0], [0], [1], [0, 0, 1, 1], [], []>} : vector<56x128xbf16>, vector<128x384xbf16>, vector<56x384xf32> -> vector<56x384xf32>
    %c0_89 = arith.constant 0 : index
    %c0_90 = arith.constant 0 : index
    %88 = vector.load %arg6[%c0_89, %c0_90] : memref<56x384xf32, #tpu.memory_space<vmem>>, vector<56x384xf32>
    %89 = arith.addf %88, %87 : vector<56x384xf32>
    %c0_91 = arith.constant 0 : index
    %c0_92 = arith.constant 0 : index
    %90 = vector.load %arg6[%c0_91, %c0_92] : memref<56x384xf32, #tpu.memory_space<vmem>>, vector<56x384xf32>
    tpu.vector_store %arg6[%c0_91, %c0_92], %89 {strides = array<i32>} : memref<56x384xf32, #tpu.memory_space<vmem>>, vector<56x384xf32>,
    %c0_93 = arith.constant 0 : index
    %c0_94 = arith.constant 0 : index
    %c0_95 = arith.constant 0 : index
    %91 = vector.load %arg5[%c0_93, %c0_94, %c0_95] : memref<1x56x128xbf16, #tpu.memory_space<vmem>>, vector<1x56x128xbf16>
    %92 = vector.shape_cast %91 : vector<1x56x128xbf16> to vector<56x128xbf16>
    %93 = arith.maximumf %92, %85 : vector<56x128xbf16>
    %c0_96 = arith.constant 0 : index
    %c0_97 = arith.constant 0 : index
    %c0_98 = arith.constant 0 : index
    %94 = vector.load %arg5[%c0_96, %c0_97, %c0_98] : memref<1x56x128xbf16, #tpu.memory_space<vmem>>, vector<1x56x128xbf16>
    %95 = vector.shape_cast %94 : vector<1x56x128xbf16> to vector<56x128xbf16>
    %96 = vector.shape_cast %93 : vector<56x128xbf16> to vector<1x56x128xbf16>
    tpu.vector_store %arg5[%c0_96, %c0_97, %c0_98], %96 {strides = array<i32>} : memref<1x56x128xbf16, #tpu.memory_space<vmem>>, vector<1x56x128xbf16>,
    %c0_99 = arith.constant 0 : index
    %c0_100 = arith.constant 0 : index
    %97 = vector.load %arg6[%c0_99, %c0_100] : memref<56x384xf32, #tpu.memory_space<vmem>>, vector<56x384xf32>
    %98 = tpu.iota {dimensions = array<i32: 0>} : vector<56x384xi32>
    %c8_i32 = arith.constant 8 : i32
    %c0_i32 = arith.constant 0 : i32
    %99 = arith.cmpi eq, %c8_i32, %c0_i32 : i32
    %c1_i32 = arith.constant 1 : i32
    %100 = arith.select %99, %c1_i32, %c8_i32 : i32
    %101 = vector.broadcast %100 : i32 to vector<56x384xi32>
    %102 = arith.remsi %98, %101 : vector<56x384xi32>
    %c0_i32_101 = arith.constant 0 : i32
    %103 = vector.broadcast %c0_i32_101 : i32 to vector<56x384xi32>
    %104 = arith.cmpi ne, %102, %103 : vector<56x384xi32>
    %c0_i32_102 = arith.constant 0 : i32
    %105 = vector.broadcast %c0_i32_102 : i32 to vector<56x384xi32>
    %106 = arith.cmpi slt, %102, %105 : vector<56x384xi32>
    %c0_i32_103 = arith.constant 0 : i32
    %107 = arith.cmpi slt, %100, %c0_i32_103 : i32
    %108 = vector.broadcast %107 : i1 to vector<56x384xi1>
    %109 = vector.broadcast %108 : vector<56x384xi1> to vector<56x384xi1>
    %110 = arith.xori %106, %109 : vector<56x384xi1>
    %111 = arith.andi %110, %104 : vector<56x384xi1>
    %112 = vector.broadcast %100 : i32 to vector<56x384xi32>
    %113 = arith.addi %102, %112 : vector<56x384xi32>
    %114 = arith.select %111, %113, %102 : vector<56x384xi1>, vector<56x384xi32>
    %c7_i32 = arith.constant 7 : i32
    %115 = vector.broadcast %c7_i32 : i32 to vector<56x384xi32>
    %116 = arith.cmpi slt, %114, %115 : vector<56x384xi32>
    %cst_104 = arith.constant 0.000000e+00 : f32
    %117 = vector.broadcast %cst_104 : f32 to vector<56x384xf32>
    %118 = arith.select %116, %97, %117 : vector<56x384xi1>, vector<56x384xf32>
    %cst_105 = arith.constant dense<0.000000e+00> : vector<384xf32>
    %119 = vector.multi_reduction <add>, %118, %cst_105 [0] : vector<56x384xf32> to vector<384xf32>
    %120 = vector.shape_cast %119 : vector<384xf32> to vector<1x384xf32>
    %c0_106 = arith.constant 0 : index
    %c0_107 = arith.constant 0 : index
    %c0_108 = arith.constant 0 : index
    %121 = vector.load %arg4[%c0_106, %c0_107, %c0_108] : memref<1x2x384xf32, #tpu.memory_space<vmem>>, vector<1x1x384xf32>
    %122 = vector.shape_cast %121 : vector<1x1x384xf32> to vector<1x384xf32>
    %123 = vector.shape_cast %120 : vector<1x384xf32> to vector<1x1x384xf32>
    tpu.vector_store %arg4[%c0_106, %c0_107, %c0_108], %123 {strides = array<i32>} : memref<1x2x384xf32, #tpu.memory_space<vmem>>, vector<1x1x384xf32>,
    %124 = arith.mulf %118, %97 : vector<56x384xf32>
    %cst_109 = arith.constant dense<0.000000e+00> : vector<384xf32>
    %125 = vector.multi_reduction <add>, %124, %cst_109 [0] : vector<56x384xf32> to vector<384xf32>
    %126 = vector.shape_cast %125 : vector<384xf32> to vector<1x384xf32>
    %c0_110 = arith.constant 0 : index
    %c1_111 = arith.constant 1 : index
    %c0_112 = arith.constant 0 : index
    %127 = vector.load %arg4[%c0_110, %c1_111, %c0_112] : memref<1x2x384xf32, #tpu.memory_space<vmem>>, vector<1x1x384xf32>
    %128 = vector.shape_cast %127 : vector<1x1x384xf32> to vector<1x384xf32>
    %129 = vector.shape_cast %126 : vector<1x384xf32> to vector<1x1x384xf32>
    tpu.vector_store %arg4[%c0_110, %c1_111, %c0_112], %129 {strides = array<i32>} : memref<1x2x384xf32, #tpu.memory_space<vmem>>, vector<1x1x384xf32>,
    %130 = arith.truncf %97 : vector<56x384xf32> to vector<56x384xbf16>
    %c0_113 = arith.constant 0 : index
    %c0_114 = arith.constant 0 : index
    %c0_115 = arith.constant 0 : index
    %131 = vector.load %arg3[%c0_113, %c0_114, %c0_115] : memref<1x56x384xbf16, #tpu.memory_space<vmem>>, vector<1x56x384xbf16>
    %132 = vector.shape_cast %131 : vector<1x56x384xbf16> to vector<56x384xbf16>
    %133 = vector.shape_cast %130 : vector<56x384xbf16> to vector<1x56x384xbf16>
    tpu.vector_store %arg3[%c0_113, %c0_114, %c0_115], %133 {strides = array<i32>} : memref<1x56x384xbf16, #tpu.memory_space<vmem>>, vector<1x56x384xbf16>,
    return
  }
  func.func @transform_0(%arg0: i32) -> (i32, i32, i32) {
    %c0_i32 = arith.constant 0 : i32
    %c0_i32_0 = arith.constant 0 : i32
    %c0_i32_1 = arith.constant 0 : i32
    return %arg0, %c0_i32, %c0_i32_0 : i32, i32, i32
  }
  func.func @transform_1(%arg0: i32) -> (i32, i32) {
    %c0_i32 = arith.constant 0 : i32
    %c0_i32_0 = arith.constant 0 : i32
    %c0_i32_1 = arith.constant 0 : i32
    return %c0_i32, %c0_i32_0 : i32, i32
  }
  func.func @transform_2(%arg0: i32) -> (i32, i32, i32) {
    %c0_i32 = arith.constant 0 : i32
    %c0_i32_0 = arith.constant 0 : i32
    %c0_i32_1 = arith.constant 0 : i32
    return %arg0, %c0_i32, %c0_i32_0 : i32, i32, i32
  }
  func.func @transform_3(%arg0: i32) -> (i32, i32, i32) {
    %c0_i32 = arith.constant 0 : i32
    %c0_i32_0 = arith.constant 0 : i32
    %c0_i32_1 = arith.constant 0 : i32
    return %arg0, %c0_i32, %c0_i32_0 : i32, i32, i32
  }
  func.func @transform_4(%arg0: i32) -> (i32, i32, i32) {
    %c0_i32 = arith.constant 0 : i32
    %c0_i32_0 = arith.constant 0 : i32
    %c0_i32_1 = arith.constant 0 : i32
    return %arg0, %c0_i32, %c0_i32_0 : i32, i32, i32
  }
}

module attributes {stable_mosaic.version = 11 : i64} {
  func.func @_bn_relu_kernel(%arg0: i32, %arg1: memref<1x56x384xbf16, #tpu.memory_space<vmem>>, %arg2: memref<1x1x384xf32, #tpu.memory_space<vmem>>, %arg3: memref<1x1x384xf32, #tpu.memory_space<vmem>>, %arg4: memref<1x56x384xf32, #tpu.memory_space<vmem>>) attributes {dimension_semantics = [#tpu.dimension_semantics<parallel>], iteration_bounds = array<i64: 2>, scalar_prefetch = 0 : i64, scratch_operands = 0 : i64, tpu.core_type = #tpu.core_type<tc>, window_params = [{transform_indices = @transform_0, window_bounds = array<i64: 1, 56, 384>}, {pipeline_mode = #tpu.pipeline_mode<synchronous>, transform_indices = @transform_1, window_bounds = array<i64: 1, 1, 384>}, {pipeline_mode = #tpu.pipeline_mode<synchronous>, transform_indices = @transform_2, window_bounds = array<i64: 1, 1, 384>}, {transform_indices = @transform_3, window_bounds = array<i64: 1, 56, 384>}]} {
    %c0 = arith.constant 0 : index
    %c0_0 = arith.constant 0 : index
    %c0_1 = arith.constant 0 : index
    %0 = vector.load %arg1[%c0, %c0_0, %c0_1] : memref<1x56x384xbf16, #tpu.memory_space<vmem>>, vector<1x56x384xbf16>
    %1 = arith.extf %0 : vector<1x56x384xbf16> to vector<1x56x384xf32>
    %c0_2 = arith.constant 0 : index
    %c0_3 = arith.constant 0 : index
    %c0_4 = arith.constant 0 : index
    %2 = vector.load %arg2[%c0_2, %c0_3, %c0_4] : memref<1x1x384xf32, #tpu.memory_space<vmem>>, vector<1x1x384xf32>
    %3 = vector.broadcast %2 : vector<1x1x384xf32> to vector<1x56x384xf32>
    %4 = arith.mulf %1, %3 : vector<1x56x384xf32>
    %c0_5 = arith.constant 0 : index
    %c0_6 = arith.constant 0 : index
    %c0_7 = arith.constant 0 : index
    %5 = vector.load %arg3[%c0_5, %c0_6, %c0_7] : memref<1x1x384xf32, #tpu.memory_space<vmem>>, vector<1x1x384xf32>
    %6 = vector.broadcast %5 : vector<1x1x384xf32> to vector<1x56x384xf32>
    %7 = arith.addf %4, %6 : vector<1x56x384xf32>
    %cst = arith.constant 0.000000e+00 : f32
    %8 = vector.broadcast %cst : f32 to vector<1x56x384xf32>
    %9 = arith.maximumf %7, %8 : vector<1x56x384xf32>
    %c0_8 = arith.constant 0 : index
    %c0_9 = arith.constant 0 : index
    %c0_10 = arith.constant 0 : index
    %10 = vector.load %arg4[%c0_8, %c0_9, %c0_10] : memref<1x56x384xf32, #tpu.memory_space<vmem>>, vector<1x56x384xf32>
    tpu.vector_store %arg4[%c0_8, %c0_9, %c0_10], %9 {strides = array<i32>} : memref<1x56x384xf32, #tpu.memory_space<vmem>>, vector<1x56x384xf32>,
    return
  }
  func.func @transform_0(%arg0: i32) -> (i32, i32, i32) {
    %c0_i32 = arith.constant 0 : i32
    %c0_i32_0 = arith.constant 0 : i32
    %c0_i32_1 = arith.constant 0 : i32
    return %arg0, %c0_i32, %c0_i32_0 : i32, i32, i32
  }
  func.func @transform_1(%arg0: i32) -> (i32, i32, i32) {
    %c0_i32 = arith.constant 0 : i32
    %c0_i32_0 = arith.constant 0 : i32
    %c0_i32_1 = arith.constant 0 : i32
    %c0_i32_2 = arith.constant 0 : i32
    return %c0_i32, %c0_i32_0, %c0_i32_1 : i32, i32, i32
  }
  func.func @transform_2(%arg0: i32) -> (i32, i32, i32) {
    %c0_i32 = arith.constant 0 : i32
    %c0_i32_0 = arith.constant 0 : i32
    %c0_i32_1 = arith.constant 0 : i32
    %c0_i32_2 = arith.constant 0 : i32
    return %c0_i32, %c0_i32_0, %c0_i32_1 : i32, i32, i32
  }
  func.func @transform_3(%arg0: i32) -> (i32, i32, i32) {
    %c0_i32 = arith.constant 0 : i32
    %c0_i32_0 = arith.constant 0 : i32
    %c0_i32_1 = arith.constant 0 : i32
    return %arg0, %c0_i32, %c0_i32_0 : i32, i32, i32
  }
}

module attributes {stable_mosaic.version = 11 : i64} {
  func.func @kernel(%arg0: i32, %arg1: memref<1x256x128xbf16, #tpu.memory_space<vmem>>, %arg2: memref<128x128xbf16, #tpu.memory_space<vmem>>, %arg3: memref<1x256x128xbf16, #tpu.memory_space<vmem>>, %arg4: memref<1x2x128xf32, #tpu.memory_space<vmem>>, %arg5: memref<256x128xf32, #tpu.memory_space<vmem>>) attributes {dimension_semantics = [#tpu.dimension_semantics<parallel>], iteration_bounds = array<i64: 2>, scalar_prefetch = 0 : i64, scratch_operands = 1 : i64, tpu.core_type = #tpu.core_type<tc>, window_params = [{transform_indices = @transform_0, window_bounds = array<i64: 1, 256, 128>}, {pipeline_mode = #tpu.pipeline_mode<synchronous>, transform_indices = @transform_1, window_bounds = array<i64: 128, 128>}, {transform_indices = @transform_2, window_bounds = array<i64: 1, 256, 128>}, {transform_indices = @transform_3, window_bounds = array<i64: 1, 2, 128>}]} {
    %c0 = arith.constant 0 : index
    %c0_0 = arith.constant 0 : index
    %c0_1 = arith.constant 0 : index
    %0 = vector.load %arg1[%c0, %c0_0, %c0_1] : memref<1x256x128xbf16, #tpu.memory_space<vmem>>, vector<1x256x128xbf16>
    %1 = vector.shape_cast %0 : vector<1x256x128xbf16> to vector<256x128xbf16>
    %c0_2 = arith.constant 0 : index
    %c0_3 = arith.constant 0 : index
    %2 = vector.load %arg2[%c0_2, %c0_3] : memref<128x128xbf16, #tpu.memory_space<vmem>>, vector<128x128xbf16>
    %cst = arith.constant dense<0.000000e+00> : vector<256x128xf32>
    %3 = tpu.matmul %1, %2, %cst {dimension_numbers = #tpu.dot_dimension_numbers<[1], [0], [0], [1], [0, 0, 1, 1], [], []>} : vector<256x128xbf16>, vector<128x128xbf16>, vector<256x128xf32> -> vector<256x128xf32>
    %c0_4 = arith.constant 0 : index
    %c0_5 = arith.constant 0 : index
    %4 = vector.load %arg5[%c0_4, %c0_5] : memref<256x128xf32, #tpu.memory_space<vmem>>, vector<256x128xf32>
    tpu.vector_store %arg5[%c0_4, %c0_5], %3 {strides = array<i32>} : memref<256x128xf32, #tpu.memory_space<vmem>>, vector<256x128xf32>,
    %c0_6 = arith.constant 0 : index
    %c0_7 = arith.constant 0 : index
    %5 = vector.load %arg5[%c0_6, %c0_7] : memref<256x128xf32, #tpu.memory_space<vmem>>, vector<256x128xf32>
    %cst_8 = arith.constant dense<0.000000e+00> : vector<128xf32>
    %6 = vector.multi_reduction <add>, %5, %cst_8 [0] : vector<256x128xf32> to vector<128xf32>
    %7 = vector.shape_cast %6 : vector<128xf32> to vector<1x128xf32>
    %c0_9 = arith.constant 0 : index
    %c0_10 = arith.constant 0 : index
    %c0_11 = arith.constant 0 : index
    %8 = vector.load %arg4[%c0_9, %c0_10, %c0_11] : memref<1x2x128xf32, #tpu.memory_space<vmem>>, vector<1x1x128xf32>
    %9 = vector.shape_cast %8 : vector<1x1x128xf32> to vector<1x128xf32>
    %10 = vector.shape_cast %7 : vector<1x128xf32> to vector<1x1x128xf32>
    tpu.vector_store %arg4[%c0_9, %c0_10, %c0_11], %10 {strides = array<i32>} : memref<1x2x128xf32, #tpu.memory_space<vmem>>, vector<1x1x128xf32>,
    %11 = arith.mulf %5, %5 : vector<256x128xf32>
    %cst_12 = arith.constant dense<0.000000e+00> : vector<128xf32>
    %12 = vector.multi_reduction <add>, %11, %cst_12 [0] : vector<256x128xf32> to vector<128xf32>
    %13 = vector.shape_cast %12 : vector<128xf32> to vector<1x128xf32>
    %c0_13 = arith.constant 0 : index
    %c1 = arith.constant 1 : index
    %c0_14 = arith.constant 0 : index
    %14 = vector.load %arg4[%c0_13, %c1, %c0_14] : memref<1x2x128xf32, #tpu.memory_space<vmem>>, vector<1x1x128xf32>
    %15 = vector.shape_cast %14 : vector<1x1x128xf32> to vector<1x128xf32>
    %16 = vector.shape_cast %13 : vector<1x128xf32> to vector<1x1x128xf32>
    tpu.vector_store %arg4[%c0_13, %c1, %c0_14], %16 {strides = array<i32>} : memref<1x2x128xf32, #tpu.memory_space<vmem>>, vector<1x1x128xf32>,
    %17 = arith.truncf %5 : vector<256x128xf32> to vector<256x128xbf16>
    %c0_15 = arith.constant 0 : index
    %c0_16 = arith.constant 0 : index
    %c0_17 = arith.constant 0 : index
    %18 = vector.load %arg3[%c0_15, %c0_16, %c0_17] : memref<1x256x128xbf16, #tpu.memory_space<vmem>>, vector<1x256x128xbf16>
    %19 = vector.shape_cast %18 : vector<1x256x128xbf16> to vector<256x128xbf16>
    %20 = vector.shape_cast %17 : vector<256x128xbf16> to vector<1x256x128xbf16>
    tpu.vector_store %arg3[%c0_15, %c0_16, %c0_17], %20 {strides = array<i32>} : memref<1x256x128xbf16, #tpu.memory_space<vmem>>, vector<1x256x128xbf16>,
    return
  }
  func.func @transform_0(%arg0: i32) -> (i32, i32, i32) {
    %c0_i32 = arith.constant 0 : i32
    %c0_i32_0 = arith.constant 0 : i32
    %c0_i32_1 = arith.constant 0 : i32
    return %arg0, %c0_i32, %c0_i32_0 : i32, i32, i32
  }
  func.func @transform_1(%arg0: i32) -> (i32, i32) {
    %c0_i32 = arith.constant 0 : i32
    %c0_i32_0 = arith.constant 0 : i32
    %c0_i32_1 = arith.constant 0 : i32
    return %c0_i32, %c0_i32_0 : i32, i32
  }
  func.func @transform_2(%arg0: i32) -> (i32, i32, i32) {
    %c0_i32 = arith.constant 0 : i32
    %c0_i32_0 = arith.constant 0 : i32
    %c0_i32_1 = arith.constant 0 : i32
    return %arg0, %c0_i32, %c0_i32_0 : i32, i32, i32
  }
  func.func @transform_3(%arg0: i32) -> (i32, i32, i32) {
    %c0_i32 = arith.constant 0 : i32
    %c0_i32_0 = arith.constant 0 : i32
    %c0_i32_1 = arith.constant 0 : i32
    return %arg0, %c0_i32, %c0_i32_0 : i32, i32, i32
  }
}

module attributes {stable_mosaic.version = 11 : i64} {
  func.func @_bn_relu_kernel(%arg0: i32, %arg1: memref<1x256x128xbf16, #tpu.memory_space<vmem>>, %arg2: memref<1x1x128xf32, #tpu.memory_space<vmem>>, %arg3: memref<1x1x128xf32, #tpu.memory_space<vmem>>, %arg4: memref<1x256x128xbf16, #tpu.memory_space<vmem>>) attributes {dimension_semantics = [#tpu.dimension_semantics<parallel>], iteration_bounds = array<i64: 2>, scalar_prefetch = 0 : i64, scratch_operands = 0 : i64, tpu.core_type = #tpu.core_type<tc>, window_params = [{transform_indices = @transform_0, window_bounds = array<i64: 1, 256, 128>}, {pipeline_mode = #tpu.pipeline_mode<synchronous>, transform_indices = @transform_1, window_bounds = array<i64: 1, 1, 128>}, {pipeline_mode = #tpu.pipeline_mode<synchronous>, transform_indices = @transform_2, window_bounds = array<i64: 1, 1, 128>}, {transform_indices = @transform_3, window_bounds = array<i64: 1, 256, 128>}]} {
    %c0 = arith.constant 0 : index
    %c0_0 = arith.constant 0 : index
    %c0_1 = arith.constant 0 : index
    %0 = vector.load %arg1[%c0, %c0_0, %c0_1] : memref<1x256x128xbf16, #tpu.memory_space<vmem>>, vector<1x256x128xbf16>
    %1 = arith.extf %0 : vector<1x256x128xbf16> to vector<1x256x128xf32>
    %c0_2 = arith.constant 0 : index
    %c0_3 = arith.constant 0 : index
    %c0_4 = arith.constant 0 : index
    %2 = vector.load %arg2[%c0_2, %c0_3, %c0_4] : memref<1x1x128xf32, #tpu.memory_space<vmem>>, vector<1x1x128xf32>
    %3 = vector.broadcast %2 : vector<1x1x128xf32> to vector<1x256x128xf32>
    %4 = arith.mulf %1, %3 : vector<1x256x128xf32>
    %c0_5 = arith.constant 0 : index
    %c0_6 = arith.constant 0 : index
    %c0_7 = arith.constant 0 : index
    %5 = vector.load %arg3[%c0_5, %c0_6, %c0_7] : memref<1x1x128xf32, #tpu.memory_space<vmem>>, vector<1x1x128xf32>
    %6 = vector.broadcast %5 : vector<1x1x128xf32> to vector<1x256x128xf32>
    %7 = arith.addf %4, %6 : vector<1x256x128xf32>
    %cst = arith.constant 0.000000e+00 : f32
    %8 = vector.broadcast %cst : f32 to vector<1x256x128xf32>
    %9 = arith.maximumf %7, %8 : vector<1x256x128xf32>
    %10 = arith.truncf %9 : vector<1x256x128xf32> to vector<1x256x128xbf16>
    %c0_8 = arith.constant 0 : index
    %c0_9 = arith.constant 0 : index
    %c0_10 = arith.constant 0 : index
    %11 = vector.load %arg4[%c0_8, %c0_9, %c0_10] : memref<1x256x128xbf16, #tpu.memory_space<vmem>>, vector<1x256x128xbf16>
    tpu.vector_store %arg4[%c0_8, %c0_9, %c0_10], %10 {strides = array<i32>} : memref<1x256x128xbf16, #tpu.memory_space<vmem>>, vector<1x256x128xbf16>,
    return
  }
  func.func @transform_0(%arg0: i32) -> (i32, i32, i32) {
    %c0_i32 = arith.constant 0 : i32
    %c0_i32_0 = arith.constant 0 : i32
    %c0_i32_1 = arith.constant 0 : i32
    return %arg0, %c0_i32, %c0_i32_0 : i32, i32, i32
  }
  func.func @transform_1(%arg0: i32) -> (i32, i32, i32) {
    %c0_i32 = arith.constant 0 : i32
    %c0_i32_0 = arith.constant 0 : i32
    %c0_i32_1 = arith.constant 0 : i32
    %c0_i32_2 = arith.constant 0 : i32
    return %c0_i32, %c0_i32_0, %c0_i32_1 : i32, i32, i32
  }
  func.func @transform_2(%arg0: i32) -> (i32, i32, i32) {
    %c0_i32 = arith.constant 0 : i32
    %c0_i32_0 = arith.constant 0 : i32
    %c0_i32_1 = arith.constant 0 : i32
    %c0_i32_2 = arith.constant 0 : i32
    return %c0_i32, %c0_i32_0, %c0_i32_1 : i32, i32, i32
  }
  func.func @transform_3(%arg0: i32) -> (i32, i32, i32) {
    %c0_i32 = arith.constant 0 : i32
    %c0_i32_0 = arith.constant 0 : i32
    %c0_i32_1 = arith.constant 0 : i32
    return %arg0, %c0_i32, %c0_i32_0 : i32, i32, i32
  }
}

module attributes {stable_mosaic.version = 11 : i64} {
  func.func @kernel(%arg0: i32, %arg1: memref<1x326x128xbf16, #tpu.memory_space<vmem>>, %arg2: memref<1152x128xbf16, #tpu.memory_space<vmem>>, %arg3: memref<1x288x128xbf16, #tpu.memory_space<vmem>>, %arg4: memref<1x2x128xf32, #tpu.memory_space<vmem>>, %arg5: memref<288x128xf32, #tpu.memory_space<vmem>>) attributes {dimension_semantics = [#tpu.dimension_semantics<parallel>], iteration_bounds = array<i64: 2>, scalar_prefetch = 0 : i64, scratch_operands = 1 : i64, tpu.core_type = #tpu.core_type<tc>, window_params = [{transform_indices = @transform_0, window_bounds = array<i64: 1, 326, 128>}, {pipeline_mode = #tpu.pipeline_mode<synchronous>, transform_indices = @transform_1, window_bounds = array<i64: 1152, 128>}, {transform_indices = @transform_2, window_bounds = array<i64: 1, 288, 128>}, {transform_indices = @transform_3, window_bounds = array<i64: 1, 2, 128>}]} {
    %c0 = arith.constant 0 : index
    %c0_0 = arith.constant 0 : index
    %c0_1 = arith.constant 0 : index
    %0 = vector.load %arg1[%c0, %c0_0, %c0_1] : memref<1x326x128xbf16, #tpu.memory_space<vmem>>, vector<1x288x128xbf16>
    %1 = vector.shape_cast %0 : vector<1x288x128xbf16> to vector<288x128xbf16>
    %c0_2 = arith.constant 0 : index
    %c0_3 = arith.constant 0 : index
    %2 = vector.load %arg2[%c0_2, %c0_3] : memref<1152x128xbf16, #tpu.memory_space<vmem>>, vector<128x128xbf16>
    %cst = arith.constant dense<0.000000e+00> : vector<288x128xf32>
    %3 = tpu.matmul %1, %2, %cst {dimension_numbers = #tpu.dot_dimension_numbers<[1], [0], [0], [1], [0, 0, 1, 1], [], []>} : vector<288x128xbf16>, vector<128x128xbf16>, vector<288x128xf32> -> vector<288x128xf32>
    %c0_4 = arith.constant 0 : index
    %c0_5 = arith.constant 0 : index
    %4 = vector.load %arg5[%c0_4, %c0_5] : memref<288x128xf32, #tpu.memory_space<vmem>>, vector<288x128xf32>
    tpu.vector_store %arg5[%c0_4, %c0_5], %3 {strides = array<i32>} : memref<288x128xf32, #tpu.memory_space<vmem>>, vector<288x128xf32>,
    %c0_6 = arith.constant 0 : index
    %c1 = arith.constant 1 : index
    %c0_7 = arith.constant 0 : index
    %5 = vector.load %arg1[%c0_6, %c1, %c0_7] : memref<1x326x128xbf16, #tpu.memory_space<vmem>>, vector<1x288x128xbf16>
    %6 = vector.shape_cast %5 : vector<1x288x128xbf16> to vector<288x128xbf16>
    %c128 = arith.constant 128 : index
    %c0_8 = arith.constant 0 : index
    %7 = vector.load %arg2[%c128, %c0_8] : memref<1152x128xbf16, #tpu.memory_space<vmem>>, vector<128x128xbf16>
    %cst_9 = arith.constant dense<0.000000e+00> : vector<288x128xf32>
    %8 = tpu.matmul %6, %7, %cst_9 {dimension_numbers = #tpu.dot_dimension_numbers<[1], [0], [0], [1], [0, 0, 1, 1], [], []>} : vector<288x128xbf16>, vector<128x128xbf16>, vector<288x128xf32> -> vector<288x128xf32>
    %c0_10 = arith.constant 0 : index
    %c0_11 = arith.constant 0 : index
    %9 = vector.load %arg5[%c0_10, %c0_11] : memref<288x128xf32, #tpu.memory_space<vmem>>, vector<288x128xf32>
    %10 = arith.addf %9, %8 : vector<288x128xf32>
    %c0_12 = arith.constant 0 : index
    %c0_13 = arith.constant 0 : index
    %11 = vector.load %arg5[%c0_12, %c0_13] : memref<288x128xf32, #tpu.memory_space<vmem>>, vector<288x128xf32>
    tpu.vector_store %arg5[%c0_12, %c0_13], %10 {strides = array<i32>} : memref<288x128xf32, #tpu.memory_space<vmem>>, vector<288x128xf32>,
    %c0_14 = arith.constant 0 : index
    %c2 = arith.constant 2 : index
    %c0_15 = arith.constant 0 : index
    %12 = vector.load %arg1[%c0_14, %c2, %c0_15] : memref<1x326x128xbf16, #tpu.memory_space<vmem>>, vector<1x288x128xbf16>
    %13 = vector.shape_cast %12 : vector<1x288x128xbf16> to vector<288x128xbf16>
    %c256 = arith.constant 256 : index
    %c0_16 = arith.constant 0 : index
    %14 = vector.load %arg2[%c256, %c0_16] : memref<1152x128xbf16, #tpu.memory_space<vmem>>, vector<128x128xbf16>
    %cst_17 = arith.constant dense<0.000000e+00> : vector<288x128xf32>
    %15 = tpu.matmul %13, %14, %cst_17 {dimension_numbers = #tpu.dot_dimension_numbers<[1], [0], [0], [1], [0, 0, 1, 1], [], []>} : vector<288x128xbf16>, vector<128x128xbf16>, vector<288x128xf32> -> vector<288x128xf32>
    %c0_18 = arith.constant 0 : index
    %c0_19 = arith.constant 0 : index
    %16 = vector.load %arg5[%c0_18, %c0_19] : memref<288x128xf32, #tpu.memory_space<vmem>>, vector<288x128xf32>
    %17 = arith.addf %16, %15 : vector<288x128xf32>
    %c0_20 = arith.constant 0 : index
    %c0_21 = arith.constant 0 : index
    %18 = vector.load %arg5[%c0_20, %c0_21] : memref<288x128xf32, #tpu.memory_space<vmem>>, vector<288x128xf32>
    tpu.vector_store %arg5[%c0_20, %c0_21], %17 {strides = array<i32>} : memref<288x128xf32, #tpu.memory_space<vmem>>, vector<288x128xf32>,
    %c0_22 = arith.constant 0 : index
    %c18 = arith.constant 18 : index
    %c0_23 = arith.constant 0 : index
    %19 = vector.load %arg1[%c0_22, %c18, %c0_23] : memref<1x326x128xbf16, #tpu.memory_space<vmem>>, vector<1x288x128xbf16>
    %20 = vector.shape_cast %19 : vector<1x288x128xbf16> to vector<288x128xbf16>
    %c384 = arith.constant 384 : index
    %c0_24 = arith.constant 0 : index
    %21 = vector.load %arg2[%c384, %c0_24] : memref<1152x128xbf16, #tpu.memory_space<vmem>>, vector<128x128xbf16>
    %cst_25 = arith.constant dense<0.000000e+00> : vector<288x128xf32>
    %22 = tpu.matmul %20, %21, %cst_25 {dimension_numbers = #tpu.dot_dimension_numbers<[1], [0], [0], [1], [0, 0, 1, 1], [], []>} : vector<288x128xbf16>, vector<128x128xbf16>, vector<288x128xf32> -> vector<288x128xf32>
    %c0_26 = arith.constant 0 : index
    %c0_27 = arith.constant 0 : index
    %23 = vector.load %arg5[%c0_26, %c0_27] : memref<288x128xf32, #tpu.memory_space<vmem>>, vector<288x128xf32>
    %24 = arith.addf %23, %22 : vector<288x128xf32>
    %c0_28 = arith.constant 0 : index
    %c0_29 = arith.constant 0 : index
    %25 = vector.load %arg5[%c0_28, %c0_29] : memref<288x128xf32, #tpu.memory_space<vmem>>, vector<288x128xf32>
    tpu.vector_store %arg5[%c0_28, %c0_29], %24 {strides = array<i32>} : memref<288x128xf32, #tpu.memory_space<vmem>>, vector<288x128xf32>,
    %c0_30 = arith.constant 0 : index
    %c19 = arith.constant 19 : index
    %c0_31 = arith.constant 0 : index
    %26 = vector.load %arg1[%c0_30, %c19, %c0_31] : memref<1x326x128xbf16, #tpu.memory_space<vmem>>, vector<1x288x128xbf16>
    %27 = vector.shape_cast %26 : vector<1x288x128xbf16> to vector<288x128xbf16>
    %c512 = arith.constant 512 : index
    %c0_32 = arith.constant 0 : index
    %28 = vector.load %arg2[%c512, %c0_32] : memref<1152x128xbf16, #tpu.memory_space<vmem>>, vector<128x128xbf16>
    %cst_33 = arith.constant dense<0.000000e+00> : vector<288x128xf32>
    %29 = tpu.matmul %27, %28, %cst_33 {dimension_numbers = #tpu.dot_dimension_numbers<[1], [0], [0], [1], [0, 0, 1, 1], [], []>} : vector<288x128xbf16>, vector<128x128xbf16>, vector<288x128xf32> -> vector<288x128xf32>
    %c0_34 = arith.constant 0 : index
    %c0_35 = arith.constant 0 : index
    %30 = vector.load %arg5[%c0_34, %c0_35] : memref<288x128xf32, #tpu.memory_space<vmem>>, vector<288x128xf32>
    %31 = arith.addf %30, %29 : vector<288x128xf32>
    %c0_36 = arith.constant 0 : index
    %c0_37 = arith.constant 0 : index
    %32 = vector.load %arg5[%c0_36, %c0_37] : memref<288x128xf32, #tpu.memory_space<vmem>>, vector<288x128xf32>
    tpu.vector_store %arg5[%c0_36, %c0_37], %31 {strides = array<i32>} : memref<288x128xf32, #tpu.memory_space<vmem>>, vector<288x128xf32>,
    %c0_38 = arith.constant 0 : index
    %c20 = arith.constant 20 : index
    %c0_39 = arith.constant 0 : index
    %33 = vector.load %arg1[%c0_38, %c20, %c0_39] : memref<1x326x128xbf16, #tpu.memory_space<vmem>>, vector<1x288x128xbf16>
    %34 = vector.shape_cast %33 : vector<1x288x128xbf16> to vector<288x128xbf16>
    %c640 = arith.constant 640 : index
    %c0_40 = arith.constant 0 : index
    %35 = vector.load %arg2[%c640, %c0_40] : memref<1152x128xbf16, #tpu.memory_space<vmem>>, vector<128x128xbf16>
    %cst_41 = arith.constant dense<0.000000e+00> : vector<288x128xf32>
    %36 = tpu.matmul %34, %35, %cst_41 {dimension_numbers = #tpu.dot_dimension_numbers<[1], [0], [0], [1], [0, 0, 1, 1], [], []>} : vector<288x128xbf16>, vector<128x128xbf16>, vector<288x128xf32> -> vector<288x128xf32>
    %c0_42 = arith.constant 0 : index
    %c0_43 = arith.constant 0 : index
    %37 = vector.load %arg5[%c0_42, %c0_43] : memref<288x128xf32, #tpu.memory_space<vmem>>, vector<288x128xf32>
    %38 = arith.addf %37, %36 : vector<288x128xf32>
    %c0_44 = arith.constant 0 : index
    %c0_45 = arith.constant 0 : index
    %39 = vector.load %arg5[%c0_44, %c0_45] : memref<288x128xf32, #tpu.memory_space<vmem>>, vector<288x128xf32>
    tpu.vector_store %arg5[%c0_44, %c0_45], %38 {strides = array<i32>} : memref<288x128xf32, #tpu.memory_space<vmem>>, vector<288x128xf32>,
    %c0_46 = arith.constant 0 : index
    %c36 = arith.constant 36 : index
    %c0_47 = arith.constant 0 : index
    %40 = vector.load %arg1[%c0_46, %c36, %c0_47] : memref<1x326x128xbf16, #tpu.memory_space<vmem>>, vector<1x288x128xbf16>
    %41 = vector.shape_cast %40 : vector<1x288x128xbf16> to vector<288x128xbf16>
    %c768 = arith.constant 768 : index
    %c0_48 = arith.constant 0 : index
    %42 = vector.load %arg2[%c768, %c0_48] : memref<1152x128xbf16, #tpu.memory_space<vmem>>, vector<128x128xbf16>
    %cst_49 = arith.constant dense<0.000000e+00> : vector<288x128xf32>
    %43 = tpu.matmul %41, %42, %cst_49 {dimension_numbers = #tpu.dot_dimension_numbers<[1], [0], [0], [1], [0, 0, 1, 1], [], []>} : vector<288x128xbf16>, vector<128x128xbf16>, vector<288x128xf32> -> vector<288x128xf32>
    %c0_50 = arith.constant 0 : index
    %c0_51 = arith.constant 0 : index
    %44 = vector.load %arg5[%c0_50, %c0_51] : memref<288x128xf32, #tpu.memory_space<vmem>>, vector<288x128xf32>
    %45 = arith.addf %44, %43 : vector<288x128xf32>
    %c0_52 = arith.constant 0 : index
    %c0_53 = arith.constant 0 : index
    %46 = vector.load %arg5[%c0_52, %c0_53] : memref<288x128xf32, #tpu.memory_space<vmem>>, vector<288x128xf32>
    tpu.vector_store %arg5[%c0_52, %c0_53], %45 {strides = array<i32>} : memref<288x128xf32, #tpu.memory_space<vmem>>, vector<288x128xf32>,
    %c0_54 = arith.constant 0 : index
    %c37 = arith.constant 37 : index
    %c0_55 = arith.constant 0 : index
    %47 = vector.load %arg1[%c0_54, %c37, %c0_55] : memref<1x326x128xbf16, #tpu.memory_space<vmem>>, vector<1x288x128xbf16>
    %48 = vector.shape_cast %47 : vector<1x288x128xbf16> to vector<288x128xbf16>
    %c896 = arith.constant 896 : index
    %c0_56 = arith.constant 0 : index
    %49 = vector.load %arg2[%c896, %c0_56] : memref<1152x128xbf16, #tpu.memory_space<vmem>>, vector<128x128xbf16>
    %cst_57 = arith.constant dense<0.000000e+00> : vector<288x128xf32>
    %50 = tpu.matmul %48, %49, %cst_57 {dimension_numbers = #tpu.dot_dimension_numbers<[1], [0], [0], [1], [0, 0, 1, 1], [], []>} : vector<288x128xbf16>, vector<128x128xbf16>, vector<288x128xf32> -> vector<288x128xf32>
    %c0_58 = arith.constant 0 : index
    %c0_59 = arith.constant 0 : index
    %51 = vector.load %arg5[%c0_58, %c0_59] : memref<288x128xf32, #tpu.memory_space<vmem>>, vector<288x128xf32>
    %52 = arith.addf %51, %50 : vector<288x128xf32>
    %c0_60 = arith.constant 0 : index
    %c0_61 = arith.constant 0 : index
    %53 = vector.load %arg5[%c0_60, %c0_61] : memref<288x128xf32, #tpu.memory_space<vmem>>, vector<288x128xf32>
    tpu.vector_store %arg5[%c0_60, %c0_61], %52 {strides = array<i32>} : memref<288x128xf32, #tpu.memory_space<vmem>>, vector<288x128xf32>,
    %c0_62 = arith.constant 0 : index
    %c38 = arith.constant 38 : index
    %c0_63 = arith.constant 0 : index
    %54 = vector.load %arg1[%c0_62, %c38, %c0_63] : memref<1x326x128xbf16, #tpu.memory_space<vmem>>, vector<1x288x128xbf16>
    %55 = vector.shape_cast %54 : vector<1x288x128xbf16> to vector<288x128xbf16>
    %c1024 = arith.constant 1024 : index
    %c0_64 = arith.constant 0 : index
    %56 = vector.load %arg2[%c1024, %c0_64] : memref<1152x128xbf16, #tpu.memory_space<vmem>>, vector<128x128xbf16>
    %cst_65 = arith.constant dense<0.000000e+00> : vector<288x128xf32>
    %57 = tpu.matmul %55, %56, %cst_65 {dimension_numbers = #tpu.dot_dimension_numbers<[1], [0], [0], [1], [0, 0, 1, 1], [], []>} : vector<288x128xbf16>, vector<128x128xbf16>, vector<288x128xf32> -> vector<288x128xf32>
    %c0_66 = arith.constant 0 : index
    %c0_67 = arith.constant 0 : index
    %58 = vector.load %arg5[%c0_66, %c0_67] : memref<288x128xf32, #tpu.memory_space<vmem>>, vector<288x128xf32>
    %59 = arith.addf %58, %57 : vector<288x128xf32>
    %c0_68 = arith.constant 0 : index
    %c0_69 = arith.constant 0 : index
    %60 = vector.load %arg5[%c0_68, %c0_69] : memref<288x128xf32, #tpu.memory_space<vmem>>, vector<288x128xf32>
    tpu.vector_store %arg5[%c0_68, %c0_69], %59 {strides = array<i32>} : memref<288x128xf32, #tpu.memory_space<vmem>>, vector<288x128xf32>,
    %c0_70 = arith.constant 0 : index
    %c0_71 = arith.constant 0 : index
    %61 = vector.load %arg5[%c0_70, %c0_71] : memref<288x128xf32, #tpu.memory_space<vmem>>, vector<288x128xf32>
    %62 = tpu.iota {dimensions = array<i32: 0>} : vector<288x128xi32>
    %c18_i32 = arith.constant 18 : i32
    %c0_i32 = arith.constant 0 : i32
    %63 = arith.cmpi eq, %c18_i32, %c0_i32 : i32
    %c1_i32 = arith.constant 1 : i32
    %64 = arith.select %63, %c1_i32, %c18_i32 : i32
    %65 = vector.broadcast %64 : i32 to vector<288x128xi32>
    %66 = arith.remsi %62, %65 : vector<288x128xi32>
    %c0_i32_72 = arith.constant 0 : i32
    %67 = vector.broadcast %c0_i32_72 : i32 to vector<288x128xi32>
    %68 = arith.cmpi ne, %66, %67 : vector<288x128xi32>
    %c0_i32_73 = arith.constant 0 : i32
    %69 = vector.broadcast %c0_i32_73 : i32 to vector<288x128xi32>
    %70 = arith.cmpi slt, %66, %69 : vector<288x128xi32>
    %c0_i32_74 = arith.constant 0 : i32
    %71 = arith.cmpi slt, %64, %c0_i32_74 : i32
    %72 = vector.broadcast %71 : i1 to vector<288x128xi1>
    %73 = vector.broadcast %72 : vector<288x128xi1> to vector<288x128xi1>
    %74 = arith.xori %70, %73 : vector<288x128xi1>
    %75 = arith.andi %74, %68 : vector<288x128xi1>
    %76 = vector.broadcast %64 : i32 to vector<288x128xi32>
    %77 = arith.addi %66, %76 : vector<288x128xi32>
    %78 = arith.select %75, %77, %66 : vector<288x128xi1>, vector<288x128xi32>
    %c16_i32 = arith.constant 16 : i32
    %79 = vector.broadcast %c16_i32 : i32 to vector<288x128xi32>
    %80 = arith.cmpi slt, %78, %79 : vector<288x128xi32>
    %cst_75 = arith.constant 0.000000e+00 : f32
    %81 = vector.broadcast %cst_75 : f32 to vector<288x128xf32>
    %82 = arith.select %80, %61, %81 : vector<288x128xi1>, vector<288x128xf32>
    %cst_76 = arith.constant dense<0.000000e+00> : vector<128xf32>
    %83 = vector.multi_reduction <add>, %82, %cst_76 [0] : vector<288x128xf32> to vector<128xf32>
    %84 = vector.shape_cast %83 : vector<128xf32> to vector<1x128xf32>
    %c0_77 = arith.constant 0 : index
    %c0_78 = arith.constant 0 : index
    %c0_79 = arith.constant 0 : index
    %85 = vector.load %arg4[%c0_77, %c0_78, %c0_79] : memref<1x2x128xf32, #tpu.memory_space<vmem>>, vector<1x1x128xf32>
    %86 = vector.shape_cast %85 : vector<1x1x128xf32> to vector<1x128xf32>
    %87 = vector.shape_cast %84 : vector<1x128xf32> to vector<1x1x128xf32>
    tpu.vector_store %arg4[%c0_77, %c0_78, %c0_79], %87 {strides = array<i32>} : memref<1x2x128xf32, #tpu.memory_space<vmem>>, vector<1x1x128xf32>,
    %88 = arith.mulf %82, %61 : vector<288x128xf32>
    %cst_80 = arith.constant dense<0.000000e+00> : vector<128xf32>
    %89 = vector.multi_reduction <add>, %88, %cst_80 [0] : vector<288x128xf32> to vector<128xf32>
    %90 = vector.shape_cast %89 : vector<128xf32> to vector<1x128xf32>
    %c0_81 = arith.constant 0 : index
    %c1_82 = arith.constant 1 : index
    %c0_83 = arith.constant 0 : index
    %91 = vector.load %arg4[%c0_81, %c1_82, %c0_83] : memref<1x2x128xf32, #tpu.memory_space<vmem>>, vector<1x1x128xf32>
    %92 = vector.shape_cast %91 : vector<1x1x128xf32> to vector<1x128xf32>
    %93 = vector.shape_cast %90 : vector<1x128xf32> to vector<1x1x128xf32>
    tpu.vector_store %arg4[%c0_81, %c1_82, %c0_83], %93 {strides = array<i32>} : memref<1x2x128xf32, #tpu.memory_space<vmem>>, vector<1x1x128xf32>,
    %94 = arith.truncf %61 : vector<288x128xf32> to vector<288x128xbf16>
    %c0_84 = arith.constant 0 : index
    %c0_85 = arith.constant 0 : index
    %c0_86 = arith.constant 0 : index
    %95 = vector.load %arg3[%c0_84, %c0_85, %c0_86] : memref<1x288x128xbf16, #tpu.memory_space<vmem>>, vector<1x288x128xbf16>
    %96 = vector.shape_cast %95 : vector<1x288x128xbf16> to vector<288x128xbf16>
    %97 = vector.shape_cast %94 : vector<288x128xbf16> to vector<1x288x128xbf16>
    tpu.vector_store %arg3[%c0_84, %c0_85, %c0_86], %97 {strides = array<i32>} : memref<1x288x128xbf16, #tpu.memory_space<vmem>>, vector<1x288x128xbf16>,
    return
  }
  func.func @transform_0(%arg0: i32) -> (i32, i32, i32) {
    %c0_i32 = arith.constant 0 : i32
    %c0_i32_0 = arith.constant 0 : i32
    %c0_i32_1 = arith.constant 0 : i32
    return %arg0, %c0_i32, %c0_i32_0 : i32, i32, i32
  }
  func.func @transform_1(%arg0: i32) -> (i32, i32) {
    %c0_i32 = arith.constant 0 : i32
    %c0_i32_0 = arith.constant 0 : i32
    %c0_i32_1 = arith.constant 0 : i32
    return %c0_i32, %c0_i32_0 : i32, i32
  }
  func.func @transform_2(%arg0: i32) -> (i32, i32, i32) {
    %c0_i32 = arith.constant 0 : i32
    %c0_i32_0 = arith.constant 0 : i32
    %c0_i32_1 = arith.constant 0 : i32
    return %arg0, %c0_i32, %c0_i32_0 : i32, i32, i32
  }
  func.func @transform_3(%arg0: i32) -> (i32, i32, i32) {
    %c0_i32 = arith.constant 0 : i32
    %c0_i32_0 = arith.constant 0 : i32
    %c0_i32_1 = arith.constant 0 : i32
    return %arg0, %c0_i32, %c0_i32_0 : i32, i32, i32
  }
}

module attributes {stable_mosaic.version = 11 : i64} {
  func.func @_bn_relu_kernel(%arg0: i32, %arg1: memref<1x288x128xbf16, #tpu.memory_space<vmem>>, %arg2: memref<1x1x128xf32, #tpu.memory_space<vmem>>, %arg3: memref<1x1x128xf32, #tpu.memory_space<vmem>>, %arg4: memref<1x288x128xbf16, #tpu.memory_space<vmem>>) attributes {dimension_semantics = [#tpu.dimension_semantics<parallel>], iteration_bounds = array<i64: 2>, scalar_prefetch = 0 : i64, scratch_operands = 0 : i64, tpu.core_type = #tpu.core_type<tc>, window_params = [{transform_indices = @transform_0, window_bounds = array<i64: 1, 288, 128>}, {pipeline_mode = #tpu.pipeline_mode<synchronous>, transform_indices = @transform_1, window_bounds = array<i64: 1, 1, 128>}, {pipeline_mode = #tpu.pipeline_mode<synchronous>, transform_indices = @transform_2, window_bounds = array<i64: 1, 1, 128>}, {transform_indices = @transform_3, window_bounds = array<i64: 1, 288, 128>}]} {
    %c0 = arith.constant 0 : index
    %c0_0 = arith.constant 0 : index
    %c0_1 = arith.constant 0 : index
    %0 = vector.load %arg1[%c0, %c0_0, %c0_1] : memref<1x288x128xbf16, #tpu.memory_space<vmem>>, vector<1x288x128xbf16>
    %1 = arith.extf %0 : vector<1x288x128xbf16> to vector<1x288x128xf32>
    %c0_2 = arith.constant 0 : index
    %c0_3 = arith.constant 0 : index
    %c0_4 = arith.constant 0 : index
    %2 = vector.load %arg2[%c0_2, %c0_3, %c0_4] : memref<1x1x128xf32, #tpu.memory_space<vmem>>, vector<1x1x128xf32>
    %3 = vector.broadcast %2 : vector<1x1x128xf32> to vector<1x288x128xf32>
    %4 = arith.mulf %1, %3 : vector<1x288x128xf32>
    %c0_5 = arith.constant 0 : index
    %c0_6 = arith.constant 0 : index
    %c0_7 = arith.constant 0 : index
    %5 = vector.load %arg3[%c0_5, %c0_6, %c0_7] : memref<1x1x128xf32, #tpu.memory_space<vmem>>, vector<1x1x128xf32>
    %6 = vector.broadcast %5 : vector<1x1x128xf32> to vector<1x288x128xf32>
    %7 = arith.addf %4, %6 : vector<1x288x128xf32>
    %cst = arith.constant 0.000000e+00 : f32
    %8 = vector.broadcast %cst : f32 to vector<1x288x128xf32>
    %9 = arith.maximumf %7, %8 : vector<1x288x128xf32>
    %10 = arith.truncf %9 : vector<1x288x128xf32> to vector<1x288x128xbf16>
    %c0_8 = arith.constant 0 : index
    %c0_9 = arith.constant 0 : index
    %c0_10 = arith.constant 0 : index
    %11 = vector.load %arg4[%c0_8, %c0_9, %c0_10] : memref<1x288x128xbf16, #tpu.memory_space<vmem>>, vector<1x288x128xbf16>
    tpu.vector_store %arg4[%c0_8, %c0_9, %c0_10], %10 {strides = array<i32>} : memref<1x288x128xbf16, #tpu.memory_space<vmem>>, vector<1x288x128xbf16>,
    return
  }
  func.func @transform_0(%arg0: i32) -> (i32, i32, i32) {
    %c0_i32 = arith.constant 0 : i32
    %c0_i32_0 = arith.constant 0 : i32
    %c0_i32_1 = arith.constant 0 : i32
    return %arg0, %c0_i32, %c0_i32_0 : i32, i32, i32
  }
  func.func @transform_1(%arg0: i32) -> (i32, i32, i32) {
    %c0_i32 = arith.constant 0 : i32
    %c0_i32_0 = arith.constant 0 : i32
    %c0_i32_1 = arith.constant 0 : i32
    %c0_i32_2 = arith.constant 0 : i32
    return %c0_i32, %c0_i32_0, %c0_i32_1 : i32, i32, i32
  }
  func.func @transform_2(%arg0: i32) -> (i32, i32, i32) {
    %c0_i32 = arith.constant 0 : i32
    %c0_i32_0 = arith.constant 0 : i32
    %c0_i32_1 = arith.constant 0 : i32
    %c0_i32_2 = arith.constant 0 : i32
    return %c0_i32, %c0_i32_0, %c0_i32_1 : i32, i32, i32
  }
  func.func @transform_3(%arg0: i32) -> (i32, i32, i32) {
    %c0_i32 = arith.constant 0 : i32
    %c0_i32_0 = arith.constant 0 : i32
    %c0_i32_1 = arith.constant 0 : i32
    return %arg0, %c0_i32, %c0_i32_0 : i32, i32, i32
  }
}

module attributes {stable_mosaic.version = 11 : i64} {
  func.func @kernel(%arg0: i32, %arg1: memref<1x65x512xbf16, #tpu.memory_space<vmem>>, %arg2: memref<1152x128xbf16, #tpu.memory_space<vmem>>, %arg3: memref<1x56x128xbf16, #tpu.memory_space<vmem>>, %arg4: memref<1x2x128xf32, #tpu.memory_space<vmem>>, %arg5: memref<56x128xf32, #tpu.memory_space<vmem>>) attributes {dimension_semantics = [#tpu.dimension_semantics<parallel>], iteration_bounds = array<i64: 2>, scalar_prefetch = 0 : i64, scratch_operands = 1 : i64, tpu.core_type = #tpu.core_type<tc>, window_params = [{transform_indices = @transform_0, window_bounds = array<i64: 1, 65, 512>}, {pipeline_mode = #tpu.pipeline_mode<synchronous>, transform_indices = @transform_1, window_bounds = array<i64: 1152, 128>}, {transform_indices = @transform_2, window_bounds = array<i64: 1, 56, 128>}, {transform_indices = @transform_3, window_bounds = array<i64: 1, 2, 128>}]} {
    %c0 = arith.constant 0 : index
    %c0_0 = arith.constant 0 : index
    %c0_1 = arith.constant 0 : index
    %0 = vector.load %arg1[%c0, %c0_0, %c0_1] : memref<1x65x512xbf16, #tpu.memory_space<vmem>>, vector<1x56x256xbf16>
    %1 = vector.shape_cast %0 : vector<1x56x256xbf16> to vector<56x256xbf16>
    %c0_2 = arith.constant 0 : index
    %c0_3 = arith.constant 0 : index
    %2 = vector.load %arg2[%c0_2, %c0_3] : memref<1152x128xbf16, #tpu.memory_space<vmem>>, vector<256x128xbf16>
    %cst = arith.constant dense<0.000000e+00> : vector<56x128xf32>
    %3 = tpu.matmul %1, %2, %cst {dimension_numbers = #tpu.dot_dimension_numbers<[1], [0], [0], [1], [0, 0, 1, 1], [], []>} : vector<56x256xbf16>, vector<256x128xbf16>, vector<56x128xf32> -> vector<56x128xf32>
    %c0_4 = arith.constant 0 : index
    %c0_5 = arith.constant 0 : index
    %4 = vector.load %arg5[%c0_4, %c0_5] : memref<56x128xf32, #tpu.memory_space<vmem>>, vector<56x128xf32>
    tpu.vector_store %arg5[%c0_4, %c0_5], %3 {strides = array<i32>} : memref<56x128xf32, #tpu.memory_space<vmem>>, vector<56x128xf32>,
    %c0_6 = arith.constant 0 : index
    %c1 = arith.constant 1 : index
    %c0_7 = arith.constant 0 : index
    %5 = vector.load %arg1[%c0_6, %c1, %c0_7] : memref<1x65x512xbf16, #tpu.memory_space<vmem>>, vector<1x56x128xbf16>
    %6 = vector.shape_cast %5 : vector<1x56x128xbf16> to vector<56x128xbf16>
    %c256 = arith.constant 256 : index
    %c0_8 = arith.constant 0 : index
    %7 = vector.load %arg2[%c256, %c0_8] : memref<1152x128xbf16, #tpu.memory_space<vmem>>, vector<128x128xbf16>
    %cst_9 = arith.constant dense<0.000000e+00> : vector<56x128xf32>
    %8 = tpu.matmul %6, %7, %cst_9 {dimension_numbers = #tpu.dot_dimension_numbers<[1], [0], [0], [1], [0, 0, 1, 1], [], []>} : vector<56x128xbf16>, vector<128x128xbf16>, vector<56x128xf32> -> vector<56x128xf32>
    %c0_10 = arith.constant 0 : index
    %c0_11 = arith.constant 0 : index
    %9 = vector.load %arg5[%c0_10, %c0_11] : memref<56x128xf32, #tpu.memory_space<vmem>>, vector<56x128xf32>
    %10 = arith.addf %9, %8 : vector<56x128xf32>
    %c0_12 = arith.constant 0 : index
    %c0_13 = arith.constant 0 : index
    %11 = vector.load %arg5[%c0_12, %c0_13] : memref<56x128xf32, #tpu.memory_space<vmem>>, vector<56x128xf32>
    tpu.vector_store %arg5[%c0_12, %c0_13], %10 {strides = array<i32>} : memref<56x128xf32, #tpu.memory_space<vmem>>, vector<56x128xf32>,
    %c0_14 = arith.constant 0 : index
    %c0_15 = arith.constant 0 : index
    %c256_16 = arith.constant 256 : index
    %12 = vector.load %arg1[%c0_14, %c0_15, %c256_16] : memref<1x65x512xbf16, #tpu.memory_space<vmem>>, vector<1x56x256xbf16>
    %13 = vector.shape_cast %12 : vector<1x56x256xbf16> to vector<56x256xbf16>
    %c384 = arith.constant 384 : index
    %c0_17 = arith.constant 0 : index
    %14 = vector.load %arg2[%c384, %c0_17] : memref<1152x128xbf16, #tpu.memory_space<vmem>>, vector<256x128xbf16>
    %cst_18 = arith.constant dense<0.000000e+00> : vector<56x128xf32>
    %15 = tpu.matmul %13, %14, %cst_18 {dimension_numbers = #tpu.dot_dimension_numbers<[1], [0], [0], [1], [0, 0, 1, 1], [], []>} : vector<56x256xbf16>, vector<256x128xbf16>, vector<56x128xf32> -> vector<56x128xf32>
    %c0_19 = arith.constant 0 : index
    %c0_20 = arith.constant 0 : index
    %16 = vector.load %arg5[%c0_19, %c0_20] : memref<56x128xf32, #tpu.memory_space<vmem>>, vector<56x128xf32>
    %17 = arith.addf %16, %15 : vector<56x128xf32>
    %c0_21 = arith.constant 0 : index
    %c0_22 = arith.constant 0 : index
    %18 = vector.load %arg5[%c0_21, %c0_22] : memref<56x128xf32, #tpu.memory_space<vmem>>, vector<56x128xf32>
    tpu.vector_store %arg5[%c0_21, %c0_22], %17 {strides = array<i32>} : memref<56x128xf32, #tpu.memory_space<vmem>>, vector<56x128xf32>,
    %c0_23 = arith.constant 0 : index
    %c1_24 = arith.constant 1 : index
    %c256_25 = arith.constant 256 : index
    %19 = vector.load %arg1[%c0_23, %c1_24, %c256_25] : memref<1x65x512xbf16, #tpu.memory_space<vmem>>, vector<1x56x128xbf16>
    %20 = vector.shape_cast %19 : vector<1x56x128xbf16> to vector<56x128xbf16>
    %c640 = arith.constant 640 : index
    %c0_26 = arith.constant 0 : index
    %21 = vector.load %arg2[%c640, %c0_26] : memref<1152x128xbf16, #tpu.memory_space<vmem>>, vector<128x128xbf16>
    %cst_27 = arith.constant dense<0.000000e+00> : vector<56x128xf32>
    %22 = tpu.matmul %20, %21, %cst_27 {dimension_numbers = #tpu.dot_dimension_numbers<[1], [0], [0], [1], [0, 0, 1, 1], [], []>} : vector<56x128xbf16>, vector<128x128xbf16>, vector<56x128xf32> -> vector<56x128xf32>
    %c0_28 = arith.constant 0 : index
    %c0_29 = arith.constant 0 : index
    %23 = vector.load %arg5[%c0_28, %c0_29] : memref<56x128xf32, #tpu.memory_space<vmem>>, vector<56x128xf32>
    %24 = arith.addf %23, %22 : vector<56x128xf32>
    %c0_30 = arith.constant 0 : index
    %c0_31 = arith.constant 0 : index
    %25 = vector.load %arg5[%c0_30, %c0_31] : memref<56x128xf32, #tpu.memory_space<vmem>>, vector<56x128xf32>
    tpu.vector_store %arg5[%c0_30, %c0_31], %24 {strides = array<i32>} : memref<56x128xf32, #tpu.memory_space<vmem>>, vector<56x128xf32>,
    %c0_32 = arith.constant 0 : index
    %c8 = arith.constant 8 : index
    %c0_33 = arith.constant 0 : index
    %26 = vector.load %arg1[%c0_32, %c8, %c0_33] : memref<1x65x512xbf16, #tpu.memory_space<vmem>>, vector<1x56x256xbf16>
    %27 = vector.shape_cast %26 : vector<1x56x256xbf16> to vector<56x256xbf16>
    %c768 = arith.constant 768 : index
    %c0_34 = arith.constant 0 : index
    %28 = vector.load %arg2[%c768, %c0_34] : memref<1152x128xbf16, #tpu.memory_space<vmem>>, vector<256x128xbf16>
    %cst_35 = arith.constant dense<0.000000e+00> : vector<56x128xf32>
    %29 = tpu.matmul %27, %28, %cst_35 {dimension_numbers = #tpu.dot_dimension_numbers<[1], [0], [0], [1], [0, 0, 1, 1], [], []>} : vector<56x256xbf16>, vector<256x128xbf16>, vector<56x128xf32> -> vector<56x128xf32>
    %c0_36 = arith.constant 0 : index
    %c0_37 = arith.constant 0 : index
    %30 = vector.load %arg5[%c0_36, %c0_37] : memref<56x128xf32, #tpu.memory_space<vmem>>, vector<56x128xf32>
    %31 = arith.addf %30, %29 : vector<56x128xf32>
    %c0_38 = arith.constant 0 : index
    %c0_39 = arith.constant 0 : index
    %32 = vector.load %arg5[%c0_38, %c0_39] : memref<56x128xf32, #tpu.memory_space<vmem>>, vector<56x128xf32>
    tpu.vector_store %arg5[%c0_38, %c0_39], %31 {strides = array<i32>} : memref<56x128xf32, #tpu.memory_space<vmem>>, vector<56x128xf32>,
    %c0_40 = arith.constant 0 : index
    %c9 = arith.constant 9 : index
    %c0_41 = arith.constant 0 : index
    %33 = vector.load %arg1[%c0_40, %c9, %c0_41] : memref<1x65x512xbf16, #tpu.memory_space<vmem>>, vector<1x56x128xbf16>
    %34 = vector.shape_cast %33 : vector<1x56x128xbf16> to vector<56x128xbf16>
    %c1024 = arith.constant 1024 : index
    %c0_42 = arith.constant 0 : index
    %35 = vector.load %arg2[%c1024, %c0_42] : memref<1152x128xbf16, #tpu.memory_space<vmem>>, vector<128x128xbf16>
    %cst_43 = arith.constant dense<0.000000e+00> : vector<56x128xf32>
    %36 = tpu.matmul %34, %35, %cst_43 {dimension_numbers = #tpu.dot_dimension_numbers<[1], [0], [0], [1], [0, 0, 1, 1], [], []>} : vector<56x128xbf16>, vector<128x128xbf16>, vector<56x128xf32> -> vector<56x128xf32>
    %c0_44 = arith.constant 0 : index
    %c0_45 = arith.constant 0 : index
    %37 = vector.load %arg5[%c0_44, %c0_45] : memref<56x128xf32, #tpu.memory_space<vmem>>, vector<56x128xf32>
    %38 = arith.addf %37, %36 : vector<56x128xf32>
    %c0_46 = arith.constant 0 : index
    %c0_47 = arith.constant 0 : index
    %39 = vector.load %arg5[%c0_46, %c0_47] : memref<56x128xf32, #tpu.memory_space<vmem>>, vector<56x128xf32>
    tpu.vector_store %arg5[%c0_46, %c0_47], %38 {strides = array<i32>} : memref<56x128xf32, #tpu.memory_space<vmem>>, vector<56x128xf32>,
    %c0_48 = arith.constant 0 : index
    %c0_49 = arith.constant 0 : index
    %40 = vector.load %arg5[%c0_48, %c0_49] : memref<56x128xf32, #tpu.memory_space<vmem>>, vector<56x128xf32>
    %41 = tpu.iota {dimensions = array<i32: 0>} : vector<56x128xi32>
    %c8_i32 = arith.constant 8 : i32
    %c0_i32 = arith.constant 0 : i32
    %42 = arith.cmpi eq, %c8_i32, %c0_i32 : i32
    %c1_i32 = arith.constant 1 : i32
    %43 = arith.select %42, %c1_i32, %c8_i32 : i32
    %44 = vector.broadcast %43 : i32 to vector<56x128xi32>
    %45 = arith.remsi %41, %44 : vector<56x128xi32>
    %c0_i32_50 = arith.constant 0 : i32
    %46 = vector.broadcast %c0_i32_50 : i32 to vector<56x128xi32>
    %47 = arith.cmpi ne, %45, %46 : vector<56x128xi32>
    %c0_i32_51 = arith.constant 0 : i32
    %48 = vector.broadcast %c0_i32_51 : i32 to vector<56x128xi32>
    %49 = arith.cmpi slt, %45, %48 : vector<56x128xi32>
    %c0_i32_52 = arith.constant 0 : i32
    %50 = arith.cmpi slt, %43, %c0_i32_52 : i32
    %51 = vector.broadcast %50 : i1 to vector<56x128xi1>
    %52 = vector.broadcast %51 : vector<56x128xi1> to vector<56x128xi1>
    %53 = arith.xori %49, %52 : vector<56x128xi1>
    %54 = arith.andi %53, %47 : vector<56x128xi1>
    %55 = vector.broadcast %43 : i32 to vector<56x128xi32>
    %56 = arith.addi %45, %55 : vector<56x128xi32>
    %57 = arith.select %54, %56, %45 : vector<56x128xi1>, vector<56x128xi32>
    %c7_i32 = arith.constant 7 : i32
    %58 = vector.broadcast %c7_i32 : i32 to vector<56x128xi32>
    %59 = arith.cmpi slt, %57, %58 : vector<56x128xi32>
    %cst_53 = arith.constant 0.000000e+00 : f32
    %60 = vector.broadcast %cst_53 : f32 to vector<56x128xf32>
    %61 = arith.select %59, %40, %60 : vector<56x128xi1>, vector<56x128xf32>
    %cst_54 = arith.constant dense<0.000000e+00> : vector<128xf32>
    %62 = vector.multi_reduction <add>, %61, %cst_54 [0] : vector<56x128xf32> to vector<128xf32>
    %63 = vector.shape_cast %62 : vector<128xf32> to vector<1x128xf32>
    %c0_55 = arith.constant 0 : index
    %c0_56 = arith.constant 0 : index
    %c0_57 = arith.constant 0 : index
    %64 = vector.load %arg4[%c0_55, %c0_56, %c0_57] : memref<1x2x128xf32, #tpu.memory_space<vmem>>, vector<1x1x128xf32>
    %65 = vector.shape_cast %64 : vector<1x1x128xf32> to vector<1x128xf32>
    %66 = vector.shape_cast %63 : vector<1x128xf32> to vector<1x1x128xf32>
    tpu.vector_store %arg4[%c0_55, %c0_56, %c0_57], %66 {strides = array<i32>} : memref<1x2x128xf32, #tpu.memory_space<vmem>>, vector<1x1x128xf32>,
    %67 = arith.mulf %61, %40 : vector<56x128xf32>
    %cst_58 = arith.constant dense<0.000000e+00> : vector<128xf32>
    %68 = vector.multi_reduction <add>, %67, %cst_58 [0] : vector<56x128xf32> to vector<128xf32>
    %69 = vector.shape_cast %68 : vector<128xf32> to vector<1x128xf32>
    %c0_59 = arith.constant 0 : index
    %c1_60 = arith.constant 1 : index
    %c0_61 = arith.constant 0 : index
    %70 = vector.load %arg4[%c0_59, %c1_60, %c0_61] : memref<1x2x128xf32, #tpu.memory_space<vmem>>, vector<1x1x128xf32>
    %71 = vector.shape_cast %70 : vector<1x1x128xf32> to vector<1x128xf32>
    %72 = vector.shape_cast %69 : vector<1x128xf32> to vector<1x1x128xf32>
    tpu.vector_store %arg4[%c0_59, %c1_60, %c0_61], %72 {strides = array<i32>} : memref<1x2x128xf32, #tpu.memory_space<vmem>>, vector<1x1x128xf32>,
    %73 = arith.truncf %40 : vector<56x128xf32> to vector<56x128xbf16>
    %c0_62 = arith.constant 0 : index
    %c0_63 = arith.constant 0 : index
    %c0_64 = arith.constant 0 : index
    %74 = vector.load %arg3[%c0_62, %c0_63, %c0_64] : memref<1x56x128xbf16, #tpu.memory_space<vmem>>, vector<1x56x128xbf16>
    %75 = vector.shape_cast %74 : vector<1x56x128xbf16> to vector<56x128xbf16>
    %76 = vector.shape_cast %73 : vector<56x128xbf16> to vector<1x56x128xbf16>
    tpu.vector_store %arg3[%c0_62, %c0_63, %c0_64], %76 {strides = array<i32>} : memref<1x56x128xbf16, #tpu.memory_space<vmem>>, vector<1x56x128xbf16>,
    return
  }
  func.func @transform_0(%arg0: i32) -> (i32, i32, i32) {
    %c0_i32 = arith.constant 0 : i32
    %c0_i32_0 = arith.constant 0 : i32
    %c0_i32_1 = arith.constant 0 : i32
    return %arg0, %c0_i32, %c0_i32_0 : i32, i32, i32
  }
  func.func @transform_1(%arg0: i32) -> (i32, i32) {
    %c0_i32 = arith.constant 0 : i32
    %c0_i32_0 = arith.constant 0 : i32
    %c0_i32_1 = arith.constant 0 : i32
    return %c0_i32, %c0_i32_0 : i32, i32
  }
  func.func @transform_2(%arg0: i32) -> (i32, i32, i32) {
    %c0_i32 = arith.constant 0 : i32
    %c0_i32_0 = arith.constant 0 : i32
    %c0_i32_1 = arith.constant 0 : i32
    return %arg0, %c0_i32, %c0_i32_0 : i32, i32, i32
  }
  func.func @transform_3(%arg0: i32) -> (i32, i32, i32) {
    %c0_i32 = arith.constant 0 : i32
    %c0_i32_0 = arith.constant 0 : i32
    %c0_i32_1 = arith.constant 0 : i32
    return %arg0, %c0_i32, %c0_i32_0 : i32, i32, i32
  }
}

module attributes {stable_mosaic.version = 11 : i64} {
  func.func @_bn_relu_kernel(%arg0: i32, %arg1: memref<1x56x128xbf16, #tpu.memory_space<vmem>>, %arg2: memref<1x1x128xf32, #tpu.memory_space<vmem>>, %arg3: memref<1x1x128xf32, #tpu.memory_space<vmem>>, %arg4: memref<1x56x128xf32, #tpu.memory_space<vmem>>) attributes {dimension_semantics = [#tpu.dimension_semantics<parallel>], iteration_bounds = array<i64: 2>, scalar_prefetch = 0 : i64, scratch_operands = 0 : i64, tpu.core_type = #tpu.core_type<tc>, window_params = [{transform_indices = @transform_0, window_bounds = array<i64: 1, 56, 128>}, {pipeline_mode = #tpu.pipeline_mode<synchronous>, transform_indices = @transform_1, window_bounds = array<i64: 1, 1, 128>}, {pipeline_mode = #tpu.pipeline_mode<synchronous>, transform_indices = @transform_2, window_bounds = array<i64: 1, 1, 128>}, {transform_indices = @transform_3, window_bounds = array<i64: 1, 56, 128>}]} {
    %c0 = arith.constant 0 : index
    %c0_0 = arith.constant 0 : index
    %c0_1 = arith.constant 0 : index
    %0 = vector.load %arg1[%c0, %c0_0, %c0_1] : memref<1x56x128xbf16, #tpu.memory_space<vmem>>, vector<1x56x128xbf16>
    %1 = arith.extf %0 : vector<1x56x128xbf16> to vector<1x56x128xf32>
    %c0_2 = arith.constant 0 : index
    %c0_3 = arith.constant 0 : index
    %c0_4 = arith.constant 0 : index
    %2 = vector.load %arg2[%c0_2, %c0_3, %c0_4] : memref<1x1x128xf32, #tpu.memory_space<vmem>>, vector<1x1x128xf32>
    %3 = vector.broadcast %2 : vector<1x1x128xf32> to vector<1x56x128xf32>
    %4 = arith.mulf %1, %3 : vector<1x56x128xf32>
    %c0_5 = arith.constant 0 : index
    %c0_6 = arith.constant 0 : index
    %c0_7 = arith.constant 0 : index
    %5 = vector.load %arg3[%c0_5, %c0_6, %c0_7] : memref<1x1x128xf32, #tpu.memory_space<vmem>>, vector<1x1x128xf32>
    %6 = vector.broadcast %5 : vector<1x1x128xf32> to vector<1x56x128xf32>
    %7 = arith.addf %4, %6 : vector<1x56x128xf32>
    %cst = arith.constant 0.000000e+00 : f32
    %8 = vector.broadcast %cst : f32 to vector<1x56x128xf32>
    %9 = arith.maximumf %7, %8 : vector<1x56x128xf32>
    %c0_8 = arith.constant 0 : index
    %c0_9 = arith.constant 0 : index
    %c0_10 = arith.constant 0 : index
    %10 = vector.load %arg4[%c0_8, %c0_9, %c0_10] : memref<1x56x128xf32, #tpu.memory_space<vmem>>, vector<1x56x128xf32>
    tpu.vector_store %arg4[%c0_8, %c0_9, %c0_10], %9 {strides = array<i32>} : memref<1x56x128xf32, #tpu.memory_space<vmem>>, vector<1x56x128xf32>,
    return
  }
  func.func @transform_0(%arg0: i32) -> (i32, i32, i32) {
    %c0_i32 = arith.constant 0 : i32
    %c0_i32_0 = arith.constant 0 : i32
    %c0_i32_1 = arith.constant 0 : i32
    return %arg0, %c0_i32, %c0_i32_0 : i32, i32, i32
  }
  func.func @transform_1(%arg0: i32) -> (i32, i32, i32) {
    %c0_i32 = arith.constant 0 : i32
    %c0_i32_0 = arith.constant 0 : i32
    %c0_i32_1 = arith.constant 0 : i32
    %c0_i32_2 = arith.constant 0 : i32
    return %c0_i32, %c0_i32_0, %c0_i32_1 : i32, i32, i32
  }
  func.func @transform_2(%arg0: i32) -> (i32, i32, i32) {
    %c0_i32 = arith.constant 0 : i32
    %c0_i32_0 = arith.constant 0 : i32
    %c0_i32_1 = arith.constant 0 : i32
    %c0_i32_2 = arith.constant 0 : i32
    return %c0_i32, %c0_i32_0, %c0_i32_1 : i32, i32, i32
  }
  func.func @transform_3(%arg0: i32) -> (i32, i32, i32) {
    %c0_i32 = arith.constant 0 : i32
    %c0_i32_0 = arith.constant 0 : i32
    %c0_i32_1 = arith.constant 0 : i32
    return %arg0, %c0_i32, %c0_i32_0 : i32, i32, i32
  }
}

</mosaic_0001>

<bundles_post_ra>
// kernel: inception_b_forward.9
= control target key start
LH: loop header
LB: loop body
LE: loop exit
PB: predicated region body
PF: predicated region fallthrough
CT: control target
= control target key end

     0   :  { %s408_s12 = smov 0   ;;  %s528_s0 = inlined_call_operand.vmem [shape: bf16[2,56,384], index: 0, kind: input, shape index: {}]   ;;  %s529_s1 = inlined_call_operand.vmem [shape: f32[1,1,384], index: 1, kind: input, shape index: {}]   ;;  %s530_s2 = inlined_call_operand.vmem [shape: f32[1,1,384], index: 2, kind: input, shape index: {}]   ;;  %s531_s3 = inlined_call_operand.vmem [shape: f32[2,56,384], index: 3, kind: output, shape index: {}]  }
   0x1 LB: > { %s361_s13 = sadd.s32 4294967295, %s386_s12   ;;  %p365_p0 = scmp.ge.s32.totalorder %s386_s12, 1  ;;  %s386_s12 = sphi %s408_s12, %s13_s12  }
   0x2   : > { %p137_p1 = scmp.lt.s32.totalorder %s386_s12, 3 }
   0x4   : > { %p138_p2 = pnand %p365_p0, %p137_p1 }
   0x5   : > { %p161_p3 = scmp.lt.s32.totalorder (!%p138_p2), %s361_s13, 1 }
   0x6   : > { %141 = sbr.rel (%p138_p2) target bundleno = 45 (0x2d), region = 32 }
   0xb   : > { %s533_s13 = smov (!%p161_p3, %s361_s13), 1  ;;  %v206_v0 = vld [vmem:[%s529_s1] sm:$0x7] }
   0xc   : > { %v235_v1 = vld [vmem:[%s530_s2] sm:$0x7]  ;;  %s370_s18 = smul.u32 84, %s533_s13  ;;  %v430_v2 = vperm.slane %v206_v0, 0  ;;  %v434_v4 = vperm.slane %v206_v0, 1  ;;  %v436_v5 = vperm.slane %v206_v0, 2 }
   0xd   : > { %v432_v3 = vperm.slane %v235_v1, 0  ;;  %v439_v7 = vperm.slane %v235_v1, 1  ;;  %v442_v9 = vperm.slane %v235_v1, 2  ;;  %s371_s22 = smul.u32 168, %s533_s13 }
   0xe   : > { %s428_s21 = scalar_lea.vmem %s528_s0, %s370_s18 }
   0xf   : > { %v171_v6 = vld [vmem:[%s428_s21] sm:$0xff]  ;;  %v172_v8 = vld [vmem:[%s428_s21 + $0x8] sm:$0xf]  ;;  %v173_v10 = vld [vmem:[%s428_s21 + $0xc] sm:$0xff]  ;;  %s464_s25 = scalar_lea.vmem %s531_s3, %s371_s22 }
  0x10   : > { %v185_v11 = vunpack.c.l.bf16 %v171_v6  ;;  %v186_v12 = vunpack.c.h.bf16 %v171_v6  ;;  %v187_v13 = vunpack.c.l.bf16 %v172_v8  ;;  %v188_v14 = vunpack.c.l.bf16 %v173_v10  ;;  %v174_v15 = vld [vmem:[%s428_s21 + $0x14] sm:$0xf]  ;;  %v175_v16 = vld [vmem:[%s428_s21 + $0x18] sm:$0xff]  ;;  %v176_v33 = vld [vmem:[%s428_s21 + $0x20] sm:$0xf] }
  0x11   : > { %v189_v17 = vunpack.c.h.bf16 %v173_v10  ;;  %v190_v18 = vunpack.c.l.bf16 %v174_v15  ;;  %v191_v19 = vunpack.c.l.bf16 %v175_v16  ;;  %v192_v20 = vunpack.c.h.bf16 %v175_v16  ;;  %v177_v38 = vld [vmem:[%s428_s21 + $0x24] sm:$0xff]  ;;  %v178_v39 = vld [vmem:[%s428_s21 + $0x2c] sm:$0xf]  ;;  %v180_v40 = vld [vmem:[%s428_s21 + $0x38] sm:$0xf] }
  0x12   : > { %v214_v21 = vmul.f32 %v430_v2, %v185_v11  ;;  %v215_v22 = vmul.f32 %v434_v4, %v186_v12  ;;  %v216_v23 = vmul.f32 %v436_v5, %v187_v13  ;;  %v217_v24 = vmul.f32 %v430_v2, %v188_v14  ;;  %v179_v45 = vld [vmem:[%s428_s21 + $0x30] sm:$0xff]  ;;  %v181_v46 = vld [vmem:[%s428_s21 + $0x3c] sm:$0xff]  ;;  %v182_v16 = vld [vmem:[%s428_s21 + $0x44] sm:$0xf] }
  0x13   : > { %v218_v25 = vmul.f32 %v434_v4, %v189_v17  ;;  %v219_v26 = vmul.f32 %v436_v5, %v190_v18  ;;  %v220_v27 = vmul.f32 %v430_v2, %v191_v19  ;;  %v221_v28 = vmul.f32 %v434_v4, %v192_v20  ;;  %v183_v17 = vld [vmem:[%s428_s21 + $0x48] sm:$0xff] }
  0x14   : > { %v243_v29 = vadd.f32 %v432_v3, %v214_v21  ;;  %v244_v30 = vadd.f32 %v439_v7, %v215_v22  ;;  %v245_v31 = vadd.f32 %v442_v9, %v216_v23  ;;  %v246_v32 = vadd.f32 %v432_v3, %v217_v24  ;;  %v184_v21 = vld [vmem:[%s428_s21 + $0x50] sm:$0xf] }
  0x15   : > { %v247_v34 = vadd.f32 %v439_v7, %v218_v25  ;;  %v248_v35 = vadd.f32 %v442_v9, %v219_v26  ;;  %v249_v36 = vadd.f32 %v432_v3, %v220_v27  ;;  %v250_v37 = vadd.f32 %v439_v7, %v221_v28 }
  0x16   : > { %v264_v41 = vmax.f32 %v243_v29, 0.0  ;;  %v265_v42 = vmax.f32 %v244_v30, 0.0  ;;  %v266_v43 = vmax.f32 %v245_v31, 0.0  ;;  %v267_v44 = vmax.f32 %v246_v32, 0.0 }
  0x17   : > { %v268_v47 = vmax.f32 %v247_v34, 0.0  ;;  %v269_v48 = vmax.f32 %v248_v35, 0.0  ;;  %v270_v49 = vmax.f32 %v249_v36, 0.0  ;;  %v271_v50 = vmax.f32 %v250_v37, 0.0 }
  0x18   : > { %285 = vst [vmem:[%s464_s25] sm:$0xff] %v264_v41  ;;  %v193_v51 = vunpack.c.l.bf16 %v176_v33  ;;  %v194_v52 = vunpack.c.l.bf16 %v177_v38  ;;  %v195_v53 = vunpack.c.h.bf16 %v177_v38  ;;  %v196_v54 = vunpack.c.l.bf16 %v178_v39 }
  0x19   : > { %286 = vst [vmem:[%s464_s25 + $0x8] sm:$0xff] %v265_v42  ;;  %v197_v55 = vunpack.c.l.bf16 %v179_v45  ;;  %v198_v56 = vunpack.c.h.bf16 %v179_v45  ;;  %v199_v57 = vunpack.c.l.bf16 %v180_v40  ;;  %v200_v58 = vunpack.c.l.bf16 %v181_v46 }
  0x1a   : > { %287 = vst [vmem:[%s464_s25 + $0x10] sm:$0xff] %v266_v43  ;;  %v222_v59 = vmul.f32 %v436_v5, %v193_v51  ;;  %v223_v60 = vmul.f32 %v430_v2, %v194_v52  ;;  %v224_v61 = vmul.f32 %v434_v4, %v195_v53  ;;  %v225_v62 = vmul.f32 %v436_v5, %v196_v54 }
  0x1b   : > { %288 = vst [vmem:[%s464_s25 + $0x18] sm:$0xff] %v267_v44  ;;  %v226_v63 = vmul.f32 %v430_v2, %v197_v55  ;;  %v227_v0 = vmul.f32 %v434_v4, %v198_v56  ;;  %v228_v1 = vmul.f32 %v436_v5, %v199_v57  ;;  %v229_v6 = vmul.f32 %v430_v2, %v200_v58 }
  0x1c   : > { %289 = vst [vmem:[%s464_s25 + $0x20] sm:$0xff] %v268_v47  ;;  %v251_v8 = vadd.f32 %v442_v9, %v222_v59  ;;  %v252_v10 = vadd.f32 %v432_v3, %v223_v60  ;;  %v253_v11 = vadd.f32 %v439_v7, %v224_v61  ;;  %v254_v12 = vadd.f32 %v442_v9, %v225_v62 }
  0x1d   : > { %290 = vst [vmem:[%s464_s25 + $0x28] sm:$0xff] %v269_v48  ;;  %v255_v13 = vadd.f32 %v432_v3, %v226_v63  ;;  %v256_v14 = vadd.f32 %v439_v7, %v227_v0  ;;  %v257_v15 = vadd.f32 %v442_v9, %v228_v1  ;;  %v258_v24 = vadd.f32 %v432_v3, %v229_v6 }
  0x1e   : > { %291 = vst [vmem:[%s464_s25 + $0x30] sm:$0xff] %v270_v49  ;;  %v272_v18 = vmax.f32 %v251_v8, 0.0  ;;  %v273_v19 = vmax.f32 %v252_v10, 0.0  ;;  %v274_v20 = vmax.f32 %v253_v11, 0.0  ;;  %v275_v22 = vmax.f32 %v254_v12, 0.0 }
  0x1f   : > { %292 = vst [vmem:[%s464_s25 + $0x38] sm:$0xff] %v271_v50  ;;  %v276_v23 = vmax.f32 %v255_v13, 0.0  ;;  %v201_v25 = vunpack.c.h.bf16 %v181_v46  ;;  %v202_v26 = vunpack.c.l.bf16 %v182_v16  ;;  %v203_v27 = vunpack.c.l.bf16 %v183_v17 }
  0x20   : > { %293 = vst [vmem:[%s464_s25 + $0x40] sm:$0xff] %v272_v18  ;;  %v204_v28 = vunpack.c.h.bf16 %v183_v17  ;;  %v277_v29 = vmax.f32 %v256_v14, 0.0  ;;  %v278_v30 = vmax.f32 %v257_v15, 0.0  ;;  %v205_v31 = vunpack.c.l.bf16 %v184_v21 }
  0x21   : > { %294 = vst [vmem:[%s464_s25 + $0x48] sm:$0xff] %v273_v19  ;;  %v230_v32 = vmul.f32 %v434_v4, %v201_v25  ;;  %v231_v33 = vmul.f32 %v436_v5, %v202_v26  ;;  %v232_v34 = vmul.f32 %v430_v2, %v203_v27  ;;  %v279_v36 = vmax.f32 %v258_v24, 0.0 }
  0x22   : > { %295 = vst [vmem:[%s464_s25 + $0x50] sm:$0xff] %v274_v20  ;;  %v233_v35 = vmul.f32 %v434_v4, %v204_v28  ;;  %v234_v37 = vmul.f32 %v436_v5, %v205_v31 }
  0x23   : > { %296 = vst [vmem:[%s464_s25 + $0x58] sm:$0xff] %v275_v22  ;;  %v259_v38 = vadd.f32 %v439_v7, %v230_v32  ;;  %v260_v39 = vadd.f32 %v442_v9, %v231_v33  ;;  %v261_v40 = vadd.f32 %v432_v3, %v232_v34 }
  0x24   : > { %297 = vst [vmem:[%s464_s25 + $0x60] sm:$0xff] %v276_v23  ;;  %v262_v2 = vadd.f32 %v439_v7, %v233_v35  ;;  %v263_v4 = vadd.f32 %v442_v9, %v234_v37 }
  0x25   : > { %298 = vst [vmem:[%s464_s25 + $0x68] sm:$0xff] %v277_v29  ;;  %v280_v41 = vmax.f32 %v259_v38, 0.0  ;;  %v281_v42 = vmax.f32 %v260_v39, 0.0  ;;  %v282_v5 = vmax.f32 %v261_v40, 0.0 }
  0x26   : > { %299 = vst [vmem:[%s464_s25 + $0x70] sm:$0xff] %v278_v30  ;;  %v283_v43 = vmax.f32 %v262_v2, 0.0  ;;  %v284_v44 = vmax.f32 %v263_v4, 0.0 }
  0x27   : > { %300 = vst [vmem:[%s464_s25 + $0x78] sm:$0xff] %v279_v36 }
  0x28   : > { %301 = vst [vmem:[%s464_s25 + $0x80] sm:$0xff] %v280_v41 }
  0x29   : > { %302 = vst [vmem:[%s464_s25 + $0x88] sm:$0xff] %v281_v42 }
  0x2a   : > { %303 = vst [vmem:[%s464_s25 + $0x90] sm:$0xff] %v282_v5 }
  0x2b   : > { %304 = vst [vmem:[%s464_s25 + $0x98] sm:$0xff] %v283_v43 }
  0x2c   : > { %305 = vst [vmem:[%s464_s25 + $0xa0] sm:$0xff] %v284_v44 }
  0x2d PF: > { %s13_s12 = sadd.s32 1, %s386_s12  }
  0x2e   : > { %p10_p4 = scmp.ge.s32.totalorder %s13_s12, 4  }
  0x30   :  { %12 = sbr.rel (!%p10_p4) target bundleno = 1 (0x1), region = 62 }

// kernel: inception_b_forward.11
= control target key start
LH: loop header
LB: loop body
LE: loop exit
PB: predicated region body
PF: predicated region fallthrough
CT: control target
= control target key end

     0   :  { %s683_s12 = smov 0   ;;  %s817_s0 = inlined_call_operand.vmem [shape: bf16[2,256,128], index: 0, kind: input, shape index: {}]   ;;  %s818_s1 = inlined_call_operand.vmem [shape: f32[1,1,128], index: 1, kind: input, shape index: {}]   ;;  %s819_s2 = inlined_call_operand.vmem [shape: f32[1,1,128], index: 2, kind: input, shape index: {}]   ;;  %s820_s3 = inlined_call_operand.vmem [shape: bf16[2,256,128], index: 3, kind: output, shape index: {}]  }
   0x1 LB: > { %s458_s13 = sadd.s32 4294967295, %s661_s12   ;;  %p462_p0 = scmp.ge.s32.totalorder %s661_s12, 1  ;;  %s661_s12 = sphi %s683_s12, %s13_s12  }
   0x2   : > { %p137_p1 = scmp.lt.s32.totalorder %s661_s12, 3 }
   0x4   : > { %p138_p2 = pnand %p462_p0, %p137_p1 }
   0x5   : > { %p161_p3 = scmp.lt.s32.totalorder (!%p138_p2), %s458_s13, 1 }
   0x6   : > { %141 = sbr.rel (%p138_p2) target bundleno = 57 (0x39), region = 32 }
   0xb   : > { %s822_s13 = smov (!%p161_p3, %s458_s13), 1  ;;  %v704_v0 = vld [vmem:[%s818_s1] ss:$0 sm:$0xff] }
   0xc   : > { %s469_s14 = sshll.u32 %s822_s13, 7  ;;  %v712_v6 = vld [vmem:[%s819_s2] ss:$0 sm:$0xff] }
   0xd   : > { %s699_s17 = scalar_lea.vmem %s817_s0, %s469_s14  ;;  %s738_s24 = scalar_lea.vmem %s820_s3, %s469_s14 }
   0xe   : > { %v472_v1 = vld [vmem:[%s699_s17] sm:$0xff]   ;;  %v615_v2 = vld [vmem:[%s699_s17 + $0x8] sm:$0xff]   ;;  %v616_v3 = vld [vmem:[%s699_s17 + $0x10] sm:$0xff]  }
   0xf   : > { %v473_v4 = vunpack.c.l.bf16 %v472_v1  ;;  %v474_v5 = vunpack.c.h.bf16 %v472_v1  ;;  %v477_v7 = vunpack.c.l.bf16 %v615_v2  ;;  %v478_v8 = vunpack.c.h.bf16 %v615_v2  ;;  %v617_v9 = vld [vmem:[%s699_s17 + $0x18] sm:$0xff]   ;;  %v618_v30 = vld [vmem:[%s699_s17 + $0x20] sm:$0xff]   ;;  %v619_v35 = vld [vmem:[%s699_s17 + $0x28] sm:$0xff]  }
  0x10   : > { %v481_v10 = vunpack.c.l.bf16 %v616_v3  ;;  %v482_v11 = vunpack.c.h.bf16 %v616_v3  ;;  %v485_v12 = vunpack.c.l.bf16 %v617_v9  ;;  %v486_v13 = vunpack.c.h.bf16 %v617_v9  ;;  %v620_v40 = vld [vmem:[%s699_s17 + $0x30] sm:$0xff]   ;;  %v621_v45 = vld [vmem:[%s699_s17 + $0x38] sm:$0xff]   ;;  %v622_v3 = vld [vmem:[%s699_s17 + $0x40] sm:$0xff]  }
  0x11   : > { %v239_v14 = vmul.f32 %v704_v0, %v473_v4  ;;  %v240_v15 = vmul.f32 %v704_v0, %v474_v5  ;;  %v241_v16 = vmul.f32 %v704_v0, %v477_v7  ;;  %v242_v17 = vmul.f32 %v704_v0, %v478_v8 }
  0x12   : > { %v243_v18 = vmul.f32 %v704_v0, %v481_v10  ;;  %v244_v19 = vmul.f32 %v704_v0, %v482_v11  ;;  %v245_v20 = vmul.f32 %v704_v0, %v485_v12  ;;  %v246_v21 = vmul.f32 %v704_v0, %v486_v13  ;;  %v623_v13 = vld [vmem:[%s699_s17 + $0x48] sm:$0xff]  }
  0x13   : > { %v275_v22 = vadd.f32 %v712_v6, %v239_v14  ;;  %v276_v23 = vadd.f32 %v712_v6, %v240_v15  ;;  %v277_v24 = vadd.f32 %v712_v6, %v241_v16  ;;  %v278_v25 = vadd.f32 %v712_v6, %v242_v17 }
  0x14   : > { %v279_v26 = vadd.f32 %v712_v6, %v243_v18  ;;  %v280_v27 = vadd.f32 %v712_v6, %v244_v19  ;;  %v281_v28 = vadd.f32 %v712_v6, %v245_v20  ;;  %v282_v29 = vadd.f32 %v712_v6, %v246_v21  ;;  %v624_v18 = vld [vmem:[%s699_s17 + $0x50] sm:$0xff]  }
  0x15   : > { %v307_v31 = vmax.f32 %v275_v22, 0.0  ;;  %v308_v32 = vmax.f32 %v276_v23, 0.0  ;;  %v309_v33 = vmax.f32 %v277_v24, 0.0  ;;  %v310_v34 = vmax.f32 %v278_v25, 0.0  ;;  %v625_v23 = vld [vmem:[%s699_s17 + $0x58] sm:$0xff]  }
  0x16   : > { %v311_v36 = vmax.f32 %v279_v26, 0.0  ;;  %v312_v37 = vmax.f32 %v280_v27, 0.0  ;;  %v313_v38 = vmax.f32 %v281_v28, 0.0  ;;  %v314_v39 = vmax.f32 %v282_v29, 0.0 }
  0x17   : > { %v538_v41 = vpack.c.bf16 %v308_v32, %v307_v31  ;;  %v543_v42 = vpack.c.bf16 %v310_v34, %v309_v33  ;;  %v489_v43 = vunpack.c.l.bf16 %v618_v30  ;;  %v490_v44 = vunpack.c.h.bf16 %v618_v30 }
  0x18   : > { %v548_v46 = vpack.c.bf16 %v312_v37, %v311_v36  ;;  %v553_v47 = vpack.c.bf16 %v314_v39, %v313_v38  ;;  %v493_v48 = vunpack.c.l.bf16 %v619_v35  ;;  %v494_v49 = vunpack.c.h.bf16 %v619_v35 }
  0x19   : > { %539 = vst [vmem:[%s738_s24] sm:$0xff] %v538_v41   ;;  %v247_v50 = vmul.f32 %v704_v0, %v489_v43  ;;  %v248_v51 = vmul.f32 %v704_v0, %v490_v44  ;;  %v497_v52 = vunpack.c.l.bf16 %v620_v40  ;;  %v498_v53 = vunpack.c.h.bf16 %v620_v40  ;;  %v626_v40 = vld [vmem:[%s699_s17 + $0x60] sm:$0xff]  }
  0x1a   : > { %630 = vst [vmem:[%s738_s24 + $0x8] sm:$0xff] %v543_v42   ;;  %v249_v54 = vmul.f32 %v704_v0, %v493_v48  ;;  %v250_v55 = vmul.f32 %v704_v0, %v494_v49  ;;  %v501_v56 = vunpack.c.l.bf16 %v621_v45  ;;  %v502_v57 = vunpack.c.h.bf16 %v621_v45 }
  0x1b   : > { %631 = vst [vmem:[%s738_s24 + $0x10] sm:$0xff] %v548_v46   ;;  %v283_v58 = vadd.f32 %v712_v6, %v247_v50  ;;  %v284_v59 = vadd.f32 %v712_v6, %v248_v51  ;;  %v251_v60 = vmul.f32 %v704_v0, %v497_v52  ;;  %v252_v61 = vmul.f32 %v704_v0, %v498_v53  ;;  %v627_v53 = vld [vmem:[%s699_s17 + $0x68] sm:$0xff]  }
  0x1c   : > { %632 = vst [vmem:[%s738_s24 + $0x18] sm:$0xff] %v553_v47   ;;  %v285_v62 = vadd.f32 %v712_v6, %v249_v54  ;;  %v286_v63 = vadd.f32 %v712_v6, %v250_v55  ;;  %v253_v1 = vmul.f32 %v704_v0, %v501_v56  ;;  %v254_v2 = vmul.f32 %v704_v0, %v502_v57 }
  0x1d   : > { %v315_v4 = vmax.f32 %v283_v58, 0.0  ;;  %v316_v5 = vmax.f32 %v284_v59, 0.0  ;;  %v287_v7 = vadd.f32 %v712_v6, %v251_v60  ;;  %v288_v8 = vadd.f32 %v712_v6, %v252_v61  ;;  %v628_v58 = vld [vmem:[%s699_s17 + $0x70] sm:$0xff]  }
  0x1e   : > { %v317_v9 = vmax.f32 %v285_v62, 0.0  ;;  %v318_v10 = vmax.f32 %v286_v63, 0.0  ;;  %v289_v11 = vadd.f32 %v712_v6, %v253_v1  ;;  %v290_v12 = vadd.f32 %v712_v6, %v254_v2  ;;  %v629_v63 = vld [vmem:[%s699_s17 + $0x78] sm:$0xff]  }
  0x1f   : > { %v558_v14 = vpack.c.bf16 %v316_v5, %v315_v4  ;;  %v319_v15 = vmax.f32 %v287_v7, 0.0  ;;  %v320_v16 = vmax.f32 %v288_v8, 0.0  ;;  %v505_v17 = vunpack.c.l.bf16 %v622_v3 }
  0x20   : > { %v563_v19 = vpack.c.bf16 %v318_v10, %v317_v9  ;;  %v321_v20 = vmax.f32 %v289_v11, 0.0  ;;  %v322_v21 = vmax.f32 %v290_v12, 0.0  ;;  %v506_v22 = vunpack.c.h.bf16 %v622_v3 }
  0x21   : > { %633 = vst [vmem:[%s738_s24 + $0x20] sm:$0xff] %v558_v14   ;;  %v568_v24 = vpack.c.bf16 %v320_v16, %v319_v15  ;;  %v255_v25 = vmul.f32 %v704_v0, %v505_v17  ;;  %v509_v26 = vunpack.c.l.bf16 %v623_v13  ;;  %v510_v27 = vunpack.c.h.bf16 %v623_v13 }
  0x22   : > { %634 = vst [vmem:[%s738_s24 + $0x28] sm:$0xff] %v563_v19   ;;  %v573_v28 = vpack.c.bf16 %v322_v21, %v321_v20  ;;  %v256_v29 = vmul.f32 %v704_v0, %v506_v22  ;;  %v513_v30 = vunpack.c.l.bf16 %v624_v18  ;;  %v514_v31 = vunpack.c.h.bf16 %v624_v18 }
  0x23   : > { %635 = vst [vmem:[%s738_s24 + $0x30] sm:$0xff] %v568_v24   ;;  %v291_v32 = vadd.f32 %v712_v6, %v255_v25  ;;  %v257_v33 = vmul.f32 %v704_v0, %v509_v26  ;;  %v258_v34 = vmul.f32 %v704_v0, %v510_v27  ;;  %v517_v35 = vunpack.c.l.bf16 %v625_v23 }
  0x24   : > { %636 = vst [vmem:[%s738_s24 + $0x38] sm:$0xff] %v573_v28   ;;  %v292_v36 = vadd.f32 %v712_v6, %v256_v29  ;;  %v259_v37 = vmul.f32 %v704_v0, %v513_v30  ;;  %v260_v38 = vmul.f32 %v704_v0, %v514_v31  ;;  %v518_v39 = vunpack.c.h.bf16 %v625_v23 }
  0x25   : > { %v323_v41 = vmax.f32 %v291_v32, 0.0  ;;  %v293_v42 = vadd.f32 %v712_v6, %v257_v33  ;;  %v294_v43 = vadd.f32 %v712_v6, %v258_v34  ;;  %v261_v44 = vmul.f32 %v704_v0, %v517_v35 }
  0x26   : > { %v324_v45 = vmax.f32 %v292_v36, 0.0  ;;  %v295_v46 = vadd.f32 %v712_v6, %v259_v37  ;;  %v296_v47 = vadd.f32 %v712_v6, %v260_v38  ;;  %v262_v48 = vmul.f32 %v704_v0, %v518_v39 }
  0x27   : > { %v325_v49 = vmax.f32 %v293_v42, 0.0  ;;  %v326_v50 = vmax.f32 %v294_v43, 0.0  ;;  %v297_v51 = vadd.f32 %v712_v6, %v261_v44  ;;  %v521_v52 = vunpack.c.l.bf16 %v626_v40 }
  0x28   : > { %v578_v54 = vpack.c.bf16 %v324_v45, %v323_v41  ;;  %v327_v55 = vmax.f32 %v295_v46, 0.0  ;;  %v328_v56 = vmax.f32 %v296_v47, 0.0  ;;  %v298_v57 = vadd.f32 %v712_v6, %v262_v48 }
  0x29   : > { %v583_v59 = vpack.c.bf16 %v326_v50, %v325_v49  ;;  %v329_v60 = vmax.f32 %v297_v51, 0.0  ;;  %v522_v61 = vunpack.c.h.bf16 %v626_v40  ;;  %v263_v62 = vmul.f32 %v704_v0, %v521_v52 }
  0x2a   : > { %637 = vst [vmem:[%s738_s24 + $0x40] sm:$0xff] %v578_v54   ;;  %v588_v1 = vpack.c.bf16 %v328_v56, %v327_v55  ;;  %v330_v2 = vmax.f32 %v298_v57, 0.0  ;;  %v525_v3 = vunpack.c.l.bf16 %v627_v53  ;;  %v526_v4 = vunpack.c.h.bf16 %v627_v53 }
  0x2b   : > { %638 = vst [vmem:[%s738_s24 + $0x48] sm:$0xff] %v583_v59   ;;  %v264_v5 = vmul.f32 %v704_v0, %v522_v61  ;;  %v299_v7 = vadd.f32 %v712_v6, %v263_v62  ;;  %v529_v8 = vunpack.c.l.bf16 %v628_v58  ;;  %v530_v9 = vunpack.c.h.bf16 %v628_v58 }
  0x2c   : > { %639 = vst [vmem:[%s738_s24 + $0x50] sm:$0xff] %v588_v1   ;;  %v593_v10 = vpack.c.bf16 %v330_v2, %v329_v60  ;;  %v265_v11 = vmul.f32 %v704_v0, %v525_v3  ;;  %v266_v12 = vmul.f32 %v704_v0, %v526_v4  ;;  %v533_v13 = vunpack.c.l.bf16 %v629_v63 }
  0x2d   : > { %v300_v14 = vadd.f32 %v712_v6, %v264_v5  ;;  %v331_v15 = vmax.f32 %v299_v7, 0.0  ;;  %v267_v16 = vmul.f32 %v704_v0, %v529_v8  ;;  %v268_v17 = vmul.f32 %v704_v0, %v530_v9 }
  0x2e   : > { %640 = vst [vmem:[%s738_s24 + $0x58] sm:$0xff] %v593_v10   ;;  %v301_v18 = vadd.f32 %v712_v6, %v265_v11  ;;  %v302_v19 = vadd.f32 %v712_v6, %v266_v12  ;;  %v534_v20 = vunpack.c.h.bf16 %v629_v63  ;;  %v269_v21 = vmul.f32 %v704_v0, %v533_v13 }
  0x2f   : > { %v332_v22 = vmax.f32 %v300_v14, 0.0  ;;  %v303_v23 = vadd.f32 %v712_v6, %v267_v16  ;;  %v304_v24 = vadd.f32 %v712_v6, %v268_v17 }
  0x30   : > { %v333_v25 = vmax.f32 %v301_v18, 0.0  ;;  %v334_v26 = vmax.f32 %v302_v19, 0.0  ;;  %v270_v27 = vmul.f32 %v704_v0, %v534_v20  ;;  %v305_v28 = vadd.f32 %v712_v6, %v269_v21 }
  0x31   : > { %v598_v29 = vpack.c.bf16 %v332_v22, %v331_v15  ;;  %v335_v30 = vmax.f32 %v303_v23, 0.0  ;;  %v336_v31 = vmax.f32 %v304_v24, 0.0 }
  0x32   : > { %v603_v32 = vpack.c.bf16 %v334_v26, %v333_v25  ;;  %v306_v33 = vadd.f32 %v712_v6, %v270_v27  ;;  %v337_v34 = vmax.f32 %v305_v28, 0.0 }
  0x33   : > { %641 = vst [vmem:[%s738_s24 + $0x60] sm:$0xff] %v598_v29   ;;  %v608_v35 = vpack.c.bf16 %v336_v31, %v335_v30 }
  0x34   : > { %642 = vst [vmem:[%s738_s24 + $0x68] sm:$0xff] %v603_v32   ;;  %v338_v36 = vmax.f32 %v306_v33, 0.0 }
  0x35   : > { %643 = vst [vmem:[%s738_s24 + $0x70] sm:$0xff] %v608_v35  }
  0x36   : > { %v613_v37 = vpack.c.bf16 %v338_v36, %v337_v34 }
  0x38   : > { %644 = vst [vmem:[%s738_s24 + $0x78] sm:$0xff] %v613_v37  }
  0x39 PF: > { %s13_s12 = sadd.s32 1, %s661_s12  }
  0x3a   : > { %p10_p4 = scmp.ge.s32.totalorder %s13_s12, 4  }
  0x3c   :  { %12 = sbr.rel (!%p10_p4) target bundleno = 1 (0x1), region = 62 }

// kernel: inception_b_forward.10
= control target key start
LH: loop header
LB: loop body
LE: loop exit
PB: predicated region body
PF: predicated region fallthrough
CT: control target
= control target key end

     0   :  { %s1074_s12 = smov 0   ;;  %s1280_s0 = inlined_call_operand.vmem [shape: bf16[2,256,128], index: 0, kind: input, shape index: {}]   ;;  %s1281_s1 = inlined_call_operand.vmem [shape: bf16[128,128], index: 1, kind: input, shape index: {}]   ;;  %s1282_s2 = inlined_call_operand.vmem [shape: bf16[2,256,128], index: 2, kind: output, shape index: {0}]   ;;  %s1283_s3 = inlined_call_operand.vmem [shape: f32[2,2,128], index: 3, kind: output, shape index: {1}]  }
   0x1 LB: > { %s785_s13 = sadd.s32 4294967295, %s1052_s12   ;;  %p789_p0 = scmp.ge.s32.totalorder %s1052_s12, 1  ;;  %s1052_s12 = sphi %s1074_s12, %s14_s12  }
   0x2   : > { %p140_p1 = scmp.lt.s32.totalorder %s1052_s12, 3 }
   0x4   : > { %p141_p2 = pnand %p789_p0, %p140_p1 }
   0x5   : > { %p168_p3 = scmp.lt.s32.totalorder (!%p141_p2), %s785_s13, 1 }
   0x6   : > { %144 = sbr.rel (%p141_p2) target bundleno = 290 (0x122), region = 28 }
   0xb   : > { %v918_v0 = vld [vmem:[%s1281_s1 + $0x38] sm:$0xff]  ;;  %v917_v1 = vld [vmem:[%s1281_s1 + $0x30] sm:$0xff]  ;;  %v916_v2 = vld [vmem:[%s1281_s1 + $0x28] sm:$0xff]  ;;  %s1285_s13 = smov (!%p168_p3, %s785_s13), 1 }
   0xc   : > { %374 = vmatpush.bf16.msra.mxu0 %v918_v0  ;;  %1014 = vmatpush.bf16.msra.mxu1 %v918_v0  ;;  %v915_v3 = vld [vmem:[%s1281_s1 + $0x20] sm:$0xff]  ;;  %v914_v4 = vld [vmem:[%s1281_s1 + $0x18] sm:$0xff]  ;;  %v913_v5 = vld [vmem:[%s1281_s1 + $0x10] sm:$0xff]  ;;  %s893_s28 = sshll.u32 %s1285_s13, 7  ;;  %s794_s10 = sshll.u32 %s1285_s13, 1 }
   0xd   : > { %1015 = vmatpush.bf16.msra.mxu2 %v918_v0  ;;  %1016 = vmatpush.bf16.msra.mxu3 %v918_v0  ;;  %v912_v6 = vld [vmem:[%s1281_s1 + $0x8] sm:$0xff]  ;;  %v911_v7 = vld [vmem:[%s1281_s1] sm:$0xff]  ;;  %s1118_s6 = scalar_lea.vmem %s1280_s0, %s893_s28  ;;  %s1145_s9 = scalar_lea.vmem %s1282_s2, %s893_s28 }
   0xe   : > { %v895_v8 = vld [vmem:[%s1118_s6] sm:$0xff]  ;;  %v896_v12 = vld [vmem:[%s1118_s6 + $0x8] sm:$0xff]  ;;  %v897_v16 = vld [vmem:[%s1118_s6 + $0x10] sm:$0xff]  ;;  %s181_s15 = scalar_lea.vmem %s1283_s3, %s794_s10 }
   0xf   : > { %v899_v9 = vld [vmem:[%s1118_s6 + $0x20] sm:$0xff]  ;;  %v900_v13 = vld [vmem:[%s1118_s6 + $0x28] sm:$0xff]  ;;  %v901_v17 = vld [vmem:[%s1118_s6 + $0x30] sm:$0xff] }
  0x10   : > { %375 = vmatpush.bf16.msra.mxu0 %v917_v1  ;;  %1017 = vmatpush.bf16.msra.mxu1 %v917_v1  ;;  %v903_v10 = vld [vmem:[%s1118_s6 + $0x40] sm:$0xff]  ;;  %v904_v14 = vld [vmem:[%s1118_s6 + $0x48] sm:$0xff]  ;;  %v905_v18 = vld [vmem:[%s1118_s6 + $0x50] sm:$0xff] }
  0x11   : > { %1018 = vmatpush.bf16.msra.mxu2 %v917_v1  ;;  %1019 = vmatpush.bf16.msra.mxu3 %v917_v1  ;;  %v907_v11 = vld [vmem:[%s1118_s6 + $0x60] sm:$0xff]  ;;  %v908_v15 = vld [vmem:[%s1118_s6 + $0x68] sm:$0xff]  ;;  %v909_v19 = vld [vmem:[%s1118_s6 + $0x70] sm:$0xff] }
  0x12   : > { %v898_v20 = vld [vmem:[%s1118_s6 + $0x18] sm:$0xff] }
  0x13   : > { %v902_v21 = vld [vmem:[%s1118_s6 + $0x38] sm:$0xff] }
  0x14   : > { %376 = vmatpush.bf16.msra.mxu0 %v916_v2  ;;  %1020 = vmatpush.bf16.msra.mxu1 %v916_v2  ;;  %v906_v22 = vld [vmem:[%s1118_s6 + $0x58] sm:$0xff] }
  0x15   : > { %1021 = vmatpush.bf16.msra.mxu2 %v916_v2  ;;  %1022 = vmatpush.bf16.msra.mxu3 %v916_v2  ;;  %v910_v23 = vld [vmem:[%s1118_s6 + $0x78] sm:$0xff] }
  0x18   : > { %377 = vmatpush.bf16.msra.mxu0 %v915_v3  ;;  %1023 = vmatpush.bf16.msra.mxu1 %v915_v3 }
  0x19   : > { %1024 = vmatpush.bf16.msra.mxu2 %v915_v3  ;;  %1025 = vmatpush.bf16.msra.mxu3 %v915_v3 }
  0x1c   : > { %378 = vmatpush.bf16.msra.mxu0 %v914_v4  ;;  %1026 = vmatpush.bf16.msra.mxu1 %v914_v4 }
  0x1d   : > { %1027 = vmatpush.bf16.msra.mxu2 %v914_v4  ;;  %1028 = vmatpush.bf16.msra.mxu3 %v914_v4 }
  0x20   : > { %379 = vmatpush.bf16.msra.mxu0 %v913_v5  ;;  %1029 = vmatpush.bf16.msra.mxu1 %v913_v5 }
  0x21   : > { %1030 = vmatpush.bf16.msra.mxu2 %v913_v5  ;;  %1031 = vmatpush.bf16.msra.mxu3 %v913_v5 }
  0x24   : > { %380 = vmatpush.bf16.msra.mxu0 %v912_v6  ;;  %1032 = vmatpush.bf16.msra.mxu1 %v912_v6 }
  0x25   : > { %1033 = vmatpush.bf16.msra.mxu2 %v912_v6  ;;  %1034 = vmatpush.bf16.msra.mxu3 %v912_v6 }
  0x28   : > { %381 = vmatpush.bf16.msra.mxu0 %v911_v7  ;;  %1035 = vmatpush.bf16.msra.mxu1 %v911_v7 }
  0x29   : > { %1036 = vmatpush.bf16.msra.mxu2 %v911_v7  ;;  %1037 = vmatpush.bf16.msra.mxu3 %v911_v7 }
  0x2b   : > { %382 = vmatmul.bf16.vlgmr.msra.gmra.mxu0 %v895_v8  ;;  %402 = vmatmul.bf16.vlgmr.msra.gmra.mxu1 %v899_v9 }
  0x2c   : > { %422 = vmatmul.bf16.vlgmr.msra.gmra.mxu2 %v903_v10  ;;  %442 = vmatmul.bf16.vlgmr.msra.gmra.mxu3 %v907_v11 }
  0x3b   : > { %387 = vmatmul.bf16.gmra.mxu0 %v896_v12  ;;  %407 = vmatmul.bf16.gmra.mxu1 %v900_v13 }
  0x3c   : > { %427 = vmatmul.bf16.gmra.mxu2 %v904_v14  ;;  %447 = vmatmul.bf16.gmra.mxu3 %v908_v15 }
  0x4b   : > { %392 = vmatmul.bf16.gmra.mxu0 %v897_v16  ;;  %412 = vmatmul.bf16.gmra.mxu1 %v901_v17 }
  0x4c   : > { %432 = vmatmul.bf16.gmra.mxu2 %v905_v18  ;;  %452 = vmatmul.bf16.gmra.mxu3 %v909_v19 }
  0x5b   : > { %397 = vmatmul.bf16.gmra.mxu0 %v898_v20  ;;  %417 = vmatmul.bf16.gmra.mxu1 %v902_v21 }
  0x5c   : > { %437 = vmatmul.bf16.gmra.mxu2 %v906_v22  ;;  %457 = vmatmul.bf16.gmra.mxu3 %v910_v23 }
  0xa8   : > { %v383_v24 = vpop.f32.mrf.mxu0  ;;  %v1136_v25 = vpop.f32.mrf.mxu1 }
  0xa9   : > { %v565_v57 = vmul.f32 %v383_v24, %v383_v24 }
  0xaf   : > { %v1138_v26 = vpop.f32.mrf.mxu2  ;;  %v1149_v30 = vpop.f32.mrf.mxu3 }
  0xb0   : > { %v385_v27 = vpop.f32.mrf.mxu0  ;;  %v1147_v28 = vpop.f32.mrf.mxu1 }
  0xb1   : > { %v922_v29 = vpack.c.bf16 %v385_v27, %v383_v24  ;;  %v942_v31 = vpack.c.bf16 %v1147_v28, %v1136_v25  ;;  %v566_v56 = vmul.f32 %v385_v27, %v385_v27  ;;  %v527_v58 = vadd.f32 %v385_v27, %v383_v24 }
  0xb2   : > { %v573_v27 = vmul.f32 %v1136_v25, %v1136_v25 }
  0xb3   : > { %923 = vst [vmem:[%s1145_s9] sm:$0xff] %v922_v29   ;;  %v597_v60 = vadd.f32 %v566_v56, %v565_v57 }
  0xb4   : > { %1002 = vst [vmem:[%s1145_s9 + $0x20] sm:$0xff] %v942_v31  }
  0xb7   : > { %v1155_v32 = vpop.f32.mrf.mxu2  ;;  %v1161_v36 = vpop.f32.mrf.mxu3 }
  0xb8   : > { %v388_v33 = vpop.f32.mrf.mxu0  ;;  %v1157_v34 = vpop.f32.mrf.mxu1  ;;  %v962_v35 = vpack.c.bf16 %v1155_v32, %v1138_v26  ;;  %v982_v37 = vpack.c.bf16 %v1161_v36, %v1149_v30 }
  0xb9   : > { %v567_v59 = vmul.f32 %v388_v33, %v388_v33  ;;  %v528_v61 = vadd.f32 %v527_v58, %v388_v33 }
  0xba   : > { %1006 = vst [vmem:[%s1145_s9 + $0x40] sm:$0xff] %v962_v35  }
  0xbb   : > { %1010 = vst [vmem:[%s1145_s9 + $0x60] sm:$0xff] %v982_v37   ;;  %v598_v3 = vadd.f32 %v597_v60, %v567_v59 }
  0xbf   : > { %v1167_v38 = vpop.f32.mrf.mxu2  ;;  %v1171_v42 = vpop.f32.mrf.mxu3 }
  0xc0   : > { %v390_v39 = vpop.f32.mrf.mxu0  ;;  %v1169_v40 = vpop.f32.mrf.mxu1 }
  0xc1   : > { %v927_v41 = vpack.c.bf16 %v390_v39, %v388_v33  ;;  %v947_v43 = vpack.c.bf16 %v1169_v40, %v1157_v34  ;;  %v568_v62 = vmul.f32 %v390_v39, %v390_v39  ;;  %v529_v4 = vadd.f32 %v528_v61, %v390_v39 }
  0xc2   : > { %v574_v33 = vmul.f32 %v1147_v28, %v1147_v28  ;;  %v575_v39 = vmul.f32 %v1157_v34, %v1157_v34 }
  0xc3   : > { %999 = vst [vmem:[%s1145_s9 + $0x8] sm:$0xff] %v927_v41   ;;  %v599_v8 = vadd.f32 %v598_v3, %v568_v62  ;;  %v581_v3 = vmul.f32 %v1138_v26, %v1138_v26 }
  0xc4   : > { %1003 = vst [vmem:[%s1145_s9 + $0x28] sm:$0xff] %v947_v43  }
  0xc7   : > { %v1177_v44 = vpop.f32.mrf.mxu2  ;;  %v1183_v48 = vpop.f32.mrf.mxu3 }
  0xc8   : > { %v393_v45 = vpop.f32.mrf.mxu0  ;;  %v1179_v46 = vpop.f32.mrf.mxu1  ;;  %v967_v47 = vpack.c.bf16 %v1177_v44, %v1167_v38  ;;  %v987_v49 = vpack.c.bf16 %v1183_v48, %v1171_v42 }
  0xc9   : > { %v569_v5 = vmul.f32 %v393_v45, %v393_v45  ;;  %v530_v9 = vadd.f32 %v529_v4, %v393_v45 }
  0xca   : > { %1007 = vst [vmem:[%s1145_s9 + $0x48] sm:$0xff] %v967_v47  }
  0xcb   : > { %1011 = vst [vmem:[%s1145_s9 + $0x68] sm:$0xff] %v987_v49   ;;  %v600_v11 = vadd.f32 %v599_v8, %v569_v5  ;;  %v582_v5 = vmul.f32 %v1155_v32, %v1155_v32 }
  0xcf   : > { %v1189_v50 = vpop.f32.mrf.mxu2  ;;  %v1193_v54 = vpop.f32.mrf.mxu3 }
  0xd0   : > { %v395_v51 = vpop.f32.mrf.mxu0  ;;  %v1191_v52 = vpop.f32.mrf.mxu1 }
  0xd1   : > { %v932_v53 = vpack.c.bf16 %v395_v51, %v393_v45  ;;  %v952_v55 = vpack.c.bf16 %v1191_v52, %v1179_v46  ;;  %v570_v10 = vmul.f32 %v395_v51, %v395_v51  ;;  %v531_v12 = vadd.f32 %v530_v9, %v395_v51 }
  0xd3   : > { %1000 = vst [vmem:[%s1145_s9 + $0x10] sm:$0xff] %v932_v53   ;;  %v601_v14 = vadd.f32 %v600_v11, %v570_v10  ;;  %v584_v10 = vmul.f32 %v1177_v44, %v1177_v44 }
  0xd4   : > { %1004 = vst [vmem:[%s1145_s9 + $0x30] sm:$0xff] %v952_v55   ;;  %v577_v55 = vmul.f32 %v1179_v46, %v1179_v46 }
  0xd7   : > { %v1199_v63 = vpop.f32.mrf.mxu2  ;;  %v1203_v6 = vpop.f32.mrf.mxu3 }
  0xd8   : > { %v398_v0 = vpop.f32.mrf.mxu0  ;;  %v418_v1 = vpop.f32.mrf.mxu1  ;;  %v972_v2 = vpack.c.bf16 %v1199_v63, %v1189_v50  ;;  %v992_v7 = vpack.c.bf16 %v1203_v6, %v1193_v54 }
  0xd9   : > { %v571_v13 = vmul.f32 %v398_v0, %v398_v0  ;;  %v532_v15 = vadd.f32 %v531_v12, %v398_v0  ;;  %v579_v61 = vmul.f32 %v418_v1, %v418_v1 }
  0xda   : > { %1008 = vst [vmem:[%s1145_s9 + $0x50] sm:$0xff] %v972_v2  }
  0xdb   : > { %1012 = vst [vmem:[%s1145_s9 + $0x70] sm:$0xff] %v992_v7   ;;  %v602_v19 = vadd.f32 %v601_v14, %v571_v13 }
  0xdf   : > { %v438_v16 = vpop.f32.mrf.mxu2  ;;  %v1209_v23 = vpop.f32.mrf.mxu3 }
  0xe0   : > { %v400_v17 = vpop.f32.mrf.mxu0  ;;  %v420_v18 = vpop.f32.mrf.mxu1 }
  0xe1   : > { %v533_v20 = vadd.f32 %v532_v15, %v400_v17  ;;  %v572_v21 = vmul.f32 %v400_v17, %v400_v17  ;;  %v937_v22 = vpack.c.bf16 %v400_v17, %v398_v0  ;;  %v957_v24 = vpack.c.bf16 %v420_v18, %v418_v1 }
  0xe2   : > { %v580_v2 = vmul.f32 %v420_v18, %v420_v18  ;;  %v586_v15 = vmul.f32 %v1199_v63, %v1199_v63 }
  0xe3   : > { %v534_v29 = vadd.f32 %v533_v20, %v1136_v25  ;;  %v603_v31 = vadd.f32 %v602_v19, %v572_v21  ;;  %1001 = vst [vmem:[%s1145_s9 + $0x18] sm:$0xff] %v937_v22   ;;  %v576_v25 = vmul.f32 %v1169_v40, %v1169_v40  ;;  %v587_v19 = vmul.f32 %v438_v16, %v438_v16 }
  0xe4   : > { %1005 = vst [vmem:[%s1145_s9 + $0x38] sm:$0xff] %v957_v24  }
  0xe5   : > { %v535_v35 = vadd.f32 %v534_v29, %v1147_v28  ;;  %v604_v37 = vadd.f32 %v603_v31, %v573_v27 }
  0xe7   : > { %v536_v41 = vadd.f32 %v535_v35, %v1157_v34  ;;  %v605_v43 = vadd.f32 %v604_v37, %v574_v33  ;;  %v440_v45 = vpop.f32.mrf.mxu2  ;;  %v460_v53 = vpop.f32.mrf.mxu3  ;;  %v578_v34 = vmul.f32 %v1191_v52, %v1191_v52  ;;  %v592_v35 = vmul.f32 %v1183_v48, %v1183_v48 }
  0xe8   : > { %v977_v47 = vpack.c.bf16 %v440_v45, %v438_v16  ;;  %v997_v28 = vpack.c.bf16 %v460_v53, %v1209_v23  ;;  %v588_v22 = vmul.f32 %v440_v45, %v440_v45 }
  0xe9   : > { %v606_v49 = vadd.f32 %v605_v43, %v575_v39  ;;  %v537_v51 = vadd.f32 %v536_v41, %v1169_v40 }
  0xea   : > { %1009 = vst [vmem:[%s1145_s9 + $0x58] sm:$0xff] %v977_v47  }
  0xeb   : > { %v538_v56 = vadd.f32 %v537_v51, %v1179_v46  ;;  %v607_v57 = vadd.f32 %v606_v49, %v576_v25  ;;  %1013 = vst [vmem:[%s1145_s9 + $0x78] sm:$0xff] %v997_v28   ;;  %v595_v49 = vmul.f32 %v1209_v23, %v1209_v23  ;;  %v596_v28 = vmul.f32 %v460_v53, %v460_v53 }
  0xed   : > { %v539_v58 = vadd.f32 %v538_v56, %v1191_v52  ;;  %v608_v59 = vadd.f32 %v607_v57, %v577_v55  ;;  %v583_v52 = vmul.f32 %v1167_v38, %v1167_v38 }
  0xef   : > { %v540_v60 = vadd.f32 %v539_v58, %v418_v1  ;;  %v609_v40 = vadd.f32 %v608_v59, %v578_v34 }
  0xf1   : > { %v610_v62 = vadd.f32 %v609_v40, %v579_v61  ;;  %v541_v0 = vadd.f32 %v540_v60, %v420_v18 }
  0xf3   : > { %v542_v4 = vadd.f32 %v541_v0, %v1138_v26  ;;  %v611_v46 = vadd.f32 %v610_v62, %v580_v2  ;;  %v585_v26 = vmul.f32 %v1189_v50, %v1189_v50 }
  0xf5   : > { %v543_v7 = vadd.f32 %v542_v4, %v1155_v32  ;;  %v612_v8 = vadd.f32 %v611_v46, %v581_v3 }
  0xf7   : > { %v544_v1 = vadd.f32 %v543_v7, %v1167_v38  ;;  %v613_v9 = vadd.f32 %v612_v8, %v582_v5 }
  0xf9   : > { %v614_v11 = vadd.f32 %v613_v9, %v583_v52  ;;  %v545_v12 = vadd.f32 %v544_v1, %v1177_v44  ;;  %v589_v44 = vmul.f32 %v1149_v30, %v1149_v30 }
  0xfb   : > { %v546_v13 = vadd.f32 %v545_v12, %v1189_v50  ;;  %v615_v14 = vadd.f32 %v614_v11, %v584_v10  ;;  %v590_v50 = vmul.f32 %v1161_v36, %v1161_v36 }
  0xfd   : > { %v547_v32 = vadd.f32 %v546_v13, %v1199_v63  ;;  %v616_v17 = vadd.f32 %v615_v14, %v585_v26  ;;  %v591_v63 = vmul.f32 %v1171_v42, %v1171_v42 }
  0xff   : > { %v617_v38 = vadd.f32 %v616_v17, %v586_v15  ;;  %v548_v18 = vadd.f32 %v547_v32, %v438_v16 }
 0x101   : > { %v618_v20 = vadd.f32 %v617_v38, %v587_v19  ;;  %v549_v21 = vadd.f32 %v548_v18, %v440_v45  ;;  %v594_v45 = vmul.f32 %v1203_v6, %v1203_v6 }
 0x103   : > { %v550_v24 = vadd.f32 %v549_v21, %v1149_v30  ;;  %v619_v27 = vadd.f32 %v618_v20, %v588_v22  ;;  %v593_v30 = vmul.f32 %v1193_v54, %v1193_v54 }
 0x105   : > { %v551_v29 = vadd.f32 %v550_v24, %v1161_v36  ;;  %v620_v31 = vadd.f32 %v619_v27, %v589_v44 }
 0x107   : > { %v552_v16 = vadd.f32 %v551_v29, %v1171_v42  ;;  %v621_v33 = vadd.f32 %v620_v31, %v590_v50 }
 0x109   : > { %v622_v37 = vadd.f32 %v621_v33, %v591_v63  ;;  %v553_v39 = vadd.f32 %v552_v16, %v1183_v48 }
 0x10b   : > { %v554_v41 = vadd.f32 %v553_v39, %v1193_v54  ;;  %v623_v43 = vadd.f32 %v622_v37, %v592_v35 }
 0x10d   : > { %v555_v36 = vadd.f32 %v554_v41, %v1203_v6  ;;  %v624_v42 = vadd.f32 %v623_v43, %v593_v30 }
 0x10f   : > { %v625_v47 = vadd.f32 %v624_v42, %v594_v45  ;;  %v556_v25 = vadd.f32 %v555_v36, %v1209_v23 }
 0x111   : > { %v626_v48 = vadd.f32 %v625_v47, %v595_v49  ;;  %v557_v51 = vadd.f32 %v556_v25, %v460_v53 }
 0x113   : > { %v558_v55 = vrot.slane %v557_v51, 4  ;;  %v627_v56 = vadd.f32 %v626_v48, %v596_v28 }
 0x115   : > { %v559_v54 = vadd.f32 %v558_v55, %v557_v51  ;;  %v628_v57 = vrot.slane %v627_v56, 4 }
 0x117   : > { %v560_v34 = vrot.slane %v559_v54, 2  ;;  %v629_v58 = vadd.f32 %v628_v57, %v627_v56 }
 0x119   : > { %v561_v59 = vadd.f32 %v560_v34, %v559_v54  ;;  %v630_v60 = vrot.slane %v629_v58, 2 }
 0x11b   : > { %v562_v6 = vrot.slane %v561_v59, 1  ;;  %v631_v61 = vadd.f32 %v630_v60, %v629_v58 }
 0x11d   : > { %v563_v40 = vadd.f32 %v562_v6, %v561_v59  ;;  %v632_v23 = vrot.slane %v631_v61, 1 }
 0x11f   : > { %564 = vst [vmem:[%s181_s15] sm:$0x1] %v563_v40  ;;  %v633_v62 = vadd.f32 %v632_v23, %v631_v61 }
 0x121   : > { %634 = vst [vmem:[%s181_s15 + $0x1] sm:$0x1] %v633_v62 }
 0x122 PF: > { %s14_s12 = sadd.s32 1, %s1052_s12  }
 0x123   : > { %p11_p4 = scmp.ge.s32.totalorder %s14_s12, 4  }
 0x125   :  { %13 = sbr.rel (!%p11_p4) target bundleno = 1 (0x1), region = 70 }

// kernel: inception_b_forward.8
= control target key start
LH: loop header
LB: loop body
LE: loop exit
PB: predicated region body
PF: predicated region fallthrough
CT: control target
= control target key end

     0   :  { %s5523_s15 = smov 0   ;;  %s7998_s0 = inlined_call_operand.vmem [shape: bf16[2,65,512], index: 0, kind: input, shape index: {}]   ;;  %s7999_s1 = inlined_call_operand.vmem [shape: bf16[1152,384], index: 1, kind: input, shape index: {}]   ;;  %s8000_s2 = inlined_call_operand.vmem [shape: bf16[2,56,384], index: 2, kind: output, shape index: {0}]   ;;  %s8001_s3 = inlined_call_operand.vmem [shape: f32[2,2,384], index: 3, kind: output, shape index: {1}]   ;;  %s8002_s4 = inlined_call_operand.vmem [shape: bf16[2,56,128], index: 4, kind: output, shape index: {2}]  }
   0x1 LB: > { %s3964_s16 = sadd.s32 4294967295, %s5496_s15   ;;  %p3968_p0 = scmp.ge.s32.totalorder %s5496_s15, 1  ;;  %s5496_s15 = sphi %s5523_s15, %s15_s15  }
   0x2   : > { %p167_p1 = scmp.lt.s32.totalorder %s5496_s15, 3 }
   0x4   : > { %p168_p2 = pnand %p3968_p0, %p167_p1 }
   0x5   : > { %p203_p3 = scmp.lt.s32.totalorder (!%p168_p2), %s3964_s16, 1 }
   0x6   : > { %171 = sbr.rel (%p168_p2) target bundleno = 648 (0x288), region = 28 }
   0xb   : > { %v4083_v0 = vld [vmem:[%s7999_s1 + $0xa8] sm:$0xf]  ;;  %v4988_v1 = vld [vmem:[%s7999_s1 + $0xb0] sm:$0xf0]  ;;  %v4987_v5 = vld [vmem:[%s7999_s1 + $0xac] sm:$0xf] }
   0xc   : > { %v4179_v2 = vld [vmem:[%s7999_s1 + $0x168] sm:$0xf]  ;;  %v4084_v3 = vor.u32 %v4988_v1, %v4083_v0  ;;  %v5012_v4 = vld [vmem:[%s7999_s1 + $0x170] sm:$0xf0]  ;;  %v4085_v6 = vld [vmem:[%s7999_s1 + $0xb4] sm:$0xf0] }
   0xd   : > { %v4180_v7 = vor.u32 %v5012_v4, %v4179_v2  ;;  %v4088_v8 = vor.u32 %v4987_v5, %v4085_v6  ;;  %v4071_v9 = vld [vmem:[%s7999_s1 + $0x90] sm:$0xf]  ;;  %v4985_v10 = vld [vmem:[%s7999_s1 + $0x98] sm:$0xf0]  ;;  %v4984_v14 = vld [vmem:[%s7999_s1 + $0x94] sm:$0xf] }
   0xe   : > { %v4167_v11 = vld [vmem:[%s7999_s1 + $0x150] sm:$0xf]  ;;  %587 = vmatpush.bf16.msra.mxu0 %v4084_v3  ;;  %5454 = vmatpush.bf16.msra.mxu3 %v4084_v3  ;;  %v4072_v12 = vor.u32 %v4985_v10, %v4071_v9  ;;  %v5009_v13 = vld [vmem:[%s7999_s1 + $0x158] sm:$0xf0]  ;;  %v4073_v15 = vld [vmem:[%s7999_s1 + $0x9c] sm:$0xf0] }
   0xf   : > { %615 = vmatpush.bf16.msra.mxu1 %v4180_v7  ;;  %643 = vmatpush.bf16.msra.mxu2 %v4088_v8  ;;  %v4168_v16 = vor.u32 %v5009_v13, %v4167_v11  ;;  %v4076_v17 = vor.u32 %v4984_v14, %v4073_v15  ;;  %v4059_v18 = vld [vmem:[%s7999_s1 + $0x78] sm:$0xf]  ;;  %v4982_v19 = vld [vmem:[%s7999_s1 + $0x80] sm:$0xf0]  ;;  %v4981_v22 = vld [vmem:[%s7999_s1 + $0x7c] sm:$0xf] }
  0x10   : > { %v4155_v20 = vld [vmem:[%s7999_s1 + $0x138] sm:$0xf]  ;;  %v5006_v21 = vld [vmem:[%s7999_s1 + $0x140] sm:$0xf0]  ;;  %v4061_v23 = vld [vmem:[%s7999_s1 + $0x84] sm:$0xf0]  ;;  %v4060_v24 = vor.u32 %v4982_v19, %v4059_v18 }
  0x11   : > { %v4156_v25 = vor.u32 %v5006_v21, %v4155_v20  ;;  %v4064_v26 = vor.u32 %v4981_v22, %v4061_v23  ;;  %v4047_v27 = vld [vmem:[%s7999_s1 + $0x60] sm:$0xf]  ;;  %v4979_v28 = vld [vmem:[%s7999_s1 + $0x68] sm:$0xf0]  ;;  %v4978_v31 = vld [vmem:[%s7999_s1 + $0x64] sm:$0xf] }
  0x12   : > { %588 = vmatpush.bf16.msra.mxu0 %v4072_v12  ;;  %5455 = vmatpush.bf16.msra.mxu3 %v4072_v12  ;;  %v4143_v29 = vld [vmem:[%s7999_s1 + $0x120] sm:$0xf]  ;;  %v5003_v30 = vld [vmem:[%s7999_s1 + $0x128] sm:$0xf0]  ;;  %v4049_v32 = vld [vmem:[%s7999_s1 + $0x6c] sm:$0xf0]  ;;  %v4048_v33 = vor.u32 %v4979_v28, %v4047_v27 }
  0x13   : > { %616 = vmatpush.bf16.msra.mxu1 %v4168_v16  ;;  %644 = vmatpush.bf16.msra.mxu2 %v4076_v17  ;;  %v4144_v34 = vor.u32 %v5003_v30, %v4143_v29  ;;  %v4052_v35 = vor.u32 %v4978_v31, %v4049_v32  ;;  %v4035_v36 = vld [vmem:[%s7999_s1 + $0x48] sm:$0xf]  ;;  %v4976_v37 = vld [vmem:[%s7999_s1 + $0x50] sm:$0xf0]  ;;  %v4975_v40 = vld [vmem:[%s7999_s1 + $0x4c] sm:$0xf] }
  0x14   : > { %v4131_v38 = vld [vmem:[%s7999_s1 + $0x108] sm:$0xf]  ;;  %v5000_v39 = vld [vmem:[%s7999_s1 + $0x110] sm:$0xf0]  ;;  %v4037_v41 = vld [vmem:[%s7999_s1 + $0x54] sm:$0xf0]  ;;  %v4036_v43 = vor.u32 %v4976_v37, %v4035_v36 }
  0x15   : > { %v4023_v42 = vld [vmem:[%s7999_s1 + $0x30] sm:$0xf]  ;;  %v4973_v44 = vld [vmem:[%s7999_s1 + $0x38] sm:$0xf0]  ;;  %v4132_v47 = vor.u32 %v5000_v39, %v4131_v38  ;;  %v4040_v48 = vor.u32 %v4975_v40, %v4037_v41  ;;  %v4972_v49 = vld [vmem:[%s7999_s1 + $0x34] sm:$0xf] }
  0x16   : > { %589 = vmatpush.bf16.msra.mxu0 %v4060_v24  ;;  %5456 = vmatpush.bf16.msra.mxu3 %v4060_v24  ;;  %v4119_v45 = vld [vmem:[%s7999_s1 + $0xf0] sm:$0xf]  ;;  %v4997_v46 = vld [vmem:[%s7999_s1 + $0xf8] sm:$0xf0]  ;;  %v4025_v50 = vld [vmem:[%s7999_s1 + $0x3c] sm:$0xf0]  ;;  %v4024_v63 = vor.u32 %v4973_v44, %v4023_v42 }
  0x17   : > { %617 = vmatpush.bf16.msra.mxu1 %v4156_v25  ;;  %645 = vmatpush.bf16.msra.mxu2 %v4064_v26  ;;  %v4011_v51 = vld [vmem:[%s7999_s1 + $0x18] sm:$0xf]  ;;  %v4970_v52 = vld [vmem:[%s7999_s1 + $0x20] sm:$0xf0]  ;;  %v5660_v55 = vld [vmem:[%s7999_s1 + $0x1c] sm:$0xf]  ;;  %v4120_v6 = vor.u32 %v4997_v46, %v4119_v45  ;;  %v4028_v7 = vor.u32 %v4972_v49, %v4025_v50 }
  0x18   : > { %v5650_v53 = vld [vmem:[%s7999_s1 + $0xd8] sm:$0xf]  ;;  %v5655_v54 = vld [vmem:[%s7999_s1 + $0xe0] sm:$0xf0]  ;;  %v5665_v56 = vld [vmem:[%s7999_s1 + $0x24] sm:$0xf0]  ;;  %v4012_v17 = vor.u32 %v4970_v52, %v4011_v51 }
  0x19   : > { %v3999_v57 = vld [vmem:[%s7999_s1] sm:$0xf]  ;;  %v4967_v58 = vld [vmem:[%s7999_s1 + $0x8] sm:$0xf0]  ;;  %v5686_v61 = vld [vmem:[%s7999_s1 + $0x4] sm:$0xf]  ;;  %v4108_v18 = vor.u32 %v5655_v54, %v5650_v53  ;;  %v4016_v19 = vor.u32 %v5660_v55, %v5665_v56 }
  0x1a   : > { %590 = vmatpush.bf16.msra.mxu0 %v4048_v33  ;;  %5457 = vmatpush.bf16.msra.mxu3 %v4048_v33  ;;  %v5676_v59 = vld [vmem:[%s7999_s1 + $0xc0] sm:$0xf]  ;;  %v5681_v60 = vld [vmem:[%s7999_s1 + $0xc8] sm:$0xf0]  ;;  %v5691_v62 = vld [vmem:[%s7999_s1 + $0xc] sm:$0xf0]  ;;  %v4000_v23 = vor.u32 %v4967_v58, %v3999_v57 }
  0x1b   : > { %618 = vmatpush.bf16.msra.mxu1 %v4144_v34  ;;  %646 = vmatpush.bf16.msra.mxu2 %v4052_v35  ;;  %s8020_s16 = smov (!%p203_p3, %s3964_s16), 1  ;;  %v5700_v0 = vld [vmem:[%s7999_s1 + $0xb0] sm:$0xf]  ;;  %v5705_v1 = vld [vmem:[%s7999_s1 + $0xb8] sm:$0xf0]  ;;  %v4096_v24 = vor.u32 %v5681_v60, %v5676_v59  ;;  %v4004_v25 = vor.u32 %v5686_v61, %v5691_v62  ;;  %vm1240_vm0 = vcmask 1046528  }
  0x1c   : > { %v5710_v2 = vld [vmem:[%s7999_s1 + $0x16c] sm:$0xf]  ;;  %v5715_v3 = vld [vmem:[%s7999_s1 + $0x174] sm:$0xf0]  ;;  %v5720_v4 = vld [vmem:[%s7999_s1 + $0x228] sm:$0xf]  ;;  %v4092_v32 = vor.u32 %v5705_v1, %v5700_v0 }
  0x1d   : > { %v5725_v5 = vld [vmem:[%s7999_s1 + $0x230] sm:$0xf0]  ;;  %s5478_s29 = smul.u32 144, %s8020_s16  ;;  %v5731_v8 = vld [vmem:[%s7999_s1 + $0x98] sm:$0xf]  ;;  %v4184_v33 = vor.u32 %v5710_v2, %v5715_v3  ;;  %vm3738_vm9 = vcmask 1040384  }
  0x1e   : > { %591 = vmatpush.bf16.msra.mxu0 %v4036_v43  ;;  %5458 = vmatpush.bf16.msra.mxu3 %v4036_v43  ;;  %v5736_v9 = vld [vmem:[%s7999_s1 + $0xa0] sm:$0xf0]  ;;  %v5741_v10 = vld [vmem:[%s7999_s1 + $0x154] sm:$0xf]  ;;  %v5746_v11 = vld [vmem:[%s7999_s1 + $0x15c] sm:$0xf0]  ;;  %v4292_v34 = vor.u32 %v5725_v5, %v5720_v4 }
  0x1f   : > { %619 = vmatpush.bf16.msra.mxu1 %v4132_v47  ;;  %647 = vmatpush.bf16.msra.mxu2 %v4040_v48  ;;  %v5751_v12 = vld [vmem:[%s7999_s1 + $0x80] sm:$0xf]  ;;  %v5756_v13 = vld [vmem:[%s7999_s1 + $0x88] sm:$0xf0]  ;;  %v5761_v14 = vld [vmem:[%s7999_s1 + $0x13c] sm:$0xf]  ;;  %s5780_s26 = scalar_lea.vmem %s7998_s0, %s5478_s29  ;;  %v4080_v35 = vor.u32 %v5736_v9, %v5731_v8  ;;  %v4172_v36 = vor.u32 %v5741_v10, %v5746_v11 }
  0x20   : > { %v5766_v15 = vld [vmem:[%s7999_s1 + $0x144] sm:$0xf0]  ;;  %v5771_v16 = vld [vmem:[%s7999_s1 + $0x210] sm:$0xf]  ;;  %v5785_v20 = vld [vmem:[%s7999_s1 + $0x218] sm:$0xf0]  ;;  %v4068_v37 = vor.u32 %v5756_v13, %v5751_v12 }
  0x21   : > { %v5790_v21 = vld [vmem:[%s7999_s1 + $0x68] sm:$0xf]  ;;  %v5795_v22 = vld [vmem:[%s7999_s1 + $0x70] sm:$0xf0]  ;;  %v3975_v26 = vld [vmem:[%s5780_s26] sm:$0xf]  ;;  %v4160_v38 = vor.u32 %v5761_v14, %v5766_v15  ;;  %v4280_v44 = vor.u32 %v5785_v20, %v5771_v16 }
  0x22   : > { %592 = vmatpush.bf16.msra.mxu0 %v4024_v63  ;;  %5459 = vmatpush.bf16.msra.mxu3 %v4024_v63  ;;  %v4961_v27 = vld [vmem:[%s5780_s26 + $0xc] sm:$0xf0]  ;;  %v3991_v28 = vld [vmem:[%s5780_s26 + $0x40] sm:$0xf]  ;;  %v4960_v30 = vld [vmem:[%s5780_s26 + $0x4] sm:$0xf] }
  0x23   : > { %620 = vmatpush.bf16.msra.mxu1 %v4120_v6  ;;  %648 = vmatpush.bf16.msra.mxu2 %v4028_v7  ;;  %v4965_v29 = vld [vmem:[%s5780_s26 + $0x4c] sm:$0xf0]  ;;  %v3977_v31 = vld [vmem:[%s5780_s26 + $0x10] sm:$0xf0]  ;;  %v5824_v39 = vld [vmem:[%s7999_s1 + $0x124] sm:$0xf]  ;;  %v5832_v42 = vor.u32 %v4961_v27, %v3975_v26 }
  0x24   : > { %v5829_v40 = vld [vmem:[%s7999_s1 + $0x12c] sm:$0xf0]  ;;  %v3983_v41 = vld [vmem:[%s5780_s26 + $0x20] sm:$0xf]  ;;  %v5834_v43 = vor.u32 %v4965_v29, %v3991_v28  ;;  %s5481_s11 = smul.u32 28, %s8020_s16  ;;  %v5846_v49 = vor.u32 %v4960_v30, %v3977_v31  ;;  %vm3740_vm10 = vcmask 1041408  }
  0x25   : > { %v4963_v46 = vld [vmem:[%s5780_s26 + $0x2c] sm:$0xf0]  ;;  %v223_v47 = vld [vmem:[%s5780_s26] sm:$0xff]  ;;  %vm899_vm1 = vsmask.f32 7424  ;;  %s5480_s19 = smul.u32 6, %s8020_s16 }
  0x26   : > { %v5844_v48 = vld [vmem:[%s5780_s26 + $0x10] sm:$0xff]  ;;  %593 = vmatpush.bf16.msra.mxu0 %v4012_v17  ;;  %5460 = vmatpush.bf16.msra.mxu3 %v4012_v17  ;;  %v5851_v51 = vld [vmem:[%s5780_s26 + $0x20] sm:$0xff]  ;;  %v797_v54 = vrot.slane %v223_v47, 4  ;;  %s5863_s14 = scalar_lea.vmem %s8002_s4, %s5481_s11  ;;  %v5874_v7 = vor.u32 %v4963_v46, %v3983_v41 }
  0x27   : > { %v5854_v52 = vld [vmem:[%s5780_s26 + $0x30] sm:$0xff]  ;;  %v5857_v53 = vld [vmem:[%s5780_s26 + $0x40] sm:$0xff]  ;;  %v798_v55 = vrot.slane %v5844_v48, 4  ;;  %621 = vmatpush.bf16.msra.mxu1 %v4108_v18  ;;  %649 = vmatpush.bf16.msra.mxu2 %v4016_v19  ;;  %v799_v58 = vrot.slane %v5851_v51, 4  ;;  %776 = vst [vmem:[%s5863_s14] sm:$0xf] %v223_v47  ;;  %s217_s21 = scalar_lea.vmem %s8001_s3, %s5480_s19 }
  0x28   : > { %v5866_v56 = vld [vmem:[%s5780_s26 + $0x50] sm:$0xff]  ;;  %v5869_v57 = vld [vmem:[%s5780_s26 + $0x60] sm:$0xff]  ;;  %v800_v63 = vrot.slane %v5854_v52, 4  ;;  %v801_v6 = vrot.slane %v5857_v53, 4  ;;  %777 = vst [vmem:[%s5863_s14 + $0x4] sm:$0xf] %v5844_v48  ;;  %v5883_v27 = vunpack.c.l.bf16 %v797_v54 }
  0x29   : > { %v313_v17 = vunpack.c.l.b16 %v5869_v57  ;;  %v802_v18 = vrot.slane %v5866_v56, 4  ;;  %v803_v19 = vrot.slane %v5869_v57, 4  ;;  %v839_v26 = vld [vmem:[%s5780_s26] sm:$0xf]  ;;  %v5885_v28 = vunpack.c.l.bf16 %v798_v55  ;;  %v840_v31 = vld [vmem:[%s5780_s26 + $0x10] sm:$0xf] }
  0x2a   : > { %v5887_v29 = vunpack.c.l.bf16 %v799_v58  ;;  %v5889_v30 = vunpack.c.l.bf16 %v800_v63  ;;  %v841_v41 = vld [vmem:[%s5780_s26 + $0x20] sm:$0xf]  ;;  %594 = vmatpush.bf16.msra.mxu0 %v4000_v23  ;;  %5461 = vmatpush.bf16.msra.mxu3 %v4000_v23  ;;  %778 = vst [vmem:[%s5863_s14 + $0x8] sm:$0xf] %v5851_v51  ;;  %v5897_v47 = vunpack.c.l.bf16 %v801_v6  ;;  %v842_v55 = vld [vmem:[%s5780_s26 + $0x30] sm:$0xf]  ;;  %v1224_v50 = vunpack.c.l.bf16 %v839_v26 }
  0x2b   : > { %v5893_v46 = vpack.c.b16 %v313_v17, %v313_v17  ;;  %v5899_v54 = vunpack.c.l.bf16 %v802_v18  ;;  %v843_v58 = vld [vmem:[%s5780_s26 + $0x40] sm:$0xf]  ;;  %622 = vmatpush.bf16.msra.mxu1 %v4096_v24  ;;  %650 = vmatpush.bf16.msra.mxu2 %v4004_v25  ;;  %779 = vst [vmem:[%s5863_s14 + $0xc] sm:$0xf] %v5854_v52  ;;  %v844_v23 = vld [vmem:[%s5780_s26 + $0x50] sm:$0xf]  ;;  %v1225_v6 = vunpack.c.l.bf16 %v840_v31  ;;  %v1226_v17 = vunpack.c.l.bf16 %v841_v41 }
  0x2c   : > { %v845_v63 = vld [vmem:[%s5780_s26 + $0x60] sm:$0xf]  ;;  %v1227_v18 = vunpack.c.l.bf16 %v842_v55  ;;  %v1228_v45 = vunpack.c.l.bf16 %v843_v58  ;;  %780 = vst [vmem:[%s5863_s14 + $0x10] sm:$0xf] %v5857_v53  ;;  %v5921_v59 = vunpack.c.l.bf16 %v803_v19  ;;  %v846_v60 = vld [vmem:[%s5780_s26 + $0x70] sm:$0x1]  ;;  %v1229_v61 = vunpack.c.l.bf16 %v844_v23 }
  0x2d   : > { %v1230_v62 = vunpack.c.l.bf16 %v845_v63  ;;  %v1241_v24 = vrot.slane %v1224_v50, 1  ;;  %v5925_v25 = vld [vmem:[%s5780_s26 + $0x8] sm:$0xff]  ;;  %595 = vmatmul.bf16.vlgmr.msra.gmra.mxu0 %v5832_v42  ;;  %605 = vmatmul.bf16.vlgmr.msra.gmra.mxu3 %v5834_v43  ;;  %781 = vst [vmem:[%s5863_s14 + $0x14] sm:$0xf] %v5866_v56  ;;  %v1231_v0 = vunpack.c.l.bf16 %v846_v60  ;;  %v1242_v1 = vrot.slane %v1225_v6, 1  ;;  %v5955_v23 = vld [vmem:[%s5780_s26 + $0x38] sm:$0xff] }
  0x2e   : > { %699 = vmatpush.bf16.msrb.mxu0 %v4092_v32  ;;  %671 = vmatpush.bf16.msrb.mxu3 %v4184_v33  ;;  %v1244_v2 = vrot.slane %v1226_v17, 1  ;;  %v1246_v3 = vrot.slane %v1227_v18, 1  ;;  %v5932_v32 = vld [vmem:[%s5780_s26 + $0x18] sm:$0xff]  ;;  %782 = vst [vmem:[%s5863_s14 + $0x18] sm:$0xf] %v5869_v57  ;;  %v1248_v33 = vrot.slane %v1228_v45, 1  ;;  %v1893_v31 = vunpack.c.l.bf16 %v5925_v25 }
  0x2f   : > { %623 = vmatmul.bf16.vlgmr.msra.gmra.mxu1 %v5846_v49  ;;  %651 = vmatmul.bf16.vlgmr.msra.gmra.mxu2 %v5832_v42  ;;  %v1250_v50 = vrot.slane %v1229_v61, 1  ;;  %v1252_v19 = vrot.slane %v1230_v62, 1  ;;  %v5939_v26 = vld [vmem:[%s5780_s26 + $0x28] sm:$0xff]  ;;  %v5946_v41 = vsel %vm1240_vm0, %v1241_v24, %v1242_v1  ;;  %v1254_v45 = vrot.slane %v1231_v0, 1  ;;  %v5961_v6 = vld [vmem:[%s5780_s26 + $0x58] sm:$0xff]  ;;  %v5207_v4 = vld [vmem:[%s5863_s14] sm:$0xff]  }
  0x30   : > { %1063 = vmatpush.bf16.msrb.mxu2 %v4292_v34  ;;  %v5949_v55 = vsel %vm1240_vm0, %v1242_v1, %v1244_v2  ;;  %v5952_v58 = vsel %vm1240_vm0, %v1244_v2, %v1246_v3  ;;  %v5958_v63 = vld [vmem:[%s5780_s26 + $0x48] sm:$0xff]  ;;  %v5971_v5 = vsel %vm1240_vm0, %v1246_v3, %v1248_v33  ;;  %v1894_v18 = vunpack.c.l.bf16 %v5932_v32 }
  0x31   : > { %v5974_v34 = vsel %vm1240_vm0, %v1248_v33, %v1250_v50  ;;  %v5977_v17 = vsel %vm1240_vm0, %v1250_v50, %v1252_v19  ;;  %v5208_v60 = vunpack.c.l.bf16 %v5207_v4  ;;  %v5209_v8 = vunpack.c.h.bf16 %v5207_v4 }
  0x32   : > { %700 = vmatpush.bf16.msrb.mxu0 %v4080_v35  ;;  %672 = vmatpush.bf16.msrb.mxu3 %v4172_v36  ;;  %v5981_v9 = vsel %vm1240_vm0, %v1252_v19, %v1254_v45  ;;  %v1895_v10 = vunpack.c.l.bf16 %v5939_v26  ;;  %v5422_v11 = vld [vmem:[%s5863_s14 + $0x8] sm:$0xff]   ;;  %v1896_v35 = vunpack.c.l.bf16 %v5955_v23  ;;  %v1897_v36 = vunpack.c.l.bf16 %v5958_v63 }
  0x33   : > { %v1898_v61 = vunpack.c.l.bf16 %v5961_v6  ;;  %v1935_v62 = vrot.slane %v5925_v25, 4  ;;  %v5212_v24 = vunpack.c.l.bf16 %v5422_v11  ;;  %v5213_v0 = vunpack.c.h.bf16 %v5422_v11 }
  0x34   : > { %1064 = vmatpush.bf16.msrb.mxu2 %v4280_v44  ;;  %v818_v1 = vmax.f32 %v5208_v60, %v5883_v27  ;;  %v819_v2 = vmax.f32 %v5209_v8, %v5885_v28  ;;  %v5423_v3 = vld [vmem:[%s5863_s14 + $0x10] sm:$0xff]   ;;  %v1936_v33 = vrot.slane %v5932_v32, 4  ;;  %v1937_v16 = vrot.slane %v5939_v26, 4 }
  0x35   : > { %v1938_v20 = vrot.slane %v5955_v23, 4  ;;  %v1939_v44 = vrot.slane %v5958_v63, 4  ;;  %v5216_v27 = vunpack.c.l.bf16 %v5423_v3  ;;  %v5217_v50 = vunpack.c.h.bf16 %v5423_v3  ;;  %v789_v19 = vld [vmem:[%s5863_s14 + $0x18] sm:$0xf] }
  0x36   : > { %701 = vmatpush.bf16.msrb.mxu0 %v4068_v37  ;;  %673 = vmatpush.bf16.msrb.mxu3 %v4160_v38  ;;  %v820_v12 = vmax.f32 %v5212_v24, %v5887_v29  ;;  %v821_v13 = vmax.f32 %v5213_v0, %v5889_v30  ;;  %v796_v14 = vunpack.c.l.bf16 %v789_v19  ;;  %v1940_v15 = vrot.slane %v5961_v6, 4  ;;  %v1977_v0 = vld [vmem:[%s5780_s26 + $0x8] sm:$0xf]  ;;  %v1978_v3 = vld [vmem:[%s5780_s26 + $0x18] sm:$0xf] }
  0x37   : > { %v6009_v37 = vunpack.c.l.bf16 %v1935_v62  ;;  %v822_v38 = vmax.f32 %v5216_v27, %v5897_v47  ;;  %v823_v45 = vmax.f32 %v5217_v50, %v5899_v54  ;;  %v6013_v4 = vunpack.c.l.bf16 %v1936_v33  ;;  %v1980_v19 = vld [vmem:[%s5780_s26 + $0x38] sm:$0xf] }
  0x38   : > { %v8003_v60 = vor.u32 %v5795_v22, %v5790_v21  ;;  %v8004_v8 = vor.u32 %v5824_v39, %v5829_v40  ;;  %v824_v11 = vmax.f32 %v796_v14, %v5921_v59  ;;  %v6022_v62 = vunpack.c.l.bf16 %v1937_v16  ;;  %v1979_v39 = vld [vmem:[%s5780_s26 + $0x28] sm:$0xf]  ;;  %v1982_v14 = vld [vmem:[%s5780_s26 + $0x58] sm:$0xf] }
  0x39   : > { %v6024_v24 = vunpack.c.l.bf16 %v1938_v20  ;;  %v1263_v27 = vmax.f32 %v818_v1, %v5946_v41  ;;  %v1264_v21 = vmax.f32 %v819_v2, %v5949_v55  ;;  %v6030_v22 = vunpack.c.l.bf16 %v1939_v44  ;;  %v1981_v16 = vld [vmem:[%s5780_s26 + $0x48] sm:$0xf] }
  0x3a   : > { %702 = vmatpush.bf16.msrb.mxu0 %v8003_v60  ;;  %674 = vmatpush.bf16.msrb.mxu3 %v8004_v8  ;;  %v831_v33 = vpack.c.bf16 %v824_v11, %v824_v11  ;;  %v1265_v40 = vmax.f32 %v820_v12, %v5952_v58  ;;  %v1266_v50 = vmax.f32 %v821_v13, %v5971_v5  ;;  %v1954_v20 = vunpack.c.l.bf16 %v1940_v15  ;;  %v1983_v1 = vld [vmem:[%s5780_s26 + $0x68] sm:$0xf] }
  0x3b   : > { %v2361_v60 = vunpack.c.l.bf16 %v1977_v0  ;;  %v2362_v8 = vunpack.c.l.bf16 %v1978_v3  ;;  %v1267_v41 = vmax.f32 %v822_v38, %v5974_v34  ;;  %v1268_v55 = vmax.f32 %v823_v45, %v5977_v17 }
  0x3c   : > { %838 = vst [vmem:[%s5863_s14 + $0x18] sm:$0xf] %v831_v33  ;;  %v2363_v58 = vunpack.c.l.bf16 %v1979_v39  ;;  %v2364_v2 = vunpack.c.l.bf16 %v1980_v19  ;;  %v2365_v5 = vunpack.c.l.bf16 %v1981_v16  ;;  %v2366_v44 = vunpack.c.l.bf16 %v1982_v14  ;;  %v3113_v16 = vld [vmem:[%s5780_s26 + $0x10] sm:$0xf] }
  0x3d   : > { %600 = vmatmul.bf16.gmra.mxu0 %v5874_v7  ;;  %610 = vmatmul.bf16.gmra.mxu3 %v5893_v46  ;;  %v1900_v12 = vmax.f32 %v1263_v27, %v1893_v31  ;;  %v1901_v13 = vmax.f32 %v1264_v21, %v1894_v18  ;;  %v2367_v15 = vunpack.c.l.bf16 %v1983_v1  ;;  %v2377_v11 = vrot.slane %v2361_v60, 1  ;;  %v3114_v60 = vld [vmem:[%s5780_s26 + $0x20] sm:$0xf] }
  0x3e   : > { %v1902_v34 = vmax.f32 %v1265_v40, %v1895_v10  ;;  %v1903_v17 = vmax.f32 %v1266_v50, %v1896_v35  ;;  %v2378_v38 = vrot.slane %v2362_v8, 1  ;;  %v2380_v45 = vrot.slane %v2363_v58, 1  ;;  %v3115_v8 = vld [vmem:[%s5780_s26 + $0x30] sm:$0xf]  ;;  %v3116_v1 = vld [vmem:[%s5780_s26 + $0x40] sm:$0xf] }
  0x3f   : > { %656 = vmatmul.bf16.gmra.mxu2 %v5874_v7  ;;  %v2382_v0 = vrot.slane %v2364_v2, 1  ;;  %v1904_v33 = vmax.f32 %v1267_v41, %v1897_v36  ;;  %v1905_v25 = vmax.f32 %v1268_v55, %v1898_v61  ;;  %v2384_v32 = vrot.slane %v2365_v5, 1  ;;  %v3118_v5 = vld [vmem:[%s5780_s26 + $0x60] sm:$0xf] }
  0x40   : > { %v2379_v18 = vsel %vm1240_vm0, %v2377_v11, %v2378_v38  ;;  %v2381_v26 = vsel %vm1240_vm0, %v2378_v38, %v2380_v45  ;;  %v1956_v10 = vmax.f32 %v1900_v12, %v6009_v37  ;;  %v1957_v35 = vmax.f32 %v1901_v13, %v6013_v4  ;;  %v3119_v13 = vld [vmem:[%s5780_s26 + $0x70] sm:$0xf] }
  0x41   : > { %v2383_v27 = vsel %vm1240_vm0, %v2380_v45, %v2382_v0  ;;  %v1958_v63 = vmax.f32 %v1902_v34, %v6022_v62  ;;  %v1959_v6 = vmax.f32 %v1903_v17, %v6024_v24  ;;  %v2385_v61 = vsel %vm1240_vm0, %v2382_v0, %v2384_v32 }
  0x42   : > { %v2386_v21 = vrot.slane %v2366_v44, 1  ;;  %v1960_v39 = vmax.f32 %v1904_v33, %v6030_v22  ;;  %v6068_v40 = vrot.slane %v2367_v15, 1  ;;  %v3029_v4 = vunpack.c.l.bf16 %v5844_v48 }
  0x43   : > { %v1216_v3 = vld [vmem:[%s5863_s14 + $0x18] sm:$0xf]  ;;  %v2399_v24 = vmax.f32 %v1956_v10, %v2379_v18  ;;  %v2400_v50 = vmax.f32 %v1957_v35, %v2381_v26  ;;  %v3030_v19 = vunpack.c.l.bf16 %v5851_v51  ;;  %v3031_v22 = vunpack.c.l.bf16 %v5854_v52  ;;  %v3117_v51 = vld [vmem:[%s5780_s26 + $0x50] sm:$0xf] }
  0x44   : > { %v1223_v31 = vunpack.c.l.bf16 %v1216_v3  ;;  %v2387_v37 = vsel %vm1240_vm0, %v2384_v32, %v2386_v21  ;;  %v2389_v62 = vsel %vm1240_vm0, %v2386_v21, %v6068_v40  ;;  %v2402_v14 = vmax.f32 %v1959_v6, %v2385_v61  ;;  %v3985_v6 = vld [vmem:[%s5780_s26 + $0x30] sm:$0xf0]  ;;  %v4043_v21 = vld [vmem:[%s7999_s1 + $0x50] sm:$0xf] }
  0x45   : > { %v3032_v41 = vunpack.c.l.bf16 %v5857_v53  ;;  %v3033_v48 = vunpack.c.l.bf16 %v5866_v56  ;;  %v3034_v55 = vunpack.c.l.bf16 %v5869_v57  ;;  %v2403_v58 = vmax.f32 %v1960_v39, %v2387_v37 }
  0x46   : > { %v1269_v23 = vmax.f32 %v1223_v31, %v5981_v9  ;;  %v1961_v9 = vmax.f32 %v1905_v25, %v1954_v20  ;;  %v2401_v20 = vmax.f32 %v1958_v63, %v2383_v27  ;;  %v3497_v52 = vunpack.c.l.bf16 %v3113_v16  ;;  %v4962_v63 = vld [vmem:[%s5780_s26 + $0x24] sm:$0xf]  ;;  %v4267_v16 = vld [vmem:[%s7999_s1 + $0x1f8] sm:$0xf] }
  0x47   : > { %v3498_v44 = vunpack.c.l.bf16 %v3114_v60  ;;  %v3499_v12 = vunpack.c.l.bf16 %v3115_v8  ;;  %v3500_v15 = vunpack.c.l.bf16 %v3116_v1  ;;  %v3036_v11 = vmax.f32 %v2399_v24, %v3029_v4  ;;  %v4187_v24 = vld [vmem:[%s7999_s1 + $0x170] sm:$0xf]  ;;  %v4121_v1 = vld [vmem:[%s7999_s1 + $0xfc] sm:$0xf0] }
  0x48   : > { %v1276_v36 = vpack.c.bf16 %v1269_v23, %v1269_v23  ;;  %v2404_v2 = vmax.f32 %v1961_v9, %v2389_v62  ;;  %v3037_v34 = vmax.f32 %v2400_v50, %v3030_v19  ;;  %v3501_v17 = vunpack.c.l.bf16 %v3117_v51  ;;  %v4133_v62 = vld [vmem:[%s7999_s1 + $0x114] sm:$0xf0]  ;;  %v5013_v50 = vld [vmem:[%s7999_s1 + $0x178] sm:$0xf0]  ;;  %v4019_v51 = vld [vmem:[%s7999_s1 + $0x20] sm:$0xf] }
  0x49   : > { %v3502_v53 = vunpack.c.l.bf16 %v3118_v5  ;;  %v3038_v56 = vmax.f32 %v2401_v20, %v3031_v22  ;;  %v3039_v38 = vmax.f32 %v2402_v14, %v3032_v41  ;;  %v3503_v45 = vunpack.c.l.bf16 %v3119_v13  ;;  %v5034_v20 = vld [vmem:[%s7999_s1 + $0x200] sm:$0xf0]  ;;  %v4175_v5 = vld [vmem:[%s7999_s1 + $0x158] sm:$0xf] }
  0x4a   : > { %1283 = vst [vmem:[%s5863_s14 + $0x18] sm:$0xf] %v1276_v36  ;;  %v3513_v0 = vrot.slane %v3497_v52, 1  ;;  %v3514_v3 = vrot.slane %v3498_v44, 1  ;;  %v3040_v33 = vmax.f32 %v2403_v58, %v3033_v48  ;;  %v3041_v25 = vmax.f32 %v2404_v2, %v3034_v55  ;;  %v4974_v14 = vld [vmem:[%s7999_s1 + $0x40] sm:$0xf0] }
  0x4b   : > { %v3516_v32 = vrot.slane %v3499_v12, 1  ;;  %v3518_v18 = vrot.slane %v3500_v15, 1  ;;  %v3092_v23 = vmax.f32 %v3036_v11, %v5885_v28  ;;  %v3093_v10 = vmax.f32 %v3037_v34, %v5887_v29  ;;  %v4977_v28 = vld [vmem:[%s7999_s1 + $0x58] sm:$0xf0]  ;;  %v4999_v29 = vld [vmem:[%s7999_s1 + $0x10c] sm:$0xf] }
  0x4c   : > { %v3515_v31 = vsel %vm1240_vm0, %v3513_v0, %v3514_v3  ;;  %v3520_v27 = vrot.slane %v3501_v17, 1  ;;  %v3094_v36 = vmax.f32 %v3038_v56, %v5889_v30  ;;  %v3095_v61 = vmax.f32 %v3039_v38, %v5897_v47  ;;  %v4996_v55 = vld [vmem:[%s7999_s1 + $0xf4] sm:$0xf]  ;;  %v5010_v52 = vld [vmem:[%s7999_s1 + $0x160] sm:$0xf0] }
  0x4d   : > { %v3517_v26 = vsel %vm1240_vm0, %v3514_v3, %v3516_v32  ;;  %v3519_v35 = vsel %vm1240_vm0, %v3516_v32, %v3518_v18  ;;  %v3522_v9 = vrot.slane %v3502_v53, 1  ;;  %v6101_v37 = vrot.slane %v3503_v45, 1  ;;  %v4971_v15 = vld [vmem:[%s7999_s1 + $0x28] sm:$0xf0]  ;;  %v4255_v11 = vld [vmem:[%s7999_s1 + $0x1e0] sm:$0xf] }
  0x4e   : > { %v3521_v39 = vsel %vm1240_vm0, %v3518_v18, %v3520_v27  ;;  %v3096_v30 = vmax.f32 %v3040_v33, %v5899_v54  ;;  %v3097_v47 = vmax.f32 %v3041_v25, %v5921_v59  ;;  %v6111_v4 = vor.u32 %v4962_v63, %v3985_v6  ;;  %v4031_v59 = vld [vmem:[%s7999_s1 + $0x38] sm:$0xf]  ;;  %v5031_v34 = vld [vmem:[%s7999_s1 + $0x1e8] sm:$0xf0]  ;;  %v4993_v45 = vld [vmem:[%s7999_s1 + $0xdc] sm:$0xf] }
  0x4f   : > { %661 = vmatmul.bf16.gmra.mxu2 %v5834_v43  ;;  %v3523_v19 = vsel %vm1240_vm0, %v3520_v27, %v3522_v9  ;;  %v3525_v54 = vsel %vm1240_vm0, %v3522_v9, %v6101_v37  ;;  %v4044_v22 = vor.u32 %v4977_v28, %v4043_v21  ;;  %v3535_v60 = vmax.f32 %v3092_v23, %v3515_v31  ;;  %v4109_v0 = vld [vmem:[%s7999_s1 + $0xe4] sm:$0xf0]  ;;  %v4968_v25 = vld [vmem:[%s7999_s1 + $0x10] sm:$0xf0]  ;;  %v4163_v32 = vld [vmem:[%s7999_s1 + $0x140] sm:$0xf] }
  0x50   : > { %628 = vmatmul.bf16.gmra.mxu1 %v6111_v4  ;;  %v3536_v8 = vmax.f32 %v3093_v10, %v3517_v26  ;;  %v4136_v41 = vor.u32 %v4999_v29, %v4133_v62  ;;  %v4188_v48 = vor.u32 %v5013_v50, %v4187_v24  ;;  %v3537_v58 = vmax.f32 %v3094_v36, %v3519_v35  ;;  %v4007_v33 = vld [vmem:[%s7999_s1 + $0x8] sm:$0xf]  ;;  %v5007_v31 = vld [vmem:[%s7999_s1 + $0x148] sm:$0xf0]  ;;  %v4990_v10 = vld [vmem:[%s7999_s1 + $0xc4] sm:$0xf] }
  0x51   : > { %v3538_v2 = vmax.f32 %v3095_v61, %v3521_v39  ;;  %703 = vmatpush.bf16.msrb.mxu0 %v4044_v22  ;;  %v4268_v12 = vor.u32 %v5034_v20, %v4267_v16  ;;  %v4032_v13 = vor.u32 %v4974_v14, %v4031_v59  ;;  %v3539_v17 = vmax.f32 %v3096_v30, %v3523_v19  ;;  %v4097_v35 = vld [vmem:[%s7999_s1 + $0xcc] sm:$0xf0]  ;;  %v4243_v27 = vld [vmem:[%s7999_s1 + $0x1c8] sm:$0xf]  ;;  %v5028_v63 = vld [vmem:[%s7999_s1 + $0x1d0] sm:$0xf0] }
  0x52   : > { %v5410_v44 = vpack.c.bf16 %v3536_v8, %v3535_v60  ;;  %675 = vmatpush.bf16.msrb.mxu3 %v4136_v41  ;;  %727 = vmatpush.bf16.msrb.mxu1 %v4188_v48  ;;  %v3540_v53 = vmax.f32 %v3097_v47, %v3525_v54  ;;  %v4124_v38 = vor.u32 %v4996_v55, %v4121_v1  ;;  %v4964_v36 = vld [vmem:[%s5780_s26 + $0x44] sm:$0xf]  ;;  %v3993_v61 = vld [vmem:[%s5780_s26 + $0x50] sm:$0xf0]  ;;  %v4299_v21 = vld [vmem:[%s7999_s1 + $0x230] sm:$0xf] }
  0x53   : > { %v5415_v56 = vpack.c.bf16 %v3538_v2, %v3537_v58  ;;  %1065 = vmatpush.bf16.msrb.mxu2 %v4268_v12  ;;  %v4176_v3 = vor.u32 %v5010_v52, %v4175_v5  ;;  %v4020_v26 = vor.u32 %v4971_v15, %v4019_v51  ;;  %v4256_v23 = vor.u32 %v5031_v34, %v4255_v11  ;;  %v5041_v39 = vld [vmem:[%s7999_s1 + $0x238] sm:$0xf0]  ;;  %v5039_v28 = vld [vmem:[%s7999_s1 + $0x22c] sm:$0xf]  ;;  %v4293_v30 = vld [vmem:[%s7999_s1 + $0x234] sm:$0xf0] }
  0x54   : > { %5411 = vst [vmem:[%s5863_s14] sm:$0xff] %v5410_v44   ;;  %v5420_v18 = vpack.c.bf16 %v3540_v53, %v3539_v17  ;;  %v4112_v6 = vor.u32 %v4993_v45, %v4109_v0  ;;  %v4164_v9 = vor.u32 %v5007_v31, %v4163_v32  ;;  %v4244_v29 = vor.u32 %v5028_v63, %v4243_v27  ;;  %v4191_v47 = vld [vmem:[%s5780_s26] sm:$0xf]  ;;  %v5014_v62 = vld [vmem:[%s5780_s26 + $0xc] sm:$0xf0]  ;;  %v4151_v50 = vld [vmem:[%s7999_s1 + $0x128] sm:$0xf] }
  0x55   : > { %5452 = vst [vmem:[%s5863_s14 + $0x8] sm:$0xff] %v5415_v56   ;;  %704 = vmatpush.bf16.msrb.mxu0 %v4032_v13  ;;  %v4008_v24 = vor.u32 %v4968_v25, %v4007_v33  ;;  %v5004_v19 = vld [vmem:[%s7999_s1 + $0x130] sm:$0xf0]  ;;  %v4231_v54 = vld [vmem:[%s7999_s1 + $0x1b0] sm:$0xf]  ;;  %v4100_v59 = vor.u32 %v4990_v10, %v4097_v35  ;;  %v4300_v22 = vor.u32 %v5041_v39, %v4299_v21 }
  0x56   : > { %676 = vmatpush.bf16.msrb.mxu3 %v4124_v38  ;;  %728 = vmatpush.bf16.msrb.mxu1 %v4176_v3  ;;  %5453 = vst [vmem:[%s5863_s14 + $0x10] sm:$0xff] %v5420_v18   ;;  %v5025_v16 = vld [vmem:[%s7999_s1 + $0x1b8] sm:$0xf0]  ;;  %v4195_v20 = vld [vmem:[%s5780_s26 + $0x20] sm:$0xf]  ;;  %v6226_v60 = vor.u32 %v4964_v36, %v3993_v61  ;;  %v4296_v48 = vor.u32 %v5039_v28, %v4293_v30 }
  0x57   : > { %1066 = vmatpush.bf16.msrb.mxu2 %v4256_v23  ;;  %v5015_v14 = vld [vmem:[%s5780_s26 + $0x2c] sm:$0xf0]  ;;  %v4287_v8 = vld [vmem:[%s7999_s1 + $0x218] sm:$0xf]  ;;  %v5038_v41 = vld [vmem:[%s7999_s1 + $0x220] sm:$0xf0]  ;;  %v4192_v55 = vor.u32 %v5014_v62, %v4191_v47  ;;  %v4152_v1 = vor.u32 %v5004_v19, %v4151_v50  ;;  %v4232_v51 = vor.u32 %v5025_v16, %v4231_v54 }
  0x58   : > { %v5036_v58 = vld [vmem:[%s7999_s1 + $0x214] sm:$0xf]  ;;  %v4281_v2 = vld [vmem:[%s7999_s1 + $0x21c] sm:$0xf0]  ;;  %v4139_v5 = vld [vmem:[%s7999_s1 + $0x110] sm:$0xf]  ;;  %v6246_v44 = vor.u32 %v5015_v14, %v4195_v20  ;;  %v4288_v13 = vor.u32 %v5038_v41, %v4287_v8 }
  0x59   : > { %705 = vmatpush.bf16.msrb.mxu0 %v4020_v26  ;;  %v5001_v52 = vld [vmem:[%s7999_s1 + $0x118] sm:$0xf0]  ;;  %v903_v12 = vshll.u32 %v4192_v55, 16  ;;  %v4219_v15 = vld [vmem:[%s7999_s1 + $0x198] sm:$0xf]  ;;  %v4284_v53 = vor.u32 %v5036_v58, %v4281_v2  ;;  %v901_v33 = vshrl.u32 %v4192_v55, 16 }
  0x5a   : > { %677 = vmatpush.bf16.msrb.mxu3 %v4112_v6  ;;  %729 = vmatpush.bf16.msrb.mxu1 %v4164_v9  ;;  %v5022_v11 = vld [vmem:[%s7999_s1 + $0x1a0] sm:$0xf0]  ;;  %v4275_v34 = vld [vmem:[%s7999_s1 + $0x200] sm:$0xf]  ;;  %v5035_v17 = vld [vmem:[%s7999_s1 + $0x208] sm:$0xf0]  ;;  %v4140_v56 = vor.u32 %v5001_v52, %v4139_v5 }
  0x5b   : > { %1067 = vmatpush.bf16.msrb.mxu2 %v4244_v29  ;;  %v4127_v38 = vld [vmem:[%s7999_s1 + $0xf8] sm:$0xf]  ;;  %v5033_v45 = vld [vmem:[%s7999_s1 + $0x1fc] sm:$0xf]  ;;  %v4269_v0 = vld [vmem:[%s7999_s1 + $0x204] sm:$0xf0]  ;;  %v4220_v3 = vor.u32 %v5022_v11, %v4219_v15  ;;  %v4276_v31 = vor.u32 %v5035_v17, %v4275_v34 }
  0x5c   : > { %v905_v25 = vrot.slane %v903_v12, 1  ;;  %v908_v32 = vshll.u32 %v6246_v44, 16  ;;  %v4263_v18 = vld [vmem:[%s7999_s1 + $0x1e8] sm:$0xf]  ;;  %v4207_v26 = vld [vmem:[%s7999_s1 + $0x180] sm:$0xf]  ;;  %v4272_v35 = vor.u32 %v5033_v45, %v4269_v0 }
  0x5d   : > { %706 = vmatpush.bf16.msrb.mxu0 %v4008_v24  ;;  %v5019_v23 = vld [vmem:[%s7999_s1 + $0x188] sm:$0xf0]  ;;  %v5032_v10 = vld [vmem:[%s7999_s1 + $0x1f0] sm:$0xf0]  ;;  %v4507_v27 = vld [vmem:[%s7999_s1 + $0x3a8] sm:$0xf]  ;;  %v314_v24 = vunpack.c.h.b16 %v5869_v57 }
  0x5e   : > { %678 = vmatpush.bf16.msrb.mxu3 %v4100_v59  ;;  %730 = vmatpush.bf16.msrb.mxu1 %v4152_v1  ;;  %v5094_v63 = vld [vmem:[%s7999_s1 + $0x3b0] sm:$0xf0]  ;;  %v5030_v36 = vld [vmem:[%s7999_s1 + $0x1e4] sm:$0xf]  ;;  %v4257_v61 = vld [vmem:[%s7999_s1 + $0x1ec] sm:$0xf0]  ;;  %v4208_v9 = vor.u32 %v5019_v23, %v4207_v26  ;;  %v906_v28 = vor.u32 %v905_v25, %v901_v33  ;;  %v4264_v30 = vor.u32 %v5032_v10, %v4263_v18 }
  0x5f   : > { %666 = vmatmul.bf16.gmra.mxu2 %v5893_v46  ;;  %v4115_v21 = vld [vmem:[%s7999_s1 + $0xe0] sm:$0xf]  ;;  %v4995_v39 = vld [vmem:[%s7999_s1 + $0xe8] sm:$0xf0]  ;;  %v6306_v29 = vrot.slane %v908_v32, 1  ;;  %v4508_v62 = vor.u32 %v5094_v63, %v4507_v27  ;;  %v4260_v19 = vor.u32 %v5030_v36, %v4257_v61  ;;  %v6341_v2 = vpack.c.b16 %v314_v24, %v314_v24 }
  0x60   : > { %633 = vmatmul.bf16.gmra.mxu1 %v6226_v60  ;;  %707 = vmatmul.bf16.vlgmr.msrb.gmra.mxu0 %v5832_v42  ;;  %v4998_v42 = vld [vmem:[%s7999_s1 + $0x100] sm:$0xf0]  ;;  %v4251_v47 = vld [vmem:[%s7999_s1 + $0x1d0] sm:$0xf]  ;;  %v5029_v50 = vld [vmem:[%s7999_s1 + $0x1d8] sm:$0xf0] }
  0x61   : > { %1119 = vmatpush.bf16.msra.mxu0 %v4300_v22  ;;  %679 = vmatmul.bf16.vlgmr.msrb.gmra.mxu3 %v5846_v49  ;;  %v4128_v6 = vor.u32 %v4998_v42, %v4127_v38  ;;  %v4495_v54 = vld [vmem:[%s7999_s1 + $0x390] sm:$0xf]  ;;  %v5091_v59 = vld [vmem:[%s7999_s1 + $0x398] sm:$0xf0]  ;;  %v4116_v22 = vor.u32 %v4995_v39, %v4115_v21  ;;  %v4103_v57 = vld [vmem:[%s7999_s1 + $0xc8] sm:$0xf]  ;;  %v6335_v8 = vsel %vm899_vm1, %v906_v28, %v6306_v29 }
  0x62   : > { %1091 = vmatpush.bf16.msra.mxu3 %v4296_v48  ;;  %1068 = vmatpush.bf16.msrb.mxu2 %v4232_v51  ;;  %v5027_v16 = vld [vmem:[%s7999_s1 + $0x1cc] sm:$0xf]  ;;  %v4245_v20 = vld [vmem:[%s7999_s1 + $0x1d4] sm:$0xf0]  ;;  %v4992_v14 = vld [vmem:[%s7999_s1 + $0xd0] sm:$0xf0]  ;;  %v4252_v55 = vor.u32 %v5029_v50, %v4251_v47  ;;  %v4496_v1 = vor.u32 %v5091_v59, %v4495_v54 }
  0x63   : > { %731 = vmatpush.bf16.msrb.mxu1 %v4140_v56  ;;  %v4199_v41 = vld [vmem:[%s5780_s26 + $0x40] sm:$0xf]  ;;  %v5016_v48 = vld [vmem:[%s5780_s26 + $0x4c] sm:$0xf0]  ;;  %v4239_v51 = vld [vmem:[%s7999_s1 + $0x1b8] sm:$0xf]  ;;  %v4248_v52 = vor.u32 %v5027_v16, %v4245_v20  ;;  %v4104_v12 = vor.u32 %v4992_v14, %v4103_v57 }
  0x64   : > { %v6339_v58 = vor.u32 %v5016_v48, %v4199_v41  ;;  %v5026_v5 = vld [vmem:[%s7999_s1 + $0x1c0] sm:$0xf0]  ;;  %v912_v11 = vshrl.u32 %v6246_v44, 16  ;;  %v4227_v17 = vld [vmem:[%s7999_s1 + $0x1a0] sm:$0xf] }
  0x65   : > { %1120 = vmatpush.bf16.msra.mxu0 %v4288_v13  ;;  %v4240_v15 = vor.u32 %v5026_v5, %v4239_v51  ;;  %v4411_v56 = vld [vmem:[%s7999_s1 + $0x2e8] sm:$0xf]  ;;  %v5070_v44 = vld [vmem:[%s7999_s1 + $0x2f0] sm:$0xf0]  ;;  %v4483_v38 = vld [vmem:[%s7999_s1 + $0x378] sm:$0xf] }
  0x66   : > { %1092 = vmatpush.bf16.msra.mxu3 %v4284_v53  ;;  %1069 = vmatpush.bf16.msrb.mxu2 %v4220_v3  ;;  %v916_v13 = vshll.u32 %v6339_v58, 16  ;;  %v5023_v53 = vld [vmem:[%s7999_s1 + $0x1a8] sm:$0xf0]  ;;  %v5088_v45 = vld [vmem:[%s7999_s1 + $0x380] sm:$0xf0]  ;;  %v4412_v0 = vor.u32 %v5070_v44, %v4411_v56  ;;  %v914_v23 = vor.u32 %v912_v11, %v6306_v29  ;;  %v920_v24 = vshrl.u32 %v6339_v58, 16 }
  0x67   : > { %732 = vmatpush.bf16.msrb.mxu1 %v4128_v6  ;;  %v4484_v3 = vor.u32 %v5088_v45, %v4483_v38  ;;  %v5024_v42 = vld [vmem:[%s7999_s1 + $0x1b4] sm:$0xf]  ;;  %v4233_v33 = vld [vmem:[%s7999_s1 + $0x1bc] sm:$0xf0]  ;;  %v4215_v25 = vld [vmem:[%s7999_s1 + $0x188] sm:$0xf] }
  0x68   : > { %v6354_v34 = vrot.slane %v916_v13, 1  ;;  %v4236_v32 = vor.u32 %v5024_v42, %v4233_v33  ;;  %v5021_v18 = vld [vmem:[%s7999_s1 + $0x19c] sm:$0xf]  ;;  %v4221_v26 = vld [vmem:[%s7999_s1 + $0x1a4] sm:$0xf0] }
  0x69   : > { %1121 = vmatpush.bf16.msra.mxu0 %v4276_v31  ;;  %v5020_v31 = vld [vmem:[%s7999_s1 + $0x190] sm:$0xf0]  ;;  %v4399_v10 = vld [vmem:[%s7999_s1 + $0x2d0] sm:$0xf]  ;;  %v4471_v27 = vld [vmem:[%s7999_s1 + $0x360] sm:$0xf]  ;;  %v4224_v6 = vor.u32 %v5021_v18, %v4221_v26 }
  0x6a   : > { %1093 = vmatpush.bf16.msra.mxu3 %v4272_v35  ;;  %1070 = vmatpush.bf16.msrb.mxu2 %v4208_v9  ;;  %v5067_v35 = vld [vmem:[%s7999_s1 + $0x2d8] sm:$0xf0]  ;;  %v4216_v63 = vor.u32 %v5020_v31, %v4215_v25  ;;  %v5085_v61 = vld [vmem:[%s7999_s1 + $0x368] sm:$0xf0]  ;;  %v5018_v39 = vld [vmem:[%s7999_s1 + $0x184] sm:$0xf]  ;;  %v6414_v28 = vsel %vm899_vm1, %v914_v23, %v6354_v34  ;;  %v922_v5 = vor.u32 %v920_v24, %v6354_v34 }
  0x6b   : > { %733 = vmatpush.bf16.msrb.mxu1 %v4116_v22  ;;  %v4400_v36 = vor.u32 %v5067_v35, %v4399_v10  ;;  %v4472_v21 = vor.u32 %v5085_v61, %v4471_v27  ;;  %v4209_v9 = vld [vmem:[%s7999_s1 + $0x18c] sm:$0xf0]  ;;  %v4203_v29 = vld [vmem:[%s5780_s26 + $0x60] sm:$0xf]  ;;  %v4509_v54 = vld [vmem:[%s7999_s1 + $0x3b4] sm:$0xf0] }
  0x6c   : > { %v4212_v47 = vor.u32 %v5018_v39, %v4209_v9  ;;  %v4459_v22 = vld [vmem:[%s7999_s1 + $0x348] sm:$0xf]  ;;  %v5082_v57 = vld [vmem:[%s7999_s1 + $0x350] sm:$0xf0]  ;;  %v4497_v41 = vld [vmem:[%s7999_s1 + $0x39c] sm:$0xf0] }
  0x6d   : > { %1122 = vmatpush.bf16.msra.mxu0 %v4264_v30  ;;  %v5017_v30 = vld [vmem:[%s5780_s26 + $0x6c] sm:$0x10]  ;;  %v4460_v20 = vor.u32 %v5082_v57, %v4459_v22  ;;  %v5090_v14 = vld [vmem:[%s7999_s1 + $0x394] sm:$0xf]  ;;  %v4375_v48 = vld [vmem:[%s7999_s1 + $0x2a0] sm:$0xf] }
  0x6e   : > { %1676 = vmatpush.bf16.msra.mxu2 %v4508_v62  ;;  %1094 = vmatpush.bf16.msra.mxu3 %v4260_v19  ;;  %v6419_v62 = vor.u32 %v5017_v30, %v4203_v29  ;;  %v5093_v19 = vld [vmem:[%s7999_s1 + $0x3ac] sm:$0xf]  ;;  %v4447_v58 = vld [vmem:[%s7999_s1 + $0x330] sm:$0xf]  ;;  %v5079_v51 = vld [vmem:[%s7999_s1 + $0x338] sm:$0xf0] }
  0x6f   : > { %1071 = vmatmul.bf16.vlgmr.msrb.gmra.mxu2 %v6335_v8  ;;  %734 = vmatpush.bf16.msrb.mxu1 %v4104_v12  ;;  %v4512_v59 = vor.u32 %v5093_v19, %v4509_v54  ;;  %v4448_v13 = vor.u32 %v5079_v51, %v4447_v58  ;;  %v4413_v11 = vld [vmem:[%s7999_s1 + $0x2f4] sm:$0xf0]  ;;  %v4363_v34 = vld [vmem:[%s7999_s1 + $0x288] sm:$0xf]  ;;  %v5058_v56 = vld [vmem:[%s7999_s1 + $0x290] sm:$0xf0] }
  0x70   : > { %638 = vmatmul.bf16.gmra.mxu1 %v6341_v2  ;;  %712 = vmatmul.bf16.gmra.mxu0 %v5874_v7  ;;  %v4228_v7 = vor.u32 %v5023_v53, %v4227_v17  ;;  %v924_v50 = vshll.u32 %v6419_v62, 16  ;;  %v4364_v44 = vor.u32 %v5058_v56, %v4363_v34  ;;  %v5087_v38 = vld [vmem:[%s7999_s1 + $0x37c] sm:$0xf]  ;;  %v4435_v45 = vld [vmem:[%s7999_s1 + $0x318] sm:$0xf] }
  0x71   : > { %1123 = vmatpush.bf16.msra.mxu0 %v4252_v55  ;;  %684 = vmatmul.bf16.gmra.mxu3 %v6111_v4  ;;  %v4500_v55 = vor.u32 %v5090_v14, %v4497_v41  ;;  %v5055_v42 = vld [vmem:[%s7999_s1 + $0x278] sm:$0xf0]  ;;  %v4401_v31 = vld [vmem:[%s7999_s1 + $0x2dc] sm:$0xf0]  ;;  %v5084_v18 = vld [vmem:[%s7999_s1 + $0x364] sm:$0xf] }
  0x72   : > { %1677 = vmatpush.bf16.msra.mxu2 %v4496_v1  ;;  %1095 = vmatpush.bf16.msra.mxu3 %v4248_v52  ;;  %v5061_v1 = vld [vmem:[%s7999_s1 + $0x2a8] sm:$0xf0]  ;;  %v926_v52 = vrot.slane %v924_v50, 1  ;;  %v4473_v23 = vld [vmem:[%s7999_s1 + $0x36c] sm:$0xf0] }
  0x73   : > { %1648 = vmatpush.bf16.msra.mxu1 %v4412_v0  ;;  %v4376_v12 = vor.u32 %v5061_v1, %v4375_v48  ;;  %v4339_v10 = vld [vmem:[%s7999_s1 + $0x258] sm:$0xf]  ;;  %v5052_v35 = vld [vmem:[%s7999_s1 + $0x260] sm:$0xf0]  ;;  %v4476_v27 = vor.u32 %v5084_v18, %v4473_v23  ;;  %v4389_v39 = vld [vmem:[%s7999_s1 + $0x2c4] sm:$0xf0] }
  0x74   : > { %v6470_v53 = vsel %vm899_vm1, %v922_v5, %v926_v52  ;;  %v4327_v9 = vld [vmem:[%s7999_s1 + $0x240] sm:$0xf]  ;;  %v5049_v29 = vld [vmem:[%s7999_s1 + $0x248] sm:$0xf0]  ;;  %v5060_v22 = vld [vmem:[%s7999_s1 + $0x2a4] sm:$0xf] }
  0x75   : > { %1124 = vmatpush.bf16.msra.mxu0 %v4240_v15  ;;  %v5069_v15 = vld [vmem:[%s7999_s1 + $0x2ec] sm:$0xf]  ;;  %v4377_v57 = vld [vmem:[%s7999_s1 + $0x2ac] sm:$0xf0]  ;;  %v5078_v41 = vld [vmem:[%s7999_s1 + $0x334] sm:$0xf] }
  0x76   : > { %1678 = vmatpush.bf16.msra.mxu2 %v4484_v3  ;;  %1096 = vmatpush.bf16.msra.mxu3 %v4236_v32  ;;  %v4416_v17 = vor.u32 %v5069_v15, %v4413_v11  ;;  %v4351_v3 = vld [vmem:[%s7999_s1 + $0x270] sm:$0xf]  ;;  %v5066_v32 = vld [vmem:[%s7999_s1 + $0x2d4] sm:$0xf]  ;;  %v5081_v54 = vld [vmem:[%s7999_s1 + $0x34c] sm:$0xf]  ;;  %v4380_v14 = vor.u32 %v5060_v22, %v4377_v57 }
  0x77   : > { %1649 = vmatpush.bf16.msra.mxu1 %v4400_v36  ;;  %v4352_v25 = vor.u32 %v5055_v42, %v4351_v3  ;;  %v4404_v26 = vor.u32 %v5066_v32, %v4401_v31  ;;  %v4340_v36 = vor.u32 %v5052_v35, %v4339_v10  ;;  %v4449_v48 = vld [vmem:[%s7999_s1 + $0x33c] sm:$0xf0]  ;;  %v5092_v58 = vld [vmem:[%s7999_s1 + $0x3a0] sm:$0xf0]  ;;  %v5042_v51 = vld [vmem:[%s5780_s26 + $0xc] sm:$0xf] }
  0x78   : > { %v4452_v1 = vor.u32 %v5078_v41, %v4449_v48  ;;  %v4305_v5 = vld [vmem:[%s5780_s26 + $0x18] sm:$0xf0]  ;;  %v5057_v11 = vld [vmem:[%s7999_s1 + $0x28c] sm:$0xf]  ;;  %v5054_v42 = vld [vmem:[%s7999_s1 + $0x274] sm:$0xf] }
  0x79   : > { %1125 = vmatpush.bf16.msra.mxu0 %v4228_v7  ;;  %v928_v7 = vshrl.u32 %v6419_v62, 16  ;;  %v4328_v62 = vor.u32 %v5049_v29, %v4327_v9  ;;  %v5075_v56 = vld [vmem:[%s7999_s1 + $0x31c] sm:$0xf]  ;;  %v5072_v18 = vld [vmem:[%s7999_s1 + $0x304] sm:$0xf] }
  0x7a   : > { %1679 = vmatpush.bf16.msra.mxu2 %v4472_v21  ;;  %1097 = vmatpush.bf16.msra.mxu3 %v4224_v6  ;;  %v5073_v6 = vld [vmem:[%s7999_s1 + $0x308] sm:$0xf0]  ;;  %v5063_v21 = vld [vmem:[%s7999_s1 + $0x2bc] sm:$0xf]  ;;  %v4341_v35 = vld [vmem:[%s7999_s1 + $0x264] sm:$0xf0] }
  0x7b   : > { %v4392_v30 = vor.u32 %v5063_v21, %v4389_v39  ;;  %v4313_v32 = vld [vmem:[%s5780_s26 + $0x38] sm:$0xf0]  ;;  %v5086_v21 = vld [vmem:[%s7999_s1 + $0x370] sm:$0xf0]  ;;  %v4303_v39 = vld [vmem:[%s5780_s26 + $0x8] sm:$0xf] }
  0x7c   : > { %v5051_v23 = vld [vmem:[%s7999_s1 + $0x25c] sm:$0xf]  ;;  %v5043_v9 = vld [vmem:[%s5780_s26 + $0x14] sm:$0xf0]  ;;  %v4395_v57 = vld [vmem:[%s7999_s1 + $0x2c0] sm:$0xf] }
  0x7d   : > { %1126 = vmatpush.bf16.msra.mxu0 %v4216_v63  ;;  %v4423_v63 = vld [vmem:[%s7999_s1 + $0x300] sm:$0xf]  ;;  %v4621_v22 = vld [vmem:[%s7999_s1 + $0x474] sm:$0xf0]  ;;  %v5065_v41 = vld [vmem:[%s7999_s1 + $0x2c8] sm:$0xf0] }
  0x7e   : > { %1098 = vmatpush.bf16.msra.mxu3 %v4212_v47  ;;  %1680 = vmatpush.bf16.msra.mxu2 %v4460_v20  ;;  %v4424_v61 = vor.u32 %v5073_v6, %v4423_v63  ;;  %v6537_v47 = vor.u32 %v928_v7, %v926_v52  ;;  %v4437_v7 = vld [vmem:[%s7999_s1 + $0x324] sm:$0xf0]  ;;  %v5068_v63 = vld [vmem:[%s7999_s1 + $0x2e0] sm:$0xf0]  ;;  %v4344_v6 = vor.u32 %v5051_v23, %v4341_v35 }
  0x7f   : > { %1076 = vmatmul.bf16.gmra.mxu2 %v6414_v28 }
  0x80   : > { %735 = vmatmul.bf16.vlgmr.msrb.gmra.mxu1 %v5846_v49  ;;  %717 = vmatmul.bf16.gmra.mxu0 %v5834_v43  ;;  %v4387_v49 = vld [vmem:[%s7999_s1 + $0x2b8] sm:$0xf]  ;;  %v5064_v43 = vld [vmem:[%s7999_s1 + $0x2c0] sm:$0xf0] }
  0x81   : > { %689 = vmatmul.bf16.gmra.mxu3 %v6226_v60  ;;  %v4388_v16 = vor.u32 %v5064_v43, %v4387_v49  ;;  %1732 = vmatpush.bf16.msrb.mxu0 %v4512_v59  ;;  %v4461_v49 = vld [vmem:[%s7999_s1 + $0x354] sm:$0xf0]  ;;  %v4515_v59 = vld [vmem:[%s7999_s1 + $0x3b0] sm:$0xf] }
  0x82   : > { %1704 = vmatpush.bf16.msrb.mxu3 %v4416_v17  ;;  %1681 = vmatpush.bf16.msra.mxu2 %v4448_v13  ;;  %v4464_v43 = vor.u32 %v5081_v54, %v4461_v49  ;;  %v4365_v17 = vld [vmem:[%s7999_s1 + $0x294] sm:$0xf0]  ;;  %v5048_v54 = vld [vmem:[%s7999_s1 + $0x244] sm:$0xf]  ;;  %v4329_v49 = vld [vmem:[%s7999_s1 + $0x24c] sm:$0xf0] }
  0x83   : > { %1650 = vmatpush.bf16.msra.mxu1 %v4388_v16  ;;  %v4368_v34 = vor.u32 %v5057_v11, %v4365_v17  ;;  %v4609_v11 = vld [vmem:[%s7999_s1 + $0x45c] sm:$0xf0]  ;;  %v4383_v17 = vld [vmem:[%s7999_s1 + $0x2a8] sm:$0xf] }
  0x85   : > { %1733 = vmatpush.bf16.msrb.mxu0 %v4500_v55  ;;  %v4503_v55 = vld [vmem:[%s7999_s1 + $0x398] sm:$0xf] }
  0x86   : > { %1705 = vmatpush.bf16.msrb.mxu3 %v4404_v26  ;;  %v4504_v52 = vor.u32 %v5092_v58, %v4503_v55  ;;  %v4425_v26 = vld [vmem:[%s7999_s1 + $0x30c] sm:$0xf0]  ;;  %v5046_v55 = vld [vmem:[%s5780_s26 + $0x4c] sm:$0xf] }
  0x87   : > { %1651 = vmatpush.bf16.msra.mxu1 %v4376_v12  ;;  %v6581_v12 = vor.u32 %v5042_v51, %v4305_v5  ;;  %v4428_v10 = vor.u32 %v5072_v18, %v4425_v26  ;;  %v4467_v58 = vld [vmem:[%s7999_s1 + $0x350] sm:$0xf]  ;;  %v5083_v51 = vld [vmem:[%s7999_s1 + $0x358] sm:$0xf0]  ;;  %v5118_v5 = vld [vmem:[%s7999_s1 + $0x454] sm:$0xf] }
  0x88   : > { %v5122_v18 = vld [vmem:[%s7999_s1 + $0x470] sm:$0xf0]  ;;  %v6731_v26 = vld [vmem:[%s5780_s26 + $0x68] sm:$0xff] }
  0x89   : > { %v1899_v35 = vunpack.c.l.bf16 %v6731_v26 }
  0x8a   : > { %1706 = vmatpush.bf16.msrb.mxu3 %v4392_v30 }
  0x8b   : > { %1652 = vmatpush.bf16.msra.mxu1 %v4364_v44  ;;  %v4419_v44 = vld [vmem:[%s7999_s1 + $0x2f0] sm:$0xf] }
  0x8e   : > { %1707 = vmatpush.bf16.msrb.mxu3 %v4380_v14 }
  0x8f   : > { %1081 = vmatmul.bf16.gmra.mxu2 %v6470_v53  ;;  %1653 = vmatpush.bf16.msra.mxu1 %v4352_v25  ;;  %v5044_v25 = vld [vmem:[%s5780_s26 + $0x2c] sm:$0xf] }
  0x90   : > { %740 = vmatmul.bf16.gmra.mxu1 %v6111_v4  ;;  %722 = vmatmul.bf16.gmra.mxu0 %v5893_v46  ;;  %v4485_v4 = vld [vmem:[%s7999_s1 + $0x384] sm:$0xf0]  ;;  %v5076_v46 = vld [vmem:[%s7999_s1 + $0x320] sm:$0xf0]  ;;  %v6653_v29 = vor.u32 %v5044_v25, %v4313_v32 }
  0x91   : > { %694 = vmatmul.bf16.gmra.mxu3 %v6341_v2  ;;  %v4488_v0 = vor.u32 %v5087_v38, %v4485_v4  ;;  %v4436_v33 = vor.u32 %v5076_v46, %v4435_v45  ;;  %v5071_v38 = vld [vmem:[%s7999_s1 + $0x2f8] sm:$0xf0]  ;;  %v5089_v45 = vld [vmem:[%s7999_s1 + $0x388] sm:$0xf0]  ;;  %v5080_v25 = vld [vmem:[%s7999_s1 + $0x340] sm:$0xf0] }
  0x92   : > { %1708 = vmatpush.bf16.msrb.mxu3 %v4368_v34  ;;  %v5062_v34 = vld [vmem:[%s7999_s1 + $0x2b0] sm:$0xf0]  ;;  %v4619_v32 = vld [vmem:[%s7999_s1 + $0x468] sm:$0xf] }
  0x93   : > { %1734 = vmatpush.bf16.msrb.mxu0 %v4488_v0  ;;  %1682 = vmatpush.bf16.msra.mxu2 %v4436_v33  ;;  %v4420_v0 = vor.u32 %v5071_v38, %v4419_v44  ;;  %v4353_v33 = vld [vmem:[%s7999_s1 + $0x27c] sm:$0xf0]  ;;  %v5045_v38 = vld [vmem:[%s5780_s26 + $0x34] sm:$0xf0]  ;;  %v4620_v23 = vor.u32 %v5122_v18, %v4619_v32  ;;  %v4335_v32 = vld [vmem:[%s7999_s1 + $0x248] sm:$0xf] }
  0x94   : > { %1654 = vmatpush.bf16.msra.mxu1 %v4340_v36  ;;  %v4356_v31 = vor.u32 %v5054_v42, %v4353_v33  ;;  %v4455_v33 = vld [vmem:[%s7999_s1 + $0x338] sm:$0xf] }
  0x96   : > { %1709 = vmatpush.bf16.msrb.mxu3 %v4356_v31  ;;  %v4456_v31 = vor.u32 %v5080_v25, %v4455_v33  ;;  %v4431_v33 = vld [vmem:[%s7999_s1 + $0x308] sm:$0xf]  ;;  %v5074_v25 = vld [vmem:[%s7999_s1 + $0x310] sm:$0xf0] }
  0x97   : > { %1735 = vmatpush.bf16.msrb.mxu0 %v4476_v27  ;;  %1683 = vmatpush.bf16.msra.mxu2 %v4424_v61  ;;  %v4407_v27 = vld [vmem:[%s7999_s1 + $0x2d8] sm:$0xf]  ;;  %v4479_v61 = vld [vmem:[%s7999_s1 + $0x368] sm:$0xf] }
  0x98   : > { %1655 = vmatpush.bf16.msra.mxu1 %v4328_v62  ;;  %v4408_v36 = vor.u32 %v5068_v63, %v4407_v27  ;;  %v4480_v30 = vor.u32 %v5086_v21, %v4479_v61  ;;  %v4371_v63 = vld [vmem:[%s7999_s1 + $0x290] sm:$0xf] }
  0x9a   : > { %1710 = vmatpush.bf16.msrb.mxu3 %v4344_v6  ;;  %v5059_v6 = vld [vmem:[%s7999_s1 + $0x298] sm:$0xf0] }
  0x9b   : > { %1736 = vmatpush.bf16.msrb.mxu0 %v4464_v43 }
  0x9c   : > { %1760 = vmatpush.bf16.msrb.mxu1 %v4420_v0 }
  0x9f   : > { %1086 = vmatmul.bf16.gmra.mxu2 %v6537_v47  ;;  %1737 = vmatpush.bf16.msrb.mxu0 %v4452_v1  ;;  %v4321_v1 = vld [vmem:[%s5780_s26 + $0x58] sm:$0xf0] }
  0xa0   : > { %745 = vmatmul.bf16.gmra.mxu1 %v6226_v60  ;;  %1127 = vmatmul.bf16.vlgmr.msra.gmra.mxu0 %v6335_v8 }
  0xa1   : > { %1099 = vmatmul.bf16.vlgmr.msra.gmra.mxu3 %v6335_v8  ;;  %v5095_v8 = vld [vmem:[%s7999_s1 + $0x3b8] sm:$0xf0]  ;;  %1761 = vmatpush.bf16.msrb.mxu1 %v4408_v36  ;;  %v4372_v36 = vor.u32 %v5059_v6, %v4371_v63 }
  0xa2   : > { %v4516_v20 = vor.u32 %v5095_v8, %v4515_v59  ;;  %v4332_v59 = vor.u32 %v5048_v54, %v4329_v49  ;;  %v5121_v8 = vld [vmem:[%s7999_s1 + $0x46c] sm:$0xf]  ;;  %v5056_v54 = vld [vmem:[%s7999_s1 + $0x280] sm:$0xf0] }
  0xa3   : > { %v4624_v14 = vor.u32 %v5121_v8, %v4621_v22  ;;  %v1375_v8 = vunpack.c.h.b16 %v6731_v26 }
  0xa4   : > { %1788 = vmatpush.bf16.msrb.mxu2 %v4516_v20  ;;  %1711 = vmatpush.bf16.msrb.mxu3 %v4332_v59 }
  0xa8   : > { %1789 = vmatpush.bf16.msrb.mxu2 %v4504_v52  ;;  %v4468_v52 = vor.u32 %v5083_v51, %v4467_v58  ;;  %2200 = vmatpush.bf16.msra.mxu3 %v4620_v23  ;;  %v5112_v58 = vld [vmem:[%s7999_s1 + $0x424] sm:$0xf]  ;;  %v4432_v23 = vor.u32 %v5074_v25, %v4431_v33 }
  0xaa   : > { %v596_v24 = vpop.f32.mrf.mxu0 }
  0xac   : > { %v624_v50 = vpop.f32.mrf.mxu1 }
  0xad   : > { %v6540_v19 = vadd.f32 %v624_v50, %v596_v24  ;;  %v6655_v24 = vor.u32 %v5043_v9, %v4303_v39  ;;  %v5115_v39 = vld [vmem:[%s7999_s1 + $0x43c] sm:$0xf]  ;;  %v4597_v9 = vld [vmem:[%s7999_s1 + $0x444] sm:$0xf0] }
  0xaf   : > { %1684 = vmatmul.bf16.vlgmr.msra.gmra.mxu2 %v6581_v12 }
  0xb0   : > { %v6554_v60 = vpop.f32.mrf.mxu3  ;;  %750 = vmatmul.bf16.gmra.mxu1 %v6341_v2  ;;  %1132 = vmatmul.bf16.gmra.mxu0 %v6414_v28  ;;  %v4440_v2 = vor.u32 %v5075_v56, %v4437_v7  ;;  %v4612_v56 = vor.u32 %v5118_v5, %v4609_v11  ;;  %v4384_v7 = vor.u32 %v5062_v34, %v4383_v17  ;;  %v4585_v5 = vld [vmem:[%s7999_s1 + $0x42c] sm:$0xf0]  ;;  %v5053_v11 = vld [vmem:[%s7999_s1 + $0x268] sm:$0xf0]  ;;  %v4319_v17 = vld [vmem:[%s5780_s26 + $0x48] sm:$0xf] }
  0xb1   : > { %1104 = vmatmul.bf16.gmra.mxu3 %v6414_v28  ;;  %v4491_v28 = vld [vmem:[%s7999_s1 + $0x380] sm:$0xf]  ;;  %v5047_v34 = vld [vmem:[%s5780_s26 + $0x54] sm:$0xf0] }
  0xb2   : > { %v6565_v16 = vpop.f32.mrf.mxu2  ;;  %v4492_v3 = vor.u32 %v5089_v45, %v4491_v28  ;;  %1738 = vmatpush.bf16.msrb.mxu0 %v4440_v2  ;;  %v6666_v43 = vpop.f32.mrf.mxu0  ;;  %v4311_v2 = vld [vmem:[%s5780_s26 + $0x28] sm:$0xf]  ;;  %v6709_v28 = vor.u32 %v5046_v55, %v4321_v1  ;;  %v5119_v1 = vld [vmem:[%s7999_s1 + $0x458] sm:$0xf0] }
  0xb3   : > { %v6711_v45 = vor.u32 %v5045_v38, %v4311_v2  ;;  %v6791_v38 = vor.u32 %v5047_v34, %v4319_v17 }
  0xb4   : > { %1790 = vmatpush.bf16.msrb.mxu2 %v4492_v3  ;;  %v6680_v20 = vpop.f32.mrf.mxu1 }
  0xb6   : > { %1739 = vmatpush.bf16.msrb.mxu0 %v4428_v10  ;;  %v1885_v10 = vld [vmem:[%s5863_s14 + $0x18] sm:$0xf] }
  0xb7   : > { %v1892_v27 = vunpack.c.l.bf16 %v1885_v10  ;;  %v5050_v10 = vld [vmem:[%s7999_s1 + $0x250] sm:$0xf0] }
  0xb8   : > { %v6583_v13 = vpop.f32.mrf.mxu3  ;;  %1791 = vmatpush.bf16.msrb.mxu2 %v4480_v30  ;;  %v4600_v30 = vor.u32 %v5115_v39, %v4597_v9  ;;  %v4336_v6 = vor.u32 %v5050_v10, %v4335_v32  ;;  %v1984_v9 = vld [vmem:[%s5780_s26 + $0x78] sm:$0x1] }
  0xb9   : > { %v1906_v21 = vmax.f32 %v1892_v27, %v1899_v35 }
  0xba   : > { %v6585_v15 = vpop.f32.mrf.mxu2  ;;  %2228 = vmatpush.bf16.msra.mxu0 %v4624_v14  ;;  %v601_v44 = vpop.f32.mrf.mxu0  ;;  %v4443_v14 = vld [vmem:[%s7999_s1 + $0x320] sm:$0xf] }
  0xbb   : > { %v1913_v59 = vpack.c.bf16 %v1906_v21, %v1906_v21 }
  0xbc   : > { %1792 = vmatpush.bf16.msrb.mxu2 %v4468_v52  ;;  %v4347_v52 = vld [vmem:[%s7999_s1 + $0x260] sm:$0xf] }
  0xbd   : > { %1920 = vst [vmem:[%s5863_s14 + $0x18] sm:$0xf] %v1913_v59  ;;  %v4348_v2 = vor.u32 %v5053_v11, %v4347_v52  ;;  %v2368_v59 = vunpack.c.l.bf16 %v1984_v9  ;;  %v1374_v52 = vunpack.c.l.b16 %v6731_v26 }
  0xbe   : > { %2229 = vmatpush.bf16.msra.mxu0 %v4612_v56  ;;  %v1941_v56 = vrot.slane %v6731_v26, 4 }
  0xbf   : > { %1689 = vmatmul.bf16.gmra.mxu2 %v6653_v29  ;;  %v2390_v11 = vrot.slane %v2368_v59, 1 }
  0xc0   : > { %v6609_v4 = vpop.f32.mrf.mxu3  ;;  %1656 = vmatmul.bf16.vlgmr.msra.gmra.mxu1 %v6655_v24  ;;  %1137 = vmatmul.bf16.gmra.mxu0 %v6470_v53  ;;  %v1955_v18 = vunpack.c.l.bf16 %v1941_v56  ;;  %v6855_v56 = vpack.c.b16 %v1374_v52, %v1374_v52 }
  0xc1   : > { %1109 = vmatmul.bf16.gmra.mxu3 %v6470_v53  ;;  %v4396_v53 = vor.u32 %v5065_v41, %v4395_v57  ;;  %1793 = vmatpush.bf16.msrb.mxu2 %v4456_v31  ;;  %v5077_v41 = vld [vmem:[%s7999_s1 + $0x328] sm:$0xf0] }
  0xc2   : > { %v6617_v46 = vpop.f32.mrf.mxu2  ;;  %v603_v61 = vpop.f32.mrf.mxu0  ;;  %2230 = vmatpush.bf16.msra.mxu0 %v4600_v30  ;;  %v4444_v55 = vor.u32 %v5077_v41, %v4443_v14  ;;  %v5109_v30 = vld [vmem:[%s7999_s1 + $0x40c] sm:$0xf] }
  0xc3   : > { %1762 = vmatpush.bf16.msrb.mxu1 %v4396_v53  ;;  %v4607_v53 = vld [vmem:[%s7999_s1 + $0x450] sm:$0xf] }
  0xc4   : > { %v4608_v51 = vor.u32 %v5119_v1, %v4607_v53  ;;  %v1927_v63 = vld [vmem:[%s5863_s14 + $0x18] sm:$0xf]  ;;  %v4739_v53 = vld [vmem:[%s7999_s1 + $0x528] sm:$0xf]  ;;  %v4583_v1 = vld [vmem:[%s7999_s1 + $0x420] sm:$0xf] }
  0xc5   : > { %1794 = vmatpush.bf16.msrb.mxu2 %v4444_v55  ;;  %v1934_v21 = vunpack.c.l.bf16 %v1927_v63  ;;  %v5152_v55 = vld [vmem:[%s7999_s1 + $0x530] sm:$0xf0] }
  0xc6   : > { %2201 = vmatpush.bf16.msra.mxu3 %v4608_v51  ;;  %v5106_v51 = vld [vmem:[%s7999_s1 + $0x3f4] sm:$0xf] }
  0xc7   : > { %1763 = vmatpush.bf16.msrb.mxu1 %v4384_v7  ;;  %v6789_v7 = vpack.c.b16 %v1375_v8, %v1375_v8 }
  0xc8   : > { %v613_v62 = vpop.f32.mrf.mxu3 }
  0xc9   : > { %1795 = vmatpush.bf16.msrb.mxu2 %v4432_v23 }
  0xca   : > { %v6657_v50 = vpop.f32.mrf.mxu2 }
  0xcb   : > { %1764 = vmatpush.bf16.msrb.mxu1 %v4372_v36  ;;  %v4595_v36 = vld [vmem:[%s7999_s1 + $0x438] sm:$0xf] }
  0xcd   : > { %v629_v3 = vpop.f32.mrf.mxu1 }
  0xce   : > { %v6716_v42 = vadd.f32 %v629_v3, %v601_v44  ;;  %v4588_v44 = vor.u32 %v5112_v58, %v4585_v5  ;;  %v4740_v58 = vor.u32 %v5152_v55, %v4739_v53  ;;  %v4561_v5 = vld [vmem:[%s7999_s1 + $0x3fc] sm:$0xf0]  ;;  %v4715_v55 = vld [vmem:[%s7999_s1 + $0x4f8] sm:$0xf] }
  0xcf   : > { %1694 = vmatmul.bf16.gmra.mxu2 %v6709_v28  ;;  %v4564_v34 = vor.u32 %v5106_v51, %v4561_v5  ;;  %v4547_v51 = vld [vmem:[%s7999_s1 + $0x3d8] sm:$0xf]  ;;  %v5104_v5 = vld [vmem:[%s7999_s1 + $0x3e0] sm:$0xf0] }
  0xd0   : > { %1661 = vmatmul.bf16.gmra.mxu1 %v6711_v45  ;;  %1142 = vmatmul.bf16.gmra.mxu0 %v6537_v47 }
  0xd1   : > { %1114 = vmatmul.bf16.gmra.mxu3 %v6537_v47  ;;  %v4359_v47 = vld [vmem:[%s7999_s1 + $0x278] sm:$0xf]  ;;  %2231 = vmatpush.bf16.msra.mxu0 %v4588_v44 }
  0xd2   : > { %v6685_v48 = vpop.f32.mrf.mxu2  ;;  %v4360_v22 = vor.u32 %v5056_v54, %v4359_v47  ;;  %v4573_v47 = vld [vmem:[%s7999_s1 + $0x414] sm:$0xf0]  ;;  %2784 = vmatpush.bf16.msra.mxu2 %v4740_v58  ;;  %v5100_v58 = vld [vmem:[%s7999_s1 + $0x3c4] sm:$0xf] }
  0xd4   : > { %1765 = vmatpush.bf16.msrb.mxu1 %v4360_v22 }
  0xd5   : > { %v631_v49 = vpop.f32.mrf.mxu1 }
  0xd6   : > { %v6759_v57 = vadd.f32 %v631_v49, %v603_v61  ;;  %v5116_v61 = vld [vmem:[%s7999_s1 + $0x440] sm:$0xf0]  ;;  %v4576_v49 = vor.u32 %v5109_v30, %v4573_v47  ;;  %v4559_v30 = vld [vmem:[%s7999_s1 + $0x3f0] sm:$0xf]  ;;  %v5107_v47 = vld [vmem:[%s7999_s1 + $0x3f8] sm:$0xf0] }
  0xd7   : > { %v4596_v39 = vor.u32 %v5116_v61, %v4595_v36  ;;  %v5103_v61 = vld [vmem:[%s7999_s1 + $0x3dc] sm:$0xf]  ;;  %v4560_v59 = vor.u32 %v5107_v47, %v4559_v30  ;;  %v4691_v47 = vld [vmem:[%s7999_s1 + $0x4c8] sm:$0xf] }
  0xd8   : > { %1766 = vmatpush.bf16.msrb.mxu1 %v4348_v2  ;;  %2232 = vmatpush.bf16.msra.mxu0 %v4576_v49  ;;  %v2391_v2 = vsel %vm1240_vm0, %v6068_v40, %v2390_v11  ;;  %v5149_v40 = vld [vmem:[%s7999_s1 + $0x518] sm:$0xf0] }
  0xd9   : > { %2202 = vmatpush.bf16.msra.mxu3 %v4596_v39  ;;  %v4627_v39 = vld [vmem:[%s7999_s1 + $0x470] sm:$0xf] }
  0xda   : > { %v6713_v0 = vpop.f32.mrf.mxu2 }
  0xdc   : > { %1767 = vmatpush.bf16.msrb.mxu1 %v4336_v6  ;;  %2233 = vmatpush.bf16.msra.mxu0 %v4564_v34  ;;  %v4615_v34 = vld [vmem:[%s7999_s1 + $0x458] sm:$0xf] }
  0xdd   : > { %v634_v31 = vpop.f32.mrf.mxu1  ;;  %v6809_v27 = vpop.f32.mrf.mxu0 }
  0xde   : > { %v6807_v35 = vadd.f32 %v634_v31, %v6554_v60  ;;  %v1962_v60 = vmax.f32 %v1934_v21, %v1955_v18  ;;  %v4727_v18 = vld [vmem:[%s7999_s1 + $0x510] sm:$0xf]  ;;  %v4549_v21 = vld [vmem:[%s7999_s1 + $0x3e4] sm:$0xf0] }
  0xdf   : > { %1699 = vmatmul.bf16.gmra.mxu2 %v6789_v7  ;;  %v4728_v23 = vor.u32 %v5149_v40, %v4727_v18  ;;  %v4703_v40 = vld [vmem:[%s7999_s1 + $0x4e0] sm:$0xf] }
  0xe0   : > { %1666 = vmatmul.bf16.gmra.mxu1 %v6791_v38  ;;  %1740 = vmatmul.bf16.vlgmr.msrb.gmra.mxu0 %v6581_v12  ;;  %v1969_v54 = vpack.c.bf16 %v1962_v60, %v1962_v60  ;;  %v4552_v60 = vor.u32 %v5103_v61, %v4549_v21 }
  0xe1   : > { %1712 = vmatmul.bf16.vlgmr.msrb.gmra.mxu3 %v6655_v24  ;;  %2785 = vmatpush.bf16.msra.mxu2 %v4728_v23 }
  0xe2   : > { %v6750_v62 = vpop.f32.mrf.mxu2  ;;  %1976 = vst [vmem:[%s5863_s14 + $0x18] sm:$0xf] %v1969_v54  ;;  %2234 = vmatpush.bf16.msra.mxu0 %v4552_v60 }
  0xe4   : > { %v680_v8 = vpop.f32.mrf.mxu3 }
  0xe5   : > { %v6828_v22 = vpop.f32.mrf.mxu1  ;;  %v6832_v14 = vadd.f32 %v680_v8, %v6565_v16  ;;  %v6834_v41 = vpop.f32.mrf.mxu0  ;;  %v5113_v16 = vld [vmem:[%s7999_s1 + $0x428] sm:$0xf0] }
  0xe6   : > { %v4584_v17 = vor.u32 %v5113_v16, %v4583_v1  ;;  %v5146_v1 = vld [vmem:[%s7999_s1 + $0x500] sm:$0xf0] }
  0xe7   : > { %v4716_v16 = vor.u32 %v5146_v1, %v4715_v55 }
  0xe8   : > { %2203 = vmatpush.bf16.msra.mxu3 %v4584_v17  ;;  %v4548_v17 = vor.u32 %v5104_v5, %v4547_v51  ;;  %v4519_v51 = vld [vmem:[%s5780_s26 + $0x8] sm:$0xf]  ;;  %v5096_v5 = vld [vmem:[%s5780_s26 + $0x14] sm:$0xf0] }
  0xe9   : > { %v2353_v44 = vld [vmem:[%s5863_s14 + $0x18] sm:$0xf]  ;;  %2786 = vmatpush.bf16.msra.mxu2 %v4716_v16 }
  0xea   : > { %v669_v3 = vpop.f32.mrf.mxu2  ;;  %v2360_v25 = vunpack.c.l.bf16 %v2353_v44  ;;  %v5120_v44 = vld [vmem:[%s7999_s1 + $0x460] sm:$0xf0] }
  0xec   : > { %v682_v3 = vpop.f32.mrf.mxu3 }
  0xed   : > { %v639_v33 = vpop.f32.mrf.mxu1  ;;  %v6862_v32 = vadd.f32 %v682_v3, %v6585_v15  ;;  %v6867_v31 = vpop.f32.mrf.mxu0  ;;  %v2405_v15 = vmax.f32 %v2360_v25, %v2391_v2  ;;  %v4616_v2 = vor.u32 %v5120_v44, %v4615_v34  ;;  %v4535_v3 = vld [vmem:[%s7999_s1 + $0x3c0] sm:$0xf] }
  0xee   : > { %v6865_v26 = vadd.f32 %v639_v33, %v6609_v4  ;;  %v5110_v4 = vld [vmem:[%s7999_s1 + $0x410] sm:$0xf0]  ;;  %v5101_v33 = vld [vmem:[%s7999_s1 + $0x3c8] sm:$0xf0] }
  0xef   : > { %1796 = vmatmul.bf16.vlgmr.msrb.gmra.mxu2 %v6581_v12  ;;  %v4571_v12 = vld [vmem:[%s7999_s1 + $0x408] sm:$0xf]  ;;  %v2412_v6 = vpack.c.bf16 %v2405_v15, %v2405_v15  ;;  %v4536_v15 = vor.u32 %v5101_v33, %v4535_v3  ;;  %v4520_v3 = vor.u32 %v5096_v5, %v4519_v51  ;;  %v4679_v33 = vld [vmem:[%s7999_s1 + $0x4b0] sm:$0xf]  ;;  %v5173_v51 = vld [vmem:[%s7999_s1 + $0x5d8] sm:$0xf0] }
  0xf0   : > { %1671 = vmatmul.bf16.gmra.mxu1 %v6855_v56  ;;  %v4572_v63 = vor.u32 %v5110_v4, %v4571_v12  ;;  %1745 = vmatmul.bf16.gmra.mxu0 %v6653_v29  ;;  %v5143_v12 = vld [vmem:[%s7999_s1 + $0x4e8] sm:$0xf0]  ;;  %v5142_v5 = vld [vmem:[%s7999_s1 + $0x4e4] sm:$0xf] }
  0xf1   : > { %1717 = vmatmul.bf16.gmra.mxu3 %v6711_v45  ;;  %2419 = vst [vmem:[%s5863_s14 + $0x18] sm:$0xf] %v2412_v6 }
  0xf2   : > { %v1072_v10 = vpop.f32.mrf.mxu2  ;;  %2204 = vmatpush.bf16.msra.mxu3 %v4572_v63  ;;  %v4704_v63 = vor.u32 %v5143_v12, %v4703_v40 }
  0xf3   : > { %v6884_v36 = vadd.f32 %v1072_v10, %v6540_v19  ;;  %v5123_v19 = vld [vmem:[%s7999_s1 + $0x478] sm:$0xf0] }
  0xf4   : > { %v4628_v9 = vor.u32 %v5123_v19, %v4627_v39  ;;  %v685_v54 = vpop.f32.mrf.mxu3  ;;  %2787 = vmatpush.bf16.msra.mxu2 %v4704_v63  ;;  %v5111_v63 = vld [vmem:[%s7999_s1 + $0x418] sm:$0xf0] }
  0xf5   : > { %v641_v49 = vpop.f32.mrf.mxu1  ;;  %v6907_v8 = vadd.f32 %v685_v54, %v6617_v46  ;;  %v6909_v53 = vpop.f32.mrf.mxu0  ;;  %v4537_v46 = vld [vmem:[%s7999_s1 + $0x3cc] sm:$0xf0]  ;;  %v5140_v54 = vld [vmem:[%s7999_s1 + $0x4d0] sm:$0xf0] }
  0xf6   : > { %2256 = vmatpush.bf16.msra.mxu1 %v4628_v9  ;;  %2205 = vmatpush.bf16.msra.mxu3 %v4560_v59  ;;  %v4540_v11 = vor.u32 %v5100_v58, %v4537_v46  ;;  %v4692_v49 = vor.u32 %v5140_v54, %v4691_v47  ;;  %v4591_v59 = vld [vmem:[%s7999_s1 + $0x428] sm:$0xf]  ;;  %v5114_v58 = vld [vmem:[%s7999_s1 + $0x430] sm:$0xf0]  ;;  %v2038_v47 = vshrl.u32 %v4520_v3, 16 }
  0xf7   : > { %v4592_v46 = vor.u32 %v5114_v58, %v4591_v59  ;;  %v5134_v58 = vld [vmem:[%s7999_s1 + $0x4a0] sm:$0xf0] }
  0xf8   : > { %2235 = vmatpush.bf16.msra.mxu0 %v4540_v11  ;;  %2788 = vmatpush.bf16.msra.mxu2 %v4692_v49 }
  0xfa   : > { %v6929_v52 = vpop.f32.mrf.mxu2  ;;  %2206 = vmatpush.bf16.msra.mxu3 %v4548_v17  ;;  %2257 = vmatpush.bf16.msra.mxu1 %v4616_v2 }
  0xfc   : > { %v687_v25 = vpop.f32.mrf.mxu3 }
  0xfd   : > { %v736_v18 = vpop.f32.mrf.mxu1  ;;  %v6951_v23 = vadd.f32 %v687_v25, %v6657_v50  ;;  %v6953_v4 = vpop.f32.mrf.mxu0  ;;  %v5151_v50 = vld [vmem:[%s7999_s1 + $0x52c] sm:$0xf]  ;;  %v5137_v25 = vld [vmem:[%s7999_s1 + $0x4b8] sm:$0xf0] }
  0xfe   : > { %v6956_v10 = vadd.f32 %v736_v18, %v6809_v27  ;;  %2207 = vmatpush.bf16.msra.mxu3 %v4536_v15  ;;  %v4741_v27 = vld [vmem:[%s7999_s1 + $0x534] sm:$0xf0]  ;;  %v4579_v15 = vld [vmem:[%s7999_s1 + $0x410] sm:$0xf] }
  0xff   : > { %1801 = vmatmul.bf16.gmra.mxu2 %v6653_v29  ;;  %v4744_v61 = vor.u32 %v5151_v50, %v4741_v27  ;;  %v5097_v18 = vld [vmem:[%s5780_s26 + $0x34] sm:$0xf0]  ;;  %v4580_v50 = vor.u32 %v5111_v63, %v4579_v15  ;;  %v2040_v27 = vshll.u32 %v4520_v3, 16 }
 0x100   : > { %1768 = vmatmul.bf16.vlgmr.msrb.gmra.mxu1 %v6655_v24  ;;  %1750 = vmatmul.bf16.gmra.mxu0 %v6709_v28  ;;  %v4603_v24 = vld [vmem:[%s7999_s1 + $0x440] sm:$0xf] }
 0x101   : > { %1722 = vmatmul.bf16.gmra.mxu3 %v6791_v38  ;;  %2840 = vmatpush.bf16.msrb.mxu0 %v4744_v61  ;;  %v4717_v61 = vld [vmem:[%s7999_s1 + $0x504] sm:$0xf0]  ;;  %v2042_v59 = vrot.slane %v2040_v27, 1 }
 0x102   : > { %v1077_v29 = vpop.f32.mrf.mxu2 }
 0x103   : > { %v6961_v6 = vadd.f32 %v1077_v29, %v6716_v42  ;;  %v5117_v42 = vld [vmem:[%s7999_s1 + $0x448] sm:$0xf0] }
 0x104   : > { %v4604_v21 = vor.u32 %v5117_v42, %v4603_v24  ;;  %v690_v39 = vpop.f32.mrf.mxu3  ;;  %v5145_v24 = vld [vmem:[%s7999_s1 + $0x4fc] sm:$0xf] }
 0x105   : > { %v738_v60 = vpop.f32.mrf.mxu1  ;;  %v6977_v19 = vadd.f32 %v690_v39, %v6685_v48  ;;  %v6979_v9 = vpop.f32.mrf.mxu0  ;;  %v5148_v48 = vld [vmem:[%s7999_s1 + $0x514] sm:$0xf]  ;;  %v4720_v42 = vor.u32 %v5145_v24, %v4717_v61 }
 0x106   : > { %v6982_v30 = vadd.f32 %v738_v60, %v6834_v41  ;;  %2258 = vmatpush.bf16.msra.mxu1 %v4604_v21  ;;  %v4729_v41 = vld [vmem:[%s7999_s1 + $0x51c] sm:$0xf0]  ;;  %v5108_v21 = vld [vmem:[%s7999_s1 + $0x400] sm:$0xf0] }
 0x107   : > { %v4732_v1 = vor.u32 %v5148_v48, %v4729_v41 }
 0x109   : > { %2841 = vmatpush.bf16.msrb.mxu0 %v4732_v1  ;;  %v4667_v1 = vld [vmem:[%s7999_s1 + $0x498] sm:$0xf] }
 0x10a   : > { %v1079_v55 = vpop.f32.mrf.mxu2  ;;  %2259 = vmatpush.bf16.msra.mxu1 %v4592_v46  ;;  %v637_v46 = vadd.f32 %v6828_v22, %v6583_v13  ;;  %v4705_v13 = vld [vmem:[%s7999_s1 + $0x4ec] sm:$0xf0]  ;;  %v4555_v22 = vld [vmem:[%s7999_s1 + $0x3e0] sm:$0xf] }
 0x10b   : > { %v7003_v16 = vadd.f32 %v1079_v55, %v6759_v57  ;;  %v4523_v57 = vld [vmem:[%s5780_s26 + $0x28] sm:$0xf] }
 0x10c   : > { %v692_v11 = vpop.f32.mrf.mxu3 }
 0x10d   : > { %v741_v17 = vpop.f32.mrf.mxu1  ;;  %v7009_v34 = vadd.f32 %v692_v11, %v6713_v0  ;;  %v7011_v44 = vpop.f32.mrf.mxu0  ;;  %v4835_v0 = vld [vmem:[%s7999_s1 + $0x5e8] sm:$0xf]  ;;  %2842 = vmatpush.bf16.msrb.mxu0 %v4720_v42 }
 0x10e   : > { %v7014_v2 = vadd.f32 %v741_v17, %v6867_v31  ;;  %v5176_v31 = vld [vmem:[%s7999_s1 + $0x5f0] sm:$0xf0]  ;;  %2260 = vmatpush.bf16.msra.mxu1 %v4580_v50  ;;  %v4527_v42 = vld [vmem:[%s5780_s26 + $0x48] sm:$0xf] }
 0x10f   : > { %1806 = vmatmul.bf16.gmra.mxu2 %v6709_v28  ;;  %v4680_v28 = vor.u32 %v5137_v25, %v4679_v33  ;;  %v4836_v12 = vor.u32 %v5176_v31, %v4835_v0  ;;  %v4708_v33 = vor.u32 %v5142_v5, %v4705_v13  ;;  %v4655_v0 = vld [vmem:[%s7999_s1 + $0x480] sm:$0xf]  ;;  %v5131_v31 = vld [vmem:[%s7999_s1 + $0x488] sm:$0xf0]  ;;  %v5102_v50 = vld [vmem:[%s7999_s1 + $0x3d0] sm:$0xf0] }
 0x110   : > { %1773 = vmatmul.bf16.gmra.mxu1 %v6711_v45  ;;  %1755 = vmatmul.bf16.gmra.mxu0 %v6789_v7  ;;  %v7042_v45 = vor.u32 %v5097_v18, %v4523_v57  ;;  %v5105_v57 = vld [vmem:[%s7999_s1 + $0x3e8] sm:$0xf0]  ;;  %v2043_v18 = vor.u32 %v2042_v59, %v2038_v47  ;;  %v4656_v63 = vor.u32 %v5131_v31, %v4655_v0  ;;  %v5125_v5 = vld [vmem:[%s5780_s26 + $0x1c] sm:$0xf0] }
 0x111   : > { %2789 = vmatpush.bf16.msra.mxu2 %v4680_v28  ;;  %1727 = vmatmul.bf16.gmra.mxu3 %v6855_v56  ;;  %v4556_v25 = vor.u32 %v5105_v57, %v4555_v22  ;;  %v5136_v22 = vld [vmem:[%s7999_s1 + $0x4b4] sm:$0xf] }
 0x112   : > { %v1082_v40 = vpop.f32.mrf.mxu2  ;;  %2812 = vmatpush.bf16.msrb.mxu3 %v4836_v12  ;;  %v2045_v55 = vshll.u32 %v7042_v45, 16  ;;  %2843 = vmatpush.bf16.msrb.mxu0 %v4708_v33 }
 0x113   : > { %v7039_v29 = vadd.f32 %v1082_v40, %v6807_v35  ;;  %v4567_v35 = vld [vmem:[%s7999_s1 + $0x3f8] sm:$0xf]  ;;  %v4543_v40 = vld [vmem:[%s7999_s1 + $0x3c8] sm:$0xf] }
 0x114   : > { %v695_v39 = vpop.f32.mrf.mxu3  ;;  %v4568_v54 = vor.u32 %v5108_v21, %v4567_v35  ;;  %v2047_v28 = vrot.slane %v2045_v55, 1  ;;  %v5098_v35 = vld [vmem:[%s5780_s26 + $0x54] sm:$0xf0]  ;;  %v4544_v21 = vor.u32 %v5102_v50, %v4543_v40 }
 0x115   : > { %v743_v60 = vpop.f32.mrf.mxu1  ;;  %v7057_v49 = vadd.f32 %v695_v39, %v6750_v62  ;;  %v725_v48 = vpop.f32.mrf.mxu0  ;;  %v4668_v62 = vor.u32 %v5134_v58, %v4667_v1  ;;  %v2049_v58 = vshrl.u32 %v7042_v45, 16  ;;  %v5153_v45 = vld [vmem:[%s7999_s1 + $0x538] sm:$0xf0] }
 0x116   : > { %v7060_v41 = vadd.f32 %v743_v60, %v6909_v53  ;;  %2261 = vmatpush.bf16.msra.mxu1 %v4568_v54  ;;  %v4823_v53 = vld [vmem:[%s7999_s1 + $0x5d0] sm:$0xf]  ;;  %v7108_v61 = vsel %vm899_vm1, %v2043_v18, %v2047_v28  ;;  %v7123_v54 = vor.u32 %v5098_v35, %v4527_v42  ;;  %v5139_v48 = vld [vmem:[%s7999_s1 + $0x4cc] sm:$0xf]  ;;  %v5099_v35 = vld [vmem:[%s5780_s26 + $0x74] sm:$0x10] }
 0x117   : > { %v4824_v17 = vor.u32 %v5173_v51, %v4823_v53  ;;  %2790 = vmatpush.bf16.msra.mxu2 %v4668_v62  ;;  %v2051_v0 = vor.u32 %v2049_v58, %v2047_v28  ;;  %v4735_v28 = vld [vmem:[%s7999_s1 + $0x518] sm:$0xf]  ;;  %v4775_v58 = vld [vmem:[%s7999_s1 + $0x570] sm:$0xf] }
 0x119   : > { %2813 = vmatpush.bf16.msrb.mxu3 %v4824_v17 }
 0x11a   : > { %v1084_v11 = vpop.f32.mrf.mxu2  ;;  %2262 = vmatpush.bf16.msra.mxu1 %v4556_v25 }
 0x11b   : > { %v7089_v3 = vadd.f32 %v1084_v11, %v637_v46  ;;  %2791 = vmatpush.bf16.msra.mxu2 %v4656_v63  ;;  %v4631_v46 = vld [vmem:[%s5780_s26 + $0x10] sm:$0xf] }
 0x11c   : > { %v697_v12 = vpop.f32.mrf.mxu3  ;;  %v4747_v11 = vld [vmem:[%s7999_s1 + $0x530] sm:$0xf]  ;;  %v7166_v25 = vor.u32 %v5125_v5, %v4631_v46  ;;  %v2057_v5 = vshrl.u32 %v7123_v54, 16 }
 0x11d   : > { %v746_v15 = vpop.f32.mrf.mxu1  ;;  %v1128_v24 = vpop.f32.mrf.mxu0  ;;  %v4748_v13 = vor.u32 %v5153_v45, %v4747_v11  ;;  %v4639_v45 = vld [vmem:[%s5780_s26 + $0x30] sm:$0xf] }
 0x11e   : > { %v7105_v27 = vadd.f32 %v746_v15, %v6953_v4  ;;  %v7113_v39 = vadd.f32 %v1128_v24, %v6956_v10  ;;  %v5170_v4 = vld [vmem:[%s7999_s1 + $0x5c0] sm:$0xf0]  ;;  %2263 = vmatpush.bf16.msra.mxu1 %v4544_v21  ;;  %v4531_v15 = vld [vmem:[%s5780_s26 + $0x68] sm:$0xf] }
 0x11f   : > { %1811 = vmatmul.bf16.gmra.mxu2 %v6789_v7  ;;  %v4811_v7 = vld [vmem:[%s7999_s1 + $0x5b8] sm:$0xf]  ;;  %v5150_v21 = vld [vmem:[%s7999_s1 + $0x520] sm:$0xf0] }
 0x120   : > { %1778 = vmatmul.bf16.gmra.mxu1 %v6791_v38  ;;  %v4812_v47 = vor.u32 %v5170_v4, %v4811_v7  ;;  %2236 = vmatmul.bf16.vlgmr.msra.gmra.mxu0 %v7108_v61  ;;  %v4693_v38 = vld [vmem:[%s7999_s1 + $0x4d4] sm:$0xf0]  ;;  %v5164_v4 = vld [vmem:[%s7999_s1 + $0x590] sm:$0xf0] }
 0x121   : > { %2208 = vmatmul.bf16.vlgmr.msra.gmra.mxu3 %v7108_v61  ;;  %v4696_v59 = vor.u32 %v5139_v48, %v4693_v38  ;;  %2896 = vmatpush.bf16.msrb.mxu2 %v4748_v13  ;;  %v7197_v48 = vor.u32 %v5099_v35, %v4531_v15  ;;  %v4669_v38 = vld [vmem:[%s7999_s1 + $0x4a4] sm:$0xf0]  ;;  %v5127_v13 = vld [vmem:[%s5780_s26 + $0x3c] sm:$0xf0] }
 0x122   : > { %v1087_v60 = vpop.f32.mrf.mxu2  ;;  %2814 = vmatpush.bf16.msrb.mxu3 %v4812_v47  ;;  %v4825_v35 = vld [vmem:[%s7999_s1 + $0x5dc] sm:$0xf0] }
 0x123   : > { %v7126_v10 = vadd.f32 %v1087_v60, %v6865_v26  ;;  %v2053_v26 = vshll.u32 %v7123_v54, 16  ;;  %2844 = vmatpush.bf16.msrb.mxu0 %v4696_v59  ;;  %v2061_v11 = vshll.u32 %v7197_v48, 16  ;;  %v5130_v54 = vld [vmem:[%s7999_s1 + $0x484] sm:$0xf] }
 0x124   : > { %v1100_v55 = vpop.f32.mrf.mxu3 }
 0x125   : > { %v748_v1 = vpop.f32.mrf.mxu1  ;;  %v7139_v62 = vadd.f32 %v1100_v55, %v6832_v14  ;;  %v1130_v51 = vpop.f32.mrf.mxu0  ;;  %v4799_v14 = vld [vmem:[%s7999_s1 + $0x5a0] sm:$0xf]  ;;  %v2055_v31 = vrot.slane %v2053_v26, 1  ;;  %v4837_v55 = vld [vmem:[%s7999_s1 + $0x5f4] sm:$0xf0] }
 0x126   : > { %v7142_v53 = vadd.f32 %v748_v1, %v6979_v9  ;;  %v7152_v17 = vadd.f32 %v1130_v51, %v6982_v30  ;;  %v5167_v9 = vld [vmem:[%s7999_s1 + $0x5a8] sm:$0xf0]  ;;  %v4681_v30 = vld [vmem:[%s7999_s1 + $0x4bc] sm:$0xf0]  ;;  %v5161_v26 = vld [vmem:[%s7999_s1 + $0x578] sm:$0xf0] }
 0x127   : > { %v4800_v33 = vor.u32 %v5167_v9, %v4799_v14  ;;  %v4684_v18 = vor.u32 %v5136_v22, %v4681_v30  ;;  %v7177_v42 = vsel %vm899_vm1, %v2051_v0, %v2055_v31  ;;  %v4776_v14 = vor.u32 %v5161_v26, %v4775_v58  ;;  %v4763_v0 = vld [vmem:[%s7999_s1 + $0x558] sm:$0xf] }
 0x129   : > { %2815 = vmatpush.bf16.msrb.mxu3 %v4800_v33  ;;  %2845 = vmatpush.bf16.msrb.mxu0 %v4684_v18  ;;  %v5147_v33 = vld [vmem:[%s7999_s1 + $0x508] sm:$0xf0] }
 0x12a   : > { %v1089_v57 = vpop.f32.mrf.mxu2 }
 0x12b   : > { %v4723_v57 = vld [vmem:[%s7999_s1 + $0x500] sm:$0xf] }
 0x12c   : > { %v1102_v40 = vpop.f32.mrf.mxu3  ;;  %v4724_v18 = vor.u32 %v5147_v33, %v4723_v57  ;;  %v4647_v57 = vld [vmem:[%s5780_s26 + $0x50] sm:$0xf]  ;;  %v5129_v33 = vld [vmem:[%s5780_s26 + $0x5c] sm:$0xf0] }
 0x12d   : > { %v751_v12 = vpop.f32.mrf.mxu1  ;;  %v7171_v63 = vadd.f32 %v1102_v40, %v6862_v32  ;;  %v1133_v24 = vpop.f32.mrf.mxu0  ;;  %v4736_v32 = vor.u32 %v5150_v21, %v4735_v28  ;;  %v5158_v40 = vld [vmem:[%s7999_s1 + $0x560] sm:$0xf0]  ;;  %v7252_v28 = vor.u32 %v5127_v13, %v4639_v45  ;;  %v627_v45 = vadd.f32 %v6680_v20, %v6666_v43  ;;  %v5141_v43 = vld [vmem:[%s7999_s1 + $0x4d8] sm:$0xf0]  ;;  %v4935_v20 = vld [vmem:[%s7999_s1 + $0x690] sm:$0xf] }
 0x12e   : > { %v7174_v50 = vadd.f32 %v751_v12, %v7011_v44  ;;  %v7187_v7 = vadd.f32 %v1133_v24, %v7014_v2  ;;  %v4787_v44 = vld [vmem:[%s7999_s1 + $0x588] sm:$0xf]  ;;  %v5133_v2 = vld [vmem:[%s7999_s1 + $0x49c] sm:$0xf]  ;;  %v4764_v24 = vor.u32 %v5158_v40, %v4763_v0  ;;  %v4699_v40 = vld [vmem:[%s7999_s1 + $0x4d0] sm:$0xf] }
 0x12f   : > { %2792 = vmatmul.bf16.vlgmr.msra.gmra.mxu2 %v7166_v25  ;;  %v4788_v47 = vor.u32 %v5164_v4, %v4787_v44  ;;  %v4672_v59 = vor.u32 %v5133_v2, %v4669_v38  ;;  %v2063_v44 = vrot.slane %v2061_v11, 1  ;;  %v4751_v4 = vld [vmem:[%s7999_s1 + $0x540] sm:$0xf] }
 0x130   : > { %1783 = vmatmul.bf16.gmra.mxu1 %v6855_v56  ;;  %2241 = vmatmul.bf16.gmra.mxu0 %v7177_v42  ;;  %v5175_v56 = vld [vmem:[%s7999_s1 + $0x5ec] sm:$0xf] }
 0x131   : > { %2897 = vmatpush.bf16.msrb.mxu2 %v4736_v32  ;;  %2213 = vmatmul.bf16.gmra.mxu3 %v7177_v42  ;;  %v4840_v1 = vor.u32 %v5175_v56, %v4837_v55  ;;  %v2059_v32 = vor.u32 %v2057_v5, %v2055_v31  ;;  %v4711_v31 = vld [vmem:[%s7999_s1 + $0x4e8] sm:$0xf]  ;;  %v5144_v56 = vld [vmem:[%s7999_s1 + $0x4f0] sm:$0xf0] }
 0x132   : > { %v1685_v60 = vpop.f32.mrf.mxu2  ;;  %2816 = vmatpush.bf16.msrb.mxu3 %v4788_v47  ;;  %2846 = vmatpush.bf16.msrb.mxu0 %v4672_v59  ;;  %v5155_v47 = vld [vmem:[%s7999_s1 + $0x548] sm:$0xf0] }
 0x133   : > { %2868 = vmatpush.bf16.msrb.mxu1 %v4840_v1  ;;  %v4752_v59 = vor.u32 %v5155_v47, %v4751_v4  ;;  %v7271_v58 = vsel %vm899_vm1, %v2059_v32, %v2063_v44  ;;  %v7326_v4 = vor.u32 %v5129_v33, %v4647_v57  ;;  %v5198_v57 = vld [vmem:[%s7999_s1 + $0x680] sm:$0xf0] }
 0x134   : > { %v1105_v46 = vpop.f32.mrf.mxu3 }
 0x135   : > { %v753_v51 = vpop.f32.mrf.mxu1  ;;  %v7223_v9 = vadd.f32 %v1105_v46, %v6907_v8  ;;  %v1135_v22 = vpop.f32.mrf.mxu0  ;;  %v4657_v8 = vld [vmem:[%s7999_s1 + $0x48c] sm:$0xf0]  ;;  %2898 = vmatpush.bf16.msrb.mxu2 %v4724_v18  ;;  %v4712_v46 = vor.u32 %v5144_v56, %v4711_v31 }
 0x136   : > { %v7235_v30 = vadd.f32 %v1135_v22, %v7060_v41  ;;  %2817 = vmatpush.bf16.msrb.mxu3 %v4776_v14  ;;  %v4660_v15 = vor.u32 %v5130_v54, %v4657_v8  ;;  %v5172_v41 = vld [vmem:[%s7999_s1 + $0x5d4] sm:$0xf]  ;;  %v1171_v54 = vadd.f32 %v6929_v52, %v627_v45  ;;  %v4789_v45 = vld [vmem:[%s7999_s1 + $0x594] sm:$0xf0] }
 0x137   : > { %v4828_v21 = vor.u32 %v5172_v41, %v4825_v35 }
 0x138   : > { %2847 = vmatpush.bf16.msrb.mxu0 %v4660_v15  ;;  %v5166_v15 = vld [vmem:[%s7999_s1 + $0x5a4] sm:$0xf] }
 0x139   : > { %2869 = vmatpush.bf16.msrb.mxu1 %v4828_v21  ;;  %2899 = vmatpush.bf16.msrb.mxu2 %v4712_v46 }
 0x13a   : > { %v1687_v12 = vpop.f32.mrf.mxu2  ;;  %2818 = vmatpush.bf16.msrb.mxu3 %v4764_v24  ;;  %v4801_v24 = vld [vmem:[%s7999_s1 + $0x5ac] sm:$0xf0] }
 0x13b   : > { %v4804_v21 = vor.u32 %v5166_v15, %v4801_v24  ;;  %v4675_v24 = vld [vmem:[%s7999_s1 + $0x4a0] sm:$0xf] }
 0x13c   : > { %v1107_v2 = vpop.f32.mrf.mxu3 }
 0x13d   : > { %v1657_v38 = vpop.f32.mrf.mxu1  ;;  %v7268_v55 = vadd.f32 %v1107_v2, %v6951_v23  ;;  %v1138_v1 = vpop.f32.mrf.mxu0  ;;  %v4947_v23 = vld [vmem:[%s7999_s1 + $0x6a8] sm:$0xf] }
 0x13e   : > { %v1686_v26 = vadd.f32 %v1685_v60, %v1657_v38  ;;  %v7274_v51 = vadd.f32 %v1138_v1, %v7105_v27  ;;  %2819 = vmatpush.bf16.msrb.mxu3 %v4752_v59  ;;  %v5204_v27 = vld [vmem:[%s7999_s1 + $0x6b0] sm:$0xf0]  ;;  %v5138_v1 = vld [vmem:[%s7999_s1 + $0x4c0] sm:$0xf0] }
 0x13f   : > { %2797 = vmatmul.bf16.gmra.mxu2 %v7252_v28  ;;  %v4948_v60 = vor.u32 %v5204_v27, %v4947_v23 }
 0x140   : > { %2264 = vmatmul.bf16.vlgmr.msra.gmra.mxu1 %v7108_v61  ;;  %v7278_v11 = vadd.f32 %v1686_v26, %v6884_v36  ;;  %2246 = vmatmul.bf16.gmra.mxu0 %v7271_v58  ;;  %v5169_v61 = vld [vmem:[%s7999_s1 + $0x5bc] sm:$0xf]  ;;  %v4813_v36 = vld [vmem:[%s7999_s1 + $0x5c4] sm:$0xf0] }
 0x141   : > { %2218 = vmatmul.bf16.gmra.mxu3 %v7271_v58  ;;  %v4816_v13 = vor.u32 %v5169_v61, %v4813_v36  ;;  %3336 = vmatpush.bf16.msra.mxu0 %v4948_v60  ;;  %v3021_v61 = vld [vmem:[%s5863_s14 + $0x18] sm:$0xf]  ;;  %v5163_v36 = vld [vmem:[%s7999_s1 + $0x58c] sm:$0xf] }
 0x142   : > { %v1690_v5 = vpop.f32.mrf.mxu2 }
 0x143   : > { %2870 = vmatpush.bf16.msrb.mxu1 %v4816_v13  ;;  %v4792_v13 = vor.u32 %v5163_v36, %v4789_v45  ;;  %v5154_v36 = vld [vmem:[%s7999_s1 + $0x544] sm:$0xf] }
 0x144   : > { %v1110_v14 = vpop.f32.mrf.mxu3 }
 0x145   : > { %v1659_v22 = vpop.f32.mrf.mxu1  ;;  %v7300_v18 = vadd.f32 %v1110_v14, %v6977_v19  ;;  %v1140_v8 = vpop.f32.mrf.mxu0  ;;  %v4700_v19 = vor.u32 %v5141_v43, %v4699_v40 }
 0x146   : > { %v1688_v0 = vadd.f32 %v1687_v12, %v1659_v22  ;;  %v7312_v52 = vadd.f32 %v1140_v8, %v7142_v53  ;;  %v5201_v12 = vld [vmem:[%s7999_s1 + $0x698] sm:$0xf0]  ;;  %v2065_v53 = vshrl.u32 %v7197_v48, 16  ;;  %v4687_v48 = vld [vmem:[%s7999_s1 + $0x4b8] sm:$0xf] }
 0x147   : > { %v4936_v35 = vor.u32 %v5201_v12, %v4935_v20  ;;  %2900 = vmatpush.bf16.msrb.mxu2 %v4700_v19  ;;  %2871 = vmatpush.bf16.msrb.mxu1 %v4804_v21  ;;  %v4688_v46 = vor.u32 %v5138_v1, %v4687_v48  ;;  %v4923_v22 = vld [vmem:[%s7999_s1 + $0x678] sm:$0xf]  ;;  %v4765_v48 = vld [vmem:[%s7999_s1 + $0x564] sm:$0xf0] }
 0x148   : > { %v7323_v32 = vadd.f32 %v1688_v0, %v1171_v54  ;;  %v7328_v38 = vor.u32 %v2065_v53, %v2063_v44  ;;  %v4843_v44 = vld [vmem:[%s7999_s1 + $0x5f0] sm:$0xf]  ;;  %v4924_v33 = vor.u32 %v5198_v57, %v4923_v22  ;;  %v4777_v54 = vld [vmem:[%s7999_s1 + $0x57c] sm:$0xf0]  ;;  %v4831_v21 = vld [vmem:[%s7999_s1 + $0x5d8] sm:$0xf] }
 0x149   : > { %3337 = vmatpush.bf16.msra.mxu0 %v4936_v35  ;;  %v5135_v35 = vld [vmem:[%s7999_s1 + $0x4a8] sm:$0xf0]  ;;  %v3120_v22 = vld [vmem:[%s5780_s26 + $0x80] sm:$0x1] }
 0x14a   : > { %v1692_v41 = vpop.f32.mrf.mxu2  ;;  %v4676_v53 = vor.u32 %v5135_v35, %v4675_v24 }
 0x14b   : > { %2901 = vmatpush.bf16.msrb.mxu2 %v4688_v46  ;;  %2872 = vmatpush.bf16.msrb.mxu1 %v4792_v13 }
 0x14c   : > { %v1112_v47 = vpop.f32.mrf.mxu3 }
 0x14d   : > { %v1662_v2 = vpop.f32.mrf.mxu1  ;;  %v7332_v31 = vadd.f32 %v1112_v47, %v7009_v34  ;;  %v1143_v56 = vpop.f32.mrf.mxu0  ;;  %v5177_v34 = vld [vmem:[%s7999_s1 + $0x5f8] sm:$0xf0]  ;;  %3338 = vmatpush.bf16.msra.mxu0 %v4924_v33  ;;  %v4753_v33 = vld [vmem:[%s7999_s1 + $0x54c] sm:$0xf0] }
 0x14e   : > { %v1691_v59 = vadd.f32 %v1690_v5, %v1662_v2  ;;  %v7344_v26 = vadd.f32 %v1143_v56, %v7174_v50  ;;  %v7350_v5 = vld [vmem:[%s5780_s26 + $0x70] sm:$0xff]  ;;  %v4844_v27 = vor.u32 %v5177_v34, %v4843_v44  ;;  %v3028_v50 = vunpack.c.l.bf16 %v3021_v61  ;;  %v5195_v56 = vld [vmem:[%s7999_s1 + $0x668] sm:$0xf0] }
 0x14f   : > { %2802 = vmatmul.bf16.gmra.mxu2 %v7326_v4  ;;  %v3035_v60 = vunpack.c.l.bf16 %v7350_v5  ;;  %v2510_v40 = vunpack.c.l.b16 %v7350_v5  ;;  %v3077_v46 = vrot.slane %v7350_v5, 4  ;;  %v5124_v61 = vld [vmem:[%s5780_s26 + $0x14] sm:$0xf] }
 0x150   : > { %2269 = vmatmul.bf16.gmra.mxu1 %v7177_v42  ;;  %2251 = vmatmul.bf16.gmra.mxu0 %v7328_v38  ;;  %v7365_v42 = vadd.f32 %v1691_v59, %v6961_v6  ;;  %v5160_v6 = vld [vmem:[%s7999_s1 + $0x574] sm:$0xf]  ;;  %v5157_v59 = vld [vmem:[%s7999_s1 + $0x55c] sm:$0xf] }
 0x151   : > { %2223 = vmatmul.bf16.gmra.mxu3 %v7328_v38  ;;  %v3042_v14 = vmax.f32 %v3028_v50, %v3035_v60  ;;  %v4780_v20 = vor.u32 %v5160_v6, %v4777_v54  ;;  %v7412_v44 = vpack.c.b16 %v2510_v40, %v2510_v40  ;;  %2902 = vmatpush.bf16.msrb.mxu2 %v4676_v53  ;;  %v4633_v60 = vld [vmem:[%s5780_s26 + $0x20] sm:$0xf0]  ;;  %v4663_v50 = vld [vmem:[%s7999_s1 + $0x488] sm:$0xf] }
 0x152   : > { %v7353_v23 = vpop.f32.mrf.mxu2  ;;  %2924 = vmatpush.bf16.msra.mxu3 %v4844_v27  ;;  %v4768_v27 = vor.u32 %v5157_v59, %v4765_v48  ;;  %v7431_v54 = vor.u32 %v5124_v61, %v4633_v60  ;;  %v4756_v40 = vor.u32 %v5154_v36, %v4753_v33  ;;  %v4899_v53 = vld [vmem:[%s7999_s1 + $0x648] sm:$0xf]  ;;  %v4641_v33 = vld [vmem:[%s5780_s26 + $0x40] sm:$0xf0] }
 0x153   : > { %v3049_v43 = vpack.c.bf16 %v3042_v14, %v3042_v14  ;;  %2873 = vmatpush.bf16.msrb.mxu1 %v4780_v20  ;;  %v3091_v14 = vunpack.c.l.bf16 %v3077_v46  ;;  %v5171_v20 = vld [vmem:[%s7999_s1 + $0x5c8] sm:$0xf0]  ;;  %v4807_v61 = vld [vmem:[%s7999_s1 + $0x5a8] sm:$0xf] }
 0x154   : > { %v1115_v8 = vpop.f32.mrf.mxu3 }
 0x155   : > { %v1664_v0 = vpop.f32.mrf.mxu1  ;;  %v7382_v19 = vadd.f32 %v1115_v8, %v7057_v49  ;;  %v1145_v12 = vpop.f32.mrf.mxu0  ;;  %3056 = vst [vmem:[%s5863_s14 + $0x18] sm:$0xf] %v3049_v43  ;;  %v5174_v49 = vld [vmem:[%s7999_s1 + $0x5e0] sm:$0xf0]  ;;  %v4819_v43 = vld [vmem:[%s7999_s1 + $0x5c0] sm:$0xf] }
 0x156   : > { %v1693_v15 = vadd.f32 %v1692_v41, %v1664_v0  ;;  %v4911_v41 = vld [vmem:[%s7999_s1 + $0x660] sm:$0xf]  ;;  %v4832_v2 = vor.u32 %v5174_v49, %v4831_v21  ;;  %v3504_v21 = vunpack.c.l.bf16 %v3120_v22  ;;  %v5192_v49 = vld [vmem:[%s7999_s1 + $0x650] sm:$0xf0] }
 0x157   : > { %v4912_v34 = vor.u32 %v5195_v56, %v4911_v41  ;;  %2874 = vmatpush.bf16.msrb.mxu1 %v4768_v27  ;;  %v4900_v41 = vor.u32 %v5192_v49, %v4899_v53  ;;  %v5205_v27 = vld [vmem:[%s7999_s1 + $0x6b8] sm:$0xf0] }
 0x158   : > { %v7410_v1 = vadd.f32 %v1693_v15, %v7003_v16  ;;  %2925 = vmatpush.bf16.msra.mxu3 %v4832_v2  ;;  %v5132_v16 = vld [vmem:[%s7999_s1 + $0x490] sm:$0xf0]  ;;  %v4820_v15 = vor.u32 %v5171_v20, %v4819_v43  ;;  %v3526_v56 = vrot.slane %v3504_v21, 1 }
 0x159   : > { %3339 = vmatpush.bf16.msra.mxu0 %v4912_v34  ;;  %v4664_v57 = vor.u32 %v5132_v16, %v4663_v50  ;;  %v4955_v34 = vld [vmem:[%s7999_s1 + $0x6b0] sm:$0xf]  ;;  %v5189_v16 = vld [vmem:[%s7999_s1 + $0x638] sm:$0xf0] }
 0x15a   : > { %v1697_v47 = vpop.f32.mrf.mxu2  ;;  %v7463_v60 = vor.u32 %v5205_v27, %v4955_v34  ;;  %v4887_v50 = vld [vmem:[%s7999_s1 + $0x630] sm:$0xf] }
 0x15b   : > { %2903 = vmatpush.bf16.msrb.mxu2 %v4664_v57  ;;  %2875 = vmatpush.bf16.msrb.mxu1 %v4756_v40  ;;  %v5126_v57 = vld [vmem:[%s5780_s26 + $0x34] sm:$0xf] }
 0x15c   : > { %v1117_v45 = vpop.f32.mrf.mxu3  ;;  %v3063_v0 = vld [vmem:[%s5863_s14 + $0x18] sm:$0xf]  ;;  %2926 = vmatpush.bf16.msra.mxu3 %v4820_v15 }
 0x15d   : > { %v1667_v13 = vpop.f32.mrf.mxu1  ;;  %v1741_v6 = vpop.f32.mrf.mxu0  ;;  %v3070_v12 = vunpack.c.l.bf16 %v3063_v0  ;;  %3340 = vmatpush.bf16.msra.mxu0 %v4900_v41  ;;  %v4943_v15 = vld [vmem:[%s7999_s1 + $0x698] sm:$0xf] }
 0x15e   : > { %v1696_v8 = vadd.f32 %v7353_v23, %v1667_v13  ;;  %v4888_v13 = vor.u32 %v5189_v16, %v4887_v50  ;;  %v4931_v16 = vld [vmem:[%s7999_s1 + $0x680] sm:$0xf] }
 0x15f   : > { %2807 = vmatmul.bf16.gmra.mxu2 %v7412_v44  ;;  %v3098_v23 = vmax.f32 %v3070_v12, %v3091_v14  ;;  %v7487_v12 = vor.u32 %v5126_v57, %v4641_v33  ;;  %v5183_v57 = vld [vmem:[%s7999_s1 + $0x608] sm:$0xf0]  ;;  %v4771_v33 = vld [vmem:[%s7999_s1 + $0x560] sm:$0xf] }
 0x160   : > { %2274 = vmatmul.bf16.gmra.mxu1 %v7271_v58  ;;  %v7443_v35 = vadd.f32 %v1696_v8, %v7039_v29  ;;  %2848 = vmatmul.bf16.vlgmr.msrb.gmra.mxu0 %v7166_v25  ;;  %v3527_v8 = vsel %vm1240_vm0, %v6101_v37, %v3526_v56  ;;  %v4795_v37 = vld [vmem:[%s7999_s1 + $0x590] sm:$0xf]  ;;  %v4949_v56 = vld [vmem:[%s7999_s1 + $0x6b4] sm:$0xf0] }
 0x161   : > { %2820 = vmatmul.bf16.vlgmr.msrb.gmra.mxu3 %v7431_v54  ;;  %v3105_v58 = vpack.c.bf16 %v3098_v23, %v3098_v23  ;;  %3392 = vmatpush.bf16.msra.mxu2 %v7463_v60  ;;  %v5202_v23 = vld [vmem:[%s7999_s1 + $0x6a0] sm:$0xf0] }
 0x162   : > { %v1700_v24 = vpop.f32.mrf.mxu2  ;;  %3341 = vmatpush.bf16.msra.mxu0 %v4888_v13 }
 0x163   : > { %3112 = vst [vmem:[%s5863_s14 + $0x18] sm:$0xf] %v3105_v58 }
 0x164   : > { %v1713_v29 = vpop.f32.mrf.mxu3 }
 0x165   : > { %v1669_v2 = vpop.f32.mrf.mxu1  ;;  %v1742_v59 = vadd.f32 %v1741_v6, %v1713_v29  ;;  %v1743_v48 = vpop.f32.mrf.mxu0 }
 0x166   : > { %v1698_v46 = vadd.f32 %v1697_v47, %v1669_v2  ;;  %v5168_v47 = vld [vmem:[%s7999_s1 + $0x5b0] sm:$0xf0]  ;;  %v4875_v2 = vld [vmem:[%s7999_s1 + $0x618] sm:$0xf] }
 0x167   : > { %v4808_v45 = vor.u32 %v5168_v47, %v4807_v61  ;;  %v7475_v14 = vadd.f32 %v1742_v59, %v7139_v62 }
 0x168   : > { %v7478_v22 = vadd.f32 %v1698_v46, %v7089_v3  ;;  %v5162_v46 = vld [vmem:[%s7999_s1 + $0x580] sm:$0xf0] }
 0x169   : > { %2927 = vmatpush.bf16.msra.mxu3 %v4808_v45  ;;  %v4863_v45 = vld [vmem:[%s7999_s1 + $0x600] sm:$0xf] }
 0x16a   : > { %v1702_v36 = vpop.f32.mrf.mxu2  ;;  %v3489_v6 = vld [vmem:[%s5863_s14 + $0x18] sm:$0xf] }
 0x16b   : > { %v3496_v43 = vunpack.c.l.bf16 %v3489_v6  ;;  %v5199_v36 = vld [vmem:[%s7999_s1 + $0x688] sm:$0xf0] }
 0x16c   : > { %v1715_v0 = vpop.f32.mrf.mxu3  ;;  %v4932_v13 = vor.u32 %v5199_v36, %v4931_v16  ;;  %v5159_v6 = vld [vmem:[%s7999_s1 + $0x568] sm:$0xf0]  ;;  %v5193_v16 = vld [vmem:[%s7999_s1 + $0x658] sm:$0xf0] }
 0x16d   : > { %v1672_v40 = vpop.f32.mrf.mxu1  ;;  %v1744_v62 = vadd.f32 %v1743_v48, %v1715_v0  ;;  %v1746_v20 = vpop.f32.mrf.mxu0  ;;  %v3541_v21 = vmax.f32 %v3496_v43, %v3527_v8  ;;  %v4783_v48 = vld [vmem:[%s7999_s1 + $0x578] sm:$0xf]  ;;  %v4864_v0 = vor.u32 %v5183_v57, %v4863_v45  ;;  %v5200_v43 = vld [vmem:[%s7999_s1 + $0x694] sm:$0xf]  ;;  %v5194_v45 = vld [vmem:[%s7999_s1 + $0x664] sm:$0xf] }
 0x16e   : > { %v1701_v3 = vadd.f32 %v1700_v24, %v1672_v40  ;;  %v5165_v24 = vld [vmem:[%s7999_s1 + $0x598] sm:$0xf0]  ;;  %v4784_v61 = vor.u32 %v5162_v46, %v4783_v48  ;;  %v4772_v40 = vor.u32 %v5159_v6, %v4771_v33 }
 0x16f   : > { %2904 = vmatmul.bf16.vlgmr.msrb.gmra.mxu2 %v7166_v25  ;;  %v7498_v25 = vor.u32 %v5202_v23, %v4943_v15  ;;  %v4796_v49 = vor.u32 %v5165_v24, %v4795_v37  ;;  %v7505_v58 = vadd.f32 %v1744_v62, %v7171_v63  ;;  %v3548_v29 = vpack.c.bf16 %v3541_v21, %v3541_v21  ;;  %v4937_v62 = vld [vmem:[%s7999_s1 + $0x69c] sm:$0xf0]  ;;  %v5128_v15 = vld [vmem:[%s5780_s26 + $0x54] sm:$0xf]  ;;  %v4649_v23 = vld [vmem:[%s5780_s26 + $0x60] sm:$0xf0] }
 0x170   : > { %2279 = vmatmul.bf16.gmra.mxu1 %v7328_v38  ;;  %v7508_v41 = vadd.f32 %v1701_v3, %v7126_v10  ;;  %2853 = vmatmul.bf16.gmra.mxu0 %v7252_v28  ;;  %v5186_v38 = vld [vmem:[%s7999_s1 + $0x620] sm:$0xf0]  ;;  %v5203_v10 = vld [vmem:[%s7999_s1 + $0x6ac] sm:$0xf]  ;;  %v4940_v3 = vor.u32 %v5200_v43, %v4937_v62  ;;  %v4759_v37 = vld [vmem:[%s7999_s1 + $0x548] sm:$0xf] }
 0x171   : > { %3393 = vmatpush.bf16.msra.mxu2 %v7498_v25  ;;  %2825 = vmatmul.bf16.gmra.mxu3 %v7487_v12  ;;  %3555 = vst [vmem:[%s5863_s14 + $0x18] sm:$0xf] %v3548_v29  ;;  %v4876_v63 = vor.u32 %v5186_v38, %v4875_v2  ;;  %v4952_v59 = vor.u32 %v5203_v10, %v4949_v56  ;;  %v5156_v21 = vld [vmem:[%s7999_s1 + $0x550] sm:$0xf0]  ;;  %v5178_v43 = vld [vmem:[%s5780_s26 + $0x1c] sm:$0xf0] }
 0x172   : > { %v1797_v53 = vpop.f32.mrf.mxu2  ;;  %2928 = vmatpush.bf16.msra.mxu3 %v4796_v49  ;;  %v5196_v29 = vld [vmem:[%s7999_s1 + $0x670] sm:$0xf0]  ;;  %v4760_v2 = vor.u32 %v5156_v21, %v4759_v37  ;;  %v4851_v21 = vld [vmem:[%s5780_s26 + $0x30] sm:$0xf] }
 0x173   : > { %3342 = vmatpush.bf16.msra.mxu0 %v4876_v63  ;;  %5462 = vmatpush.bf16.msra.mxu1 %v4952_v59  ;;  %v7574_v63 = vor.u32 %v5128_v15, %v4649_v23 }
 0x174   : > { %v1718_v34 = vpop.f32.mrf.mxu3 }
 0x175   : > { %v1674_v27 = vpop.f32.mrf.mxu1  ;;  %v1747_v47 = vadd.f32 %v1746_v20, %v1718_v34  ;;  %v1748_v50 = vpop.f32.mrf.mxu0  ;;  %3394 = vmatpush.bf16.msra.mxu2 %v4932_v13  ;;  %v4925_v34 = vld [vmem:[%s7999_s1 + $0x684] sm:$0xf0] }
 0x176   : > { %2929 = vmatpush.bf16.msra.mxu3 %v4784_v61 }
 0x177   : > { %v7557_v20 = vadd.f32 %v1747_v47, %v7223_v9  ;;  %3343 = vmatpush.bf16.msra.mxu0 %v4864_v0  ;;  %5463 = vmatpush.bf16.msra.mxu1 %v4940_v3  ;;  %v4919_v9 = vld [vmem:[%s7999_s1 + $0x668] sm:$0xf]  ;;  %v2511_v0 = vunpack.c.h.b16 %v7350_v5  ;;  %v4895_v5 = vld [vmem:[%s7999_s1 + $0x638] sm:$0xf] }
 0x178   : > { %v4920_v48 = vor.u32 %v5196_v29, %v4919_v9  ;;  %v5191_v9 = vld [vmem:[%s7999_s1 + $0x64c] sm:$0xf]  ;;  %v4901_v29 = vld [vmem:[%s7999_s1 + $0x654] sm:$0xf0] }
 0x179   : > { %v7615_v23 = vpack.c.b16 %v2511_v0, %v2511_v0 }
 0x17a   : > { %v1799_v8 = vpop.f32.mrf.mxu2  ;;  %2930 = vmatpush.bf16.msra.mxu3 %v4772_v40  ;;  %3395 = vmatpush.bf16.msra.mxu2 %v4920_v48  ;;  %v4847_v40 = vld [vmem:[%s5780_s26 + $0x10] sm:$0xf] }
 0x17b   : > { %3364 = vmatpush.bf16.msrb.mxu0 %v4952_v59  ;;  %v4848_v37 = vor.u32 %v5178_v43, %v4847_v40 }
 0x17c   : > { %v1720_v24 = vpop.f32.mrf.mxu3 }
 0x17d   : > { %v1769_v49 = vpop.f32.mrf.mxu1  ;;  %v1749_v38 = vadd.f32 %v1748_v50, %v1720_v24  ;;  %v1751_v10 = vpop.f32.mrf.mxu0  ;;  %v4907_v50 = vld [vmem:[%s7999_s1 + $0x650] sm:$0xf]  ;;  %v5179_v24 = vld [vmem:[%s5780_s26 + $0x3c] sm:$0xf0] }
 0x17e   : > { %v1798_v56 = vadd.f32 %v1797_v53, %v1769_v49  ;;  %2931 = vmatpush.bf16.msra.mxu3 %v4760_v2  ;;  %v5197_v53 = vld [vmem:[%s7999_s1 + $0x67c] sm:$0xf]  ;;  %v4908_v36 = vor.u32 %v5193_v16, %v4907_v50  ;;  %v4883_v50 = vld [vmem:[%s7999_s1 + $0x620] sm:$0xf]  ;;  %v5187_v16 = vld [vmem:[%s7999_s1 + $0x628] sm:$0xf0] }
 0x17f   : > { %2909 = vmatmul.bf16.gmra.mxu2 %v7252_v28  ;;  %v7578_v28 = vadd.f32 %v1749_v38, %v7268_v55  ;;  %3365 = vmatpush.bf16.msrb.mxu0 %v4940_v3  ;;  %v4928_v55 = vor.u32 %v5197_v53, %v4925_v34  ;;  %v3174_v34 = vshrl.u32 %v4848_v37, 16 }
 0x180   : > { %2876 = vmatmul.bf16.vlgmr.msrb.gmra.mxu1 %v7431_v54  ;;  %v7581_v46 = vadd.f32 %v1798_v56, %v7113_v39  ;;  %2858 = vmatmul.bf16.gmra.mxu0 %v7326_v4  ;;  %v7640_v56 = vor.u32 %v5179_v24, %v4851_v21 }
 0x181   : > { %2830 = vmatmul.bf16.gmra.mxu3 %v7574_v63  ;;  %5464 = vmatpush.bf16.msra.mxu1 %v4928_v55 }
 0x182   : > { %v1802_v59 = vpop.f32.mrf.mxu2  ;;  %5470 = vmatpush.bf16.msrb.mxu3 %v7463_v60  ;;  %3396 = vmatpush.bf16.msra.mxu2 %v4908_v36 }
 0x183   : > { %3366 = vmatpush.bf16.msrb.mxu0 %v4928_v55 }
 0x184   : > { %v1723_v27 = vpop.f32.mrf.mxu3 }
 0x185   : > { %v1771_v61 = vpop.f32.mrf.mxu1  ;;  %v1752_v39 = vadd.f32 %v1751_v10, %v1723_v27  ;;  %v1753_v47 = vpop.f32.mrf.mxu0  ;;  %v4904_v10 = vor.u32 %v5191_v9, %v4901_v29  ;;  %v4855_v9 = vld [vmem:[%s5780_s26 + $0x50] sm:$0xf]  ;;  %v5180_v29 = vld [vmem:[%s5780_s26 + $0x5c] sm:$0xf0] }
 0x186   : > { %5471 = vmatpush.bf16.msrb.mxu3 %v7498_v25  ;;  %v1800_v60 = vadd.f32 %v1799_v8, %v1771_v61  ;;  %v4913_v25 = vld [vmem:[%s7999_s1 + $0x66c] sm:$0xf0] }
 0x187   : > { %v4916_v33 = vor.u32 %v5194_v45, %v4913_v25  ;;  %v7606_v6 = vadd.f32 %v1752_v39, %v7300_v18  ;;  %v4884_v45 = vor.u32 %v5187_v16, %v4883_v50  ;;  %v4877_v25 = vld [vmem:[%s7999_s1 + $0x624] sm:$0xf0]  ;;  %v4859_v16 = vld [vmem:[%s5780_s26 + $0x70] sm:$0xf] }
 0x188   : > { %v7609_v8 = vadd.f32 %v1800_v60, %v7152_v17  ;;  %v3181_v60 = vshll.u32 %v7640_v56, 16 }
 0x189   : > { %5465 = vmatpush.bf16.msra.mxu1 %v4916_v33  ;;  %3367 = vmatpush.bf16.msrb.mxu0 %v4916_v33 }
 0x18a   : > { %v1804_v57 = vpop.f32.mrf.mxu2  ;;  %5472 = vmatpush.bf16.msrb.mxu3 %v4932_v13  ;;  %v5190_v13 = vld [vmem:[%s7999_s1 + $0x640] sm:$0xf0] }
 0x18b   : > { %v4896_v49 = vor.u32 %v5190_v13, %v4895_v5 }
 0x18c   : > { %v1725_v62 = vpop.f32.mrf.mxu3 }
 0x18d   : > { %v1774_v3 = vpop.f32.mrf.mxu1  ;;  %v1754_v18 = vadd.f32 %v1753_v47, %v1725_v62  ;;  %v1756_v15 = vpop.f32.mrf.mxu0  ;;  %3397 = vmatpush.bf16.msra.mxu2 %v4896_v49  ;;  %5466 = vmatpush.bf16.msra.mxu1 %v4904_v10  ;;  %v3183_v62 = vrot.slane %v3181_v60, 1 }
 0x18e   : > { %5473 = vmatpush.bf16.msrb.mxu3 %v4920_v48  ;;  %v1803_v17 = vadd.f32 %v1802_v59, %v1774_v3  ;;  %v3176_v48 = vshll.u32 %v4848_v37, 16  ;;  %3368 = vmatpush.bf16.msrb.mxu0 %v4904_v10  ;;  %v5188_v59 = vld [vmem:[%s7999_s1 + $0x634] sm:$0xf]  ;;  %v4871_v3 = vld [vmem:[%s7999_s1 + $0x608] sm:$0xf] }
 0x18f   : > { %2914 = vmatmul.bf16.gmra.mxu2 %v7326_v4  ;;  %v7633_v2 = vadd.f32 %v1754_v18, %v7332_v31  ;;  %v4865_v37 = vld [vmem:[%s7999_s1 + $0x60c] sm:$0xf0] }
 0x190   : > { %2881 = vmatmul.bf16.gmra.mxu1 %v7487_v12  ;;  %v7636_v38 = vadd.f32 %v1803_v17, %v7187_v7  ;;  %2863 = vmatmul.bf16.gmra.mxu0 %v7412_v44  ;;  %v4889_v7 = vld [vmem:[%s7999_s1 + $0x63c] sm:$0xf0]  ;;  %v3178_v47 = vrot.slane %v3176_v48, 1 }
 0x191   : > { %2835 = vmatmul.bf16.gmra.mxu3 %v7615_v23  ;;  %v4892_v55 = vor.u32 %v5188_v59, %v4889_v7  ;;  %3398 = vmatpush.bf16.msra.mxu2 %v4884_v45 }
 0x192   : > { %v1807_v4 = vpop.f32.mrf.mxu2  ;;  %5474 = vmatpush.bf16.msrb.mxu3 %v4908_v36  ;;  %v5185_v36 = vld [vmem:[%s7999_s1 + $0x61c] sm:$0xf]  ;;  %v3179_v43 = vor.u32 %v3178_v47, %v3174_v34 }
 0x193   : > { %5467 = vmatpush.bf16.msra.mxu1 %v4892_v55  ;;  %3369 = vmatpush.bf16.msrb.mxu0 %v4892_v55  ;;  %v4880_v33 = vor.u32 %v5185_v36, %v4877_v25 }
 0x194   : > { %v1728_v31 = vpop.f32.mrf.mxu3  ;;  %v7681_v13 = vsel %vm899_vm1, %v3179_v43, %v3183_v62 }
 0x195   : > { %v1776_v53 = vpop.f32.mrf.mxu1  ;;  %v1757_v27 = vadd.f32 %v1756_v15, %v1728_v31  ;;  %v1758_v61 = vpop.f32.mrf.mxu0 }
 0x196   : > { %v1805_v39 = vadd.f32 %v1804_v57, %v1776_v53  ;;  %5475 = vmatpush.bf16.msrb.mxu3 %v4896_v49  ;;  %v3185_v53 = vshrl.u32 %v7640_v56, 16 }
 0x197   : > { %v7662_v0 = vadd.f32 %v1757_v27, %v7382_v19  ;;  %5468 = vmatpush.bf16.msra.mxu1 %v4880_v33  ;;  %3370 = vmatpush.bf16.msrb.mxu0 %v4880_v33  ;;  %v5184_v19 = vld [vmem:[%s7999_s1 + $0x610] sm:$0xf0] }
 0x198   : > { %v7665_v40 = vadd.f32 %v1805_v39, %v7235_v30  ;;  %v5182_v30 = vld [vmem:[%s7999_s1 + $0x604] sm:$0xf]  ;;  %v4872_v17 = vor.u32 %v5184_v19, %v4871_v3  ;;  %v3187_v27 = vor.u32 %v3185_v53, %v3183_v62 }
 0x199   : > { %v4868_v24 = vor.u32 %v5182_v30, %v4865_v37 }
 0x19a   : > { %v1809_v57 = vpop.f32.mrf.mxu2  ;;  %5476 = vmatpush.bf16.msrb.mxu3 %v4884_v45  ;;  %3399 = vmatpush.bf16.msra.mxu2 %v4872_v17  ;;  %v5181_v45 = vld [vmem:[%s5780_s26 + $0x7c] sm:$0x10]  ;;  %s5479_s26 = smul.u32 84, %s8020_s16 }
 0x19b   : > { %3371 = vmatpush.bf16.msrb.mxu0 %v4868_v24  ;;  %5469 = vmatpush.bf16.msra.mxu1 %v4868_v24 }
 0x19c   : > { %v1730_v18 = vpop.f32.mrf.mxu3  ;;  %s7867_s18 = scalar_lea.vmem %s8000_s2, %s5479_s26 }
 0x19d   : > { %v1779_v15 = vpop.f32.mrf.mxu1  ;;  %v2237_v5 = vpop.f32.mrf.mxu0 }
 0x19e   : > { %v1808_v21 = vadd.f32 %v1807_v4, %v1779_v15  ;;  %v7684_v49 = vadd.f32 %v2237_v5, %v7475_v14  ;;  %v4856_v4 = vor.u32 %v5180_v29, %v4855_v9  ;;  %5477 = vmatpush.bf16.msrb.mxu3 %v4872_v17 }
 0x19f   : > { %2919 = vmatmul.bf16.gmra.mxu2 %v7412_v44 }
 0x1a0   : > { %2886 = vmatmul.bf16.gmra.mxu1 %v7574_v63  ;;  %v7690_v10 = vadd.f32 %v1808_v21, %v7274_v51  ;;  %3344 = vmatmul.bf16.vlgmr.msra.gmra.mxu0 %v7681_v13  ;;  %v3189_v51 = vshll.u32 %v4856_v4, 16  ;;  %v3193_v43 = vshrl.u32 %v4856_v4, 16 }
 0x1a1   : > { %2932 = vmatmul.bf16.vlgmr.msra.gmra.mxu3 %v7431_v54 }
 0x1a2   : > { %v1812_v44 = vpop.f32.mrf.mxu2  ;;  %v3191_v61 = vrot.slane %v3189_v51, 1 }
 0x1a4   : > { %v2209_v48 = vpop.f32.mrf.mxu3  ;;  %v3192_v56 = vsel %vm899_vm1, %v3187_v27, %v3191_v61  ;;  %v3195_v30 = vor.u32 %v3193_v43, %v3191_v61 }
 0x1a5   : > { %v1781_v14 = vpop.f32.mrf.mxu1  ;;  %v7695_v59 = vadd.f32 %v2209_v48, %v7278_v11  ;;  %v2239_v7 = vpop.f32.mrf.mxu0 }
 0x1a6   : > { %v1810_v31 = vadd.f32 %v1809_v57, %v1781_v14  ;;  %v7699_v34 = vadd.f32 %v2239_v7, %v7505_v58 }
 0x1a8   : > { %v7702_v54 = vadd.f32 %v1810_v31, %v7312_v52 }
 0x1aa   : > { %v1814_v55 = vpop.f32.mrf.mxu2 }
 0x1ac   : > { %v2211_v39 = vpop.f32.mrf.mxu3 }
 0x1ad   : > { %v1784_v47 = vpop.f32.mrf.mxu1  ;;  %v7706_v11 = vadd.f32 %v2211_v39, %v7323_v32  ;;  %v2242_v60 = vpop.f32.mrf.mxu0  ;;  %v4860_v32 = vor.u32 %v5181_v45, %v4859_v16 }
 0x1ae   : > { %v1813_v50 = vadd.f32 %v1812_v44, %v1784_v47  ;;  %v7710_v58 = vadd.f32 %v2242_v60, %v7557_v20 }
 0x1af   : > { %3400 = vmatmul.bf16.vlgmr.msra.gmra.mxu2 %v7681_v13  ;;  %v3197_v62 = vshll.u32 %v4860_v32, 16 }
 0x1b0   : > { %2891 = vmatmul.bf16.gmra.mxu1 %v7615_v23  ;;  %v7718_v36 = vadd.f32 %v1813_v50, %v7344_v26  ;;  %3349 = vmatmul.bf16.gmra.mxu0 %v3192_v56 }
 0x1b1   : > { %2937 = vmatmul.bf16.gmra.mxu3 %v7487_v12  ;;  %v3199_v18 = vrot.slane %v3197_v62, 1 }
 0x1b2   : > { %v7715_v52 = vpop.f32.mrf.mxu2 }
 0x1b4   : > { %v2214_v25 = vpop.f32.mrf.mxu3 }
 0x1b5   : > { %v1786_v57 = vpop.f32.mrf.mxu1  ;;  %v7722_v33 = vadd.f32 %v2214_v25, %v7365_v42  ;;  %v2244_v20 = vpop.f32.mrf.mxu0  ;;  %v3200_v42 = vsel %vm899_vm1, %v3195_v30, %v3199_v18 }
 0x1b6   : > { %v7725_v3 = vadd.f32 %v2244_v20, %v7578_v28 }
 0x1ba   : > { %v2795_v19 = vpop.f32.mrf.mxu2 }
 0x1bc   : > { %v2216_v26 = vpop.f32.mrf.mxu3 }
 0x1bd   : > { %v2265_v15 = vpop.f32.mrf.mxu1  ;;  %v7728_v12 = vadd.f32 %v2216_v26, %v7410_v1  ;;  %v2247_v17 = vpop.f32.mrf.mxu0 }
 0x1be   : > { %v7731_v37 = vadd.f32 %v2265_v15, %v7581_v46  ;;  %v7735_v5 = vadd.f32 %v2247_v17, %v7606_v6  ;;  %v3201_v6 = vshrl.u32 %v4860_v32, 16 }
 0x1bf   : > { %3405 = vmatmul.bf16.gmra.mxu2 %v3192_v56 }
 0x1c0   : > { %3377 = vmatmul.bf16.vlgmr.msra.gmra.mxu1 %v3192_v56  ;;  %3354 = vmatmul.bf16.gmra.mxu0 %v3200_v42  ;;  %v3203_v14 = vor.u32 %v3201_v6, %v3199_v18 }
 0x1c1   : > { %2942 = vmatmul.bf16.gmra.mxu3 %v7574_v63 }
 0x1c2   : > { %v2798_v28 = vpop.f32.mrf.mxu2 }
 0x1c4   : > { %v2219_v21 = vpop.f32.mrf.mxu3 }
 0x1c5   : > { %v2267_v24 = vpop.f32.mrf.mxu1  ;;  %v7739_v9 = vadd.f32 %v2219_v21, %v7443_v35  ;;  %v2249_v1 = vpop.f32.mrf.mxu0 }
 0x1c6   : > { %v7742_v29 = vadd.f32 %v2267_v24, %v7609_v8  ;;  %v7745_v46 = vadd.f32 %v2249_v1, %v7633_v2 }
 0x1ca   : > { %v2800_v44 = vpop.f32.mrf.mxu2 }
 0x1cc   : > { %v2221_v4 = vpop.f32.mrf.mxu3 }
 0x1cd   : > { %v2270_v48 = vpop.f32.mrf.mxu1  ;;  %v7748_v63 = vadd.f32 %v2221_v4, %v7478_v22  ;;  %v2252_v7 = vpop.f32.mrf.mxu0 }
 0x1ce   : > { %v7751_v35 = vadd.f32 %v2270_v48, %v7636_v38  ;;  %v7754_v31 = vadd.f32 %v2252_v7, %v7662_v0 }
 0x1cf   : > { %3410 = vmatmul.bf16.gmra.mxu2 %v3200_v42 }
 0x1d0   : > { %3382 = vmatmul.bf16.gmra.mxu1 %v3200_v42  ;;  %3359 = vmatmul.bf16.gmra.mxu0 %v3203_v14 }
 0x1d1   : > { %2947 = vmatmul.bf16.gmra.mxu3 %v7615_v23 }
 0x1d2   : > { %v2803_v8 = vpop.f32.mrf.mxu2 }
 0x1d4   : > { %v2224_v2 = vpop.f32.mrf.mxu3 }
 0x1d5   : > { %v2272_v53 = vpop.f32.mrf.mxu1  ;;  %v7758_v51 = vadd.f32 %v2224_v2, %v7508_v41  ;;  %v2254_v55 = vpop.f32.mrf.mxu0 }
 0x1d6   : > { %v7761_v22 = vadd.f32 %v2272_v53, %v7665_v40 }
 0x1da   : > { %v2805_v27 = vpop.f32.mrf.mxu2 }
 0x1dc   : > { %v2226_v38 = vpop.f32.mrf.mxu3 }
 0x1dd   : > { %v2275_v61 = vpop.f32.mrf.mxu1  ;;  %v2849_v39 = vpop.f32.mrf.mxu0 }
 0x1de   : > { %v7764_v0 = vadd.f32 %v2275_v61, %v7690_v10 }
 0x1e0   : > { %3387 = vmatmul.bf16.gmra.mxu1 %v3203_v14  ;;  %3372 = vmatmul.bf16.vlgmr.msrb.gmra.mxu0 %v7681_v13 }
 0x1e1   : > { %3415 = vmatmul.bf16.vlgmr.msrb.gmra.mxu3 %v3203_v14 }
 0x1e2   : > { %v2808_v47 = vpop.f32.mrf.mxu2 }
 0x1e4   : > { %v2821_v23 = vpop.f32.mrf.mxu3 }
 0x1e5   : > { %v2277_v60 = vpop.f32.mrf.mxu1  ;;  %v2822_v41 = vadd.f32 %v2821_v23, %v7715_v52  ;;  %v2851_v40 = vpop.f32.mrf.mxu0 }
 0x1e6   : > { %v7769_v56 = vadd.f32 %v2277_v60, %v7702_v54 }
 0x1e7   : > { %v2973_v16 = vadd.f32 %v2822_v41, %v7695_v59 }
 0x1ea   : > { %v2810_v50 = vpop.f32.mrf.mxu2 }
 0x1ec   : > { %v2823_v45 = vpop.f32.mrf.mxu3 }
 0x1ed   : > { %v2280_v10 = vpop.f32.mrf.mxu1  ;;  %v2824_v32 = vadd.f32 %v2823_v45, %v2795_v19  ;;  %v2854_v57 = vpop.f32.mrf.mxu0 }
 0x1ee   : > { %v7773_v25 = vadd.f32 %v2280_v10, %v7718_v36 }
 0x1ef   : > { %v2976_v20 = vadd.f32 %v2824_v32, %v7706_v11 }
 0x1f2   : > { %v7775_v13 = vpop.f32.mrf.mxu2 }
 0x1f4   : > { %v2826_v43 = vpop.f32.mrf.mxu3 }
 0x1f5   : > { %v2282_v52 = vpop.f32.mrf.mxu1  ;;  %v2827_v62 = vadd.f32 %v2826_v43, %v2798_v28  ;;  %v2856_v54 = vpop.f32.mrf.mxu0 }
 0x1f7   : > { %v7781_v18 = vadd.f32 %v2827_v62, %v7722_v33 }
 0x1fa   : > { %v7778_v30 = vpop.f32.mrf.mxu2 }
 0x1fc   : > { %v2828_v59 = vpop.f32.mrf.mxu3 }
 0x1fd   : > { %v2877_v26 = vpop.f32.mrf.mxu1  ;;  %v2829_v19 = vadd.f32 %v2828_v59, %v2800_v44  ;;  %v2859_v15 = vpop.f32.mrf.mxu0 }
 0x1fe   : > { %v2878_v36 = vadd.f32 %v2877_v26, %v2849_v39 }
 0x1ff   : > { %v7786_v42 = vadd.f32 %v2829_v19, %v7728_v12 }
 0x200   : > { %v7789_v11 = vadd.f32 %v2878_v36, %v7684_v49 }
 0x202   : > { %v7783_v17 = vpop.f32.mrf.mxu2 }
 0x204   : > { %v2831_v28 = vpop.f32.mrf.mxu3 }
 0x205   : > { %v2879_v21 = vpop.f32.mrf.mxu1  ;;  %v2832_v24 = vadd.f32 %v2831_v28, %v2803_v8  ;;  %v2861_v1 = vpop.f32.mrf.mxu0 }
 0x206   : > { %v2880_v6 = vadd.f32 %v2879_v21, %v2851_v40 }
 0x207   : > { %v7794_v4 = vadd.f32 %v2832_v24, %v7739_v9 }
 0x208   : > { %v7797_v44 = vadd.f32 %v2880_v6, %v7699_v34  ;;  %v3577_v34 = vlaneseq }
 0x20a   : > { %v7791_v33 = vpop.f32.mrf.mxu2  ;;  %vm3745_vm11 = vcmp.lt.s32.totalorder %v3577_v34, 384 }
 0x20c   : > { %v2833_v48 = vpop.f32.mrf.mxu3 }
 0x20d   : > { %v2882_v14 = vpop.f32.mrf.mxu1  ;;  %v2834_v12 = vadd.f32 %v2833_v48, %v2805_v27  ;;  %v2864_v7 = vpop.f32.mrf.mxu0 }
 0x20e   : > { %v2883_v2 = vadd.f32 %v2882_v14, %v2854_v57 }
 0x20f   : > { %v7805_v8 = vadd.f32 %v2834_v12, %v7748_v63 }
 0x210   : > { %v7802_v53 = vadd.f32 %v2883_v2, %v7710_v58  ;;  %v7816_v58 = vshrl.u32 %v3577_v34, 7 }
 0x212   : > { %v7799_v49 = vpop.f32.mrf.mxu2  ;;  %v3589_v10 = vand.u32 7, %v7816_v58 }
 0x214   : > { %v2836_v55 = vpop.f32.mrf.mxu3  ;;  %vm7827_vm2 = vcmp.lt.s32.totalorder %v3589_v10, 7 }
 0x215   : > { %v2884_v38 = vpop.f32.mrf.mxu1  ;;  %v2837_v9 = vadd.f32 %v2836_v55, %v2808_v47  ;;  %v2866_v61 = vpop.f32.mrf.mxu0  ;;  %v3579_v47 = vadd.s32 8, %v7816_v58  ;;  %v3581_v55 = vadd.s32 24, %v7816_v58 }
 0x216   : > { %v2885_v39 = vadd.f32 %v2884_v38, %v2856_v54 }
 0x217   : > { %v7813_v60 = vadd.f32 %v2837_v9, %v7758_v51  ;;  %v3596_v51 = vand.u32 7, %v3579_v47 }
 0x218   : > { %v7810_v27 = vadd.f32 %v2885_v39, %v7725_v3 }
 0x219   : > { %vm7831_vm3 = vcmp.lt.s32.totalorder %v3596_v51, 7 }
 0x21a   : > { %v7807_v23 = vpop.f32.mrf.mxu2 }
 0x21c   : > { %v2838_v41 = vpop.f32.mrf.mxu3 }
 0x21d   : > { %v2887_v63 = vpop.f32.mrf.mxu1  ;;  %v3345_v50 = vpop.f32.mrf.mxu0 }
 0x21e   : > { %v2888_v40 = vadd.f32 %v2887_v63, %v2859_v15  ;;  %v7819_v45 = vadd.f32 %v3345_v50, %v2973_v16  ;;  %v3580_v16 = vadd.s32 16, %v7816_v58 }
 0x220   : > { %v7825_v3 = vadd.f32 %v2888_v40, %v7735_v5  ;;  %v3676_v5 = vsel %vm7827_vm2, %v7819_v45, 0.0  ;;  %v3610_v40 = vand.u32 7, %v3581_v55 }
 0x221   : > { %v3748_v28 = vmul.f32 %v3676_v5, %v7819_v45 }
 0x222   : > { %v7822_v32 = vpop.f32.mrf.mxu2  ;;  %vm7870_vm5 = vcmp.lt.s32.totalorder %v3610_v40, 7 }
 0x224   : > { %v2933_v43 = vpop.f32.mrf.mxu3 }
 0x225   : > { %v2889_v52 = vpop.f32.mrf.mxu1  ;;  %v3347_v54 = vpop.f32.mrf.mxu0  ;;  %v2934_v6 = vadd.f32 %v2933_v43, %v7775_v13  ;;  %v3582_v43 = vadd.s32 32, %v7816_v58 }
 0x226   : > { %v2890_v62 = vadd.f32 %v2889_v52, %v2861_v1  ;;  %v7839_v26 = vadd.f32 %v3347_v54, %v2976_v20  ;;  %v3603_v1 = vand.u32 7, %v3580_v16 }
 0x227   : > { %v2975_v9 = vadd.f32 %v2934_v6, %v7731_v37 }
 0x228   : > { %v7842_v15 = vadd.f32 %v2890_v62, %v7745_v46  ;;  %v3679_v36 = vsel %vm7831_vm3, %v7839_v26, 0.0  ;;  %vm7850_vm4 = vcmp.lt.s32.totalorder %v3603_v1, 7 }
 0x229   : > { %v3697_v21 = vadd.f32 %v3679_v36, %v3676_v5  ;;  %v3751_v24 = vmul.f32 %v3679_v36, %v7839_v26 }
 0x22a   : > { %v2922_v19 = vpop.f32.mrf.mxu2 }
 0x22b   : > { %v3769_v48 = vadd.f32 %v3751_v24, %v3748_v28  ;;  %v3617_v28 = vand.u32 7, %v3582_v43 }
 0x22c   : > { %v2935_v20 = vpop.f32.mrf.mxu3 }
 0x22d   : > { %v2892_v14 = vpop.f32.mrf.mxu1  ;;  %v3350_v2 = vpop.f32.mrf.mxu0  ;;  %v2936_v50 = vadd.f32 %v2935_v20, %v7778_v30  ;;  %vm7885_vm6 = vcmp.lt.s32.totalorder %v3617_v28, 7 }
 0x22e   : > { %v2893_v12 = vadd.f32 %v2892_v14, %v2864_v7  ;;  %v3447_v38 = vadd.f32 %v3350_v2, %v7781_v18 }
 0x22f   : > { %v2978_v52 = vadd.f32 %v2936_v50, %v7742_v29 }
 0x230   : > { %v7859_v39 = vadd.f32 %v2893_v12, %v7754_v31  ;;  %v3682_v13 = vsel %vm7850_vm4, %v3447_v38, 0.0 }
 0x231   : > { %v3698_v41 = vadd.f32 %v3697_v21, %v3682_v13  ;;  %v3754_v63 = vmul.f32 %v3682_v13, %v3447_v38 }
 0x232   : > { %v3401_v61 = vpop.f32.mrf.mxu2 }
 0x233   : > { %v3443_v7 = vadd.f32 %v3401_v61, %v2975_v9  ;;  %v3770_v10 = vadd.f32 %v3769_v48, %v3754_v63 }
 0x234   : > { %v2938_v37 = vpop.f32.mrf.mxu3 }
 0x235   : > { %v3816_v47 = vpack.c.bf16 %v3443_v7, %v3443_v7  ;;  %v2894_v31 = vpop.f32.mrf.mxu1  ;;  %v3352_v18 = vpop.f32.mrf.mxu0  ;;  %v3678_v16 = vsel %vm7827_vm2, %v3443_v7, 0.0  ;;  %v2939_v21 = vadd.f32 %v2938_v37, %v7783_v17  ;;  %v3583_v17 = vadd.s32 40, %v7816_v58 }
 0x236   : > { %v3450_v30 = vadd.f32 %v3352_v18, %v7786_v42  ;;  %v3750_v29 = vmul.f32 %v3678_v16, %v3443_v7 }
 0x237   : > { %3830 = vst [vmem:[%s7867_s18 + $0x8] sm:$0xf] %v3816_v47  ;;  %v2981_v13 = vadd.f32 %v2939_v21, %v7751_v35 }
 0x238   : > { %v3685_v54 = vsel %vm7870_vm5, %v3450_v30, 0.0 }
 0x239   : > { %v3699_v19 = vadd.f32 %v3698_v41, %v3685_v54  ;;  %v3757_v36 = vmul.f32 %v3685_v54, %v3450_v30 }
 0x23a   : > { %v3403_v62 = vpop.f32.mrf.mxu2 }
 0x23b   : > { %v3446_v5 = vadd.f32 %v3403_v62, %v2978_v52  ;;  %v3771_v1 = vadd.f32 %v3770_v10, %v3757_v36 }
 0x23c   : > { %v2940_v20 = vpop.f32.mrf.mxu3 }
 0x23d   : > { %v3681_v24 = vsel %vm7831_vm3, %v3446_v5, 0.0  ;;  %v3818_v42 = vpack.c.bf16 %v3446_v5, %v3446_v5  ;;  %v3378_v14 = vpop.f32.mrf.mxu1  ;;  %v3355_v12 = vpop.f32.mrf.mxu0  ;;  %v2941_v10 = vadd.f32 %v2940_v20, %v7791_v33  ;;  %v3584_v33 = vadd.s32 48, %v7816_v58 }
 0x23e   : > { %v3721_v6 = vadd.f32 %v3681_v24, %v3678_v16  ;;  %v3753_v48 = vmul.f32 %v3681_v24, %v3446_v5  ;;  %v7890_v55 = vadd.f32 %v3378_v14, %v7802_v53  ;;  %v3453_v61 = vadd.f32 %v3355_v12, %v7794_v4 }
 0x23f   : > { %3832 = vst [vmem:[%s7867_s18 + $0x14] sm:$0xf] %v3818_v42  ;;  %v3624_v53 = vand.u32 7, %v3583_v17 }
 0x240   : > { %v3793_v9 = vadd.f32 %v3753_v48, %v3750_v29  ;;  %v3819_v7 = vpack.c.bf16 %v7890_v55, %v3447_v38  ;;  %v3688_v63 = vsel %vm7885_vm6, %v3453_v61, 0.0 }
 0x241   : > { %v3700_v50 = vadd.f32 %v3699_v19, %v3688_v63  ;;  %v3760_v47 = vmul.f32 %v3688_v63, %v3453_v61  ;;  %vm7903_vm7 = vcmp.lt.s32.totalorder %v3624_v53, 7  ;;  %v2984_v19 = vadd.f32 %v2941_v10, %v7761_v22 }
 0x242   : > { %v3406_v41 = vpop.f32.mrf.mxu2  ;;  %3833 = vst [vmem:[%s7867_s18 + $0x18] sm:$0xff] %v3819_v7 }
 0x243   : > { %v3449_v40 = vadd.f32 %v3406_v41, %v2981_v13  ;;  %v3772_v31 = vadd.f32 %v3771_v1, %v3760_v47 }
 0x244   : > { %v2943_v38 = vpop.f32.mrf.mxu3 }
 0x245   : > { %v3684_v37 = vsel %vm7850_vm4, %v3449_v40, 0.0  ;;  %v3820_v4 = vpack.c.bf16 %v3449_v40, %v3449_v40  ;;  %v3380_v43 = vpop.f32.mrf.mxu1  ;;  %v3357_v52 = vpop.f32.mrf.mxu0  ;;  %v2944_v29 = vadd.f32 %v2943_v38, %v7799_v49 }
 0x246   : > { %v3722_v35 = vadd.f32 %v3721_v6, %v3684_v37  ;;  %v3756_v18 = vmul.f32 %v3684_v37, %v3449_v40  ;;  %v7908_v54 = vadd.f32 %v3380_v43, %v7810_v27  ;;  %v3456_v5 = vadd.f32 %v3357_v52, %v7805_v8 }
 0x247   : > { %3834 = vst [vmem:[%s7867_s18 + $0x20] sm:$0xf] %v3820_v4  ;;  %v3631_v27 = vand.u32 7, %v3584_v33  ;;  %v2987_v13 = vadd.f32 %v2944_v29, %v7764_v0 }
 0x248   : > { %v3794_v16 = vadd.f32 %v3793_v9, %v3756_v18  ;;  %v3821_v36 = vpack.c.bf16 %v7908_v54, %v3450_v30  ;;  %v3691_v21 = vsel %vm7903_vm7, %v3456_v5, 0.0 }
 0x249   : > { %v3701_v42 = vadd.f32 %v3700_v50, %v3691_v21  ;;  %v3763_v1 = vmul.f32 %v3691_v21, %v3456_v5  ;;  %vm7921_vm8 = vcmp.lt.s32.totalorder %v3631_v27, 7 }
 0x24a   : > { %v3408_v28 = vpop.f32.mrf.mxu2  ;;  %3835 = vst [vmem:[%s7867_s18 + $0x24] sm:$0xff] %v3821_v36 }
 0x24b   : > { %v3452_v24 = vadd.f32 %v3408_v28, %v2984_v19  ;;  %v3773_v6 = vadd.f32 %v3772_v31, %v3763_v1 }
 0x24c   : > { %v2945_v30 = vpop.f32.mrf.mxu3 }
 0x24d   : > { %v3687_v58 = vsel %vm7870_vm5, %v3452_v24, 0.0  ;;  %v3822_v8 = vpack.c.bf16 %v3452_v24, %v3452_v24  ;;  %v3383_v20 = vpop.f32.mrf.mxu1  ;;  %v3360_v14 = vpop.f32.mrf.mxu0 }
 0x24e   : > { %v3723_v22 = vadd.f32 %v3722_v35, %v3687_v58  ;;  %v3759_v48 = vmul.f32 %v3687_v58, %v3452_v24  ;;  %v7926_v17 = vadd.f32 %v3383_v20, %v7825_v3  ;;  %v3459_v9 = vadd.f32 %v3360_v14, %v7813_v60 }
 0x24f   : > { %3836 = vst [vmem:[%s7867_s18 + $0x2c] sm:$0xf] %v3822_v8  ;;  %v2946_v3 = vadd.f32 %v2945_v30, %v7807_v23 }
 0x250   : > { %v3795_v49 = vadd.f32 %v3794_v16, %v3759_v48  ;;  %v3823_v7 = vpack.c.bf16 %v7926_v17, %v3453_v61  ;;  %v3694_v63 = vsel %vm7921_vm8, %v3459_v9, 0.0  ;;  %v3689_v59 = vsel %vm7885_vm6, %v7926_v17, 0.0 }
 0x251   : > { %v7933_v50 = vadd.f32 %v3701_v42, %v3694_v63  ;;  %v3766_v47 = vmul.f32 %v3694_v63, %v3459_v9  ;;  %v2990_v38 = vadd.f32 %v2946_v3, %v7769_v56 }
 0x252   : > { %v3411_v41 = vpop.f32.mrf.mxu2  ;;  %3837 = vst [vmem:[%s7867_s18 + $0x30] sm:$0xff] %v3823_v7 }
 0x253   : > { %v3455_v40 = vadd.f32 %v3411_v41, %v2987_v13  ;;  %v7939_v0 = vadd.f32 %v3773_v6, %v3766_v47  ;;  %v3703_v3 = vrot.slane %v7933_v50, 4 }
 0x254   : > { %v2948_v37 = vpop.f32.mrf.mxu3 }
 0x255   : > { %v3690_v53 = vsel %vm7885_vm6, %v3455_v40, 0.0  ;;  %v3824_v60 = vpack.c.bf16 %v3455_v40, %v3455_v40  ;;  %v3385_v4 = vpop.f32.mrf.mxu1  ;;  %v2949_v31 = vadd.f32 %v2948_v37, %v7822_v32  ;;  %v3362_v35 = vpop.f32.mrf.mxu0 }
 0x256   : > { %v3724_v10 = vadd.f32 %v3723_v22, %v3690_v53  ;;  %v3762_v61 = vmul.f32 %v3690_v53, %v3455_v40  ;;  %v7944_v18 = vadd.f32 %v3385_v4, %v7842_v15 }
 0x257   : > { %3838 = vst [vmem:[%s7867_s18 + $0x38] sm:$0xf] %v3824_v60  ;;  %v2993_v33 = vadd.f32 %v2949_v31, %v7773_v25 }
 0x258   : > { %v3796_v23 = vadd.f32 %v3795_v49, %v3762_v61  ;;  %v3825_v43 = vpack.c.bf16 %v7944_v18, %v3456_v5  ;;  %v3692_v60 = vsel %vm7903_vm7, %v7944_v18, 0.0  ;;  %v3761_v61 = vmul.f32 %v3689_v59, %v7926_v17 }
 0x259   : > { %v3764_v35 = vmul.f32 %v3692_v60, %v7944_v18 }
 0x25a   : > { %v3413_v52 = vpop.f32.mrf.mxu2  ;;  %3839 = vst [vmem:[%s7867_s18 + $0x3c] sm:$0xff] %v3825_v43 }
 0x25b   : > { %v3458_v16 = vadd.f32 %v3413_v52, %v2990_v38 }
 0x25c   : > { %v2950_v15 = vpop.f32.mrf.mxu3 }
 0x25d   : > { %v3693_v32 = vsel %vm7903_vm7, %v3458_v16, 0.0  ;;  %v3826_v19 = vpack.c.bf16 %v3458_v16, %v3458_v16  ;;  %v3388_v21 = vpop.f32.mrf.mxu1  ;;  %v3373_v24 = vpop.f32.mrf.mxu0 }
 0x25e   : > { %v3725_v36 = vadd.f32 %v3724_v10, %v3693_v32  ;;  %v3765_v28 = vmul.f32 %v3693_v32, %v3458_v16  ;;  %v3460_v56 = vadd.f32 %v3388_v21, %v7859_v39  ;;  %v3442_v42 = vadd.f32 %v3373_v24, %v7789_v11 }
 0x25f   : > { %3840 = vst [vmem:[%s7867_s18 + $0x44] sm:$0xf] %v3826_v19  ;;  %v3683_v11 = vsel %vm7850_vm4, %v7890_v55, 0.0 }
 0x260   : > { %v3797_v5 = vadd.f32 %v3796_v23, %v3765_v28  ;;  %v3827_v25 = vpack.c.bf16 %v3460_v56, %v3459_v9  ;;  %v3815_v1 = vpack.c.bf16 %v3442_v42, %v7819_v45  ;;  %v3677_v6 = vsel %vm7827_vm2, %v3442_v42, 0.0 }
 0x261   : > { %v3749_v49 = vmul.f32 %v3677_v6, %v3442_v42  ;;  %v3755_v7 = vmul.f32 %v3683_v11, %v7890_v55  ;;  %v3775_v55 = vrot.slane %v7939_v0, 4  ;;  %v3695_v4 = vsel %vm7921_vm8, %v3460_v56, 0.0 }
 0x262   : > { %3841 = vst [vmem:[%s7867_s18 + $0x48] sm:$0xff] %v3827_v25  ;;  %v3767_v52 = vmul.f32 %v3695_v4, %v3460_v56 }
 0x263   : > { %3829 = vst [vmem:[%s7867_s18] sm:$0xff] %v3815_v1  ;;  %v3776_v62 = vadd.f32 %v3775_v55, %v7939_v0 }
 0x264   : > { %v3416_v27 = vpop.f32.mrf.mxu3 }
 0x265   : > { %v3390_v29 = vpop.f32.mrf.mxu1  ;;  %v3461_v58 = vadd.f32 %v3416_v27, %v2993_v33  ;;  %v3375_v8 = vpop.f32.mrf.mxu0  ;;  %v3777_v12 = vrot.slane %v3776_v62, 2 }
 0x266   : > { %v3445_v22 = vadd.f32 %v3375_v8, %v7797_v44  ;;  %v3686_v44 = vsel %vm7870_vm5, %v7908_v54, 0.0 }
 0x267   : > { %v3696_v45 = vsel %vm7921_vm8, %v3461_v58, 0.0  ;;  %v3828_v39 = vpack.c.bf16 %v3461_v58, %v3461_v58  ;;  %v3758_v47 = vmul.f32 %v3686_v44, %v7908_v54  ;;  %v3704_v54 = vadd.f32 %v3703_v3, %v7933_v50 }
 0x268   : > { %v3768_v48 = vmul.f32 %v3696_v45, %v3461_v58  ;;  %v3680_v30 = vsel %vm7831_vm3, %v3445_v22, 0.0  ;;  %v3817_v20 = vpack.c.bf16 %v3445_v22, %v7839_v26  ;;  %v3726_v14 = vadd.f32 %v3725_v36, %v3696_v45 }
 0x269   : > { %3842 = vst [vmem:[%s7867_s18 + $0x50] sm:$0xf] %v3828_v39  ;;  %v3709_v57 = vadd.f32 %v3680_v30, %v3677_v6  ;;  %v3752_v9 = vmul.f32 %v3680_v30, %v3445_v22  ;;  %v3705_v17 = vrot.slane %v3704_v54, 2  ;;  %v3778_v25 = vadd.f32 %v3777_v12, %v3776_v62 }
 0x26a   : > { %3831 = vst [vmem:[%s7867_s18 + $0xc] sm:$0xff] %v3817_v20  ;;  %v3727_v46 = vrot.slane %v3726_v14, 4  ;;  %v3798_v13 = vadd.f32 %v3797_v5, %v3768_v48 }
 0x26b   : > { %v3710_v41 = vadd.f32 %v3709_v57, %v3683_v11  ;;  %v3781_v63 = vadd.f32 %v3752_v9, %v3749_v49  ;;  %v3706_v24 = vadd.f32 %v3705_v17, %v3704_v54  ;;  %v3779_v6 = vrot.slane %v3778_v25, 1 }
 0x26c   : > { %v3799_v26 = vrot.slane %v3798_v13, 4  ;;  %v3418_v40 = vpop.f32.mrf.mxu3  ;;  %v3728_v10 = vadd.f32 %v3727_v46, %v3726_v14 }
 0x26d   : > { %v3711_v53 = vadd.f32 %v3710_v41, %v3686_v44  ;;  %v3782_v51 = vadd.f32 %v3781_v63, %v3755_v7  ;;  %v3707_v27 = vrot.slane %v3706_v24, 1  ;;  %v3780_v14 = vadd.f32 %v3779_v6, %v3778_v25 }
 0x26e   : > { %v3800_v31 = vadd.f32 %v3799_v26, %v3798_v13  ;;  %v3729_v43 = vrot.slane %v3728_v10, 2 }
 0x26f   : > { %v3712_v37 = vadd.f32 %v3711_v53, %v3689_v59  ;;  %v3783_v2 = vadd.f32 %v3782_v51, %v3758_v47  ;;  %v3708_v39 = vadd.f32 %v3707_v27, %v3706_v24 }
 0x270   : > { %v3801_v32 = vrot.slane %v3800_v31, 2  ;;  %v3730_v28 = vadd.f32 %v3729_v43, %v3728_v10 }
 0x271   : > { %v3713_v23 = vadd.f32 %v3712_v37, %v3692_v60  ;;  %v3784_v38 = vadd.f32 %v3783_v2, %v3761_v61 }
 0x272   : > { %v3802_v50 = vadd.f32 %v3801_v32, %v3800_v31  ;;  %v3731_v42 = vrot.slane %v3730_v28, 1 }
 0x273   : > { %v3714_v33 = vadd.f32 %v3713_v23, %v3695_v4  ;;  %v3785_v16 = vadd.f32 %v3784_v38, %v3764_v35 }
 0x274   : > { %v3803_v56 = vrot.slane %v3802_v50, 1  ;;  %v3732_v8 = vadd.f32 %v3731_v42, %v3730_v28 }
 0x275   : > { %v3715_v19 = vrot.slane %v3714_v33, 4  ;;  %v3786_v36 = vadd.f32 %v3785_v16, %v3767_v52 }
 0x276   : > { %v3804_v45 = vadd.f32 %v3803_v56, %v3802_v50  ;;  %v3737_v20 = vrot.slane %v3732_v8, 6 }
 0x277   : > { %v3716_v15 = vadd.f32 %v3715_v19, %v3714_v33  ;;  %v3787_v21 = vrot.slane %v3786_v36, 4 }
 0x278   : > { %v3809_v44 = vrot.slane %v3804_v45, 6 }
 0x279   : > { %v3717_v18 = vrot.slane %v3716_v15, 2  ;;  %v3788_v5 = vadd.f32 %v3787_v21, %v3786_v36 }
 0x27b   : > { %v3718_v1 = vadd.f32 %v3717_v18, %v3716_v15  ;;  %v3789_v0 = vrot.slane %v3788_v5, 2 }
 0x27d   : > { %v3719_v29 = vrot.slane %v3718_v1, 1  ;;  %v3790_v58 = vadd.f32 %v3789_v0, %v3788_v5 }
 0x27f   : > { %v3720_v22 = vadd.f32 %v3719_v29, %v3718_v1  ;;  %v3791_v11 = vrot.slane %v3790_v58, 1 }
 0x281   : > { %v3736_v48 = vrot.slane %v3720_v22, 7  ;;  %v3792_v30 = vadd.f32 %v3791_v11, %v3790_v58 }
 0x283   : > { %v3808_v49 = vrot.slane %v3792_v30, 7  ;;  %v3739_v57 = vsel %vm3738_vm9, %v3708_v39, %v3736_v48 }
 0x284   : > { %v3741_v9 = vsel %vm3740_vm10, %v3739_v57, %v3737_v20 }
 0x285   : > { %3747 = vst.msk [vmem:[%s217_s21] ss:$2 sm:$0x7] %vm3745_vm11, %v3741_v9  ;;  %v3810_v46 = vsel %vm3738_vm9, %v3780_v14, %v3808_v49 }
 0x286   : > { %v3811_v13 = vsel %vm3740_vm10, %v3810_v46, %v3809_v44 }
 0x287   : > { %4957 = vst.msk [vmem:[%s217_s21 + $0x1] ss:$2 sm:$0x7] %vm3745_vm11, %v3811_v13 }
 0x288 PF: > { %s15_s15 = sadd.s32 1, %s5496_s15  }
 0x289   : > { %p12_p4 = scmp.ge.s32.totalorder %s15_s15, 4  }
 0x28b   :  { %14 = sbr.rel (!%p12_p4) target bundleno = 1 (0x1), region = 83 }

// kernel: inception_b_forward.13
= control target key start
LH: loop header
LB: loop body
LE: loop exit
PB: predicated region body
PF: predicated region fallthrough
CT: control target
= control target key end

     0   :  { %s730_s12 = smov 0   ;;  %s876_s0 = inlined_call_operand.vmem [shape: bf16[2,288,128], index: 0, kind: input, shape index: {}]   ;;  %s877_s1 = inlined_call_operand.vmem [shape: f32[1,1,128], index: 1, kind: input, shape index: {}]   ;;  %s878_s2 = inlined_call_operand.vmem [shape: f32[1,1,128], index: 2, kind: input, shape index: {}]   ;;  %s879_s3 = inlined_call_operand.vmem [shape: bf16[2,288,128], index: 3, kind: output, shape index: {}]  }
   0x1 LB: > { %s486_s13 = sadd.s32 4294967295, %s708_s12   ;;  %p490_p0 = scmp.ge.s32.totalorder %s708_s12, 1  ;;  %s708_s12 = sphi %s730_s12, %s13_s12  }
   0x2   : > { %p137_p1 = scmp.lt.s32.totalorder %s708_s12, 3 }
   0x4   : > { %p138_p2 = pnand %p490_p0, %p137_p1 }
   0x5   : > { %p161_p3 = scmp.lt.s32.totalorder (!%p138_p2), %s486_s13, 1 }
   0x6   : > { %141 = sbr.rel (%p138_p2) target bundleno = 63 (0x3f), region = 32 }
   0xb   : > { %s881_s13 = smov (!%p161_p3, %s486_s13), 1  ;;  %v751_v0 = vld [vmem:[%s877_s1] ss:$0 sm:$0xff] }
   0xc   : > { %s691_s14 = smul.u32 144, %s881_s13  ;;  %v759_v6 = vld [vmem:[%s878_s2] ss:$0 sm:$0xff] }
   0xe   : > { %s746_s17 = scalar_lea.vmem %s876_s0, %s691_s14  ;;  %s785_s24 = scalar_lea.vmem %s879_s3, %s691_s14 }
   0xf   : > { %v496_v1 = vld [vmem:[%s746_s17] sm:$0xff]   ;;  %v657_v2 = vld [vmem:[%s746_s17 + $0x8] sm:$0xff]   ;;  %v658_v3 = vld [vmem:[%s746_s17 + $0x10] sm:$0xff]  }
  0x10   : > { %v497_v4 = vunpack.c.l.bf16 %v496_v1  ;;  %v498_v5 = vunpack.c.h.bf16 %v496_v1  ;;  %v501_v7 = vunpack.c.l.bf16 %v657_v2  ;;  %v502_v8 = vunpack.c.h.bf16 %v657_v2  ;;  %v659_v9 = vld [vmem:[%s746_s17 + $0x18] sm:$0xff]   ;;  %v660_v30 = vld [vmem:[%s746_s17 + $0x20] sm:$0xff]   ;;  %v661_v35 = vld [vmem:[%s746_s17 + $0x28] sm:$0xff]  }
  0x11   : > { %v505_v10 = vunpack.c.l.bf16 %v658_v3  ;;  %v506_v11 = vunpack.c.h.bf16 %v658_v3  ;;  %v509_v12 = vunpack.c.l.bf16 %v659_v9  ;;  %v510_v13 = vunpack.c.h.bf16 %v659_v9  ;;  %v662_v40 = vld [vmem:[%s746_s17 + $0x30] sm:$0xff]   ;;  %v663_v45 = vld [vmem:[%s746_s17 + $0x38] sm:$0xff]   ;;  %v664_v3 = vld [vmem:[%s746_s17 + $0x40] sm:$0xff]  }
  0x12   : > { %v247_v14 = vmul.f32 %v751_v0, %v497_v4  ;;  %v248_v15 = vmul.f32 %v751_v0, %v498_v5  ;;  %v249_v16 = vmul.f32 %v751_v0, %v501_v7  ;;  %v250_v17 = vmul.f32 %v751_v0, %v502_v8 }
  0x13   : > { %v251_v18 = vmul.f32 %v751_v0, %v505_v10  ;;  %v252_v19 = vmul.f32 %v751_v0, %v506_v11  ;;  %v253_v20 = vmul.f32 %v751_v0, %v509_v12  ;;  %v254_v21 = vmul.f32 %v751_v0, %v510_v13  ;;  %v665_v13 = vld [vmem:[%s746_s17 + $0x48] sm:$0xff]  }
  0x14   : > { %v287_v22 = vadd.f32 %v759_v6, %v247_v14  ;;  %v288_v23 = vadd.f32 %v759_v6, %v248_v15  ;;  %v289_v24 = vadd.f32 %v759_v6, %v249_v16  ;;  %v290_v25 = vadd.f32 %v759_v6, %v250_v17 }
  0x15   : > { %v291_v26 = vadd.f32 %v759_v6, %v251_v18  ;;  %v292_v27 = vadd.f32 %v759_v6, %v252_v19  ;;  %v293_v28 = vadd.f32 %v759_v6, %v253_v20  ;;  %v294_v29 = vadd.f32 %v759_v6, %v254_v21  ;;  %v666_v18 = vld [vmem:[%s746_s17 + $0x50] sm:$0xff]  }
  0x16   : > { %v323_v31 = vmax.f32 %v287_v22, 0.0  ;;  %v324_v32 = vmax.f32 %v288_v23, 0.0  ;;  %v325_v33 = vmax.f32 %v289_v24, 0.0  ;;  %v326_v34 = vmax.f32 %v290_v25, 0.0  ;;  %v667_v23 = vld [vmem:[%s746_s17 + $0x58] sm:$0xff]  }
  0x17   : > { %v327_v36 = vmax.f32 %v291_v26, 0.0  ;;  %v328_v37 = vmax.f32 %v292_v27, 0.0  ;;  %v329_v38 = vmax.f32 %v293_v28, 0.0  ;;  %v330_v39 = vmax.f32 %v294_v29, 0.0 }
  0x18   : > { %v570_v41 = vpack.c.bf16 %v324_v32, %v323_v31  ;;  %v575_v42 = vpack.c.bf16 %v326_v34, %v325_v33  ;;  %v513_v43 = vunpack.c.l.bf16 %v660_v30  ;;  %v514_v44 = vunpack.c.h.bf16 %v660_v30 }
  0x19   : > { %v580_v46 = vpack.c.bf16 %v328_v37, %v327_v36  ;;  %v585_v47 = vpack.c.bf16 %v330_v39, %v329_v38  ;;  %v517_v48 = vunpack.c.l.bf16 %v661_v35  ;;  %v518_v49 = vunpack.c.h.bf16 %v661_v35 }
  0x1a   : > { %571 = vst [vmem:[%s785_s24] sm:$0xff] %v570_v41   ;;  %v255_v50 = vmul.f32 %v751_v0, %v513_v43  ;;  %v256_v51 = vmul.f32 %v751_v0, %v514_v44  ;;  %v521_v52 = vunpack.c.l.bf16 %v662_v40  ;;  %v522_v53 = vunpack.c.h.bf16 %v662_v40  ;;  %v668_v40 = vld [vmem:[%s746_s17 + $0x60] sm:$0xff]  }
  0x1b   : > { %674 = vst [vmem:[%s785_s24 + $0x8] sm:$0xff] %v575_v42   ;;  %v257_v54 = vmul.f32 %v751_v0, %v517_v48  ;;  %v258_v55 = vmul.f32 %v751_v0, %v518_v49  ;;  %v525_v56 = vunpack.c.l.bf16 %v663_v45  ;;  %v526_v57 = vunpack.c.h.bf16 %v663_v45 }
  0x1c   : > { %675 = vst [vmem:[%s785_s24 + $0x10] sm:$0xff] %v580_v46   ;;  %v295_v58 = vadd.f32 %v759_v6, %v255_v50  ;;  %v296_v59 = vadd.f32 %v759_v6, %v256_v51  ;;  %v259_v60 = vmul.f32 %v751_v0, %v521_v52  ;;  %v260_v61 = vmul.f32 %v751_v0, %v522_v53  ;;  %v669_v53 = vld [vmem:[%s746_s17 + $0x68] sm:$0xff]  }
  0x1d   : > { %676 = vst [vmem:[%s785_s24 + $0x18] sm:$0xff] %v585_v47   ;;  %v297_v62 = vadd.f32 %v759_v6, %v257_v54  ;;  %v298_v63 = vadd.f32 %v759_v6, %v258_v55  ;;  %v261_v1 = vmul.f32 %v751_v0, %v525_v56  ;;  %v262_v2 = vmul.f32 %v751_v0, %v526_v57 }
  0x1e   : > { %v331_v4 = vmax.f32 %v295_v58, 0.0  ;;  %v332_v5 = vmax.f32 %v296_v59, 0.0  ;;  %v299_v7 = vadd.f32 %v759_v6, %v259_v60  ;;  %v300_v8 = vadd.f32 %v759_v6, %v260_v61  ;;  %v670_v58 = vld [vmem:[%s746_s17 + $0x70] sm:$0xff]  }
  0x1f   : > { %v333_v9 = vmax.f32 %v297_v62, 0.0  ;;  %v334_v10 = vmax.f32 %v298_v63, 0.0  ;;  %v301_v11 = vadd.f32 %v759_v6, %v261_v1  ;;  %v302_v12 = vadd.f32 %v759_v6, %v262_v2  ;;  %v671_v63 = vld [vmem:[%s746_s17 + $0x78] sm:$0xff]  }
  0x20   : > { %v590_v14 = vpack.c.bf16 %v332_v5, %v331_v4  ;;  %v335_v15 = vmax.f32 %v299_v7, 0.0  ;;  %v336_v16 = vmax.f32 %v300_v8, 0.0  ;;  %v529_v17 = vunpack.c.l.bf16 %v664_v3 }
  0x21   : > { %v595_v19 = vpack.c.bf16 %v334_v10, %v333_v9  ;;  %v337_v20 = vmax.f32 %v301_v11, 0.0  ;;  %v338_v21 = vmax.f32 %v302_v12, 0.0  ;;  %v530_v22 = vunpack.c.h.bf16 %v664_v3 }
  0x22   : > { %677 = vst [vmem:[%s785_s24 + $0x20] sm:$0xff] %v590_v14   ;;  %v600_v24 = vpack.c.bf16 %v336_v16, %v335_v15  ;;  %v263_v25 = vmul.f32 %v751_v0, %v529_v17  ;;  %v533_v26 = vunpack.c.l.bf16 %v665_v13  ;;  %v534_v27 = vunpack.c.h.bf16 %v665_v13  ;;  %v672_v14 = vld [vmem:[%s746_s17 + $0x80] sm:$0xff]  }
  0x23   : > { %678 = vst [vmem:[%s785_s24 + $0x28] sm:$0xff] %v595_v19   ;;  %v605_v28 = vpack.c.bf16 %v338_v21, %v337_v20  ;;  %v264_v29 = vmul.f32 %v751_v0, %v530_v22  ;;  %v537_v30 = vunpack.c.l.bf16 %v666_v18  ;;  %v538_v31 = vunpack.c.h.bf16 %v666_v18 }
  0x24   : > { %679 = vst [vmem:[%s785_s24 + $0x30] sm:$0xff] %v600_v24   ;;  %v303_v32 = vadd.f32 %v759_v6, %v263_v25  ;;  %v265_v33 = vmul.f32 %v751_v0, %v533_v26  ;;  %v266_v34 = vmul.f32 %v751_v0, %v534_v27  ;;  %v541_v35 = vunpack.c.l.bf16 %v667_v23 }
  0x25   : > { %680 = vst [vmem:[%s785_s24 + $0x38] sm:$0xff] %v605_v28   ;;  %v304_v36 = vadd.f32 %v759_v6, %v264_v29  ;;  %v267_v37 = vmul.f32 %v751_v0, %v537_v30  ;;  %v268_v38 = vmul.f32 %v751_v0, %v538_v31  ;;  %v542_v39 = vunpack.c.h.bf16 %v667_v23  ;;  %v673_v31 = vld [vmem:[%s746_s17 + $0x88] sm:$0xff]  }
  0x26   : > { %v339_v41 = vmax.f32 %v303_v32, 0.0  ;;  %v305_v42 = vadd.f32 %v759_v6, %v265_v33  ;;  %v306_v43 = vadd.f32 %v759_v6, %v266_v34  ;;  %v269_v44 = vmul.f32 %v751_v0, %v541_v35 }
  0x27   : > { %v340_v45 = vmax.f32 %v304_v36, 0.0  ;;  %v307_v46 = vadd.f32 %v759_v6, %v267_v37  ;;  %v308_v47 = vadd.f32 %v759_v6, %v268_v38  ;;  %v270_v48 = vmul.f32 %v751_v0, %v542_v39 }
  0x28   : > { %v341_v49 = vmax.f32 %v305_v42, 0.0  ;;  %v342_v50 = vmax.f32 %v306_v43, 0.0  ;;  %v309_v51 = vadd.f32 %v759_v6, %v269_v44  ;;  %v545_v52 = vunpack.c.l.bf16 %v668_v40 }
  0x29   : > { %v610_v54 = vpack.c.bf16 %v340_v45, %v339_v41  ;;  %v343_v55 = vmax.f32 %v307_v46, 0.0  ;;  %v344_v56 = vmax.f32 %v308_v47, 0.0  ;;  %v310_v57 = vadd.f32 %v759_v6, %v270_v48 }
  0x2a   : > { %v615_v59 = vpack.c.bf16 %v342_v50, %v341_v49  ;;  %v345_v60 = vmax.f32 %v309_v51, 0.0  ;;  %v546_v61 = vunpack.c.h.bf16 %v668_v40  ;;  %v271_v62 = vmul.f32 %v751_v0, %v545_v52 }
  0x2b   : > { %681 = vst [vmem:[%s785_s24 + $0x40] sm:$0xff] %v610_v54   ;;  %v620_v1 = vpack.c.bf16 %v344_v56, %v343_v55  ;;  %v346_v2 = vmax.f32 %v310_v57, 0.0  ;;  %v549_v3 = vunpack.c.l.bf16 %v669_v53  ;;  %v550_v4 = vunpack.c.h.bf16 %v669_v53 }
  0x2c   : > { %682 = vst [vmem:[%s785_s24 + $0x48] sm:$0xff] %v615_v59   ;;  %v272_v5 = vmul.f32 %v751_v0, %v546_v61  ;;  %v311_v7 = vadd.f32 %v759_v6, %v271_v62  ;;  %v553_v8 = vunpack.c.l.bf16 %v670_v58  ;;  %v554_v9 = vunpack.c.h.bf16 %v670_v58 }
  0x2d   : > { %683 = vst [vmem:[%s785_s24 + $0x50] sm:$0xff] %v620_v1   ;;  %v625_v10 = vpack.c.bf16 %v346_v2, %v345_v60  ;;  %v273_v11 = vmul.f32 %v751_v0, %v549_v3  ;;  %v274_v12 = vmul.f32 %v751_v0, %v550_v4  ;;  %v557_v13 = vunpack.c.l.bf16 %v671_v63 }
  0x2e   : > { %v312_v15 = vadd.f32 %v759_v6, %v272_v5  ;;  %v347_v16 = vmax.f32 %v311_v7, 0.0  ;;  %v275_v17 = vmul.f32 %v751_v0, %v553_v8  ;;  %v276_v18 = vmul.f32 %v751_v0, %v554_v9 }
  0x2f   : > { %684 = vst [vmem:[%s785_s24 + $0x58] sm:$0xff] %v625_v10   ;;  %v313_v19 = vadd.f32 %v759_v6, %v273_v11  ;;  %v314_v20 = vadd.f32 %v759_v6, %v274_v12  ;;  %v558_v21 = vunpack.c.h.bf16 %v671_v63  ;;  %v277_v22 = vmul.f32 %v751_v0, %v557_v13 }
  0x30   : > { %v348_v23 = vmax.f32 %v312_v15, 0.0  ;;  %v315_v24 = vadd.f32 %v759_v6, %v275_v17  ;;  %v316_v25 = vadd.f32 %v759_v6, %v276_v18  ;;  %v561_v26 = vunpack.c.l.bf16 %v672_v14 }
  0x31   : > { %v349_v27 = vmax.f32 %v313_v19, 0.0  ;;  %v350_v28 = vmax.f32 %v314_v20, 0.0  ;;  %v278_v29 = vmul.f32 %v751_v0, %v558_v21  ;;  %v317_v30 = vadd.f32 %v759_v6, %v277_v22 }
  0x32   : > { %v630_v32 = vpack.c.bf16 %v348_v23, %v347_v16  ;;  %v351_v33 = vmax.f32 %v315_v24, 0.0  ;;  %v352_v34 = vmax.f32 %v316_v25, 0.0  ;;  %v562_v35 = vunpack.c.h.bf16 %v672_v14 }
  0x33   : > { %v635_v36 = vpack.c.bf16 %v350_v28, %v349_v27  ;;  %v318_v37 = vadd.f32 %v759_v6, %v278_v29  ;;  %v353_v38 = vmax.f32 %v317_v30, 0.0  ;;  %v279_v39 = vmul.f32 %v751_v0, %v561_v26 }
  0x34   : > { %685 = vst [vmem:[%s785_s24 + $0x60] sm:$0xff] %v630_v32   ;;  %v640_v40 = vpack.c.bf16 %v352_v34, %v351_v33  ;;  %v280_v41 = vmul.f32 %v751_v0, %v562_v35  ;;  %v565_v42 = vunpack.c.l.bf16 %v673_v31  ;;  %v566_v43 = vunpack.c.h.bf16 %v673_v31 }
  0x35   : > { %686 = vst [vmem:[%s785_s24 + $0x68] sm:$0xff] %v635_v36   ;;  %v354_v44 = vmax.f32 %v318_v37, 0.0  ;;  %v319_v45 = vadd.f32 %v759_v6, %v279_v39 }
  0x36   : > { %687 = vst [vmem:[%s785_s24 + $0x70] sm:$0xff] %v640_v40   ;;  %v320_v46 = vadd.f32 %v759_v6, %v280_v41  ;;  %v281_v47 = vmul.f32 %v751_v0, %v565_v42  ;;  %v282_v48 = vmul.f32 %v751_v0, %v566_v43 }
  0x37   : > { %v645_v49 = vpack.c.bf16 %v354_v44, %v353_v38  ;;  %v355_v50 = vmax.f32 %v319_v45, 0.0 }
  0x38   : > { %v356_v51 = vmax.f32 %v320_v46, 0.0  ;;  %v321_v52 = vadd.f32 %v759_v6, %v281_v47  ;;  %v322_v53 = vadd.f32 %v759_v6, %v282_v48 }
  0x39   : > { %688 = vst [vmem:[%s785_s24 + $0x78] sm:$0xff] %v645_v49  }
  0x3a   : > { %v650_v54 = vpack.c.bf16 %v356_v51, %v355_v50  ;;  %v357_v55 = vmax.f32 %v321_v52, 0.0  ;;  %v358_v56 = vmax.f32 %v322_v53, 0.0 }
  0x3c   : > { %689 = vst [vmem:[%s785_s24 + $0x80] sm:$0xff] %v650_v54   ;;  %v655_v57 = vpack.c.bf16 %v358_v56, %v357_v55 }
  0x3e   : > { %690 = vst [vmem:[%s785_s24 + $0x88] sm:$0xff] %v655_v57  }
  0x3f PF: > { %s13_s12 = sadd.s32 1, %s708_s12  }
  0x40   : > { %p10_p4 = scmp.ge.s32.totalorder %s13_s12, 4  }
  0x42   :  { %12 = sbr.rel (!%p10_p4) target bundleno = 1 (0x1), region = 62 }

// kernel: inception_b_forward.15
= control target key start
LH: loop header
LB: loop body
LE: loop exit
PB: predicated region body
PF: predicated region fallthrough
CT: control target
= control target key end

     0   :  { %s339_s12 = smov 0   ;;  %s366_s0 = inlined_call_operand.vmem [shape: bf16[2,56,128], index: 0, kind: input, shape index: {}]   ;;  %s367_s1 = inlined_call_operand.vmem [shape: f32[1,1,128], index: 1, kind: input, shape index: {}]   ;;  %s368_s2 = inlined_call_operand.vmem [shape: f32[1,1,128], index: 2, kind: input, shape index: {}]   ;;  %s369_s3 = inlined_call_operand.vmem [shape: f32[2,56,128], index: 3, kind: output, shape index: {}]  }
   0x1 LB: > { %s276_s13 = sadd.s32 4294967295, %s317_s12   ;;  %p280_p0 = scmp.ge.s32.totalorder %s317_s12, 1  ;;  %s317_s12 = sphi %s339_s12, %s13_s12  }
   0x2   : > { %p137_p1 = scmp.lt.s32.totalorder %s317_s12, 3 }
   0x4   : > { %p138_p2 = pnand %p280_p0, %p137_p1 }
   0x5   : > { %p161_p3 = scmp.lt.s32.totalorder (!%p138_p2), %s276_s13, 1 }
   0x6   : > { %141 = sbr.rel (%p138_p2) target bundleno = 31 (0x1f), region = 32 }
   0xb   : > { %s371_s13 = smov (!%p161_p3, %s276_s13), 1  ;;  %v309_v0 = vld [vmem:[%s367_s1] ss:$0 sm:$0xff] }
   0xc   : > { %s299_s14 = smul.u32 28, %s371_s13  ;;  %v310_v5 = vld [vmem:[%s368_s2] ss:$0 sm:$0xff] }
   0xd   : > { %s300_s22 = smul.u32 56, %s371_s13 }
   0xe   : > { %s165_s17 = scalar_lea.vmem %s366_s0, %s299_s14 }
   0xf   : > { %v286_v1 = vld [vmem:[%s165_s17] sm:$0xff]   ;;  %v297_v2 = vld [vmem:[%s165_s17 + $0x8] sm:$0xff]   ;;  %v298_v3 = vld [vmem:[%s165_s17 + $0x10] sm:$0xff]   ;;  %s170_s25 = scalar_lea.vmem %s369_s3, %s300_s22 }
  0x10   : > { %v287_v4 = vunpack.c.l.bf16 %v286_v1  ;;  %v288_v6 = vunpack.c.h.bf16 %v286_v1  ;;  %v291_v7 = vunpack.c.l.bf16 %v297_v2  ;;  %v292_v8 = vunpack.c.h.bf16 %v297_v2  ;;  %v177_v9 = vld [vmem:[%s165_s17 + $0x18] sm:$0xf] }
  0x11   : > { %v295_v10 = vunpack.c.l.bf16 %v298_v3  ;;  %v296_v11 = vunpack.c.h.bf16 %v298_v3  ;;  %v184_v12 = vunpack.c.l.bf16 %v177_v9 }
  0x12   : > { %v189_v13 = vmul.f32 %v309_v0, %v287_v4  ;;  %v190_v14 = vmul.f32 %v309_v0, %v288_v6  ;;  %v191_v15 = vmul.f32 %v309_v0, %v291_v7  ;;  %v192_v16 = vmul.f32 %v309_v0, %v292_v8 }
  0x13   : > { %v193_v17 = vmul.f32 %v309_v0, %v295_v10  ;;  %v194_v18 = vmul.f32 %v309_v0, %v296_v11  ;;  %v195_v19 = vmul.f32 %v309_v0, %v184_v12 }
  0x14   : > { %v200_v20 = vadd.f32 %v310_v5, %v189_v13  ;;  %v201_v21 = vadd.f32 %v310_v5, %v190_v14  ;;  %v202_v22 = vadd.f32 %v310_v5, %v191_v15  ;;  %v203_v23 = vadd.f32 %v310_v5, %v192_v16 }
  0x15   : > { %v204_v24 = vadd.f32 %v310_v5, %v193_v17  ;;  %v205_v25 = vadd.f32 %v310_v5, %v194_v18  ;;  %v206_v29 = vadd.f32 %v310_v5, %v195_v19 }
  0x16   : > { %v207_v26 = vmax.f32 %v200_v20, 0.0  ;;  %v208_v27 = vmax.f32 %v201_v21, 0.0  ;;  %v209_v28 = vmax.f32 %v202_v22, 0.0  ;;  %v210_v30 = vmax.f32 %v203_v23, 0.0 }
  0x17   : > { %v211_v31 = vmax.f32 %v204_v24, 0.0  ;;  %v212_v32 = vmax.f32 %v205_v25, 0.0  ;;  %v213_v33 = vmax.f32 %v206_v29, 0.0 }
  0x18   : > { %214 = vst [vmem:[%s170_s25] sm:$0xff] %v207_v26 }
  0x19   : > { %215 = vst [vmem:[%s170_s25 + $0x8] sm:$0xff] %v208_v27 }
  0x1a   : > { %216 = vst [vmem:[%s170_s25 + $0x10] sm:$0xff] %v209_v28 }
  0x1b   : > { %217 = vst [vmem:[%s170_s25 + $0x18] sm:$0xff] %v210_v30 }
  0x1c   : > { %218 = vst [vmem:[%s170_s25 + $0x20] sm:$0xff] %v211_v31 }
  0x1d   : > { %219 = vst [vmem:[%s170_s25 + $0x28] sm:$0xff] %v212_v32 }
  0x1e   : > { %220 = vst [vmem:[%s170_s25 + $0x30] sm:$0xff] %v213_v33 }
  0x1f PF: > { %s13_s12 = sadd.s32 1, %s317_s12  }
  0x20   : > { %p10_p4 = scmp.ge.s32.totalorder %s13_s12, 4  }
  0x22   :  { %12 = sbr.rel (!%p10_p4) target bundleno = 1 (0x1), region = 62 }

// kernel: inception_b_forward.14
= control target key start
LH: loop header
LB: loop body
LE: loop exit
PB: predicated region body
PF: predicated region fallthrough
CT: control target
= control target key end

     0   :  { %s2281_s12 = smov 0   ;;  %s2646_s0 = inlined_call_operand.vmem [shape: bf16[2,65,512], index: 0, kind: input, shape index: {}]   ;;  %s2647_s1 = inlined_call_operand.vmem [shape: bf16[1152,128], index: 1, kind: input, shape index: {}]   ;;  %s2648_s2 = inlined_call_operand.vmem [shape: bf16[2,56,128], index: 2, kind: output, shape index: {0}]   ;;  %s2649_s3 = inlined_call_operand.vmem [shape: f32[2,2,128], index: 3, kind: output, shape index: {1}]  }
   0x1 LB: > { %s1690_s13 = sadd.s32 4294967295, %s2259_s12   ;;  %p1694_p0 = scmp.ge.s32.totalorder %s2259_s12, 1  ;;  %s2259_s12 = sphi %s2281_s12, %s14_s12  }
   0x2   : > { %p140_p1 = scmp.lt.s32.totalorder %s2259_s12, 3 }
   0x4   : > { %p141_p2 = pnand %p1694_p0, %p140_p1 }
   0x5   : > { %p168_p3 = scmp.lt.s32.totalorder (!%p141_p2), %s1690_s13, 1 }
   0x6   : > { %144 = sbr.rel (%p141_p2) target bundleno = 337 (0x151), region = 28 }
   0xb   : > { %v2121_v0 = vld [vmem:[%s2647_s1 + $0x38] sm:$0xff]  ;;  %v2120_v3 = vld [vmem:[%s2647_s1 + $0x30] sm:$0xff]  ;;  %s2651_s13 = smov (!%p168_p3, %s1690_s13), 1  ;;  %v2119_v6 = vld [vmem:[%s2647_s1 + $0x28] sm:$0xff]  ;;  %vm461_vm0 = vsmask.f32 7424 }
   0xc   : > { %v2141_v1 = vld [vmem:[%s2647_s1 + $0xb8] sm:$0xff]  ;;  %354 = vmatpush.bf16.msra.mxu0 %v2121_v0  ;;  %2227 = vmatpush.bf16.msra.mxu1 %v2121_v0  ;;  %v2140_v4 = vld [vmem:[%s2647_s1 + $0xb0] sm:$0xff]  ;;  %v2139_v7 = vld [vmem:[%s2647_s1 + $0xa8] sm:$0xff]  ;;  %s2243_s5 = smul.u32 144, %s2651_s13  ;;  %s1697_s20 = sshll.u32 %s2651_s13, 1 }
   0xd   : > { %v2155_v2 = vld [vmem:[%s2647_s1 + $0xf8] sm:$0xff]  ;;  %545 = vmatpush.bf16.msra.mxu2 %v2141_v1  ;;  %v2154_v5 = vld [vmem:[%s2647_s1 + $0xf0] sm:$0xff]  ;;  %v2153_v8 = vld [vmem:[%s2647_s1 + $0xe8] sm:$0xff]  ;;  %s181_s23 = scalar_lea.vmem %s2649_s3, %s1697_s20 }
   0xe   : > { %766 = vmatpush.bf16.msra.mxu3 %v2155_v2  ;;  %v2118_v9 = vld [vmem:[%s2647_s1 + $0x20] sm:$0xff]  ;;  %s2331_s16 = scalar_lea.vmem %s2646_s0, %s2243_s5  ;;  %v2117_v12 = vld [vmem:[%s2647_s1 + $0x18] sm:$0xff]  ;;  %v2116_v18 = vld [vmem:[%s2647_s1 + $0x10] sm:$0xff] }
   0xf   : > { %v2138_v10 = vld [vmem:[%s2647_s1 + $0xa0] sm:$0xff]  ;;  %v2130_v14 = vld [vmem:[%s2331_s16 + $0xc] sm:$0xf0]  ;;  %v2137_v15 = vld [vmem:[%s2647_s1 + $0x98] sm:$0xff] }
  0x10   : > { %355 = vmatpush.bf16.msra.mxu0 %v2120_v3  ;;  %2228 = vmatpush.bf16.msra.mxu1 %v2120_v3  ;;  %v2152_v11 = vld [vmem:[%s2647_s1 + $0xe0] sm:$0xff]  ;;  %v2151_v16 = vld [vmem:[%s2647_s1 + $0xd8] sm:$0xff]  ;;  %v2131_v20 = vld [vmem:[%s2331_s16 + $0x2c] sm:$0xf0] }
  0x11   : > { %546 = vmatpush.bf16.msra.mxu2 %v2140_v4  ;;  %v1788_v13 = vld [vmem:[%s2331_s16] sm:$0xf]  ;;  %v2136_v21 = vld [vmem:[%s2647_s1 + $0x90] sm:$0xff]  ;;  %v2115_v25 = vld [vmem:[%s2647_s1 + $0x8] sm:$0xff] }
  0x12   : > { %767 = vmatpush.bf16.msra.mxu3 %v2154_v5  ;;  %v1789_v17 = vor.u32 %v2130_v14, %v1788_v13  ;;  %v1792_v19 = vld [vmem:[%s2331_s16 + $0x20] sm:$0xf]  ;;  %v2150_v22 = vld [vmem:[%s2647_s1 + $0xd0] sm:$0xff]  ;;  %v2135_v26 = vld [vmem:[%s2647_s1 + $0x88] sm:$0xff] }
  0x13   : > { %v2355_v23 = vor.u32 %v2131_v20, %v1792_v19  ;;  %v2149_v27 = vld [vmem:[%s2647_s1 + $0xc8] sm:$0xff]  ;;  %v2114_v28 = vld [vmem:[%s2647_s1] sm:$0xff]  ;;  %v2109_v33 = vld [vmem:[%s2331_s16 + $0xc] sm:$0xf0] }
  0x14   : > { %356 = vmatpush.bf16.msra.mxu0 %v2119_v6  ;;  %2229 = vmatpush.bf16.msra.mxu1 %v2119_v6  ;;  %v465_v24 = vshll.u32 %v1789_v17, 16  ;;  %v1700_v29 = vld [vmem:[%s2331_s16] sm:$0xf]  ;;  %v463_v30 = vshrl.u32 %v1789_v17, 16  ;;  %v2113_v35 = vld [vmem:[%s2331_s16 + $0x4c] sm:$0xf0] }
  0x15   : > { %547 = vmatpush.bf16.msra.mxu2 %v2139_v7  ;;  %v470_v32 = vshll.u32 %v2355_v23, 16  ;;  %v1716_v34 = vld [vmem:[%s2331_s16 + $0x40] sm:$0xf]  ;;  %v2129_v36 = vld [vmem:[%s2647_s1 + $0x78] sm:$0xff]  ;;  %v1701_v40 = vor.u32 %v2109_v33, %v1700_v29  ;;  %v1836_v44 = vld [vmem:[%s2331_s16 + $0x8] sm:$0xf] }
  0x16   : > { %768 = vmatpush.bf16.msra.mxu3 %v2153_v8  ;;  %v467_v31 = vrot.slane %v465_v24, 1  ;;  %v2163_v37 = vld [vmem:[%s2647_s1 + $0x138] sm:$0xff]  ;;  %v2134_v38 = vld [vmem:[%s2647_s1 + $0x80] sm:$0xff]  ;;  %v1717_v41 = vor.u32 %v2113_v35, %v1716_v34  ;;  %v2128_v48 = vld [vmem:[%s2647_s1 + $0x70] sm:$0xff]  ;;  %v474_v1 = vshrl.u32 %v2355_v23, 16 }
  0x17   : > { %v2148_v39 = vld [vmem:[%s2647_s1 + $0xc0] sm:$0xff]  ;;  %v472_v43 = vrot.slane %v470_v32, 1  ;;  %v2143_v45 = vld [vmem:[%s2331_s16 + $0x14] sm:$0xf0]  ;;  %v2162_v49 = vld [vmem:[%s2647_s1 + $0x130] sm:$0xff] }
  0x18   : > { %357 = vmatpush.bf16.msra.mxu0 %v2118_v9  ;;  %2230 = vmatpush.bf16.msra.mxu1 %v2118_v9  ;;  %v468_v42 = vor.u32 %v467_v31, %v463_v30  ;;  %v2189_v46 = vld [vmem:[%s2647_s1 + $0x1b8] sm:$0xff]  ;;  %v1837_v50 = vor.u32 %v2143_v45, %v1836_v44  ;;  %v1796_v52 = vld [vmem:[%s2331_s16 + $0x40] sm:$0xf]  ;;  %v2132_v53 = vld [vmem:[%s2331_s16 + $0x4c] sm:$0xf0] }
  0x19   : > { %548 = vmatpush.bf16.msra.mxu2 %v2138_v10  ;;  %v2197_v47 = vld [vmem:[%s2647_s1 + $0x1f8] sm:$0xff]  ;;  %v2188_v54 = vld [vmem:[%s2647_s1 + $0x1b0] sm:$0xff]  ;;  %v2127_v56 = vld [vmem:[%s2647_s1 + $0x68] sm:$0xff]  ;;  %v2415_v58 = vor.u32 %v2132_v53, %v1796_v52  ;;  %v476_v10 = vor.u32 %v474_v1, %v472_v43 }
  0x1a   : > { %769 = vmatpush.bf16.msra.mxu3 %v2152_v11  ;;  %v473_v51 = vsel %vm461_vm0, %v468_v42, %v472_v43  ;;  %v2196_v55 = vld [vmem:[%s2647_s1 + $0x1f0] sm:$0xff]  ;;  %v2161_v57 = vld [vmem:[%s2647_s1 + $0x128] sm:$0xff]  ;;  %v2418_v59 = vld [vmem:[%s2331_s16 + $0x60] sm:$0xff] }
  0x1b   : > { %v2187_v60 = vld [vmem:[%s2647_s1 + $0x1a8] sm:$0xff]  ;;  %v2126_v62 = vld [vmem:[%s2647_s1 + $0x60] sm:$0xff]  ;;  %v240_v0 = vunpack.c.l.b16 %v2418_v59  ;;  %v478_v2 = vshll.u32 %v2415_v58, 16  ;;  %v2111_v4 = vld [vmem:[%s2331_s16 + $0x2c] sm:$0xf0]  ;;  %v482_v33 = vshrl.u32 %v2415_v58, 16 }
  0x1c   : > { %358 = vmatpush.bf16.msra.mxu0 %v2117_v12  ;;  %2231 = vmatpush.bf16.msra.mxu1 %v2117_v12  ;;  %v2195_v61 = vld [vmem:[%s2647_s1 + $0x1e8] sm:$0xff]  ;;  %v2160_v63 = vld [vmem:[%s2647_s1 + $0x120] sm:$0xff]  ;;  %v2125_v6 = vld [vmem:[%s2647_s1 + $0x58] sm:$0xff] }
  0x1d   : > { %549 = vmatpush.bf16.msra.mxu2 %v2137_v15  ;;  %v1708_v3 = vld [vmem:[%s2331_s16 + $0x20] sm:$0xf]  ;;  %v2159_v7 = vld [vmem:[%s2647_s1 + $0x118] sm:$0xff]  ;;  %v248_v9 = vpack.c.b16 %v240_v0, %v240_v0  ;;  %v480_v11 = vrot.slane %v478_v2, 1  ;;  %v1844_v12 = vld [vmem:[%s2331_s16 + $0x28] sm:$0xf] }
  0x1e   : > { %770 = vmatpush.bf16.msra.mxu3 %v2151_v16  ;;  %v2186_v5 = vld [vmem:[%s2647_s1 + $0x1a0] sm:$0xff]  ;;  %v1709_v8 = vor.u32 %v2111_v4, %v1708_v3  ;;  %v2145_v13 = vld [vmem:[%s2331_s16 + $0x34] sm:$0xf0]  ;;  %v2124_v15 = vld [vmem:[%s2647_s1 + $0x50] sm:$0xff] }
  0x1f   : > { %v2185_v14 = vld [vmem:[%s2647_s1 + $0x198] sm:$0xff]  ;;  %v2158_v16 = vld [vmem:[%s2647_s1 + $0x110] sm:$0xff]  ;;  %v1845_v17 = vor.u32 %v2145_v13, %v1844_v12  ;;  %v2194_v19 = vld [vmem:[%s2647_s1 + $0x1e0] sm:$0xff]  ;;  %v484_v43 = vor.u32 %v482_v33, %v480_v11 }
  0x20   : > { %359 = vmatpush.bf16.msra.mxu0 %v2116_v18  ;;  %2232 = vmatpush.bf16.msra.mxu1 %v2116_v18  ;;  %v481_v18 = vsel %vm461_vm0, %v476_v10, %v480_v11  ;;  %v1800_v20 = vld [vmem:[%s2331_s16 + $0x60] sm:$0xf]  ;;  %v2157_v23 = vld [vmem:[%s2647_s1 + $0x108] sm:$0xff]  ;;  %v2184_v24 = vld [vmem:[%s2647_s1 + $0x190] sm:$0xff] }
  0x21   : > { %550 = vmatpush.bf16.msra.mxu2 %v2136_v21  ;;  %v2133_v21 = vld [vmem:[%s2331_s16 + $0x6c] sm:$0x10]  ;;  %v2156_v29 = vld [vmem:[%s2647_s1 + $0x100] sm:$0xff]  ;;  %v2175_v30 = vld [vmem:[%s2647_s1 + $0x178] sm:$0xff] }
  0x22   : > { %771 = vmatpush.bf16.msra.mxu3 %v2150_v22  ;;  %v2123_v22 = vld [vmem:[%s2647_s1 + $0x48] sm:$0xff]  ;;  %v2209_v31 = vld [vmem:[%s2647_s1 + $0x238] sm:$0xff]  ;;  %v2108_v32 = vld [vmem:[%s2331_s16 + $0x4] sm:$0xf] }
  0x23   : > { %v2192_v35 = vld [vmem:[%s2647_s1 + $0x1d0] sm:$0xff]  ;;  %v1852_v45 = vld [vmem:[%s2331_s16 + $0x48] sm:$0xf]  ;;  %v2182_v52 = vld [vmem:[%s2647_s1 + $0x180] sm:$0xff] }
  0x24   : > { %360 = vmatpush.bf16.msra.mxu0 %v2115_v25  ;;  %2233 = vmatpush.bf16.msra.mxu1 %v2115_v25  ;;  %v2472_v25 = vor.u32 %v2133_v21, %v1800_v20  ;;  %v2190_v53 = vld [vmem:[%s2647_s1 + $0x1c0] sm:$0xff]  ;;  %v2171_v58 = vld [vmem:[%s2647_s1 + $0x158] sm:$0xff]  ;;  %v2170_v4 = vld [vmem:[%s2647_s1 + $0x150] sm:$0xff] }
  0x25   : > { %551 = vmatpush.bf16.msra.mxu2 %v2135_v26  ;;  %v2193_v26 = vld [vmem:[%s2647_s1 + $0x1d8] sm:$0xff]  ;;  %v2168_v10 = vld [vmem:[%s2647_s1 + $0x140] sm:$0xff]  ;;  %v1718_v13 = vld [vmem:[%s2331_s16 + $0x50] sm:$0xf0] }
  0x26   : > { %772 = vmatpush.bf16.msra.mxu3 %v2149_v27  ;;  %v2183_v27 = vld [vmem:[%s2647_s1 + $0x188] sm:$0xff]  ;;  %v486_v34 = vshll.u32 %v2472_v25, 16  ;;  %v490_v0 = vshrl.u32 %v2472_v25, 16  ;;  %v2202_v11 = vld [vmem:[%s2647_s1 + $0x200] sm:$0xff]  ;;  %v2176_v20 = vld [vmem:[%s2331_s16 + $0x14] sm:$0xf] }
  0x27   : > { %v2112_v12 = vld [vmem:[%s2331_s16 + $0x44] sm:$0xf]  ;;  %v2179_v33 = vld [vmem:[%s2331_s16 + $0x3c] sm:$0xf0] }
  0x28   : > { %361 = vmatpush.bf16.msra.mxu0 %v2114_v28  ;;  %2234 = vmatpush.bf16.msra.mxu1 %v2114_v28  ;;  %v2122_v28 = vld [vmem:[%s2647_s1 + $0x40] sm:$0xff]  ;;  %v488_v44 = vrot.slane %v486_v34, 1  ;;  %v2178_v34 = vld [vmem:[%s2331_s16 + $0x34] sm:$0xf] }
  0x29   : > { %552 = vmatpush.bf16.msra.mxu2 %v2134_v38  ;;  %v1838_v38 = vld [vmem:[%s2331_s16 + $0x18] sm:$0xf0]  ;;  %v1974_v21 = vld [vmem:[%s2331_s16 + $0x20] sm:$0xf0] }
  0x2a   : > { %773 = vmatpush.bf16.msra.mxu3 %v2148_v39  ;;  %v2174_v39 = vld [vmem:[%s2647_s1 + $0x170] sm:$0xff] }
  0x2b   : > { %362 = vmatmul.bf16.vlgmr.msra.gmra.mxu0 %v1701_v40  ;;  %372 = vmatmul.bf16.vlgmr.msra.gmra.mxu1 %v1717_v41  ;;  %v2208_v40 = vld [vmem:[%s2647_s1 + $0x230] sm:$0xff] }
  0x2c   : > { %382 = vmatpush.bf16.msrb.mxu1 %v2129_v36  ;;  %794 = vmatpush.bf16.msrb.mxu0 %v2163_v37  ;;  %v1702_v36 = vld [vmem:[%s2331_s16 + $0x10] sm:$0xf0]  ;;  %v2142_v37 = vld [vmem:[%s2331_s16 + $0xc] sm:$0xf] }
  0x2d   : > { %1191 = vmatpush.bf16.msrb.mxu2 %v2189_v46  ;;  %774 = vmatmul.bf16.vlgmr.msra.gmra.mxu3 %v1837_v50  ;;  %v1705_v41 = vor.u32 %v2108_v32, %v1702_v36  ;;  %v1841_v42 = vor.u32 %v2142_v37, %v1838_v38  ;;  %v2147_v46 = vld [vmem:[%s2331_s16 + $0x54] sm:$0xf0]  ;;  %v2173_v50 = vld [vmem:[%s2647_s1 + $0x168] sm:$0xff] }
  0x2e   : > { %1219 = vmatpush.bf16.msrb.mxu3 %v2197_v47  ;;  %553 = vmatmul.bf16.vlgmr.msra.gmra.mxu2 %v473_v51  ;;  %v2191_v47 = vld [vmem:[%s2647_s1 + $0x1c8] sm:$0xff]  ;;  %v2165_v37 = vld [vmem:[%s2331_s16 + $0x34] sm:$0xf0] }
  0x2f   : > { %v2207_v51 = vld [vmem:[%s2647_s1 + $0x228] sm:$0xff] }
  0x30   : > { %383 = vmatpush.bf16.msrb.mxu1 %v2128_v48  ;;  %795 = vmatpush.bf16.msrb.mxu0 %v2162_v49  ;;  %v1853_v48 = vor.u32 %v2147_v46, %v1852_v45  ;;  %v489_v49 = vsel %vm461_vm0, %v484_v43, %v488_v44  ;;  %v1928_v36 = vld [vmem:[%s2331_s16 + $0x28] sm:$0xf] }
  0x31   : > { %1192 = vmatpush.bf16.msrb.mxu2 %v2188_v54  ;;  %v2172_v54 = vld [vmem:[%s2647_s1 + $0x160] sm:$0xff]  ;;  %v1929_v43 = vor.u32 %v2165_v37, %v1928_v36 }
  0x32   : > { %1220 = vmatpush.bf16.msrb.mxu3 %v2196_v55  ;;  %v2206_v55 = vld [vmem:[%s2647_s1 + $0x220] sm:$0xff] }
  0x34   : > { %384 = vmatpush.bf16.msrb.mxu1 %v2127_v56  ;;  %796 = vmatpush.bf16.msrb.mxu0 %v2161_v57  ;;  %v2110_v56 = vld [vmem:[%s2331_s16 + $0x24] sm:$0xf]  ;;  %v2533_v57 = vld [vmem:[%s2331_s16 + $0x68] sm:$0xff] }
  0x35   : > { %1193 = vmatpush.bf16.msrb.mxu2 %v2187_v60  ;;  %v2205_v60 = vld [vmem:[%s2647_s1 + $0x218] sm:$0xff]  ;;  %v652_v1 = vunpack.c.l.b16 %v2533_v57  ;;  %v653_v25 = vunpack.c.h.b16 %v2533_v57  ;;  %v1988_v57 = vld [vmem:[%s2331_s16 + $0x50] sm:$0xf] }
  0x36   : > { %1221 = vmatpush.bf16.msrb.mxu3 %v2195_v61  ;;  %v1710_v61 = vld [vmem:[%s2331_s16 + $0x30] sm:$0xf0] }
  0x37   : > { %v1713_v2 = vor.u32 %v2110_v56, %v1710_v61  ;;  %v661_v32 = vpack.c.b16 %v653_v25, %v653_v25  ;;  %v1990_v61 = vld [vmem:[%s2331_s16 + $0x60] sm:$0xf0] }
  0x38   : > { %385 = vmatpush.bf16.msrb.mxu1 %v2126_v62  ;;  %797 = vmatpush.bf16.msrb.mxu0 %v2160_v63  ;;  %v2144_v62 = vld [vmem:[%s2331_s16 + $0x2c] sm:$0xf]  ;;  %v1846_v63 = vld [vmem:[%s2331_s16 + $0x38] sm:$0xf0] }
  0x39   : > { %1194 = vmatpush.bf16.msrb.mxu2 %v2186_v5  ;;  %v1849_v3 = vor.u32 %v2144_v62, %v1846_v63  ;;  %v492_v5 = vor.u32 %v490_v0, %v488_v44  ;;  %v1932_v0 = vld [vmem:[%s2331_s16 + $0x48] sm:$0xf] }
  0x3a   : > { %1222 = vmatpush.bf16.msrb.mxu3 %v2194_v19  ;;  %v2177_v19 = vld [vmem:[%s2331_s16 + $0x1c] sm:$0xf0] }
  0x3b   : > { %367 = vmatmul.bf16.gmra.mxu0 %v1709_v8  ;;  %377 = vmatmul.bf16.gmra.mxu1 %v248_v9  ;;  %v2169_v8 = vld [vmem:[%s2647_s1 + $0x148] sm:$0xff] }
  0x3c   : > { %386 = vmatpush.bf16.msrb.mxu1 %v2125_v6  ;;  %798 = vmatpush.bf16.msrb.mxu0 %v2159_v7  ;;  %v660_v6 = vpack.c.b16 %v652_v1, %v652_v1  ;;  %v2204_v7 = vld [vmem:[%s2647_s1 + $0x210] sm:$0xff]  ;;  %v2203_v9 = vld [vmem:[%s2647_s1 + $0x208] sm:$0xff]  ;;  %v2166_v1 = vld [vmem:[%s2331_s16 + $0x54] sm:$0xf0] }
  0x3d   : > { %1195 = vmatpush.bf16.msrb.mxu2 %v2185_v14  ;;  %779 = vmatmul.bf16.gmra.mxu3 %v1845_v17  ;;  %v2146_v14 = vld [vmem:[%s2331_s16 + $0x4c] sm:$0xf]  ;;  %v1721_v17 = vor.u32 %v2112_v12, %v1718_v13  ;;  %v1025_v12 = vld [vmem:[%s2331_s16 + $0x70] sm:$0xff] }
  0x3e   : > { %558 = vmatmul.bf16.gmra.mxu2 %v481_v18  ;;  %1223 = vmatpush.bf16.msrb.mxu3 %v2193_v26  ;;  %v1924_v26 = vld [vmem:[%s2331_s16 + $0x8] sm:$0xf] }
  0x40   : > { %387 = vmatpush.bf16.msrb.mxu1 %v2124_v15  ;;  %799 = vmatpush.bf16.msrb.mxu0 %v2158_v16  ;;  %v1854_v15 = vld [vmem:[%s2331_s16 + $0x58] sm:$0xf0]  ;;  %v1972_v16 = vld [vmem:[%s2331_s16 + $0x10] sm:$0xf] }
  0x41   : > { %1196 = vmatpush.bf16.msrb.mxu2 %v2184_v24  ;;  %v1857_v18 = vor.u32 %v2146_v14, %v1854_v15  ;;  %v241_v24 = vunpack.c.h.b16 %v2418_v59  ;;  %v2199_v59 = vld [vmem:[%s2331_s16 + $0x3c] sm:$0xf0] }
  0x42   : > { %1224 = vmatpush.bf16.msrb.mxu3 %v2192_v35  ;;  %v1982_v35 = vld [vmem:[%s2331_s16 + $0x40] sm:$0xf0] }
  0x44   : > { %388 = vmatpush.bf16.msrb.mxu1 %v2123_v22  ;;  %800 = vmatpush.bf16.msrb.mxu0 %v2157_v23  ;;  %v1973_v22 = vor.u32 %v2177_v19, %v1972_v16  ;;  %v1977_v23 = vor.u32 %v2176_v20, %v1974_v21  ;;  %v1936_v21 = vld [vmem:[%s2331_s16 + $0x68] sm:$0xf] }
  0x45   : > { %1197 = vmatpush.bf16.msrb.mxu2 %v2183_v27  ;;  %v2164_v27 = vld [vmem:[%s2331_s16 + $0x14] sm:$0xf0] }
  0x46   : > { %1225 = vmatpush.bf16.msrb.mxu3 %v2191_v47  ;;  %v1925_v38 = vor.u32 %v2164_v27, %v1924_v26 }
  0x48   : > { %389 = vmatpush.bf16.msrb.mxu1 %v2122_v28  ;;  %801 = vmatpush.bf16.msrb.mxu0 %v2156_v29  ;;  %v2060_v28 = vld [vmem:[%s2331_s16 + $0x10] sm:$0xf]  ;;  %v2198_v29 = vld [vmem:[%s2331_s16 + $0x1c] sm:$0xf0]  ;;  %v890_v44 = vshll.u32 %v1925_v38, 16  ;;  %v888_v47 = vshrl.u32 %v1925_v38, 16 }
  0x49   : > { %1198 = vmatpush.bf16.msrb.mxu2 %v2182_v52 }
  0x4a   : > { %1226 = vmatpush.bf16.msrb.mxu3 %v2190_v53 }
  0x4b   : > { %390 = vmatmul.bf16.vlgmr.msrb.gmra.mxu1 %v1705_v41  ;;  %802 = vmatmul.bf16.vlgmr.msrb.gmra.mxu0 %v1841_v42  ;;  %v1985_v42 = vor.u32 %v2178_v34, %v1982_v35 }
  0x4c   : > { %970 = vmatpush.bf16.msra.mxu1 %v2175_v30  ;;  %1395 = vmatpush.bf16.msra.mxu0 %v2209_v31  ;;  %v1980_v30 = vld [vmem:[%s2331_s16 + $0x30] sm:$0xf] }
  0x4d   : > { %784 = vmatmul.bf16.gmra.mxu3 %v1853_v48  ;;  %2235 = vmatpush.bf16.msra.mxu2 %v2209_v31  ;;  %v249_v31 = vpack.c.b16 %v241_v24, %v241_v24  ;;  %v1981_v41 = vor.u32 %v2179_v33, %v1980_v30  ;;  %v895_v48 = vshll.u32 %v1929_v43, 16  ;;  %v2201_v24 = vld [vmem:[%s2331_s16 + $0x7c] sm:$0x10] }
  0x4e   : > { %563 = vmatmul.bf16.gmra.mxu2 %v489_v49  ;;  %v892_v49 = vrot.slane %v890_v44, 1 }
  0x50   : > { %971 = vmatpush.bf16.msra.mxu1 %v2174_v39  ;;  %1396 = vmatpush.bf16.msra.mxu0 %v2208_v40  ;;  %v2061_v39 = vor.u32 %v2198_v29, %v2060_v28  ;;  %v893_v53 = vor.u32 %v892_v49, %v888_v47 }
  0x51   : > { %2236 = vmatpush.bf16.msra.mxu2 %v2208_v40  ;;  %v2064_v40 = vld [vmem:[%s2331_s16 + $0x30] sm:$0xf] }
  0x52   : > { %v2065_v45 = vor.u32 %v2199_v59, %v2064_v40  ;;  %v1315_v46 = vshll.u32 %v2061_v39, 16 }
  0x54   : > { %972 = vmatpush.bf16.msra.mxu1 %v2173_v50  ;;  %1397 = vmatpush.bf16.msra.mxu0 %v2207_v51  ;;  %v1313_v50 = vshrl.u32 %v2061_v39, 16  ;;  %v1320_v52 = vshll.u32 %v2065_v45, 16 }
  0x55   : > { %2237 = vmatpush.bf16.msra.mxu2 %v2207_v51  ;;  %v1317_v51 = vrot.slane %v1315_v46, 1 }
  0x56   : > { %v1322_v56 = vrot.slane %v1320_v52, 1 }
  0x58   : > { %973 = vmatpush.bf16.msra.mxu1 %v2172_v54  ;;  %1398 = vmatpush.bf16.msra.mxu0 %v2206_v55  ;;  %v897_v54 = vrot.slane %v895_v48, 1 }
  0x59   : > { %2238 = vmatpush.bf16.msra.mxu2 %v2206_v55  ;;  %v1318_v55 = vor.u32 %v1317_v51, %v1313_v50 }
  0x5a   : > { %v898_v62 = vsel %vm461_vm0, %v893_v53, %v897_v54 }
  0x5b   : > { %395 = vmatmul.bf16.gmra.mxu1 %v1713_v2  ;;  %807 = vmatmul.bf16.gmra.mxu0 %v1849_v3  ;;  %v1323_v63 = vsel %vm461_vm0, %v1318_v55, %v1322_v56  ;;  %v2068_v2 = vld [vmem:[%s2331_s16 + $0x50] sm:$0xf]  ;;  %v2200_v3 = vld [vmem:[%s2331_s16 + $0x5c] sm:$0xf0] }
  0x5c   : > { %974 = vmatpush.bf16.msra.mxu1 %v2171_v58  ;;  %1399 = vmatpush.bf16.msra.mxu0 %v2205_v60  ;;  %v2181_v58 = vld [vmem:[%s2331_s16 + $0x5c] sm:$0xf0] }
  0x5d   : > { %789 = vmatmul.bf16.gmra.mxu3 %v660_v6  ;;  %2239 = vmatpush.bf16.msra.mxu2 %v2205_v60  ;;  %v2180_v60 = vld [vmem:[%s2331_s16 + $0x54] sm:$0xf]  ;;  %v1933_v6 = vor.u32 %v2166_v1, %v1932_v0 }
  0x5e   : > { %568 = vmatmul.bf16.gmra.mxu2 %v492_v5  ;;  %v1993_v5 = vor.u32 %v2180_v60, %v1990_v61 }
  0x5f   : > { %v907_v29 = vshrl.u32 %v1933_v6, 16 }
  0x60   : > { %975 = vmatpush.bf16.msra.mxu1 %v2170_v4  ;;  %1400 = vmatpush.bf16.msra.mxu0 %v2204_v7  ;;  %v1989_v4 = vor.u32 %v2181_v58, %v1988_v57 }
  0x61   : > { %2240 = vmatpush.bf16.msra.mxu2 %v2204_v7  ;;  %v2069_v7 = vor.u32 %v2200_v3, %v2068_v2 }
  0x64   : > { %976 = vmatpush.bf16.msra.mxu1 %v2169_v8  ;;  %1401 = vmatpush.bf16.msra.mxu0 %v2203_v9  ;;  %v899_v8 = vshrl.u32 %v1929_v43, 16 }
  0x65   : > { %2241 = vmatpush.bf16.msra.mxu2 %v2203_v9  ;;  %v903_v9 = vshll.u32 %v1933_v6, 16 }
  0x66   : > { %v901_v13 = vor.u32 %v899_v8, %v897_v54 }
  0x67   : > { %v905_v14 = vrot.slane %v903_v9, 1 }
  0x68   : > { %977 = vmatpush.bf16.msra.mxu1 %v2168_v10  ;;  %1402 = vmatpush.bf16.msra.mxu0 %v2202_v11  ;;  %v1324_v10 = vshrl.u32 %v2065_v45, 16 }
  0x69   : > { %2242 = vmatpush.bf16.msra.mxu2 %v2202_v11  ;;  %v1328_v11 = vshll.u32 %v2069_v7, 16  ;;  %v906_v19 = vsel %vm461_vm0, %v901_v13, %v905_v14  ;;  %v909_v33 = vor.u32 %v907_v29, %v905_v14 }
  0x6a   : > { %v1326_v15 = vor.u32 %v1324_v10, %v1322_v56 }
  0x6b   : > { %400 = vmatmul.bf16.gmra.mxu1 %v1721_v17  ;;  %812 = vmatmul.bf16.gmra.mxu0 %v1857_v18  ;;  %v1330_v16 = vrot.slane %v1328_v11, 1  ;;  %v1077_v17 = vunpack.c.l.b16 %v1025_v12  ;;  %v1078_v18 = vunpack.c.h.b16 %v1025_v12 }
  0x6d   : > { %1227 = vmatmul.bf16.vlgmr.msrb.gmra.mxu3 %v1977_v23  ;;  %v1331_v20 = vsel %vm461_vm0, %v1326_v15, %v1330_v16  ;;  %v2072_v23 = vld [vmem:[%s2331_s16 + $0x70] sm:$0xf]  ;;  %v1085_v25 = vpack.c.b16 %v1077_v17, %v1077_v17  ;;  %v1086_v26 = vpack.c.b16 %v1078_v18, %v1078_v18 }
  0x6e   : > { %1199 = vmatmul.bf16.vlgmr.msrb.gmra.mxu2 %v1973_v22  ;;  %v2167_v22 = vld [vmem:[%s2331_s16 + $0x74] sm:$0x10]  ;;  %v2073_v28 = vor.u32 %v2201_v24, %v2072_v23  ;;  %s2244_s16 = smul.u32 28, %s2651_s13 }
  0x6f   : > { %v1937_v27 = vor.u32 %v2167_v22, %v1936_v21 }
  0x70   : > { %v1340_v37 = vshrl.u32 %v2073_v28, 16  ;;  %s2624_s19 = scalar_lea.vmem %s2648_s2, %s2244_s16 }
  0x71   : > { %v911_v30 = vshll.u32 %v1937_v27, 16  ;;  %v915_v46 = vshrl.u32 %v1937_v27, 16 }
  0x73   : > { %v913_v34 = vrot.slane %v911_v30, 1 }
  0x75   : > { %v914_v40 = vsel %vm461_vm0, %v909_v33, %v913_v34  ;;  %v917_v47 = vor.u32 %v915_v46, %v913_v34 }
  0x7b   : > { %405 = vmatmul.bf16.gmra.mxu1 %v249_v31  ;;  %817 = vmatmul.bf16.gmra.mxu0 %v661_v32  ;;  %v1332_v31 = vshrl.u32 %v2069_v7, 16  ;;  %v1336_v32 = vshll.u32 %v2073_v28, 16 }
  0x7d   : > { %1232 = vmatmul.bf16.gmra.mxu3 %v1985_v42  ;;  %v1334_v35 = vor.u32 %v1332_v31, %v1330_v16  ;;  %v1338_v36 = vrot.slane %v1336_v32, 1 }
  0x7e   : > { %1204 = vmatmul.bf16.gmra.mxu2 %v1981_v41 }
  0x7f   : > { %v1339_v59 = vsel %vm461_vm0, %v1334_v35, %v1338_v36  ;;  %v1342_v41 = vor.u32 %v1340_v37, %v1338_v36 }
  0x8b   : > { %978 = vmatmul.bf16.vlgmr.msra.gmra.mxu1 %v898_v62  ;;  %1403 = vmatmul.bf16.vlgmr.msra.gmra.mxu0 %v1323_v63 }
  0x8d   : > { %1237 = vmatmul.bf16.gmra.mxu3 %v1993_v5 }
  0x8e   : > { %1209 = vmatmul.bf16.gmra.mxu2 %v1989_v4 }
  0x9b   : > { %983 = vmatmul.bf16.gmra.mxu1 %v906_v19  ;;  %1408 = vmatmul.bf16.gmra.mxu0 %v1331_v20 }
  0x9d   : > { %1242 = vmatmul.bf16.gmra.mxu3 %v1086_v26 }
  0x9e   : > { %1214 = vmatmul.bf16.gmra.mxu2 %v1085_v25 }
  0xa8   : > { %v363_v38 = vpop.f32.mrf.mxu0  ;;  %v373_v39 = vpop.f32.mrf.mxu1 }
  0xab   : > { %988 = vmatmul.bf16.gmra.mxu1 %v914_v40  ;;  %1413 = vmatmul.bf16.gmra.mxu0 %v1339_v59 }
  0xae   : > { %1418 = vmatmul.bf16.vlgmr.msra.gmra.mxu2 %v1342_v41 }
  0xb0   : > { %v365_v42 = vpop.f32.mrf.mxu0  ;;  %v375_v43 = vpop.f32.mrf.mxu1 }
  0xb1   : > { %v554_v44 = vpop.f32.mrf.mxu2  ;;  %v775_v45 = vpop.f32.mrf.mxu3 }
  0xb8   : > { %v368_v48 = vpop.f32.mrf.mxu0  ;;  %v378_v49 = vpop.f32.mrf.mxu1 }
  0xb9   : > { %v556_v50 = vpop.f32.mrf.mxu2  ;;  %v777_v51 = vpop.f32.mrf.mxu3 }
  0xbb   : > { %993 = vmatmul.bf16.gmra.mxu1 %v917_v47 }
  0xc0   : > { %v370_v52 = vpop.f32.mrf.mxu0  ;;  %v380_v53 = vpop.f32.mrf.mxu1 }
  0xc1   : > { %v559_v54 = vpop.f32.mrf.mxu2  ;;  %v780_v55 = vpop.f32.mrf.mxu3 }
  0xc8   : > { %v391_v56 = vpop.f32.mrf.mxu1  ;;  %v803_v57 = vpop.f32.mrf.mxu0 }
  0xc9   : > { %v392_v58 = vadd.f32 %v391_v56, %v363_v38  ;;  %v804_v60 = vadd.f32 %v803_v57, %v775_v45  ;;  %v561_v61 = vpop.f32.mrf.mxu2  ;;  %v782_v62 = vpop.f32.mrf.mxu3 }
  0xcb   : > { %v580_v63 = vadd.f32 %v554_v44, %v392_v58 }
  0xcd   : > { %v829_v0 = vadd.f32 %v804_v60, %v580_v63 }
  0xd0   : > { %v393_v1 = vpop.f32.mrf.mxu1  ;;  %v805_v2 = vpop.f32.mrf.mxu0 }
  0xd1   : > { %v394_v3 = vadd.f32 %v393_v1, %v365_v42  ;;  %v564_v4 = vpop.f32.mrf.mxu2  ;;  %v785_v5 = vpop.f32.mrf.mxu3  ;;  %v806_v7 = vadd.f32 %v805_v2, %v777_v51 }
  0xd3   : > { %v581_v6 = vadd.f32 %v556_v50, %v394_v3 }
  0xd5   : > { %v830_v8 = vadd.f32 %v806_v7, %v581_v6 }
  0xd8   : > { %v396_v9 = vpop.f32.mrf.mxu1  ;;  %v808_v10 = vpop.f32.mrf.mxu0 }
  0xd9   : > { %v397_v11 = vadd.f32 %v396_v9, %v368_v48  ;;  %v809_v12 = vadd.f32 %v808_v10, %v780_v55  ;;  %v566_v13 = vpop.f32.mrf.mxu2  ;;  %v787_v14 = vpop.f32.mrf.mxu3 }
  0xdb   : > { %v582_v15 = vadd.f32 %v559_v54, %v397_v11 }
  0xdd   : > { %v2605_v16 = vadd.f32 %v809_v12, %v582_v15 }
  0xe0   : > { %v398_v17 = vpop.f32.mrf.mxu1  ;;  %v810_v18 = vpop.f32.mrf.mxu0 }
  0xe1   : > { %v399_v19 = vadd.f32 %v398_v17, %v370_v52  ;;  %v569_v20 = vpop.f32.mrf.mxu2  ;;  %v790_v21 = vpop.f32.mrf.mxu3  ;;  %v811_v23 = vadd.f32 %v810_v18, %v782_v62 }
  0xe3   : > { %v583_v22 = vadd.f32 %v561_v61, %v399_v19 }
  0xe5   : > { %v2607_v24 = vadd.f32 %v811_v23, %v583_v22 }
  0xe8   : > { %v401_v25 = vpop.f32.mrf.mxu1  ;;  %v813_v26 = vpop.f32.mrf.mxu0 }
  0xe9   : > { %v402_v27 = vadd.f32 %v401_v25, %v373_v39  ;;  %v814_v28 = vadd.f32 %v813_v26, %v785_v5  ;;  %v571_v29 = vpop.f32.mrf.mxu2  ;;  %v792_v30 = vpop.f32.mrf.mxu3 }
  0xeb   : > { %v584_v31 = vadd.f32 %v564_v4, %v402_v27 }
  0xed   : > { %v2609_v32 = vadd.f32 %v814_v28, %v584_v31 }
  0xf0   : > { %v403_v33 = vpop.f32.mrf.mxu1  ;;  %v815_v34 = vpop.f32.mrf.mxu0 }
  0xf1   : > { %v404_v35 = vadd.f32 %v403_v33, %v375_v43  ;;  %v1200_v36 = vpop.f32.mrf.mxu2  ;;  %v1228_v37 = vpop.f32.mrf.mxu3  ;;  %v816_v40 = vadd.f32 %v815_v34, %v787_v14  ;;  %v1451_v43 = vlaneseq }
  0xf3   : > { %v585_v38 = vadd.f32 %v566_v13, %v404_v35  ;;  %v2615_v60 = vshrl.u32 %v1451_v43, 7 }
  0xf5   : > { %v2611_v59 = vadd.f32 %v816_v40, %v585_v38  ;;  %v1453_v61 = vadd.s32 8, %v2615_v60  ;;  %v1463_v63 = vand.u32 7, %v2615_v60  ;;  %v1454_v10 = vadd.s32 16, %v2615_v60 }
  0xf6   : > { %v1455_v28 = vadd.s32 24, %v2615_v60 }
  0xf7   : > { %v1470_v3 = vand.u32 7, %v1453_v61  ;;  %vm1543_vm1 = vcmp.lt.s32.totalorder %v1463_v63, 7 }
  0xf8   : > { %v406_v41 = vpop.f32.mrf.mxu1  ;;  %v818_v42 = vpop.f32.mrf.mxu0 }
  0xf9   : > { %v407_v44 = vadd.f32 %v406_v41, %v378_v49  ;;  %v1202_v45 = vpop.f32.mrf.mxu2  ;;  %v1230_v39 = vpop.f32.mrf.mxu3  ;;  %v819_v47 = vadd.f32 %v818_v42, %v790_v21  ;;  %v1229_v49 = vadd.f32 %v1228_v37, %v1200_v36  ;;  %vm1544_vm2 = vcmp.lt.s32.totalorder %v1470_v3, 7 }
  0xfa   : > { %v1231_v4 = vadd.f32 %v1230_v39, %v1202_v45  ;;  %v1484_v36 = vand.u32 7, %v1455_v28 }
  0xfb   : > { %v586_v46 = vadd.f32 %v569_v20, %v407_v44  ;;  %v1477_v20 = vand.u32 7, %v1454_v10  ;;  %v1456_v44 = vadd.s32 32, %v2615_v60 }
  0xfc   : > { %vm1546_vm4 = vcmp.lt.s32.totalorder %v1484_v36, 7 }
  0xfd   : > { %v2613_v48 = vadd.f32 %v819_v47, %v586_v46  ;;  %vm1545_vm3 = vcmp.lt.s32.totalorder %v1477_v20, 7 }
 0x100   : > { %v408_v50 = vpop.f32.mrf.mxu1  ;;  %v820_v51 = vpop.f32.mrf.mxu0 }
 0x101   : > { %v1205_v52 = vpop.f32.mrf.mxu2  ;;  %v1233_v53 = vpop.f32.mrf.mxu3 }
 0x102   : > { %v1234_v21 = vadd.f32 %v1233_v53, %v1205_v52  ;;  %v1491_v52 = vand.u32 7, %v1456_v44 }
 0x104   : > { %vm1547_vm5 = vcmp.lt.s32.totalorder %v1491_v52, 7 }
 0x108   : > { %v979_v54 = vpop.f32.mrf.mxu1  ;;  %v1404_v55 = vpop.f32.mrf.mxu0 }
 0x109   : > { %v1005_v56 = vadd.f32 %v979_v54, %v829_v0  ;;  %v1207_v57 = vpop.f32.mrf.mxu2  ;;  %v1235_v58 = vpop.f32.mrf.mxu3 }
 0x10a   : > { %v1236_v37 = vadd.f32 %v1235_v58, %v1207_v57  ;;  %v1457_v58 = vadd.s32 40, %v2615_v60 }
 0x10b   : > { %v1254_v62 = vadd.f32 %v1229_v49, %v1005_v56 }
 0x10d   : > { %v1430_v5 = vadd.f32 %v1404_v55, %v1254_v62 }
 0x10f   : > { %v1550_v11 = vsel %vm1543_vm1, %v1430_v5, 0.0 }
 0x110   : > { %v981_v1 = vpop.f32.mrf.mxu1  ;;  %v1406_v2 = vpop.f32.mrf.mxu0  ;;  %v1570_v15 = vmul.f32 %v1550_v11, %v1430_v5 }
 0x111   : > { %v1006_v6 = vadd.f32 %v981_v1, %v830_v8  ;;  %v1210_v7 = vpop.f32.mrf.mxu2  ;;  %v1238_v9 = vpop.f32.mrf.mxu3 }
 0x112   : > { %v1239_v53 = vadd.f32 %v1238_v9, %v1210_v7  ;;  %v1458_v9 = vadd.s32 48, %v2615_v60 }
 0x113   : > { %v1255_v0 = vadd.f32 %v1231_v4, %v1006_v6 }
 0x115   : > { %v1431_v12 = vadd.f32 %v1406_v2, %v1255_v0  ;;  %v1498_v2 = vand.u32 7, %v1457_v58 }
 0x117   : > { %v1551_v13 = vsel %vm1544_vm2, %v1431_v12, 0.0  ;;  %v2213_v14 = vpack.c.bf16 %v1431_v12, %v1430_v5  ;;  %vm1548_vm6 = vcmp.lt.s32.totalorder %v1498_v2, 7 }
 0x118   : > { %v1557_v8 = vadd.f32 %v1551_v13, %v1550_v11  ;;  %v1571_v17 = vmul.f32 %v1551_v13, %v1431_v12  ;;  %v984_v18 = vpop.f32.mrf.mxu1  ;;  %v1409_v19 = vpop.f32.mrf.mxu0 }
 0x119   : > { %2214 = vst [vmem:[%s2624_s19] sm:$0xff] %v2213_v14   ;;  %v1007_v22 = vadd.f32 %v984_v18, %v2605_v16  ;;  %v1212_v23 = vpop.f32.mrf.mxu2  ;;  %v1240_v25 = vpop.f32.mrf.mxu3 }
 0x11a   : > { %v1577_v26 = vadd.f32 %v1571_v17, %v1570_v15  ;;  %v1241_v3 = vadd.f32 %v1240_v25, %v1212_v23  ;;  %v1505_v15 = vand.u32 7, %v1458_v9 }
 0x11b   : > { %v1256_v27 = vadd.f32 %v1234_v21, %v1007_v22 }
 0x11c   : > { %vm1549_vm7 = vcmp.lt.s32.totalorder %v1505_v15, 7 }
 0x11d   : > { %v1432_v29 = vadd.f32 %v1409_v19, %v1256_v27 }
 0x11f   : > { %v1552_v30 = vsel %vm1545_vm3, %v1432_v29, 0.0 }
 0x120   : > { %v1558_v31 = vadd.f32 %v1557_v8, %v1552_v30  ;;  %v1572_v33 = vmul.f32 %v1552_v30, %v1432_v29  ;;  %v986_v34 = vpop.f32.mrf.mxu1  ;;  %v1411_v35 = vpop.f32.mrf.mxu0 }
 0x121   : > { %v1008_v38 = vadd.f32 %v986_v34, %v2607_v24  ;;  %v1215_v40 = vpop.f32.mrf.mxu2  ;;  %v1243_v16 = vpop.f32.mrf.mxu3 }
 0x122   : > { %v1578_v41 = vadd.f32 %v1577_v26, %v1572_v33  ;;  %v1244_v8 = vadd.f32 %v1243_v16, %v1215_v40 }
 0x123   : > { %v1257_v42 = vadd.f32 %v1236_v37, %v1008_v38 }
 0x125   : > { %v1433_v45 = vadd.f32 %v1411_v35, %v1257_v42 }
 0x127   : > { %v1553_v39 = vsel %vm1546_vm4, %v1433_v45, 0.0  ;;  %v2218_v46 = vpack.c.bf16 %v1433_v45, %v1432_v29 }
 0x128   : > { %v1559_v47 = vadd.f32 %v1558_v31, %v1553_v39  ;;  %v1573_v50 = vmul.f32 %v1553_v39, %v1433_v45  ;;  %v989_v51 = vpop.f32.mrf.mxu1  ;;  %v1414_v56 = vpop.f32.mrf.mxu0 }
 0x129   : > { %2225 = vst [vmem:[%s2624_s19 + $0x8] sm:$0xff] %v2218_v46   ;;  %v1009_v43 = vadd.f32 %v989_v51, %v2609_v32  ;;  %v1217_v54 = vpop.f32.mrf.mxu2  ;;  %v1245_v24 = vpop.f32.mrf.mxu3 }
 0x12a   : > { %v1579_v55 = vadd.f32 %v1578_v41, %v1573_v50 }
 0x12b   : > { %v1258_v57 = vadd.f32 %v1239_v53, %v1009_v43 }
 0x12d   : > { %v1434_v49 = vadd.f32 %v1414_v56, %v1258_v57 }
 0x12f   : > { %v1554_v61 = vsel %vm1547_vm5, %v1434_v49, 0.0 }
 0x130   : > { %v1560_v62 = vadd.f32 %v1559_v47, %v1554_v61  ;;  %v1574_v63 = vmul.f32 %v1554_v61, %v1434_v49  ;;  %v991_v1 = vpop.f32.mrf.mxu1  ;;  %v1416_v7 = vpop.f32.mrf.mxu0 }
 0x131   : > { %v1010_v4 = vadd.f32 %v991_v1, %v2611_v59  ;;  %v1419_v5 = vpop.f32.mrf.mxu2 }
 0x132   : > { %v1580_v32 = vadd.f32 %v1579_v55, %v1574_v63 }
 0x133   : > { %v1259_v6 = vadd.f32 %v1241_v3, %v1010_v4 }
 0x135   : > { %v1435_v0 = vadd.f32 %v1416_v7, %v1259_v6 }
 0x137   : > { %v1555_v10 = vsel %vm1548_vm6, %v1435_v0, 0.0  ;;  %v2223_v11 = vpack.c.bf16 %v1435_v0, %v1434_v49 }
 0x138   : > { %v1561_v12 = vadd.f32 %v1560_v62, %v1555_v10  ;;  %v1575_v13 = vmul.f32 %v1555_v10, %v1435_v0  ;;  %v994_v14 = vpop.f32.mrf.mxu1 }
 0x139   : > { %2226 = vst [vmem:[%s2624_s19 + $0x10] sm:$0xff] %v2223_v11   ;;  %v1011_v17 = vadd.f32 %v994_v14, %v2613_v48  ;;  %v1421_v59 = vpop.f32.mrf.mxu2 }
 0x13a   : > { %v1581_v18 = vadd.f32 %v1580_v32, %v1575_v13 }
 0x13b   : > { %v1260_v19 = vadd.f32 %v1244_v8, %v1011_v17 }
 0x13d   : > { %v1436_v20 = vadd.f32 %v1419_v5, %v1260_v19 }
 0x13f   : > { %v1556_v21 = vsel %vm1549_vm7, %v1436_v20, 0.0  ;;  %v1596_v60 = vpack.c.bf16 %v1436_v20, %v1436_v20 }
 0x140   : > { %v1562_v22 = vadd.f32 %v1561_v12, %v1556_v21  ;;  %v1576_v23 = vmul.f32 %v1556_v21, %v1436_v20  ;;  %v996_v25 = vpop.f32.mrf.mxu1 }
 0x141   : > { %1603 = vst [vmem:[%s2624_s19 + $0x18] sm:$0xf] %v1596_v60 }
 0x142   : > { %v1563_v26 = vrot.slane %v1562_v22, 4  ;;  %v1582_v27 = vadd.f32 %v1581_v18, %v1576_v23 }
 0x144   : > { %v1564_v28 = vadd.f32 %v1563_v26, %v1562_v22  ;;  %v1583_v29 = vrot.slane %v1582_v27, 4 }
 0x146   : > { %v1565_v30 = vrot.slane %v1564_v28, 2  ;;  %v1584_v31 = vadd.f32 %v1583_v29, %v1582_v27 }
 0x148   : > { %v1566_v48 = vadd.f32 %v1565_v30, %v1564_v28  ;;  %v1585_v33 = vrot.slane %v1584_v31, 2 }
 0x14a   : > { %v1567_v34 = vrot.slane %v1566_v48, 1  ;;  %v1586_v35 = vadd.f32 %v1585_v33, %v1584_v31 }
 0x14c   : > { %v1568_v36 = vadd.f32 %v1567_v34, %v1566_v48  ;;  %v1587_v37 = vrot.slane %v1586_v35, 1 }
 0x14e   : > { %1569 = vst [vmem:[%s181_s23] sm:$0x1] %v1568_v36  ;;  %v1588_v38 = vadd.f32 %v1587_v37, %v1586_v35 }
 0x150   : > { %1589 = vst [vmem:[%s181_s23 + $0x1] sm:$0x1] %v1588_v38 }
 0x151 PF: > { %s14_s12 = sadd.s32 1, %s2259_s12  }
 0x152   : > { %p11_p4 = scmp.ge.s32.totalorder %s14_s12, 4  }
 0x154   :  { %13 = sbr.rel (!%p11_p4) target bundleno = 1 (0x1), region = 70 }

// kernel: inception_b_forward.12
= control target key start
LH: loop header
LB: loop body
LE: loop exit
PB: predicated region body
PF: predicated region fallthrough
CT: control target
= control target key end

     0   :  { %s7554_s12 = smov 0   ;;  %s9615_s0 = inlined_call_operand.vmem [shape: bf16[2,326,128], index: 0, kind: input, shape index: {}]   ;;  %s9616_s1 = inlined_call_operand.vmem [shape: bf16[1152,128], index: 1, kind: input, shape index: {}]   ;;  %s9617_s2 = inlined_call_operand.vmem [shape: bf16[2,288,128], index: 2, kind: output, shape index: {0}]   ;;  %s9618_s3 = inlined_call_operand.vmem [shape: f32[2,2,128], index: 3, kind: output, shape index: {1}]  }
   0x1 LB: > { %s6203_s13 = sadd.s32 4294967295, %s7531_s12   ;;  %p6207_p0 = scmp.ge.s32.totalorder %s7531_s12, 1  ;;  %s7531_s12 = sphi %s7554_s12, %s14_s12  }
   0x2   : > { %p140_p1 = scmp.lt.s32.totalorder %s7531_s12, 3 }
   0x4   : > { %p141_p2 = pnand %p6207_p0, %p140_p1 }
   0x6   : > { %144 = sbr.rel (%p141_p2) target bundleno = 893 (0x37d), region = 28 }
   0xb   : > { %v7174_v0 = vld [vmem:[%s9616_s1 + $0x38] sm:$0xff]  ;;  %v7173_v1 = vld [vmem:[%s9616_s1 + $0x30] sm:$0xff]  ;;  %v7172_v2 = vld [vmem:[%s9616_s1 + $0x28] sm:$0xff]  ;;  %p168_p3 = scmp.lt.s32.totalorder %s6203_s13, 1  ;;  %vm1239_vm0 = vcmask 1046528   ;;  %vm2742_vm4 = vcmask 1045504  }
   0xc   : > { %7490 = vmatpush.bf16.msra.mxu1 %v7174_v0  ;;  %7491 = vmatpush.bf16.msra.mxu2 %v7174_v0  ;;  %v7171_v3 = vld [vmem:[%s9616_s1 + $0x20] sm:$0xff]  ;;  %v7170_v4 = vld [vmem:[%s9616_s1 + $0x18] sm:$0xff]  ;;  %v7169_v5 = vld [vmem:[%s9616_s1 + $0x10] sm:$0xff]  ;;  %vm671_vm1 = vsmask.f32 7424  ;;  %vm4245_vm5 = vcmask 1044480  }
   0xd   : > { %390 = vmatpush.bf16.msra.mxu0 %v7174_v0  ;;  %7492 = vmatpush.bf16.msra.mxu3 %v7174_v0  ;;  %s9745_s13 = smov (!%p168_p3, %s6203_s13), 1  ;;  %v7168_v6 = vld [vmem:[%s9616_s1 + $0x8] sm:$0xff]  ;;  %v7167_v7 = vld [vmem:[%s9616_s1] sm:$0xff]  ;;  %v7226_v8 = vld [vmem:[%s9616_s1 + $0xb8] sm:$0xff]  ;;  %vm2152_vm2 = vsmask.f32 6400 }
   0xe   : > { %s7514_s28 = smul.u32 164, %s9745_s13  ;;  %v7200_v9 = vld [vmem:[%s9616_s1 + $0x78] sm:$0xff]  ;;  %v7225_v14 = vld [vmem:[%s9616_s1 + $0xb0] sm:$0xff]  ;;  %v7224_v19 = vld [vmem:[%s9616_s1 + $0xa8] sm:$0xff]  ;;  %vm3655_vm3 = vsmask.f32 5376 }
   0xf   : > { %v7278_v10 = vld [vmem:[%s9616_s1 + $0x138] sm:$0xff]  ;;  %v7199_v15 = vld [vmem:[%s9616_s1 + $0x70] sm:$0xff]  ;;  %v7198_v20 = vld [vmem:[%s9616_s1 + $0x68] sm:$0xff]  ;;  %s7515_s17 = smul.u32 144, %s9745_s13 }
  0x10   : > { %7493 = vmatpush.bf16.msra.mxu1 %v7173_v1  ;;  %7494 = vmatpush.bf16.msra.mxu2 %v7173_v1  ;;  %s7596_s6 = scalar_lea.vmem %s9615_s0, %s7514_s28  ;;  %v7277_v16 = vld [vmem:[%s9616_s1 + $0x130] sm:$0xff]  ;;  %v7252_v18 = vld [vmem:[%s9616_s1 + $0xf8] sm:$0xff]  ;;  %v7276_v21 = vld [vmem:[%s9616_s1 + $0x128] sm:$0xff] }
  0x11   : > { %391 = vmatpush.bf16.msra.mxu0 %v7173_v1  ;;  %7495 = vmatpush.bf16.msra.mxu3 %v7173_v1  ;;  %v7154_v11 = vld [vmem:[%s7596_s6 + $0x28] sm:$0xff]  ;;  %v7159_v12 = vld [vmem:[%s7596_s6 + $0x50] sm:$0xff]  ;;  %v7149_v13 = vld [vmem:[%s7596_s6] sm:$0xff]  ;;  %s8807_s20 = scalar_lea.vmem %s9617_s2, %s7515_s17 }
  0x12   : > { %v7164_v17 = vld [vmem:[%s7596_s6 + $0x78] sm:$0xff]  ;;  %v7251_v22 = vld [vmem:[%s9616_s1 + $0xf0] sm:$0xff]  ;;  %v7223_v23 = vld [vmem:[%s9616_s1 + $0xa0] sm:$0xff] }
  0x13   : > { %v7197_v24 = vld [vmem:[%s9616_s1 + $0x60] sm:$0xff]  ;;  %v7250_v26 = vld [vmem:[%s9616_s1 + $0xe8] sm:$0xff]  ;;  %v7222_v27 = vld [vmem:[%s9616_s1 + $0x98] sm:$0xff] }
  0x14   : > { %7496 = vmatpush.bf16.msra.mxu1 %v7172_v2  ;;  %7497 = vmatpush.bf16.msra.mxu2 %v7172_v2  ;;  %v7275_v25 = vld [vmem:[%s9616_s1 + $0x120] sm:$0xff]  ;;  %v7196_v28 = vld [vmem:[%s9616_s1 + $0x58] sm:$0xff]  ;;  %v7155_v29 = vld [vmem:[%s7596_s6 + $0x30] sm:$0xff] }
  0x15   : > { %392 = vmatpush.bf16.msra.mxu0 %v7172_v2  ;;  %7498 = vmatpush.bf16.msra.mxu3 %v7172_v2  ;;  %v7160_v30 = vld [vmem:[%s7596_s6 + $0x58] sm:$0xff]  ;;  %v7150_v31 = vld [vmem:[%s7596_s6 + $0x8] sm:$0xff]  ;;  %v7165_v32 = vld [vmem:[%s7596_s6 + $0x80] sm:$0xff] }
  0x16   : > { %v7221_v33 = vld [vmem:[%s9616_s1 + $0x90] sm:$0xff]  ;;  %v7274_v34 = vld [vmem:[%s9616_s1 + $0x118] sm:$0xff]  ;;  %v7249_v35 = vld [vmem:[%s9616_s1 + $0xe0] sm:$0xff] }
  0x17   : > { %v7195_v36 = vld [vmem:[%s9616_s1 + $0x50] sm:$0xff]  ;;  %v7220_v37 = vld [vmem:[%s9616_s1 + $0x88] sm:$0xff]  ;;  %v7248_v39 = vld [vmem:[%s9616_s1 + $0xd8] sm:$0xff] }
  0x18   : > { %7499 = vmatpush.bf16.msra.mxu1 %v7171_v3  ;;  %7500 = vmatpush.bf16.msra.mxu2 %v7171_v3  ;;  %v7273_v38 = vld [vmem:[%s9616_s1 + $0x110] sm:$0xff]  ;;  %v7156_v41 = vld [vmem:[%s7596_s6 + $0x38] sm:$0xff]  ;;  %v7161_v42 = vld [vmem:[%s7596_s6 + $0x60] sm:$0xff] }
  0x19   : > { %393 = vmatpush.bf16.msra.mxu0 %v7171_v3  ;;  %7501 = vmatpush.bf16.msra.mxu3 %v7171_v3  ;;  %v7247_v40 = vld [vmem:[%s9616_s1 + $0xd0] sm:$0xff]  ;;  %v7166_v44 = vld [vmem:[%s7596_s6 + $0x88] sm:$0xff]  ;;  %v7219_v47 = vld [vmem:[%s9616_s1 + $0x80] sm:$0xff] }
  0x1a   : > { %v7151_v43 = vld [vmem:[%s7596_s6 + $0x10] sm:$0xff]  ;;  %v7194_v45 = vld [vmem:[%s9616_s1 + $0x48] sm:$0xff]  ;;  %v7193_v49 = vld [vmem:[%s9616_s1 + $0x40] sm:$0xff] }
  0x1b   : > { %v7246_v46 = vld [vmem:[%s9616_s1 + $0xc8] sm:$0xff]  ;;  %v7245_v50 = vld [vmem:[%s9616_s1 + $0xc0] sm:$0xff]  ;;  %v7228_v54 = vld [vmem:[%s7596_s6 + $0x10] sm:$0xff] }
  0x1c   : > { %7502 = vmatpush.bf16.msra.mxu1 %v7170_v4  ;;  %7503 = vmatpush.bf16.msra.mxu2 %v7170_v4  ;;  %v7272_v48 = vld [vmem:[%s9616_s1 + $0x108] sm:$0xff]  ;;  %v7271_v51 = vld [vmem:[%s9616_s1 + $0x100] sm:$0xff]  ;;  %v7152_v58 = vld [vmem:[%s7596_s6 + $0x18] sm:$0xff]  ;;  %v1697_v60 = vrot.slane %v7228_v54, 1 }
  0x1d   : > { %394 = vmatpush.bf16.msra.mxu0 %v7170_v4  ;;  %7504 = vmatpush.bf16.msra.mxu3 %v7170_v4  ;;  %v6525_v52 = vld [vmem:[%s7596_s6 + $0x8] sm:$0xe]  ;;  %v7227_v53 = vld [vmem:[%s7596_s6 + $0x8] sm:$0xf0]  ;;  %v7157_v56 = vld [vmem:[%s7596_s6 + $0x40] sm:$0xff] }
  0x1e   : > { %v6526_v55 = vor.u32 %v7227_v53, %v6525_v52  ;;  %v7162_v57 = vld [vmem:[%s7596_s6 + $0x68] sm:$0xff]  ;;  %v7330_v61 = vld [vmem:[%s9616_s1 + $0x1b8] sm:$0xff] }
  0x1f   : > { %v7356_v63 = vld [vmem:[%s9616_s1 + $0x1f8] sm:$0xff]  ;;  %v6629_v3 = vld [vmem:[%s7596_s6 + $0x8] sm:$0xe]  ;;  %v7253_v4 = vld [vmem:[%s7596_s6 + $0x8] sm:$0xf0] }
  0x20   : > { %7505 = vmatpush.bf16.msra.mxu1 %v7169_v5  ;;  %7506 = vmatpush.bf16.msra.mxu2 %v7169_v5  ;;  %v1696_v59 = vrot.slane %v6526_v55, 1  ;;  %v7304_v0 = vld [vmem:[%s9616_s1 + $0x178] sm:$0xff] }
  0x21   : > { %395 = vmatpush.bf16.msra.mxu0 %v7169_v5  ;;  %7507 = vmatpush.bf16.msra.mxu3 %v7169_v5  ;;  %v7382_v1 = vld [vmem:[%s9616_s1 + $0x238] sm:$0xff]  ;;  %v7158_v5 = vld [vmem:[%s7596_s6 + $0x48] sm:$0xff] }
  0x22   : > { %v1698_v62 = vsel %vm1239_vm0, %v1696_v59, %v1697_v60  ;;  %v7229_v2 = vld [vmem:[%s7596_s6 + $0x18] sm:$0xff] }
  0x24   : > { %7508 = vmatpush.bf16.msra.mxu1 %v7168_v6  ;;  %7509 = vmatpush.bf16.msra.mxu2 %v7168_v6 }
  0x25   : > { %396 = vmatpush.bf16.msra.mxu0 %v7168_v6  ;;  %7510 = vmatpush.bf16.msra.mxu3 %v7168_v6  ;;  %v7163_v6 = vld [vmem:[%s7596_s6 + $0x70] sm:$0xff] }
  0x28   : > { %7511 = vmatpush.bf16.msra.mxu1 %v7167_v7  ;;  %7512 = vmatpush.bf16.msra.mxu2 %v7167_v7 }
  0x29   : > { %397 = vmatpush.bf16.msra.mxu0 %v7167_v7  ;;  %7513 = vmatpush.bf16.msra.mxu3 %v7167_v7  ;;  %v7153_v7 = vld [vmem:[%s7596_s6 + $0x20] sm:$0xff] }
  0x2b   : > { %423 = vmatmul.bf16.vlgmr.msra.gmra.mxu1 %v7154_v11  ;;  %448 = vmatmul.bf16.vlgmr.msra.gmra.mxu2 %v7159_v12  ;;  %v6630_v11 = vor.u32 %v7253_v4, %v6629_v3  ;;  %v7176_v12 = vld [vmem:[%s7596_s6 + $0x8] sm:$0xff] }
  0x2c   : > { %1343 = vmatpush.bf16.msrb.mxu2 %v7226_v8  ;;  %886 = vmatpush.bf16.msrb.mxu1 %v7200_v9  ;;  %v7175_v8 = vld [vmem:[%s7596_s6] sm:$0xff]  ;;  %v1699_v9 = vrot.slane %v7229_v2, 1 }
  0x2d   : > { %2389 = vmatpush.bf16.msrb.mxu0 %v7278_v10  ;;  %473 = vmatmul.bf16.vlgmr.msra.gmra.mxu3 %v7164_v17  ;;  %v7254_v10 = vld [vmem:[%s7596_s6 + $0x10] sm:$0xff]  ;;  %v2154_v17 = vshrl.u32 %v6630_v11, 16 }
  0x2e   : > { %398 = vmatmul.bf16.vlgmr.msra.gmra.mxu0 %v7149_v13  ;;  %1799 = vmatpush.bf16.msrb.mxu3 %v7252_v18  ;;  %v675_v13 = vshll.u32 %v7175_v8, 16  ;;  %v2157_v18 = vshll.u32 %v6630_v11, 16 }
  0x30   : > { %1344 = vmatpush.bf16.msrb.mxu2 %v7225_v14  ;;  %887 = vmatpush.bf16.msrb.mxu1 %v7199_v15  ;;  %v6421_v14 = vld [vmem:[%s7596_s6] sm:$0xe]  ;;  %v1700_v15 = vsel %vm1239_vm0, %v1697_v60, %v1699_v9 }
  0x31   : > { %2390 = vmatpush.bf16.msrb.mxu0 %v7277_v16  ;;  %v7201_v16 = vld [vmem:[%s7596_s6] sm:$0xf0] }
  0x32   : > { %1800 = vmatpush.bf16.msrb.mxu3 %v7251_v22  ;;  %v677_v22 = vrot.slane %v675_v13, 1  ;;  %v7232_v13 = vld [vmem:[%s7596_s6 + $0x30] sm:$0xff] }
  0x34   : > { %1345 = vmatpush.bf16.msrb.mxu2 %v7224_v19  ;;  %888 = vmatpush.bf16.msrb.mxu1 %v7198_v20  ;;  %v2162_v19 = vshrl.u32 %v7254_v10, 16  ;;  %v2165_v20 = vshll.u32 %v7254_v10, 16 }
  0x35   : > { %2391 = vmatpush.bf16.msrb.mxu0 %v7276_v21  ;;  %v673_v21 = vshrl.u32 %v7175_v8, 16 }
  0x36   : > { %1801 = vmatpush.bf16.msrb.mxu3 %v7250_v26  ;;  %v2156_v26 = vrot.slane %v2154_v17, 1  ;;  %v1705_v17 = vrot.slane %v7232_v13, 1 }
  0x38   : > { %1346 = vmatpush.bf16.msrb.mxu2 %v7223_v23  ;;  %889 = vmatpush.bf16.msrb.mxu1 %v7197_v24  ;;  %v680_v23 = vshll.u32 %v7176_v12, 16  ;;  %v7202_v24 = vld [vmem:[%s7596_s6 + $0x8] sm:$0xff] }
  0x39   : > { %2392 = vmatpush.bf16.msrb.mxu0 %v7275_v25  ;;  %v6422_v25 = vor.u32 %v7201_v16, %v6421_v14 }
  0x3a   : > { %1802 = vmatpush.bf16.msrb.mxu3 %v7249_v35 }
  0x3b   : > { %428 = vmatmul.bf16.gmra.mxu1 %v7155_v29  ;;  %453 = vmatmul.bf16.gmra.mxu2 %v7160_v30  ;;  %v2167_v29 = vrot.slane %v2165_v20, 2  ;;  %v678_v30 = vor.u32 %v677_v22, %v673_v21  ;;  %v7179_v20 = vld [vmem:[%s7596_s6 + $0x20] sm:$0xff] }
  0x3c   : > { %1347 = vmatpush.bf16.msrb.mxu2 %v7222_v27  ;;  %890 = vmatpush.bf16.msrb.mxu1 %v7196_v28  ;;  %v2159_v27 = vrot.slane %v2157_v18, 2  ;;  %v2164_v28 = vrot.slane %v2162_v19, 1  ;;  %v7257_v19 = vld [vmem:[%s7596_s6 + $0x28] sm:$0xff] }
  0x3d   : > { %2393 = vmatpush.bf16.msrb.mxu0 %v7274_v34  ;;  %478 = vmatmul.bf16.gmra.mxu3 %v7165_v32  ;;  %v1240_v32 = vrot.slane %v6422_v25, 1  ;;  %v7230_v34 = vld [vmem:[%s7596_s6 + $0x20] sm:$0xff]  ;;  %v2189_v22 = vshrl.u32 %v7257_v19, 16  ;;  %v704_v25 = vshll.u32 %v7179_v20, 16 }
  0x3e   : > { %403 = vmatmul.bf16.gmra.mxu0 %v7150_v31  ;;  %1803 = vmatpush.bf16.msrb.mxu3 %v7248_v39  ;;  %v682_v31 = vrot.slane %v680_v23, 1  ;;  %v2160_v35 = vor.u32 %v2159_v27, %v2156_v26  ;;  %v1701_v39 = vrot.slane %v7230_v34, 1  ;;  %v2192_v23 = vshll.u32 %v7257_v19, 16  ;;  %v7205_v26 = vld [vmem:[%s7596_s6 + $0x20] sm:$0xff]  ;;  %v7233_v34 = vld [vmem:[%s7596_s6 + $0x38] sm:$0xff] }
  0x3f   : > { %v2191_v27 = vrot.slane %v2189_v22, 1 }
  0x40   : > { %1348 = vmatpush.bf16.msrb.mxu2 %v7221_v33  ;;  %891 = vmatpush.bf16.msrb.mxu1 %v7195_v36  ;;  %v1241_v33 = vrot.slane %v7202_v24, 1  ;;  %v2168_v36 = vor.u32 %v2167_v29, %v2164_v28  ;;  %v2194_v28 = vrot.slane %v2192_v23, 2  ;;  %v7328_v29 = vld [vmem:[%s9616_s1 + $0x1a8] sm:$0xff] }
  0x41   : > { %2394 = vmatpush.bf16.msrb.mxu0 %v7273_v38 }
  0x42   : > { %1804 = vmatpush.bf16.msrb.mxu3 %v7247_v40  ;;  %v1242_v38 = vsel %vm1239_vm0, %v1240_v32, %v1241_v33  ;;  %v2169_v40 = vsel %vm2152_vm2, %v2160_v35, %v2168_v36  ;;  %v706_v32 = vrot.slane %v704_v25, 1  ;;  %v2195_v35 = vor.u32 %v2194_v28, %v2191_v27  ;;  %v7327_v27 = vld [vmem:[%s9616_s1 + $0x1a0] sm:$0xff] }
  0x44   : > { %1349 = vmatpush.bf16.msrb.mxu2 %v7220_v37  ;;  %892 = vmatpush.bf16.msrb.mxu1 %v7194_v45  ;;  %v683_v37 = vsel %vm671_vm1, %v678_v30, %v682_v31  ;;  %v7355_v45 = vld [vmem:[%s9616_s1 + $0x1f0] sm:$0xff]  ;;  %v7354_v30 = vld [vmem:[%s9616_s1 + $0x1e8] sm:$0xff] }
  0x45   : > { %2395 = vmatpush.bf16.msrb.mxu0 %v7272_v48 }
  0x46   : > { %1805 = vmatpush.bf16.msrb.mxu3 %v7246_v46  ;;  %v7303_v46 = vld [vmem:[%s9616_s1 + $0x170] sm:$0xff] }
  0x48   : > { %1350 = vmatpush.bf16.msrb.mxu2 %v7219_v47  ;;  %893 = vmatpush.bf16.msrb.mxu1 %v7193_v49  ;;  %v684_v49 = vshrl.u32 %v7176_v12, 16 }
  0x49   : > { %2396 = vmatpush.bf16.msrb.mxu0 %v7271_v51  ;;  %v7203_v51 = vld [vmem:[%s7596_s6 + $0x10] sm:$0xff] }
  0x4a   : > { %1806 = vmatpush.bf16.msrb.mxu3 %v7245_v50  ;;  %v686_v54 = vor.u32 %v684_v49, %v682_v31 }
  0x4b   : > { %433 = vmatmul.bf16.gmra.mxu1 %v7156_v41  ;;  %458 = vmatmul.bf16.gmra.mxu2 %v7161_v42  ;;  %v7255_v41 = vld [vmem:[%s7596_s6 + $0x18] sm:$0xff]  ;;  %v7177_v42 = vld [vmem:[%s7596_s6 + $0x10] sm:$0xff] }
  0x4c   : > { %3302 = vmatpush.bf16.msra.mxu2 %v7330_v61  ;;  %2846 = vmatpush.bf16.msra.mxu1 %v7304_v0  ;;  %v2171_v47 = vshrl.u32 %v7255_v41, 16  ;;  %v2174_v48 = vshll.u32 %v7255_v41, 16  ;;  %v688_v50 = vshll.u32 %v7177_v42, 16  ;;  %v7256_v0 = vld [vmem:[%s7596_s6 + $0x20] sm:$0xff] }
  0x4d   : > { %483 = vmatmul.bf16.gmra.mxu3 %v7166_v44  ;;  %4349 = vmatpush.bf16.msra.mxu0 %v7382_v1  ;;  %v7329_v44 = vld [vmem:[%s9616_s1 + $0x1b0] sm:$0xff]  ;;  %v7178_v1 = vld [vmem:[%s7596_s6 + $0x18] sm:$0xff]  ;;  %v2180_v3 = vshrl.u32 %v7256_v0, 16  ;;  %v2183_v4 = vshll.u32 %v7256_v0, 16 }
  0x4e   : > { %408 = vmatmul.bf16.gmra.mxu0 %v7151_v43  ;;  %3892 = vmatpush.bf16.msra.mxu3 %v7356_v63  ;;  %v1702_v43 = vsel %vm1239_vm0, %v1699_v9, %v1701_v39  ;;  %v2173_v52 = vrot.slane %v2171_v47, 1  ;;  %v2176_v53 = vrot.slane %v2174_v48, 2  ;;  %v690_v55 = vrot.slane %v688_v50, 1 }
  0x4f   : > { %v2182_v8 = vrot.slane %v2180_v3, 1  ;;  %v2185_v9 = vrot.slane %v2183_v4, 2  ;;  %v700_v24 = vshrl.u32 %v7178_v1, 16 }
  0x50   : > { %3303 = vmatpush.bf16.msra.mxu2 %v7329_v44  ;;  %2847 = vmatpush.bf16.msra.mxu1 %v7303_v46  ;;  %v691_v59 = vsel %vm671_vm1, %v686_v54, %v690_v55  ;;  %v7180_v44 = vld [vmem:[%s7596_s6 + $0x28] sm:$0xff] }
  0x51   : > { %v2186_v14 = vor.u32 %v2185_v9, %v2182_v8  ;;  %v7380_v46 = vld [vmem:[%s9616_s1 + $0x228] sm:$0xff]  ;;  %v7181_v8 = vld [vmem:[%s7596_s6 + $0x30] sm:$0xff] }
  0x52   : > { %3893 = vmatpush.bf16.msra.mxu3 %v7355_v45 }
  0x54   : > { %3304 = vmatpush.bf16.msra.mxu2 %v7328_v29 }
  0x56   : > { %3894 = vmatpush.bf16.msra.mxu3 %v7354_v30 }
  0x58   : > { %3305 = vmatpush.bf16.msra.mxu2 %v7327_v27 }
  0x5b   : > { %438 = vmatmul.bf16.gmra.mxu1 %v7157_v56  ;;  %463 = vmatmul.bf16.gmra.mxu2 %v7162_v57  ;;  %v1243_v56 = vrot.slane %v7203_v51, 1  ;;  %v7231_v57 = vld [vmem:[%s7596_s6 + $0x28] sm:$0xff]  ;;  %v708_v51 = vshrl.u32 %v7179_v20, 16 }
  0x5c   : > { %v1703_v61 = vrot.slane %v7231_v57, 1 }
  0x5d   : > { %1807 = vmatmul.bf16.vlgmr.msrb.gmra.mxu3 %v1698_v62  ;;  %v1244_v60 = vsel %vm1239_vm0, %v1241_v33, %v1243_v56  ;;  %v7381_v62 = vld [vmem:[%s9616_s1 + $0x230] sm:$0xff]  ;;  %v1247_v33 = vrot.slane %v7205_v26, 1 }
  0x5e   : > { %413 = vmatmul.bf16.gmra.mxu0 %v7152_v58  ;;  %v2177_v58 = vor.u32 %v2176_v53, %v2173_v52  ;;  %v1704_v2 = vsel %vm1239_vm0, %v1701_v39, %v1703_v61  ;;  %v1706_v21 = vsel %vm1239_vm0, %v1703_v61, %v1705_v17  ;;  %v712_v52 = vshll.u32 %v7180_v44, 16  ;;  %v7206_v53 = vld [vmem:[%s7596_s6 + $0x28] sm:$0xff]  ;;  %v7234_v61 = vld [vmem:[%s7596_s6 + $0x40] sm:$0xff] }
  0x5f   : > { %4350 = vmatpush.bf16.msra.mxu0 %v7381_v62  ;;  %v1709_v3 = vrot.slane %v7234_v61, 1  ;;  %v7236_v61 = vld [vmem:[%s7596_s6 + $0x50] sm:$0xff] }
  0x60   : > { %v2178_v63 = vsel %vm2152_vm2, %v2168_v36, %v2177_v58  ;;  %v2187_v18 = vsel %vm2152_vm2, %v2177_v58, %v2186_v14  ;;  %v7302_v36 = vld [vmem:[%s9616_s1 + $0x168] sm:$0xff]  ;;  %v710_v58 = vor.u32 %v708_v51, %v706_v32  ;;  %v7379_v51 = vld [vmem:[%s9616_s1 + $0x220] sm:$0xff] }
  0x61   : > { %2848 = vmatpush.bf16.msra.mxu1 %v7302_v36 }
  0x63   : > { %4351 = vmatpush.bf16.msra.mxu0 %v7380_v46  ;;  %v724_v46 = vshrl.u32 %v7181_v8, 16 }
  0x67   : > { %4352 = vmatpush.bf16.msra.mxu0 %v7379_v51  ;;  %v7262_v51 = vld [vmem:[%s7596_s6 + $0x50] sm:$0xff] }
  0x6b   : > { %443 = vmatmul.bf16.gmra.mxu1 %v7158_v5  ;;  %468 = vmatmul.bf16.gmra.mxu2 %v7163_v6  ;;  %v692_v5 = vshrl.u32 %v7177_v42, 16  ;;  %v696_v6 = vshll.u32 %v7178_v1, 16  ;;  %v2196_v42 = vsel %vm2152_vm2, %v2186_v14, %v2195_v35  ;;  %v716_v14 = vshrl.u32 %v7180_v44, 16 }
  0x6d   : > { %1812 = vmatmul.bf16.gmra.mxu3 %v1700_v15  ;;  %v694_v10 = vor.u32 %v692_v5, %v690_v55  ;;  %v698_v11 = vrot.slane %v696_v6, 1  ;;  %v7259_v6 = vld [vmem:[%s7596_s6 + $0x38] sm:$0xff] }
  0x6e   : > { %418 = vmatmul.bf16.gmra.mxu0 %v7153_v7  ;;  %v7204_v7 = vld [vmem:[%s7596_s6 + $0x18] sm:$0xff] }
  0x6f   : > { %v1245_v12 = vrot.slane %v7204_v7, 1  ;;  %v699_v15 = vsel %vm671_vm1, %v694_v10, %v698_v11  ;;  %v702_v31 = vor.u32 %v700_v24, %v698_v11  ;;  %v2207_v10 = vshrl.u32 %v7259_v6, 16  ;;  %v7235_v24 = vld [vmem:[%s7596_s6 + $0x48] sm:$0xff] }
  0x70   : > { %v2210_v11 = vshll.u32 %v7259_v6, 16  ;;  %v1713_v6 = vrot.slane %v7236_v61, 1  ;;  %v2234_v61 = vshrl.u32 %v7262_v51, 16 }
  0x71   : > { %v1246_v16 = vsel %vm1239_vm0, %v1243_v56, %v1245_v12  ;;  %v1248_v39 = vsel %vm1239_vm0, %v1245_v12, %v1247_v33 }
  0x72   : > { %v2212_v19 = vrot.slane %v2210_v11, 2 }
  0x7b   : > { %894 = vmatmul.bf16.vlgmr.msrb.gmra.mxu1 %v683_v37  ;;  %1351 = vmatmul.bf16.vlgmr.msrb.gmra.mxu2 %v1242_v38  ;;  %v707_v38 = vsel %vm671_vm1, %v702_v31, %v706_v32  ;;  %v1711_v31 = vrot.slane %v7235_v24, 1  ;;  %v7353_v32 = vld [vmem:[%s9616_s1 + $0x1e0] sm:$0xff] }
  0x7c   : > { %3895 = vmatpush.bf16.msra.mxu3 %v7353_v32  ;;  %v7209_v24 = vld [vmem:[%s7596_s6 + $0x40] sm:$0xff] }
  0x7d   : > { %1817 = vmatmul.bf16.gmra.mxu3 %v1702_v43  ;;  %v7258_v43 = vld [vmem:[%s7596_s6 + $0x30] sm:$0xff] }
  0x7e   : > { %2397 = vmatmul.bf16.vlgmr.msrb.gmra.mxu0 %v2169_v40  ;;  %v1707_v40 = vrot.slane %v7233_v34, 1  ;;  %v2198_v47 = vshrl.u32 %v7258_v43, 16  ;;  %v2201_v48 = vshll.u32 %v7258_v43, 16 }
  0x80   : > { %v1708_v45 = vsel %vm1239_vm0, %v1705_v17, %v1707_v40  ;;  %v2200_v55 = vrot.slane %v2198_v47, 1  ;;  %v2203_v56 = vrot.slane %v2201_v48, 2  ;;  %v1710_v9 = vsel %vm1239_vm0, %v1707_v40, %v1709_v3  ;;  %v7208_v48 = vld [vmem:[%s7596_s6 + $0x38] sm:$0xff] }
  0x81   : > { %v1712_v40 = vsel %vm1239_vm0, %v1709_v3, %v1711_v31 }
  0x82   : > { %v2204_v62 = vor.u32 %v2203_v56, %v2200_v55 }
  0x84   : > { %v2205_v5 = vsel %vm2152_vm2, %v2195_v35, %v2204_v62  ;;  %v7260_v35 = vld [vmem:[%s7596_s6 + $0x40] sm:$0xff] }
  0x85   : > { %v2219_v43 = vshll.u32 %v7260_v35, 16 }
  0x87   : > { %v2221_v55 = vrot.slane %v2219_v43, 2 }
  0x8b   : > { %899 = vmatmul.bf16.gmra.mxu1 %v691_v59  ;;  %1356 = vmatmul.bf16.gmra.mxu2 %v1244_v60  ;;  %v714_v59 = vrot.slane %v712_v52, 1  ;;  %v1249_v60 = vrot.slane %v7206_v53, 1 }
  0x8d   : > { %1822 = vmatmul.bf16.gmra.mxu3 %v1704_v2  ;;  %v715_v1 = vsel %vm671_vm1, %v710_v58, %v714_v59  ;;  %v1250_v2 = vsel %vm1239_vm0, %v1247_v33, %v1249_v60 }
  0x8e   : > { %2402 = vmatmul.bf16.gmra.mxu0 %v2178_v63 }
  0x9b   : > { %904 = vmatmul.bf16.gmra.mxu1 %v699_v15  ;;  %1361 = vmatmul.bf16.gmra.mxu2 %v1246_v16  ;;  %v720_v15 = vshll.u32 %v7181_v8, 16  ;;  %v7207_v16 = vld [vmem:[%s7596_s6 + $0x30] sm:$0xff] }
  0x9c   : > { %v1251_v23 = vrot.slane %v7207_v16, 1 }
  0x9d   : > { %1827 = vmatmul.bf16.gmra.mxu3 %v1706_v21  ;;  %v718_v21 = vor.u32 %v716_v14, %v714_v59  ;;  %v722_v22 = vrot.slane %v720_v15, 1  ;;  %v7183_v14 = vld [vmem:[%s7596_s6 + $0x40] sm:$0xff]  ;;  %v1714_v15 = vsel %vm1239_vm0, %v1711_v31, %v1713_v6 }
  0x9e   : > { %2407 = vmatmul.bf16.gmra.mxu0 %v2187_v18  ;;  %v2209_v18 = vrot.slane %v2207_v10, 1  ;;  %v1252_v30 = vsel %vm1239_vm0, %v1249_v60, %v1251_v23  ;;  %v1253_v60 = vrot.slane %v7208_v48, 1  ;;  %v7261_v10 = vld [vmem:[%s7596_s6 + $0x48] sm:$0xff] }
  0x9f   : > { %v723_v29 = vsel %vm671_vm1, %v718_v21, %v722_v22  ;;  %v726_v58 = vor.u32 %v724_v46, %v722_v22  ;;  %v2225_v16 = vshrl.u32 %v7261_v10, 16 }
  0xa0   : > { %v2213_v25 = vor.u32 %v2212_v19, %v2209_v18  ;;  %v2228_v18 = vshll.u32 %v7261_v10, 16 }
  0xa1   : > { %v2227_v27 = vrot.slane %v2225_v16, 1 }
  0xa2   : > { %v2214_v34 = vsel %vm2152_vm2, %v2204_v62, %v2213_v25 }
  0xa8   : > { %v7784_v37 = vpop.f32.mrf.mxu1 }
  0xab   : > { %v7788_v41 = vpop.f32.mrf.mxu0  ;;  %909 = vmatmul.bf16.gmra.mxu1 %v707_v38  ;;  %1366 = vmatmul.bf16.gmra.mxu2 %v1248_v39  ;;  %v7301_v38 = vld [vmem:[%s9616_s1 + $0x160] sm:$0xff]  ;;  %v7182_v39 = vld [vmem:[%s7596_s6 + $0x38] sm:$0xff] }
  0xac   : > { %2849 = vmatpush.bf16.msra.mxu1 %v7301_v38  ;;  %v728_v47 = vshll.u32 %v7182_v39, 16  ;;  %v732_v22 = vshrl.u32 %v7182_v39, 16 }
  0xad   : > { %1832 = vmatmul.bf16.gmra.mxu3 %v1708_v45 }
  0xae   : > { %2412 = vmatmul.bf16.gmra.mxu0 %v2196_v42  ;;  %v7797_v49 = vpop.f32.mrf.mxu2  ;;  %v2216_v42 = vshrl.u32 %v7260_v35, 16  ;;  %v730_v59 = vrot.slane %v728_v47, 1  ;;  %v7237_v35 = vld [vmem:[%s7596_s6 + $0x58] sm:$0xff] }
  0xaf   : > { %v1715_v46 = vrot.slane %v7237_v35, 1 }
  0xb0   : > { %v7799_v50 = vpop.f32.mrf.mxu1  ;;  %v7804_v57 = vpop.f32.mrf.mxu3  ;;  %v2218_v53 = vrot.slane %v2216_v42, 1  ;;  %v731_v3 = vsel %vm671_vm1, %v726_v58, %v730_v59  ;;  %v734_v32 = vor.u32 %v732_v22, %v730_v59  ;;  %v7184_v58 = vld [vmem:[%s7596_s6 + $0x48] sm:$0xff]  ;;  %v7300_v22 = vld [vmem:[%s9616_s1 + $0x158] sm:$0xff] }
  0xb1   : > { %v1716_v59 = vsel %vm1239_vm0, %v1713_v6, %v1715_v46  ;;  %v744_v10 = vshll.u32 %v7184_v58, 16  ;;  %v2236_v6 = vrot.slane %v2234_v61, 1  ;;  %2850 = vmatpush.bf16.msra.mxu1 %v7300_v22  ;;  %v7263_v61 = vld [vmem:[%s7596_s6 + $0x58] sm:$0xff]  ;;  %v748_v22 = vshrl.u32 %v7184_v58, 16 }
  0xb2   : > { %v2222_v62 = vor.u32 %v2221_v55, %v2218_v53  ;;  %v7326_v55 = vld [vmem:[%s9616_s1 + $0x198] sm:$0xff] }
  0xb3   : > { %v7802_v54 = vpop.f32.mrf.mxu0  ;;  %3306 = vmatpush.bf16.msra.mxu2 %v7326_v55 }
  0xb6   : > { %v7807_v63 = vpop.f32.mrf.mxu2 }
  0xb8   : > { %v7809_v0 = vpop.f32.mrf.mxu1  ;;  %v7817_v7 = vpop.f32.mrf.mxu3 }
  0xbb   : > { %v7813_v4 = vpop.f32.mrf.mxu0  ;;  %914 = vmatmul.bf16.gmra.mxu1 %v715_v1  ;;  %1371 = vmatmul.bf16.gmra.mxu2 %v1250_v2 }
  0xbd   : > { %1837 = vmatmul.bf16.gmra.mxu3 %v1710_v9  ;;  %v2223_v9 = vsel %vm2152_vm2, %v2213_v25, %v2222_v62 }
  0xbe   : > { %2417 = vmatmul.bf16.gmra.mxu0 %v2205_v5  ;;  %v7821_v12 = vpop.f32.mrf.mxu2  ;;  %v1254_v5 = vsel %vm1239_vm0, %v1251_v23, %v1253_v60  ;;  %v736_v23 = vshll.u32 %v7183_v14, 16 }
  0xc0   : > { %v7823_v13 = vpop.f32.mrf.mxu1  ;;  %v7828_v20 = vpop.f32.mrf.mxu3  ;;  %v738_v31 = vrot.slane %v736_v23, 1  ;;  %v7378_v23 = vld [vmem:[%s9616_s1 + $0x218] sm:$0xff] }
  0xc1   : > { %4353 = vmatpush.bf16.msra.mxu0 %v7378_v23 }
  0xc2   : > { %v739_v39 = vsel %vm671_vm1, %v734_v32, %v738_v31  ;;  %v7238_v32 = vld [vmem:[%s7596_s6 + $0x60] sm:$0xff] }
  0xc3   : > { %v7826_v17 = vpop.f32.mrf.mxu0  ;;  %v1717_v55 = vrot.slane %v7238_v32, 1 }
  0xc6   : > { %v7831_v26 = vpop.f32.mrf.mxu2 }
  0xc8   : > { %v7836_v28 = vpop.f32.mrf.mxu1  ;;  %v7847_v36 = vpop.f32.mrf.mxu3 }
  0xcb   : > { %v7843_v33 = vpop.f32.mrf.mxu0  ;;  %919 = vmatmul.bf16.gmra.mxu1 %v723_v29  ;;  %1376 = vmatmul.bf16.gmra.mxu2 %v1252_v30  ;;  %v2230_v29 = vrot.slane %v2228_v18, 2 }
  0xcd   : > { %1842 = vmatmul.bf16.gmra.mxu3 %v1712_v40  ;;  %v2231_v38 = vor.u32 %v2230_v29, %v2227_v27  ;;  %v746_v27 = vrot.slane %v744_v10, 1 }
  0xce   : > { %2422 = vmatmul.bf16.gmra.mxu0 %v2214_v34  ;;  %v7854_v44 = vpop.f32.mrf.mxu2  ;;  %v1255_v34 = vrot.slane %v7209_v24, 1 }
  0xcf   : > { %v2232_v48 = vsel %vm2152_vm2, %v2222_v62, %v2231_v38  ;;  %v2237_v62 = vshll.u32 %v7262_v51, 16 }
  0xd0   : > { %v7856_v45 = vpop.f32.mrf.mxu1  ;;  %v7864_v56 = vpop.f32.mrf.mxu3  ;;  %v1256_v43 = vsel %vm1239_vm0, %v1253_v60, %v1255_v34  ;;  %v7352_v60 = vld [vmem:[%s9616_s1 + $0x1d8] sm:$0xff] }
  0xd1   : > { %3896 = vmatpush.bf16.msra.mxu3 %v7352_v60  ;;  %v2239_v18 = vrot.slane %v2237_v62, 2 }
  0xd3   : > { %v7862_v52 = vpop.f32.mrf.mxu0  ;;  %v2240_v35 = vor.u32 %v2239_v18, %v2236_v6  ;;  %v2246_v6 = vshll.u32 %v7263_v61, 16 }
  0xd5   : > { %v2241_v60 = vsel %vm2152_vm2, %v2231_v38, %v2240_v35 }
  0xd6   : > { %v7867_v1 = vpop.f32.mrf.mxu2 }
  0xd8   : > { %v7869_v2 = vpop.f32.mrf.mxu1  ;;  %v7877_v11 = vpop.f32.mrf.mxu3 }
  0xd9   : > { %9623 = vst [vmem:[#allocation3_spill] sm:$0xff] %v7877_v11 }
  0xdb   : > { %v7873_v8 = vpop.f32.mrf.mxu0  ;;  %924 = vmatmul.bf16.gmra.mxu1 %v731_v3  ;;  %1381 = vmatmul.bf16.gmra.mxu2 %v1254_v5 }
  0xdd   : > { %1847 = vmatmul.bf16.gmra.mxu3 %v1714_v15  ;;  %v7210_v15 = vld [vmem:[%s7596_s6 + $0x48] sm:$0xff] }
  0xde   : > { %2427 = vmatmul.bf16.gmra.mxu0 %v2223_v9  ;;  %v7881_v19 = vpop.f32.mrf.mxu2  ;;  %v740_v9 = vshrl.u32 %v7183_v14, 16  ;;  %v1257_v29 = vrot.slane %v7210_v15, 1  ;;  %v2243_v15 = vshrl.u32 %v7263_v61, 16 }
  0xe0   : > { %v7883_v21 = vpop.f32.mrf.mxu1  ;;  %v7888_v30 = vpop.f32.mrf.mxu3  ;;  %v742_v14 = vor.u32 %v740_v9, %v738_v31  ;;  %v1258_v51 = vsel %vm1239_vm0, %v1255_v34, %v1257_v29  ;;  %v7936_v31 = vld [vmem:[%s7596_s6 + $0x50] sm:$0xff]  ;;  %v1718_v9 = vsel %vm1239_vm0, %v1715_v46, %v1717_v55 }
  0xe1   : > { %v752_v23 = vshll.u32 %v7936_v31, 16 }
  0xe3   : > { %v7886_v25 = vpop.f32.mrf.mxu0  ;;  %v754_v61 = vrot.slane %v752_v23, 1 }
  0xe6   : > { %v7891_v40 = vpop.f32.mrf.mxu2 }
  0xe8   : > { %v7893_v42 = vpop.f32.mrf.mxu1  ;;  %v7901_v53 = vpop.f32.mrf.mxu3 }
  0xeb   : > { %v7897_v47 = vpop.f32.mrf.mxu0  ;;  %929 = vmatmul.bf16.gmra.mxu1 %v739_v39  ;;  %1386 = vmatmul.bf16.gmra.mxu2 %v1256_v43 }
  0xed   : > { %1852 = vmatmul.bf16.gmra.mxu3 %v1716_v59 }
  0xee   : > { %2432 = vmatmul.bf16.gmra.mxu0 %v2232_v48  ;;  %v7911_v3 = vpop.f32.mrf.mxu2  ;;  %v747_v48 = vsel %vm671_vm1, %v742_v14, %v746_v27  ;;  %v7942_v14 = vld [vmem:[%s7596_s6 + $0x50] sm:$0xff] }
  0xf0   : > { %v7913_v5 = vpop.f32.mrf.mxu1  ;;  %v7924_v24 = vpop.f32.mrf.mxu3 }
  0xf3   : > { %v7916_v16 = vpop.f32.mrf.mxu0 }
  0xf6   : > { %v7927_v39 = vpop.f32.mrf.mxu2 }
  0xf8   : > { %v895_v43 = vpop.f32.mrf.mxu1  ;;  %v7933_v62 = vpop.f32.mrf.mxu3 }
  0xf9   : > { %v1021_v10 = vadd.f32 %v895_v43, %v7788_v41  ;;  %v750_v43 = vor.u32 %v748_v22, %v746_v27 }
  0xfb   : > { %v2398_v59 = vpop.f32.mrf.mxu0  ;;  %934 = vmatmul.bf16.gmra.mxu1 %v747_v48  ;;  %1391 = vmatmul.bf16.gmra.mxu2 %v1258_v51  ;;  %v2245_v51 = vrot.slane %v2243_v15, 1  ;;  %v755_v15 = vsel %vm671_vm1, %v750_v43, %v754_v61 }
  0xfd   : > { %1857 = vmatmul.bf16.gmra.mxu3 %v1718_v9  ;;  %v1259_v9 = vrot.slane %v7942_v14, 1  ;;  %v7264_v14 = vld [vmem:[%s7596_s6 + $0x60] sm:$0xff] }
  0xfe   : > { %2437 = vmatmul.bf16.gmra.mxu0 %v2241_v60  ;;  %v1352_v34 = vpop.f32.mrf.mxu2  ;;  %v2248_v60 = vrot.slane %v2246_v6, 2 }
  0xff   : > { %v1478_v18 = vadd.f32 %v1352_v34, %v1021_v10  ;;  %v7951_v10 = vld [vmem:[%s7596_s6 + $0x68] sm:$0xff]  ;;  %v1260_v6 = vsel %vm1239_vm0, %v1257_v29, %v1259_v9 }
 0x100   : > { %v897_v38 = vpop.f32.mrf.mxu1  ;;  %v7945_v46 = vpop.f32.mrf.mxu3  ;;  %v2249_v34 = vor.u32 %v2248_v60, %v2245_v51  ;;  %v2252_v51 = vshrl.u32 %v7264_v14, 16 }
 0x101   : > { %v1934_v32 = vadd.f32 %v7888_v30, %v1478_v18  ;;  %v1022_v58 = vadd.f32 %v897_v38, %v7802_v54 }
 0x102   : > { %v2250_v23 = vsel %vm2152_vm2, %v2240_v35, %v2249_v34 }
 0x103   : > { %v2400_v48 = vpop.f32.mrf.mxu0  ;;  %v7947_v41 = vadd.f32 %v2398_v59, %v1934_v32  ;;  %v1719_v59 = vrot.slane %v7951_v10, 1  ;;  %v756_v10 = vshrl.u32 %v7936_v31, 16  ;;  %v7299_v31 = vld [vmem:[%s9616_s1 + $0x150] sm:$0xff] }
 0x104   : > { %2851 = vmatpush.bf16.msra.mxu1 %v7299_v31 }
 0x105   : > { %9624 = vst [vmem:[#allocation4_spill] sm:$0xff] %v7947_v41  ;;  %v1720_v29 = vsel %vm1239_vm0, %v1717_v55, %v1719_v59 }
 0x106   : > { %v1354_v11 = vpop.f32.mrf.mxu2 }
 0x107   : > { %v1479_v30 = vadd.f32 %v1354_v11, %v1022_v58  ;;  %v7965_v11 = vld [vmem:[%s7596_s6 + $0x58] sm:$0xff] }
 0x108   : > { %v900_v18 = vpop.f32.mrf.mxu1  ;;  %v7960_v32 = vpop.f32.mrf.mxu3  ;;  %v760_v58 = vshll.u32 %v7965_v11, 16 }
 0x109   : > { %v1935_v27 = vadd.f32 %v7901_v53, %v1479_v30  ;;  %v1023_v38 = vadd.f32 %v900_v18, %v7813_v4  ;;  %v2255_v53 = vshll.u32 %v7264_v14, 16  ;;  %v7972_v30 = vld [vmem:[%s7596_s6 + $0x58] sm:$0xff]  ;;  %v7325_v4 = vld [vmem:[%s9616_s1 + $0x190] sm:$0xff] }
 0x10a   : > { %v7351_v18 = vld [vmem:[%s9616_s1 + $0x1d0] sm:$0xff]  ;;  %3307 = vmatpush.bf16.msra.mxu2 %v7325_v4  ;;  %v762_v14 = vrot.slane %v760_v58, 1 }
 0x10b   : > { %v2403_v22 = vpop.f32.mrf.mxu0  ;;  %939 = vmatmul.bf16.gmra.mxu1 %v755_v15  ;;  %1396 = vmatmul.bf16.gmra.mxu2 %v1260_v6  ;;  %v7962_v54 = vadd.f32 %v2400_v48, %v1935_v27  ;;  %v2254_v6 = vrot.slane %v2252_v51, 1  ;;  %v2257_v55 = vrot.slane %v2255_v53, 2 }
 0x10c   : > { %3897 = vmatpush.bf16.msra.mxu3 %v7351_v18 }
 0x10d   : > { %9625 = vst [vmem:[#allocation5_spill] sm:$0xff] %v7962_v54  ;;  %1862 = vmatmul.bf16.gmra.mxu3 %v1720_v29  ;;  %v1261_v29 = vrot.slane %v7972_v30, 1  ;;  %v2258_v53 = vor.u32 %v2257_v55, %v2254_v6  ;;  %v7265_v30 = vld [vmem:[%s7596_s6 + $0x68] sm:$0xff] }
 0x10e   : > { %2442 = vmatmul.bf16.gmra.mxu0 %v2250_v23  ;;  %v1357_v60 = vpop.f32.mrf.mxu2  ;;  %v758_v23 = vor.u32 %v756_v10, %v754_v61  ;;  %v2264_v55 = vshll.u32 %v7265_v30, 16 }
 0x10f   : > { %v1480_v43 = vadd.f32 %v1357_v60, %v1023_v38  ;;  %v7240_v38 = vld [vmem:[%s7596_s6 + $0x70] sm:$0xff]  ;;  %v1262_v4 = vsel %vm1239_vm0, %v1259_v9, %v1261_v29  ;;  %v2259_v58 = vsel %vm2152_vm2, %v2249_v34, %v2258_v53  ;;  %v8004_v9 = vld [vmem:[%s7596_s6 + $0x60] sm:$0xff]  ;;  %v2261_v34 = vshrl.u32 %v7265_v30, 16  ;;  %v8017_v30 = vld [vmem:[%s7596_s6 + $0x78] sm:$0xff] }
 0x110   : > { %v902_v35 = vpop.f32.mrf.mxu1  ;;  %v7984_v27 = vpop.f32.mrf.mxu3  ;;  %v763_v41 = vsel %vm671_vm1, %v758_v23, %v762_v14 }
 0x111   : > { %v1936_v48 = vadd.f32 %v7924_v24, %v1480_v43  ;;  %v1024_v51 = vadd.f32 %v902_v35, %v7826_v17  ;;  %v7377_v17 = vld [vmem:[%s9616_s1 + $0x210] sm:$0xff] }
 0x112   : > { %4354 = vmatpush.bf16.msra.mxu0 %v7377_v17 }
 0x113   : > { %v2405_v15 = vpop.f32.mrf.mxu0  ;;  %v7986_v24 = vadd.f32 %v2403_v22, %v1936_v48  ;;  %v1721_v22 = vrot.slane %v7240_v38, 1  ;;  %v7213_v38 = vld [vmem:[%s7596_s6 + $0x60] sm:$0xff] }
 0x116   : > { %v1359_v60 = vpop.f32.mrf.mxu2 }
 0x117   : > { %v1481_v43 = vadd.f32 %v1359_v60, %v1024_v51 }
 0x118   : > { %v905_v54 = vpop.f32.mrf.mxu1  ;;  %v7999_v35 = vpop.f32.mrf.mxu3 }
 0x119   : > { %v1937_v61 = vadd.f32 %v7933_v62, %v1481_v43  ;;  %v1722_v62 = vsel %vm1239_vm0, %v1719_v59, %v1721_v22  ;;  %v1025_v6 = vadd.f32 %v905_v54, %v7843_v33  ;;  %v2263_v43 = vrot.slane %v2261_v34, 1 }
 0x11a   : > { %v2266_v59 = vrot.slane %v2264_v55, 2 }
 0x11b   : > { %v2408_v10 = vpop.f32.mrf.mxu0  ;;  %944 = vmatmul.bf16.gmra.mxu1 %v763_v41  ;;  %1401 = vmatmul.bf16.gmra.mxu2 %v1262_v4  ;;  %v8001_v48 = vadd.f32 %v2405_v15, %v1937_v61  ;;  %v764_v41 = vshrl.u32 %v7965_v11, 16  ;;  %v768_v15 = vshll.u32 %v8004_v9, 16 }
 0x11c   : > { %v2267_v17 = vor.u32 %v2266_v59, %v2263_v43 }
 0x11d   : > { %1867 = vmatmul.bf16.gmra.mxu3 %v1722_v62  ;;  %v766_v54 = vor.u32 %v764_v41, %v762_v14  ;;  %v770_v61 = vrot.slane %v768_v15, 1  ;;  %v7266_v41 = vld [vmem:[%s7596_s6 + $0x70] sm:$0xff] }
 0x11e   : > { %2447 = vmatmul.bf16.gmra.mxu0 %v2259_v58  ;;  %v1362_v18 = vpop.f32.mrf.mxu2  ;;  %v1263_v58 = vrot.slane %v7213_v38, 1 }
 0x11f   : > { %v1482_v31 = vadd.f32 %v1362_v18, %v1025_v6  ;;  %v771_v34 = vsel %vm671_vm1, %v766_v54, %v770_v61  ;;  %v772_v54 = vshrl.u32 %v8004_v9, 16 }
 0x120   : > { %v907_v23 = vpop.f32.mrf.mxu1  ;;  %v8012_v4 = vpop.f32.mrf.mxu3  ;;  %v1264_v55 = vsel %vm1239_vm0, %v1261_v29, %v1263_v58 }
 0x121   : > { %v1938_v51 = vadd.f32 %v7945_v46, %v1482_v31  ;;  %v1026_v11 = vadd.f32 %v907_v23, %v7862_v52  ;;  %v2268_v31 = vsel %vm2152_vm2, %v2258_v53, %v2267_v17  ;;  %v8031_v23 = vld [vmem:[%s7596_s6 + $0x68] sm:$0xff] }
 0x123   : > { %v2410_v60 = vpop.f32.mrf.mxu0  ;;  %v8014_v33 = vadd.f32 %v2408_v10, %v1938_v51  ;;  %v1723_v10 = vrot.slane %v8017_v30, 1  ;;  %v2270_v51 = vshrl.u32 %v7266_v41, 16  ;;  %v776_v30 = vshll.u32 %v8031_v23, 16 }
 0x125   : > { %v1724_v29 = vsel %vm1239_vm0, %v1721_v22, %v1723_v10 }
 0x126   : > { %v1364_v62 = vpop.f32.mrf.mxu2 }
 0x127   : > { %v1483_v6 = vadd.f32 %v1364_v62, %v1026_v11 }
 0x128   : > { %v910_v46 = vpop.f32.mrf.mxu1  ;;  %v8026_v15 = vpop.f32.mrf.mxu3 }
 0x129   : > { %v1939_v18 = vadd.f32 %v7960_v32, %v1483_v6  ;;  %v1027_v38 = vadd.f32 %v910_v46, %v7873_v8  ;;  %v2273_v32 = vshll.u32 %v7266_v41, 16  ;;  %v2272_v6 = vrot.slane %v2270_v51, 1  ;;  %v7324_v8 = vld [vmem:[%s9616_s1 + $0x188] sm:$0xff] }
 0x12a   : > { %v7350_v46 = vld [vmem:[%s9616_s1 + $0x1c8] sm:$0xff]  ;;  %3308 = vmatpush.bf16.msra.mxu2 %v7324_v8 }
 0x12b   : > { %v2413_v14 = vpop.f32.mrf.mxu0  ;;  %949 = vmatmul.bf16.gmra.mxu1 %v771_v34  ;;  %1406 = vmatmul.bf16.gmra.mxu2 %v1264_v55  ;;  %v8028_v52 = vadd.f32 %v2410_v60, %v1939_v18  ;;  %v8038_v60 = vld [vmem:[%s7596_s6 + $0x68] sm:$0xff]  ;;  %v2275_v22 = vrot.slane %v2273_v32, 2  ;;  %v774_v55 = vor.u32 %v772_v54, %v770_v61 }
 0x12c   : > { %3898 = vmatpush.bf16.msra.mxu3 %v7350_v46  ;;  %v1265_v18 = vrot.slane %v8038_v60, 1  ;;  %v7267_v60 = vld [vmem:[%s7596_s6 + $0x78] sm:$0xff] }
 0x12d   : > { %1872 = vmatmul.bf16.gmra.mxu3 %v1724_v29  ;;  %v2276_v29 = vor.u32 %v2275_v22, %v2272_v6  ;;  %v2279_v22 = vshrl.u32 %v7267_v60, 16  ;;  %v2282_v8 = vshll.u32 %v7267_v60, 16 }
 0x12e   : > { %2452 = vmatmul.bf16.gmra.mxu0 %v2268_v31  ;;  %v1367_v43 = vpop.f32.mrf.mxu2  ;;  %v8053_v31 = vld [vmem:[%s7596_s6 + $0x80] sm:$0xff] }
 0x12f   : > { %v1484_v59 = vadd.f32 %v1367_v43, %v1027_v38 }
 0x130   : > { %v912_v53 = vpop.f32.mrf.mxu1  ;;  %v8047_v34 = vpop.f32.mrf.mxu3 }
 0x131   : > { %v1940_v11 = vadd.f32 %v7984_v27, %v1484_v59  ;;  %v778_v27 = vrot.slane %v776_v30, 1  ;;  %v1028_v41 = vadd.f32 %v912_v53, %v7886_v25  ;;  %v1266_v59 = vsel %vm1239_vm0, %v1263_v58, %v1265_v18  ;;  %v7298_v25 = vld [vmem:[%s9616_s1 + $0x148] sm:$0xff]  ;;  %v7189_v58 = vld [vmem:[%s7596_s6 + $0x70] sm:$0xff] }
 0x132   : > { %v2277_v30 = vsel %vm2152_vm2, %v2267_v17, %v2276_v29  ;;  %2852 = vmatpush.bf16.msra.mxu1 %v7298_v25  ;;  %v8083_v25 = vld [vmem:[%s7596_s6 + $0x88] sm:$0xff] }
 0x133   : > { %v2415_v62 = vpop.f32.mrf.mxu0  ;;  %v8049_v9 = vadd.f32 %v2413_v14, %v1940_v11  ;;  %v779_v43 = vsel %vm671_vm1, %v774_v55, %v778_v27  ;;  %v1725_v14 = vrot.slane %v8053_v31, 1  ;;  %v780_v31 = vshrl.u32 %v8031_v23, 16 }
 0x135   : > { %v1726_v6 = vsel %vm1239_vm0, %v1723_v10, %v1725_v14 }
 0x136   : > { %v1369_v38 = vpop.f32.mrf.mxu2 }
 0x137   : > { %v1485_v51 = vadd.f32 %v1369_v38, %v1028_v41  ;;  %v784_v41 = vshll.u32 %v7189_v58, 16  ;;  %v7215_v38 = vld [vmem:[%s7596_s6 + $0x70] sm:$0xff] }
 0x138   : > { %v915_v32 = vpop.f32.mrf.mxu1  ;;  %v8065_v53 = vpop.f32.mrf.mxu3  ;;  %v1267_v60 = vrot.slane %v7215_v38, 1 }
 0x139   : > { %v1941_v61 = vadd.f32 %v7999_v35, %v1485_v51  ;;  %v7376_v35 = vld [vmem:[%s9616_s1 + $0x208] sm:$0xff]  ;;  %v1029_v17 = vadd.f32 %v915_v32, %v7897_v47  ;;  %v782_v32 = vor.u32 %v780_v31, %v778_v27  ;;  %v7268_v31 = vld [vmem:[%s7596_s6 + $0x80] sm:$0xff] }
 0x13a   : > { %4355 = vmatpush.bf16.msra.mxu0 %v7376_v35 }
 0x13b   : > { %v2418_v54 = vpop.f32.mrf.mxu0  ;;  %954 = vmatmul.bf16.gmra.mxu1 %v779_v43  ;;  %1411 = vmatmul.bf16.gmra.mxu2 %v1266_v59  ;;  %v8067_v11 = vadd.f32 %v2415_v62, %v1941_v61  ;;  %v2281_v43 = vrot.slane %v2279_v22, 1  ;;  %v2284_v59 = vrot.slane %v2282_v8, 2  ;;  %v1268_v8 = vsel %vm1239_vm0, %v1265_v18, %v1267_v60 }
 0x13d   : > { %1877 = vmatmul.bf16.gmra.mxu3 %v1726_v6  ;;  %v2285_v23 = vor.u32 %v2284_v59, %v2281_v43 }
 0x13e   : > { %2457 = vmatmul.bf16.gmra.mxu0 %v2277_v30  ;;  %v1372_v46 = vpop.f32.mrf.mxu2  ;;  %v786_v30 = vrot.slane %v784_v41, 1 }
 0x13f   : > { %v1486_v55 = vadd.f32 %v1372_v46, %v1029_v17 }
 0x140   : > { %v917_v62 = vpop.f32.mrf.mxu1  ;;  %v8078_v61 = vpop.f32.mrf.mxu3  ;;  %v787_v22 = vsel %vm671_vm1, %v782_v32, %v786_v30  ;;  %v788_v32 = vshrl.u32 %v7189_v58, 16 }
 0x141   : > { %v1942_v10 = vadd.f32 %v8012_v4, %v1486_v55  ;;  %v1030_v6 = vadd.f32 %v917_v62, %v7916_v16  ;;  %v2286_v55 = vsel %vm2152_vm2, %v2276_v29, %v2285_v23  ;;  %v8097_v62 = vld [vmem:[%s7596_s6 + $0x78] sm:$0xff] }
 0x143   : > { %v2420_v51 = vpop.f32.mrf.mxu0  ;;  %v8080_v47 = vadd.f32 %v2418_v54, %v1942_v10  ;;  %v1727_v54 = vrot.slane %v8083_v25, 1  ;;  %v2288_v10 = vshrl.u32 %v7268_v31, 16  ;;  %v792_v25 = vshll.u32 %v8097_v62, 16 }
 0x145   : > { %v1728_v18 = vsel %vm1239_vm0, %v1725_v14, %v1727_v54 }
 0x146   : > { %v1374_v35 = vpop.f32.mrf.mxu2 }
 0x147   : > { %v1487_v17 = vadd.f32 %v1374_v35, %v1030_v6  ;;  %v8103_v6 = vld [vmem:[%s7596_s6 + $0x78] sm:$0xff] }
 0x148   : > { %v920_v4 = vpop.f32.mrf.mxu1  ;;  %v8092_v41 = vpop.f32.mrf.mxu3 }
 0x149   : > { %v1943_v46 = vadd.f32 %v8026_v15, %v1487_v17  ;;  %v1031_v38 = vadd.f32 %v920_v4, %v7784_v37  ;;  %v2291_v15 = vshll.u32 %v7268_v31, 16  ;;  %v2290_v17 = vrot.slane %v2288_v10, 1 }
 0x14a   : > { %v790_v4 = vor.u32 %v788_v32, %v786_v30  ;;  %v7269_v32 = vld [vmem:[%s7596_s6 + $0x88] sm:$0xff] }
 0x14b   : > { %v2423_v27 = vpop.f32.mrf.mxu0  ;;  %959 = vmatmul.bf16.gmra.mxu1 %v787_v22  ;;  %1416 = vmatmul.bf16.gmra.mxu2 %v1268_v8  ;;  %v8094_v16 = vadd.f32 %v2420_v51, %v1943_v46  ;;  %v2293_v22 = vrot.slane %v2291_v15, 2  ;;  %v794_v8 = vrot.slane %v792_v25, 1  ;;  %v1269_v46 = vrot.slane %v8103_v6, 1 }
 0x14d   : > { %9626 = vst [vmem:[#allocation6_spill] sm:$0xff] %v8094_v16  ;;  %1882 = vmatmul.bf16.gmra.mxu3 %v1728_v18  ;;  %v2294_v31 = vor.u32 %v2293_v22, %v2290_v17  ;;  %v795_v10 = vsel %vm671_vm1, %v790_v4, %v794_v8  ;;  %v1270_v15 = vsel %vm1239_vm0, %v1267_v60, %v1269_v46  ;;  %v2297_v17 = vshrl.u32 %v7269_v32, 16  ;;  %v1586_v4 = vld [vmem:[%s7596_s6 + $0x98] sm:$0x1] }
 0x14e   : > { %2462 = vmatmul.bf16.gmra.mxu0 %v2286_v55  ;;  %v1377_v43 = vpop.f32.mrf.mxu2  ;;  %v8112_v55 = vld [vmem:[%s7596_s6 + $0x90] sm:$0xff]  ;;  %v2300_v22 = vshll.u32 %v7269_v32, 16  ;;  %v7375_v32 = vld [vmem:[%s9616_s1 + $0x200] sm:$0xff] }
 0x14f   : > { %v1488_v29 = vadd.f32 %v1377_v43, %v1031_v38  ;;  %4356 = vmatpush.bf16.msra.mxu0 %v7375_v32 }
 0x150   : > { %v922_v59 = vpop.f32.mrf.mxu1  ;;  %v8106_v14 = vpop.f32.mrf.mxu3 }
 0x151   : > { %v1944_v51 = vadd.f32 %v8047_v34, %v1488_v29  ;;  %v1032_v58 = vadd.f32 %v922_v59, %v7799_v50  ;;  %v2295_v29 = vsel %vm2152_vm2, %v2285_v23, %v2294_v31  ;;  %v7323_v50 = vld [vmem:[%s9616_s1 + $0x180] sm:$0xff] }
 0x152   : > { %v7349_v59 = vld [vmem:[%s9616_s1 + $0x1c0] sm:$0xff]  ;;  %3309 = vmatpush.bf16.msra.mxu2 %v7323_v50 }
 0x153   : > { %v2425_v35 = vpop.f32.mrf.mxu0  ;;  %v8108_v37 = vadd.f32 %v2423_v27, %v1944_v51  ;;  %v1729_v27 = vrot.slane %v8112_v55, 1  ;;  %v8135_v23 = vld [vmem:[%s7596_s6 + $0x80] sm:$0xff]  ;;  %3899 = vmatpush.bf16.msra.mxu3 %v7349_v59 }
 0x155   : > { %9627 = vst [vmem:[#allocation7_spill] sm:$0xff] %v8108_v37  ;;  %v1730_v6 = vsel %vm1239_vm0, %v1727_v54, %v1729_v27 }
 0x156   : > { %v1379_v18 = vpop.f32.mrf.mxu2 }
 0x157   : > { %v1489_v38 = vadd.f32 %v1379_v18, %v1032_v58 }
 0x158   : > { %v925_v34 = vpop.f32.mrf.mxu1  ;;  %v8127_v25 = vpop.f32.mrf.mxu3 }
 0x159   : > { %v1945_v30 = vadd.f32 %v8065_v53, %v1489_v38  ;;  %v7297_v53 = vld [vmem:[%s9616_s1 + $0x140] sm:$0xff]  ;;  %v1033_v51 = vadd.f32 %v925_v34, %v7809_v0  ;;  %v796_v38 = vshrl.u32 %v8097_v62, 16  ;;  %v2299_v0 = vrot.slane %v2297_v17, 1 }
 0x15a   : > { %2853 = vmatpush.bf16.msra.mxu1 %v7297_v53  ;;  %v2302_v34 = vrot.slane %v2300_v22, 2 }
 0x15b   : > { %v2428_v43 = vpop.f32.mrf.mxu0  ;;  %964 = vmatmul.bf16.gmra.mxu1 %v795_v10  ;;  %1421 = vmatmul.bf16.gmra.mxu2 %v1270_v15  ;;  %v8132_v60 = vadd.f32 %v2425_v35, %v1945_v30  ;;  %v800_v10 = vshll.u32 %v8135_v23, 16  ;;  %v8145_v15 = vld [vmem:[%s7596_s6 + $0x80] sm:$0xff]  ;;  %v1676_v30 = vunpack.c.l.b16 %v1586_v4  ;;  %v798_v62 = vor.u32 %v796_v38, %v794_v8 }
 0x15c   : > { %v8157_v17 = vor.u32 %v2302_v34, %v2299_v0  ;;  %v7331_v0 = vld [vmem:[%s7596_s6 + $0x10] sm:$0xf0] }
 0x15d   : > { %9628 = vst [vmem:[#allocation8_spill] sm:$0xff] %v8132_v60  ;;  %1887 = vmatmul.bf16.gmra.mxu3 %v1730_v6  ;;  %v802_v53 = vrot.slane %v800_v10, 1  ;;  %v1271_v6 = vrot.slane %v8145_v15, 1 }
 0x15e   : > { %2467 = vmatmul.bf16.gmra.mxu0 %v2295_v29  ;;  %v1382_v58 = vpop.f32.mrf.mxu2  ;;  %v2304_v15 = vsel %vm2152_vm2, %v2294_v31, %v8157_v17 }
 0x15f   : > { %v1490_v18 = vadd.f32 %v1382_v58, %v1033_v51  ;;  %v1695_v51 = vpack.c.b16 %v1676_v30, %v1676_v30  ;;  %v8168_v30 = vld [vmem:[%s7596_s6 + $0x88] sm:$0xff] }
 0x160   : > { %v927_v35 = vpop.f32.mrf.mxu1  ;;  %v8151_v50 = vpop.f32.mrf.mxu3 }
 0x161   : > { %v1946_v54 = vadd.f32 %v8078_v61, %v1490_v18  ;;  %v1034_v61 = vadd.f32 %v927_v35, %v7823_v13  ;;  %v803_v18 = vsel %vm671_vm1, %v798_v62, %v802_v53  ;;  %v1731_v8 = vrot.slane %v1695_v51, 1  ;;  %v7270_v13 = vld [vmem:[%s7596_s6 + $0x90] sm:$0xff] }
 0x162   : > { %v2306_v62 = vshrl.u32 %v7270_v13, 16  ;;  %v2309_v51 = vshll.u32 %v7270_v13, 16 }
 0x163   : > { %v2430_v29 = vpop.f32.mrf.mxu0  ;;  %v8153_v59 = vadd.f32 %v2428_v43, %v1946_v54  ;;  %v1272_v43 = vsel %vm1239_vm0, %v1269_v46, %v1271_v6  ;;  %v6941_v54 = vld [vmem:[%s7596_s6 + $0x10] sm:$0xc]  ;;  %v7332_v46 = vld [vmem:[%s7596_s6 + $0x18] sm:$0xff] }
 0x164   : > { %v6942_v32 = vor.u32 %v7331_v0, %v6941_v54  ;;  %v2311_v13 = vrot.slane %v2309_v51, 2  ;;  %v2042_v0 = vld [vmem:[%s7596_s6 + $0x98] sm:$0x3] }
 0x165   : > { %9629 = vst [vmem:[#allocation9_spill] sm:$0xff] %v8153_v59 }
 0x166   : > { %v1384_v22 = vpop.f32.mrf.mxu2  ;;  %v3657_v55 = vshrl.u32 %v6942_v32, 16 }
 0x167   : > { %v1491_v4 = vadd.f32 %v1384_v22, %v1034_v61 }
 0x168   : > { %v930_v58 = vpop.f32.mrf.mxu1  ;;  %v8165_v35 = vpop.f32.mrf.mxu3 }
 0x169   : > { %v1947_v38 = vadd.f32 %v8092_v41, %v1491_v4  ;;  %v1732_v41 = vsel %vm1239_vm0, %v1729_v27, %v1731_v8  ;;  %v1035_v31 = vadd.f32 %v930_v58, %v7836_v28  ;;  %v804_v4 = vshrl.u32 %v8135_v23, 16 }
 0x16a   : > { %v3665_v27 = vshrl.u32 %v7332_v46, 16  ;;  %v3668_v8 = vshll.u32 %v7332_v46, 16  ;;  %v2308_v58 = vrot.slane %v2306_v62, 1  ;;  %v2132_v62 = vunpack.c.l.b16 %v2042_v0 }
 0x16b   : > { %v2433_v10 = vpop.f32.mrf.mxu0  ;;  %969 = vmatmul.bf16.gmra.mxu1 %v803_v18  ;;  %1426 = vmatmul.bf16.gmra.mxu2 %v1272_v43  ;;  %v8172_v34 = vadd.f32 %v2430_v29, %v1947_v38  ;;  %v808_v18 = vshll.u32 %v8168_v30, 16  ;;  %v8182_v29 = vld [vmem:[%s7596_s6 + $0x88] sm:$0xff]  ;;  %v3660_v38 = vshll.u32 %v6942_v32, 16  ;;  %v806_v23 = vor.u32 %v804_v4, %v802_v53 }
 0x16c   : > { %v3667_v32 = vrot.slane %v3665_v27, 2  ;;  %v3670_v60 = vrot.slane %v3668_v8, 3  ;;  %v2312_v46 = vor.u32 %v2311_v13, %v2308_v58  ;;  %v2151_v8 = vpack.c.b16 %v2132_v62, %v2132_v62  ;;  %v7333_v13 = vld [vmem:[%s7596_s6 + $0x20] sm:$0xff] }
 0x16d   : > { %9630 = vst [vmem:[#allocation10_spill] sm:$0xff] %v8172_v34  ;;  %1892 = vmatmul.bf16.gmra.mxu3 %v1732_v41  ;;  %v3659_v41 = vrot.slane %v3657_v55, 2  ;;  %v3662_v59 = vrot.slane %v3660_v38, 3 }
 0x16e   : > { %2472 = vmatmul.bf16.gmra.mxu0 %v2304_v15  ;;  %v1387_v61 = vpop.f32.mrf.mxu2  ;;  %v3671_v55 = vor.u32 %v3670_v60, %v3667_v32  ;;  %v2318_v0 = vshll.u32 %v2151_v8, 16 }
 0x16f   : > { %v1492_v22 = vadd.f32 %v1387_v61, %v1035_v31  ;;  %v810_v31 = vrot.slane %v808_v18, 1  ;;  %v1273_v61 = vrot.slane %v8182_v29, 1  ;;  %v3663_v18 = vor.u32 %v3662_v59, %v3659_v41  ;;  %v6733_v29 = vld [vmem:[%s7596_s6 + $0x8] sm:$0xc] }
 0x170   : > { %v932_v43 = vpop.f32.mrf.mxu1  ;;  %v8185_v54 = vpop.f32.mrf.mxu3  ;;  %v812_v41 = vshrl.u32 %v8168_v30, 16 }
 0x171   : > { %v1948_v15 = vadd.f32 %v8106_v14, %v1492_v22  ;;  %v1036_v14 = vadd.f32 %v932_v43, %v7856_v45  ;;  %v561_v22 = vld [vmem:[%s7596_s6 + $0x90] sm:$0x1]  ;;  %v811_v16 = vsel %vm671_vm1, %v806_v23, %v810_v31  ;;  %v2313_v45 = vsel %vm2152_vm2, %v8157_v17, %v2312_v46 }
 0x172   : > { %v651_v4 = vunpack.c.l.b16 %v561_v22  ;;  %v1129_v43 = vld [vmem:[%s7596_s6 + $0x90] sm:$0x1]  ;;  %v3672_v60 = vsel %vm3655_vm3, %v3663_v18, %v3671_v55  ;;  %v3677_v22 = vshll.u32 %v7333_v13, 16 }
 0x173   : > { %v2435_v28 = vpop.f32.mrf.mxu0  ;;  %v8189_v34 = vadd.f32 %v2433_v10, %v1948_v15  ;;  %v1274_v10 = vsel %vm1239_vm0, %v1271_v6, %v1273_v61  ;;  %v1219_v59 = vunpack.c.l.b16 %v1129_v43 }
 0x174   : > { %v670_v6 = vpack.c.b16 %v651_v4, %v651_v4  ;;  %v2320_v4 = vrot.slane %v2318_v0, 2  ;;  %v3679_v30 = vrot.slane %v3677_v22, 3 }
 0x176   : > { %v1389_v51 = vpop.f32.mrf.mxu2 }
 0x177   : > { %v1493_v37 = vadd.f32 %v1389_v51, %v1036_v14  ;;  %v1238_v14 = vpack.c.b16 %v1219_v59, %v1219_v59 }
 0x178   : > { %v935_v53 = vpop.f32.mrf.mxu1  ;;  %v8201_v15 = vpop.f32.mrf.mxu3 }
 0x179   : > { %v1949_v38 = vadd.f32 %v8127_v25, %v1493_v37  ;;  %v1037_v37 = vadd.f32 %v935_v53, %v7869_v2  ;;  %v2315_v25 = vshrl.u32 %v2151_v8, 16  ;;  %v814_v2 = vor.u32 %v812_v41, %v810_v31  ;;  %v7334_v41 = vld [vmem:[%s7596_s6 + $0x28] sm:$0xff] }
 0x17b   : > { %v2438_v27 = vpop.f32.mrf.mxu0  ;;  %974 = vmatmul.bf16.gmra.mxu1 %v811_v16  ;;  %1431 = vmatmul.bf16.gmra.mxu2 %v1274_v10  ;;  %v8203_v58 = vadd.f32 %v2435_v28, %v1949_v38  ;;  %v816_v16 = vshll.u32 %v670_v6, 16  ;;  %v3674_v28 = vshrl.u32 %v7333_v13, 16  ;;  %v2317_v10 = vrot.slane %v2315_v25, 1 }
 0x17d   : > { %3900 = vmatmul.bf16.vlgmr.msra.gmra.mxu3 %v3672_v60  ;;  %v818_v38 = vrot.slane %v816_v16, 1  ;;  %v3676_v43 = vrot.slane %v3674_v28, 2  ;;  %v2321_v6 = vor.u32 %v2320_v4, %v2317_v10  ;;  %v7305_v16 = vld [vmem:[%s7596_s6 + $0x10] sm:$0xf0]  ;;  %v8238_v4 = vld [vmem:[%s7596_s6 + $0x18] sm:$0xff] }
 0x17e   : > { %2477 = vmatmul.bf16.gmra.mxu0 %v2313_v45  ;;  %v1392_v17 = vpop.f32.mrf.mxu2  ;;  %v1275_v45 = vrot.slane %v1238_v14, 1  ;;  %v7045_v14 = vld [vmem:[%s7596_s6 + $0x10] sm:$0x8]  ;;  %v7357_v28 = vld [vmem:[%s7596_s6 + $0x10] sm:$0xf0] }
 0x17f   : > { %v1494_v23 = vadd.f32 %v1392_v17, %v1037_v37  ;;  %v819_v13 = vsel %vm671_vm1, %v814_v2, %v818_v38  ;;  %v2322_v25 = vsel %vm2152_vm2, %v2312_v46, %v2321_v6  ;;  %v3683_v38 = vshrl.u32 %v7334_v41, 16 }
 0x180   : > { %v937_v32 = vpop.f32.mrf.mxu1  ;;  %v8210_v18 = vpop.f32.mrf.mxu3  ;;  %v1276_v31 = vsel %vm1239_vm0, %v1273_v61, %v1275_v45  ;;  %v7279_v61 = vld [vmem:[%s7596_s6 + $0x8] sm:$0xf0] }
 0x181   : > { %v1950_v62 = vadd.f32 %v8151_v50, %v1494_v23  ;;  %v1038_v8 = vadd.f32 %v937_v32, %v7883_v21  ;;  %v6837_v32 = vld [vmem:[%s7596_s6 + $0x10] sm:$0xc] }
 0x182   : > { %v6838_v2 = vor.u32 %v7305_v16, %v6837_v32 }
 0x183   : > { %v2440_v51 = vpop.f32.mrf.mxu0  ;;  %v8212_v53 = vadd.f32 %v2438_v27, %v1950_v62  ;;  %v3680_v27 = vor.u32 %v3679_v30, %v3676_v43  ;;  %v8235_v62 = vld [vmem:[%s7596_s6 + $0x10] sm:$0xff]  ;;  %v7358_v43 = vld [vmem:[%s7596_s6 + $0x18] sm:$0xff]  ;;  %v7046_v30 = vor.u32 %v7357_v28, %v7045_v14 }
 0x185   : > { %v3681_v23 = vsel %vm3655_vm3, %v3671_v55, %v3680_v27  ;;  %v3686_v55 = vshll.u32 %v7334_v41, 16 }
 0x186   : > { %v1394_v59 = vpop.f32.mrf.mxu2 }
 0x187   : > { %v1495_v60 = vadd.f32 %v1394_v59, %v1038_v8  ;;  %v2744_v59 = vrot.slane %v8235_v62, 2  ;;  %v7335_v62 = vld [vmem:[%s7596_s6 + $0x30] sm:$0xff] }
 0x188   : > { %v940_v50 = vpop.f32.mrf.mxu1  ;;  %v8221_v0 = vpop.f32.mrf.mxu3 }
 0x189   : > { %v1951_v37 = vadd.f32 %v8165_v35, %v1495_v60  ;;  %v1039_v35 = vadd.f32 %v940_v50, %v7893_v42  ;;  %v3199_v50 = vrot.slane %v6838_v2, 2  ;;  %v7281_v2 = vld [vmem:[%s7596_s6 + $0x18] sm:$0xff] }
 0x18b   : > { %v2443_v21 = vpop.f32.mrf.mxu0  ;;  %979 = vmatmul.bf16.gmra.mxu1 %v819_v13  ;;  %1436 = vmatmul.bf16.gmra.mxu2 %v1276_v31  ;;  %v8223_v17 = vadd.f32 %v2440_v51, %v1951_v37  ;;  %v6734_v51 = vor.u32 %v7279_v61, %v6733_v29  ;;  %v3200_v13 = vrot.slane %v8238_v4, 2  ;;  %v3685_v31 = vrot.slane %v3683_v38, 2  ;;  %v7307_v38 = vld [vmem:[%s7596_s6 + $0x20] sm:$0xff] }
 0x18c   : > { %v3688_v37 = vrot.slane %v3686_v55, 3  ;;  %v4246_v29 = vrot.slane %v7046_v30, 3  ;;  %v3692_v55 = vshrl.u32 %v7335_v62, 16 }
 0x18d   : > { %3905 = vmatmul.bf16.gmra.mxu3 %v3681_v23  ;;  %v2743_v6 = vrot.slane %v6734_v51, 2 }
 0x18e   : > { %2482 = vmatmul.bf16.gmra.mxu0 %v2322_v25  ;;  %v1397_v46 = vpop.f32.mrf.mxu2  ;;  %v3689_v32 = vor.u32 %v3688_v37, %v3685_v31  ;;  %v3202_v31 = vrot.slane %v7307_v38, 2  ;;  %v3694_v37 = vrot.slane %v3692_v55, 2 }
 0x18f   : > { %v1496_v22 = vadd.f32 %v1397_v46, %v1039_v35  ;;  %v2745_v35 = vsel %vm2742_vm4, %v2743_v6, %v2744_v59  ;;  %v7359_v6 = vld [vmem:[%s7596_s6 + $0x20] sm:$0xff] }
 0x190   : > { %v942_v10 = vpop.f32.mrf.mxu1  ;;  %v8242_v8 = vpop.f32.mrf.mxu3 }
 0x191   : > { %v1952_v45 = vadd.f32 %v8185_v54, %v1496_v22  ;;  %v1040_v25 = vadd.f32 %v942_v10, %v7913_v5  ;;  %v4247_v54 = vrot.slane %v7358_v43, 3  ;;  %v3690_v22 = vsel %vm3655_vm3, %v3680_v27, %v3689_v32 }
 0x192   : > { %v2746_v27 = vrot.slane %v7281_v2, 2 }
 0x193   : > { %v2445_v42 = vpop.f32.mrf.mxu0  ;;  %v8245_v60 = vadd.f32 %v2443_v21, %v1952_v45  ;;  %v3201_v21 = vsel %vm2742_vm4, %v3199_v50, %v3200_v13  ;;  %v4248_v5 = vsel %vm4245_vm5, %v4246_v29, %v4247_v54  ;;  %v3695_v45 = vshll.u32 %v7335_v62, 16  ;;  %v7336_v62 = vld [vmem:[%s7596_s6 + $0x38] sm:$0xff] }
 0x194   : > { %v4249_v29 = vrot.slane %v7359_v6, 3  ;;  %v3704_v2 = vshll.u32 %v7336_v62, 16 }
 0x196   : > { %v1399_v61 = vpop.f32.mrf.mxu2 }
 0x197   : > { %v1497_v23 = vadd.f32 %v1399_v61, %v1040_v25 }
 0x198   : > { %v945_v41 = vpop.f32.mrf.mxu1  ;;  %v8253_v14 = vpop.f32.mrf.mxu3 }
 0x199   : > { %v1953_v16 = vadd.f32 %v8201_v15, %v1497_v23  ;;  %v1041_v51 = vadd.f32 %v945_v41, %v7797_v49  ;;  %v3697_v49 = vrot.slane %v3695_v45, 3  ;;  %v7360_v45 = vld [vmem:[%s7596_s6 + $0x28] sm:$0xff] }
 0x19b   : > { %v2448_v46 = vpop.f32.mrf.mxu0  ;;  %2854 = vmatmul.bf16.vlgmr.msra.gmra.mxu1 %v2745_v35  ;;  %3310 = vmatmul.bf16.vlgmr.msra.gmra.mxu2 %v3201_v21  ;;  %v8255_v28 = vadd.f32 %v2445_v42, %v1953_v16  ;;  %v2747_v35 = vsel %vm2742_vm4, %v2744_v59, %v2746_v27  ;;  %v3698_v21 = vor.u32 %v3697_v49, %v3694_v37 }
 0x19d   : > { %3910 = vmatmul.bf16.gmra.mxu3 %v3690_v22  ;;  %v3699_v59 = vsel %vm3655_vm3, %v3689_v32, %v3698_v21 }
 0x19e   : > { %4357 = vmatmul.bf16.vlgmr.msra.gmra.mxu0 %v4248_v5  ;;  %v1402_v10 = vpop.f32.mrf.mxu2  ;;  %v4250_v5 = vsel %vm4245_vm5, %v4247_v54, %v4249_v29  ;;  %v3701_v54 = vshrl.u32 %v7336_v62, 16  ;;  %v7337_v62 = vld [vmem:[%s7596_s6 + $0x40] sm:$0xff] }
 0x19f   : > { %v1498_v4 = vadd.f32 %v1402_v10, %v1041_v51 }
 0x1a0   : > { %v947_v15 = vpop.f32.mrf.mxu1  ;;  %v8264_v42 = vpop.f32.mrf.mxu3  ;;  %v3703_v37 = vrot.slane %v3701_v54, 2 }
 0x1a1   : > { %v1954_v43 = vadd.f32 %v8210_v18, %v1498_v4  ;;  %v1042_v25 = vadd.f32 %v947_v15, %v7807_v63  ;;  %v3203_v18 = vsel %vm2742_vm4, %v3200_v13, %v3202_v31  ;;  %v7282_v4 = vld [vmem:[%s7596_s6 + $0x20] sm:$0xff]  ;;  %v7308_v15 = vld [vmem:[%s7596_s6 + $0x28] sm:$0xff] }
 0x1a2   : > { %v2748_v32 = vrot.slane %v7282_v4, 2  ;;  %v3204_v6 = vrot.slane %v7308_v15, 2  ;;  %v3713_v4 = vshll.u32 %v7337_v62, 16 }
 0x1a3   : > { %v2450_v30 = vpop.f32.mrf.mxu0  ;;  %v8266_v50 = vadd.f32 %v2448_v46, %v1954_v43 }
 0x1a5   : > { %9631 = vst [vmem:[#allocation11_spill] sm:$0xff] %v8266_v50 }
 0x1a6   : > { %v1404_v61 = vpop.f32.mrf.mxu2 }
 0x1a7   : > { %v1499_v23 = vadd.f32 %v1404_v61, %v1042_v25  ;;  %v4251_v25 = vrot.slane %v7360_v45, 3 }
 0x1a8   : > { %v950_v41 = vpop.f32.mrf.mxu1  ;;  %v8273_v22 = vpop.f32.mrf.mxu3 }
 0x1a9   : > { %v1955_v16 = vadd.f32 %v8221_v0, %v1499_v23  ;;  %v1043_v13 = vadd.f32 %v950_v41, %v7821_v12  ;;  %v3706_v12 = vrot.slane %v3704_v2, 3  ;;  %v7361_v2 = vld [vmem:[%s7596_s6 + $0x30] sm:$0xff] }
 0x1ab   : > { %v2453_v46 = vpop.f32.mrf.mxu0  ;;  %2859 = vmatmul.bf16.gmra.mxu1 %v2747_v35  ;;  %3315 = vmatmul.bf16.gmra.mxu2 %v3203_v18  ;;  %v8275_v63 = vadd.f32 %v2450_v30, %v1955_v16  ;;  %v2749_v35 = vsel %vm2742_vm4, %v2746_v27, %v2748_v32  ;;  %v3707_v18 = vor.u32 %v3706_v12, %v3703_v37 }
 0x1ad   : > { %9632 = vst [vmem:[#allocation12_spill] sm:$0xff] %v8275_v63  ;;  %3915 = vmatmul.bf16.gmra.mxu3 %v3699_v59  ;;  %v3708_v27 = vsel %vm3655_vm3, %v3698_v21, %v3707_v18 }
 0x1ae   : > { %4362 = vmatmul.bf16.gmra.mxu0 %v4250_v5  ;;  %v1407_v51 = vpop.f32.mrf.mxu2  ;;  %v4252_v5 = vsel %vm4245_vm5, %v4249_v29, %v4251_v25  ;;  %v3710_v29 = vshrl.u32 %v7337_v62, 16  ;;  %v7338_v62 = vld [vmem:[%s7596_s6 + $0x48] sm:$0xff] }
 0x1af   : > { %v1500_v10 = vadd.f32 %v1407_v51, %v1043_v13 }
 0x1b0   : > { %v952_v0 = vpop.f32.mrf.mxu1  ;;  %v8284_v43 = vpop.f32.mrf.mxu3  ;;  %v3712_v37 = vrot.slane %v3710_v29, 2 }
 0x1b1   : > { %v1956_v38 = vadd.f32 %v8242_v8, %v1500_v10  ;;  %v1044_v49 = vadd.f32 %v952_v0, %v7831_v26  ;;  %v3205_v8 = vsel %vm2742_vm4, %v3202_v31, %v3204_v6  ;;  %v7283_v10 = vld [vmem:[%s7596_s6 + $0x28] sm:$0xff]  ;;  %v7309_v0 = vld [vmem:[%s7596_s6 + $0x30] sm:$0xff] }
 0x1b2   : > { %v2750_v21 = vrot.slane %v7283_v10, 2  ;;  %v3206_v45 = vrot.slane %v7309_v0, 2  ;;  %v3722_v10 = vshll.u32 %v7338_v62, 16 }
 0x1b3   : > { %v2455_v55 = vpop.f32.mrf.mxu0  ;;  %v8286_v30 = vadd.f32 %v2453_v46, %v1956_v38 }
 0x1b5   : > { %9633 = vst [vmem:[#allocation13_spill] sm:$0xff] %v8286_v30 }
 0x1b6   : > { %v1409_v61 = vpop.f32.mrf.mxu2 }
 0x1b7   : > { %v1501_v23 = vadd.f32 %v1409_v61, %v1044_v49  ;;  %v4253_v49 = vrot.slane %v7361_v2, 3 }
 0x1b8   : > { %v955_v41 = vpop.f32.mrf.mxu1  ;;  %v8293_v59 = vpop.f32.mrf.mxu3 }
 0x1b9   : > { %v1957_v16 = vadd.f32 %v8253_v14, %v1501_v23  ;;  %v1045_v31 = vadd.f32 %v955_v41, %v7854_v44  ;;  %v3715_v44 = vrot.slane %v3713_v4, 3  ;;  %v7362_v4 = vld [vmem:[%s7596_s6 + $0x38] sm:$0xff] }
 0x1bb   : > { %v2458_v46 = vpop.f32.mrf.mxu0  ;;  %2864 = vmatmul.bf16.gmra.mxu1 %v2749_v35  ;;  %3320 = vmatmul.bf16.gmra.mxu2 %v3205_v8  ;;  %v8295_v26 = vadd.f32 %v2455_v55, %v1957_v16  ;;  %v2751_v35 = vsel %vm2742_vm4, %v2748_v32, %v2750_v21  ;;  %v3716_v8 = vor.u32 %v3715_v44, %v3712_v37 }
 0x1bd   : > { %9634 = vst [vmem:[#allocation14_spill] sm:$0xff] %v8295_v26  ;;  %3920 = vmatmul.bf16.gmra.mxu3 %v3708_v27  ;;  %v3717_v32 = vsel %vm3655_vm3, %v3707_v18, %v3716_v8 }
 0x1be   : > { %4367 = vmatmul.bf16.gmra.mxu0 %v4252_v5  ;;  %v1412_v13 = vpop.f32.mrf.mxu2  ;;  %v4254_v5 = vsel %vm4245_vm5, %v4251_v25, %v4253_v49  ;;  %v3719_v25 = vshrl.u32 %v7338_v62, 16  ;;  %v7339_v62 = vld [vmem:[%s7596_s6 + $0x50] sm:$0xff] }
 0x1bf   : > { %v1502_v51 = vadd.f32 %v1412_v13, %v1045_v31 }
 0x1c0   : > { %v957_v14 = vpop.f32.mrf.mxu1  ;;  %v8304_v38 = vpop.f32.mrf.mxu3  ;;  %v3721_v37 = vrot.slane %v3719_v25, 2 }
 0x1c1   : > { %v1958_v15 = vadd.f32 %v8264_v42, %v1502_v51  ;;  %v1046_v12 = vadd.f32 %v957_v14, %v7867_v1  ;;  %v3207_v42 = vsel %vm2742_vm4, %v3204_v6, %v3206_v45  ;;  %v7284_v51 = vld [vmem:[%s7596_s6 + $0x30] sm:$0xff]  ;;  %v7310_v14 = vld [vmem:[%s7596_s6 + $0x38] sm:$0xff] }
 0x1c2   : > { %v2752_v18 = vrot.slane %v7284_v51, 2  ;;  %v3208_v2 = vrot.slane %v7310_v14, 2  ;;  %v3731_v51 = vshll.u32 %v7339_v62, 16 }
 0x1c3   : > { %v2460_v54 = vpop.f32.mrf.mxu0  ;;  %v8306_v55 = vadd.f32 %v2458_v46, %v1958_v15 }
 0x1c5   : > { %9635 = vst [vmem:[#allocation15_spill] sm:$0xff] %v8306_v55  ;;  %v8539_v55 = vld [vmem:[%s7596_s6 + $0x60] sm:$0xff] }
 0x1c6   : > { %v1414_v61 = vpop.f32.mrf.mxu2 }
 0x1c7   : > { %v1503_v23 = vadd.f32 %v1414_v61, %v1046_v12  ;;  %v4255_v12 = vrot.slane %v7362_v4, 3  ;;  %v3733_v4 = vrot.slane %v3731_v51, 3 }
 0x1c8   : > { %v960_v41 = vpop.f32.mrf.mxu1  ;;  %v8313_v27 = vpop.f32.mrf.mxu3 }
 0x1c9   : > { %v1959_v16 = vadd.f32 %v8273_v22, %v1503_v23  ;;  %v1047_v6 = vadd.f32 %v960_v41, %v7881_v19  ;;  %v3724_v19 = vrot.slane %v3722_v10, 3  ;;  %v8348_v10 = vld [vmem:[%s7596_s6 + $0x40] sm:$0xff] }
 0x1cb   : > { %v2463_v46 = vpop.f32.mrf.mxu0  ;;  %2869 = vmatmul.bf16.gmra.mxu1 %v2751_v35  ;;  %3325 = vmatmul.bf16.gmra.mxu2 %v3207_v42  ;;  %v8315_v1 = vadd.f32 %v2460_v54, %v1959_v16  ;;  %v2753_v35 = vsel %vm2742_vm4, %v2750_v21, %v2752_v18  ;;  %v3725_v42 = vor.u32 %v3724_v19, %v3721_v37 }
 0x1cd   : > { %9636 = vst [vmem:[#allocation16_spill] sm:$0xff] %v8315_v1  ;;  %3925 = vmatmul.bf16.gmra.mxu3 %v3717_v32  ;;  %v3726_v21 = vsel %vm3655_vm3, %v3716_v8, %v3725_v42 }
 0x1ce   : > { %4372 = vmatmul.bf16.gmra.mxu0 %v4254_v5  ;;  %v1417_v31 = vpop.f32.mrf.mxu2  ;;  %v4256_v5 = vsel %vm4245_vm5, %v4253_v49, %v4255_v12  ;;  %v8344_v49 = vld [vmem:[%s7596_s6 + $0x40] sm:$0xff] }
 0x1cf   : > { %v1504_v13 = vadd.f32 %v1417_v31, %v1047_v6 }
 0x1d0   : > { %v962_v22 = vpop.f32.mrf.mxu1  ;;  %v8324_v15 = vpop.f32.mrf.mxu3 }
 0x1d1   : > { %v1960_v0 = vadd.f32 %v8284_v43, %v1504_v13  ;;  %v1048_v44 = vadd.f32 %v962_v22, %v7891_v40  ;;  %v3209_v43 = vsel %vm2742_vm4, %v3206_v45, %v3208_v2  ;;  %v3728_v22 = vshrl.u32 %v7339_v62, 16 }
 0x1d3   : > { %v2465_v29 = vpop.f32.mrf.mxu0  ;;  %v8326_v54 = vadd.f32 %v2463_v46, %v1960_v0 }
 0x1d5   : > { %9637 = vst [vmem:[#allocation17_spill] sm:$0xff] %v8326_v54 }
 0x1d6   : > { %v1419_v61 = vpop.f32.mrf.mxu2 }
 0x1d7   : > { %v1505_v23 = vadd.f32 %v1419_v61, %v1048_v44  ;;  %v9619_v44 = vrot.slane %v8348_v10, 3 }
 0x1d8   : > { %v965_v41 = vpop.f32.mrf.mxu1  ;;  %v8333_v32 = vpop.f32.mrf.mxu3 }
 0x1d9   : > { %v1961_v16 = vadd.f32 %v8293_v59, %v1505_v23  ;;  %v1049_v45 = vadd.f32 %v965_v41, %v7911_v3  ;;  %v8341_v59 = vld [vmem:[%s7596_s6 + $0x38] sm:$0xff]  ;;  %v9620_v3 = vrot.slane %v8344_v49, 2  ;;  %v4592_v23 = vlaneseq }
 0x1da   : > { %v2754_v8 = vrot.slane %v8341_v59, 2 }
 0x1db   : > { %v2468_v46 = vpop.f32.mrf.mxu0  ;;  %2874 = vmatmul.bf16.gmra.mxu1 %v2753_v35  ;;  %3330 = vmatmul.bf16.gmra.mxu2 %v3209_v43  ;;  %v8335_v40 = vadd.f32 %v2465_v29, %v1961_v16  ;;  %v3730_v29 = vrot.slane %v3728_v22, 2  ;;  %v3211_v43 = vsel %vm2742_vm4, %v3208_v2, %v9620_v3  ;;  %v8378_v2 = vld [vmem:[%s7596_s6 + $0x40] sm:$0xff] }
 0x1dc   : > { %v2755_v35 = vsel %vm2742_vm4, %v2752_v18, %v2754_v8 }
 0x1dd   : > { %9638 = vst [vmem:[#allocation18_spill] sm:$0xff] %v8335_v40  ;;  %3930 = vmatmul.bf16.gmra.mxu3 %v3726_v21  ;;  %v8364_v16 = vor.u32 %v3733_v4, %v3730_v29  ;;  %v8372_v21 = vshrl.u32 %v4592_v23, 7  ;;  %v8386_v29 = vld [vmem:[%s7596_s6 + $0x48] sm:$0xff]  ;;  %v9642_v40 = vrot.slane %v8344_v49, 2 }
 0x1de   : > { %4377 = vmatmul.bf16.gmra.mxu0 %v4256_v5  ;;  %v1422_v6 = vpop.f32.mrf.mxu2  ;;  %v4258_v5 = vsel %vm4245_vm5, %v4255_v12, %v9619_v44  ;;  %v8390_v23 = vld [vmem:[%s7596_s6 + $0x48] sm:$0xff]  ;;  %v8410_v44 = vld [vmem:[%s7596_s6 + $0x50] sm:$0xff] }
 0x1df   : > { %v1506_v31 = vadd.f32 %v1422_v6, %v1049_v45  ;;  %v4632_v18 = vand.u32 65535, %v8372_v21  ;;  %v7340_v45 = vld [vmem:[%s7596_s6 + $0x58] sm:$0xff]  ;;  %v4633_v12 = vshrl.u32 %v8372_v21, 16 }
 0x1e0   : > { %v967_v13 = vpop.f32.mrf.mxu1  ;;  %v8350_v0 = vpop.f32.mrf.mxu3  ;;  %v3737_v22 = vshrl.u32 %v7340_v45, 16  ;;  %v3740_v51 = vshll.u32 %v7340_v45, 16 }
 0x1e1   : > { %v1962_v14 = vadd.f32 %v8304_v38, %v1506_v31  ;;  %v1050_v19 = vadd.f32 %v967_v13, %v7927_v39  ;;  %v4636_v31 = vmul.u32 58254, %v4632_v18  ;;  %v4635_v4 = vmul.u32 14564, %v4632_v18  ;;  %v8400_v18 = vld [vmem:[%s7596_s6 + $0x48] sm:$0xff] }
 0x1e2   : > { %v9645_v49 = vrot.slane %v8400_v18, 2 }
 0x1e3   : > { %v2470_v25 = vpop.f32.mrf.mxu0  ;;  %v8354_v37 = vadd.f32 %v2468_v46, %v1962_v14 }
 0x1e5   : > { %9639 = vst [vmem:[#allocation19_spill] sm:$0xff] %v8354_v37  ;;  %v9641_v37 = vrot.slane %v8386_v29, 2 }
 0x1e6   : > { %v1424_v61 = vpop.f32.mrf.mxu2 }
 0x1e7   : > { %v1507_v38 = vadd.f32 %v1424_v61, %v1050_v19  ;;  %v4637_v19 = vmul.u32 14564, %v4633_v12  ;;  %v4639_v61 = vshll.u32 %v4636_v31, 16  ;;  %v3213_v59 = vsel %vm2742_vm4, %v9642_v40, %v9641_v37 }
 0x1e8   : > { %v970_v41 = vpop.f32.mrf.mxu1  ;;  %v8374_v62 = vpop.f32.mrf.mxu3 }
 0x1e9   : > { %v1963_v39 = vadd.f32 %v8313_v27, %v1507_v38  ;;  %v3735_v27 = vsel %vm3655_vm3, %v3725_v42, %v8364_v16  ;;  %v1051_v6 = vadd.f32 %v970_v41, %v7804_v57  ;;  %v2756_v42 = vrot.slane %v8378_v2, 2 }
 0x1ea   : > { %v4641_v45 = vshll.u32 %v4637_v19, 16  ;;  %vm4643_vm6 = vc.u32 %v4635_v4, %v4639_v61 }
 0x1eb   : > { %v8367_v46 = vpop.f32.mrf.mxu0  ;;  %2879 = vmatmul.bf16.gmra.mxu1 %v2755_v35  ;;  %3335 = vmatmul.bf16.gmra.mxu2 %v3211_v43  ;;  %v8392_v57 = vadd.f32 %v2470_v25, %v1963_v39  ;;  %v3739_v43 = vrot.slane %v3737_v22, 2  ;;  %v9621_v25 = vmov 0   ;;  %v8441_v40 = vsel %vm2742_vm4, %v2756_v42, %v9645_v49 }
 0x1ec   : > { %v4644_v39 = vsel %vm4643_vm6, 1, %v9621_v25  ;;  %v9646_v49 = vmov 0  }
 0x1ed   : > { %3935 = vmatmul.bf16.gmra.mxu3 %v3735_v27  ;;  %9640 = vst [vmem:[#allocation20_spill] sm:$0xff] %v8392_v57  ;;  %v3742_v27 = vrot.slane %v3740_v51, 3  ;;  %v4640_v51 = vshrl.u32 %v4636_v31, 16  ;;  %v2757_v57 = vsel %vm2742_vm4, %v2754_v8, %v2756_v42  ;;  %v4642_v31 = vshrl.u32 %v4637_v19, 16 }
 0x1ee   : > { %4382 = vmatmul.bf16.gmra.mxu0 %v4258_v5  ;;  %v1427_v13 = vpop.f32.mrf.mxu2  ;;  %v4638_v5 = vmul.u32 58254, %v4633_v12  ;;  %v9643_v8 = vrot.slane %v8390_v23, 3 }
 0x1ef   : > { %v1508_v14 = vadd.f32 %v1427_v13, %v1051_v6  ;;  %v4645_v13 = vadd.s32 %v4639_v61, %v4635_v4 }
 0x1f0   : > { %v972_v38 = vpop.f32.mrf.mxu1  ;;  %v8397_v6 = vpop.f32.mrf.mxu3 }
 0x1f1   : > { %v1964_v41 = vadd.f32 %v8324_v15, %v1508_v14  ;;  %v8405_v15 = vadd.s32 8, %v8372_v21  ;;  %v1052_v22 = vadd.f32 %v972_v38, %v7817_v7  ;;  %v4646_v14 = vadd.s32 %v4644_v39, %v4638_v5  ;;  %v8420_v38 = vld [vmem:[%s7596_s6 + $0x50] sm:$0xff] }
 0x1f2   : > { %vm4647_vm7 = vc.u32 %v4645_v13, %v4641_v45  ;;  %v8422_v5 = vor.u32 %v3742_v27, %v3739_v43  ;;  %v9644_v7 = vrot.slane %v8348_v10, 3 }
 0x1f3   : > { %v8395_v35 = vpop.f32.mrf.mxu0  ;;  %v4648_v4 = vsel %vm4647_vm7, 1, %v9621_v25  ;;  %v4661_v61 = vand.u32 65535, %v8405_v15  ;;  %v4662_v3 = vshrl.u32 %v8405_v15, 16 }
 0x1f4   : > { %v4650_v45 = vadd.s32 %v4648_v4, %v4646_v14  ;;  %v4260_v54 = vsel %vm4245_vm5, %v9644_v7, %v9643_v8  ;;  %v8450_v7 = vadd.s32 16, %v8372_v21  ;;  %v7341_v8 = vld [vmem:[%s7596_s6 + $0x60] sm:$0xff] }
 0x1f5   : > { %v4664_v39 = vmul.u32 14564, %v4661_v61  ;;  %v4665_v25 = vmul.u32 58254, %v4661_v61  ;;  %v4666_v27 = vmul.u32 14564, %v4662_v3  ;;  %v4667_v14 = vmul.u32 58254, %v4662_v3 }
 0x1f6   : > { %v1429_v2 = vpop.f32.mrf.mxu2  ;;  %v4651_v43 = vadd.s32 %v4650_v45, %v4640_v51  ;;  %v8454_v45 = vld [vmem:[%s7596_s6 + $0x50] sm:$0xff] }
 0x1f7   : > { %v1509_v13 = vadd.f32 %v1429_v2, %v1052_v22  ;;  %v4668_v4 = vshll.u32 %v4665_v25, 16  ;;  %v4670_v3 = vshll.u32 %v4666_v27, 16  ;;  %v4671_v1 = vshrl.u32 %v4666_v27, 16 }
 0x1f8   : > { %v975_v12 = vpop.f32.mrf.mxu1  ;;  %v8444_v37 = vpop.f32.mrf.mxu3  ;;  %v4652_v51 = vadd.s32 %v4651_v43, %v4642_v31  ;;  %v4669_v31 = vshrl.u32 %v4665_v25, 16  ;;  %v9648_v25 = vrot.slane %v8410_v44, 2 }
 0x1f9   : > { %v1965_v2 = vadd.f32 %v8333_v32, %v1509_v13  ;;  %v3744_v32 = vsel %vm3655_vm3, %v8364_v16, %v8422_v5  ;;  %vm4672_vm8 = vc.u32 %v4664_v39, %v4668_v4  ;;  %v4674_v61 = vadd.s32 %v4668_v4, %v4664_v39  ;;  %v8466_v4 = vld [vmem:[%s7596_s6 + $0x58] sm:$0xff] }
 0x1fa   : > { %v1053_v42 = vadd.f32 %v975_v12, %v7828_v20  ;;  %v4653_v13 = vshrl.u32 %v4652_v51, 4  ;;  %v4673_v10 = vsel %vm4672_vm8, 1, %v9646_v49  ;;  %v8459_v16 = vadd.f32 %v8367_v46, %v1964_v41 }
 0x1fb   : > { %v8435_v19 = vpop.f32.mrf.mxu0  ;;  %2884 = vmatmul.bf16.gmra.mxu1 %v2757_v57  ;;  %3340 = vmatmul.bf16.gmra.mxu2 %v3213_v59  ;;  %v8462_v57 = vld [vmem:[%s7596_s6 + $0x58] sm:$0xff]  ;;  %v4675_v59 = vadd.s32 %v4673_v10, %v4667_v14  ;;  %vm4676_vm9 = vc.u32 %v4674_v61, %v4670_v3  ;;  %v4690_v39 = vand.u32 65535, %v8450_v7  ;;  %v3749_v12 = vshll.u32 %v7341_v8, 16 }
 0x1fc   : > { %9647 = vst [vmem:[#allocation21_spill] sm:$0xff] %v8459_v16  ;;  %v4654_v20 = vmul.u32 18, %v4653_v13  ;;  %v4677_v51 = vsel %vm4676_vm9, 1, %v9646_v49  ;;  %v4691_v41 = vshrl.u32 %v8450_v7, 16  ;;  %v9649_v14 = vrot.slane %v8386_v29, 2 }
 0x1fd   : > { %3940 = vmatmul.bf16.gmra.mxu3 %v3744_v32  ;;  %v4679_v46 = vadd.s32 %v4677_v51, %v4675_v59  ;;  %v9650_v3 = vrot.slane %v8420_v38, 3  ;;  %v9651_v61 = vrot.slane %v8390_v23, 3  ;;  %v9675_v26 = vrot.slane %v8466_v4, 3 }
 0x1fe   : > { %4387 = vmatmul.bf16.gmra.mxu0 %v4260_v54  ;;  %v1432_v43 = vpop.f32.mrf.mxu2  ;;  %v3746_v54 = vshrl.u32 %v7341_v8, 16  ;;  %v3215_v10 = vsel %vm2742_vm4, %v9649_v14, %v9648_v25  ;;  %v8482_v27 = vsub.s32 %v8372_v21, %v4654_v20  ;;  %v3751_v14 = vrot.slane %v3749_v12, 3  ;;  %v8508_v12 = vld [vmem:[%s7596_s6 + $0x58] sm:$0xff] }
 0x1ff   : > { %v1510_v22 = vadd.f32 %v1432_v43, %v1053_v42  ;;  %v4262_v13 = vsel %vm4245_vm5, %v9651_v61, %v9650_v3  ;;  %v2760_v42 = vrot.slane %v8454_v45, 2  ;;  %v4680_v59 = vadd.s32 %v4679_v46, %v4669_v31 }
 0x200   : > { %v977_v16 = vpop.f32.mrf.mxu1  ;;  %v4694_v43 = vmul.u32 58254, %v4690_v39  ;;  %v8490_v51 = vpop.f32.mrf.mxu3  ;;  %v3748_v25 = vrot.slane %v3746_v54, 2  ;;  %v4693_v45 = vmul.u32 14564, %v4690_v39  ;;  %v4695_v61 = vmul.u32 14564, %v4691_v41 }
 0x201   : > { %v8485_v32 = vadd.f32 %v8350_v0, %v1510_v22  ;;  %v1054_v20 = vadd.f32 %v977_v16, %v7847_v36  ;;  %v4681_v3 = vadd.s32 %v4680_v59, %v4671_v1  ;;  %vm5673_vm10 = vcmp.ne.s32.totalorder %v8482_v27, 0 }
 0x202   : > { %v4697_v0 = vshll.u32 %v4694_v43, 16  ;;  %v4696_v22 = vmul.u32 58254, %v4691_v41  ;;  %v8496_v31 = vadd.s32 24, %v8372_v21  ;;  %v8499_v46 = vadd.f32 %v8395_v35, %v1965_v2  ;;  %v8511_v35 = vld [vmem:[%s7596_s6 + $0x60] sm:$0xff] }
 0x203   : > { %v8487_v8 = vpop.f32.mrf.mxu0  ;;  %vm5709_vm11 = vcmp.lt.s32.totalorder %v8482_v27, 0  ;;  %v8503_v54 = vadd.s32 18, %v8482_v27  ;;  %v4682_v39 = vshrl.u32 %v4681_v3, 4  ;;  %v4699_v36 = vshll.u32 %v4695_v61, 16 }
 0x204   : > { %9652 = vst [vmem:[#allocation22_spill] sm:$0xff] %v8487_v8  ;;  %v8505_v16 = vor.u32 %v3751_v14, %v3748_v25  ;;  %v4698_v59 = vshrl.u32 %v4694_v43, 16  ;;  %vm4701_vm12 = vc.u32 %v4693_v45, %v4697_v0  ;;  %v4703_v41 = vadd.s32 %v4697_v0, %v4693_v45  ;;  %vm8519_vm13 = vmand %vm5709_vm11, %vm5673_vm10 }
 0x205   : > { %9653 = vst [vmem:[#allocation23_spill] sm:$0xff] %v8499_v46  ;;  %v4683_v29 = vmul.u32 18, %v4682_v39  ;;  %v4702_v2 = vsel %vm4701_vm12, 1, %v9646_v49  ;;  %v4719_v8 = vand.u32 65535, %v8496_v31  ;;  %v4720_v45 = vshrl.u32 %v8496_v31, 16 }
 0x206   : > { %v1434_v1 = vpop.f32.mrf.mxu2  ;;  %v4704_v14 = vadd.s32 %v4702_v2, %v4696_v22  ;;  %vm4705_vm14 = vc.u32 %v4703_v41, %v4699_v36  ;;  %v9658_v0 = vrot.slane %v8400_v18, 2  ;;  %v9659_v36 = vrot.slane %v8462_v57, 2 }
 0x207   : > { %v1511_v23 = vadd.f32 %v1434_v1, %v1054_v20  ;;  %v8536_v1 = vsub.s32 %v8405_v15, %v4683_v29  ;;  %v4706_v22 = vsel %vm4705_vm14, 1, %v9646_v49  ;;  %v9661_v18 = vrot.slane %v8466_v4, 3 }
 0x208   : > { %v980_v46 = vpop.f32.mrf.mxu1  ;;  %v8533_v39 = vsel %vm2742_vm4, %v9658_v0, %v2760_v42  ;;  %v9662_v41 = vrot.slane %v8420_v38, 3  ;;  %v8556_v15 = vpop.f32.mrf.mxu3  ;;  %v4700_v29 = vshrl.u32 %v4695_v61, 16  ;;  %v4708_v0 = vadd.s32 %v4706_v22, %v4704_v14 }
 0x209   : > { %v8526_v20 = vadd.f32 %v8374_v62, %v1511_v23  ;;  %v9660_v62 = vrot.slane %v8410_v44, 2  ;;  %v1055_v43 = vadd.f32 %v980_v46, %v7864_v56  ;;  %v3753_v38 = vsel %vm3655_vm3, %v8422_v5, %v8505_v16 }
 0x20a   : > { %v8554_v2 = vsel %vm4245_vm5, %v9662_v41, %v9661_v18  ;;  %v9663_v61 = vrot.slane %v8508_v12, 2  ;;  %v4709_v56 = vadd.s32 %v4708_v0, %v4698_v59  ;;  %v8574_v46 = vmul.u32 14564, %v4720_v45 }
 0x20b   : > { %9656 = vst [vmem:[#allocation24_spill] sm:$0xff] %v8526_v20  ;;  %v8528_v3 = vpop.f32.mrf.mxu0  ;;  %v8547_v23 = vsel %vm2742_vm4, %v9660_v62, %v9659_v36  ;;  %2889 = vmatmul.bf16.gmra.mxu1 %v8441_v40  ;;  %3345 = vmatmul.bf16.gmra.mxu2 %v3215_v10  ;;  %v7342_v40 = vld [vmem:[%s7596_s6 + $0x68] sm:$0xff]  ;;  %v4723_v10 = vmul.u32 58254, %v4719_v8  ;;  %vm5674_vm15 = vcmp.ne.s32.totalorder %v8536_v1, 0  ;;  %v4722_v62 = vmul.u32 14564, %v4719_v8 }
 0x20c   : > { %9657 = vst [vmem:[#allocation25_spill] sm:$0xff] %v8528_v3  ;;  %v8571_v14 = vsel %vm2742_vm4, %v2760_v42, %v9663_v61  ;;  %v8580_v5 = vadd.f32 %v8435_v19, %v8485_v32  ;;  %v4710_v18 = vadd.s32 %v4709_v56, %v4700_v29  ;;  %v3755_v41 = vshrl.u32 %v7342_v40, 16 }
 0x20d   : > { %v3758_v44 = vshll.u32 %v7342_v40, 16  ;;  %v8583_v42 = vadd.s32 32, %v8372_v21  ;;  %3945 = vmatmul.bf16.gmra.mxu3 %v3753_v38  ;;  %v4725_v0 = vmul.u32 58254, %v4720_v45  ;;  %v4726_v61 = vshll.u32 %v4723_v10, 16 }
 0x20e   : > { %4392 = vmatmul.bf16.gmra.mxu0 %v4262_v13  ;;  %9664 = vst [vmem:[#allocation26_spill] sm:$0xff] %v8580_v5  ;;  %v1437_v13 = vpop.f32.mrf.mxu2  ;;  %v4728_v36 = vshll.u32 %v8574_v46, 16  ;;  %vm5710_vm0 = vcmp.lt.s32.totalorder %v8536_v1, 0  ;;  %v4711_v8 = vshrl.u32 %v4710_v18, 4  ;;  %v3757_v22 = vrot.slane %v3755_v41, 2 }
 0x20f   : > { %v1512_v59 = vadd.f32 %v1437_v13, %v1055_v43  ;;  %v3760_v19 = vrot.slane %v3758_v44, 3  ;;  %v8593_v56 = vadd.s32 18, %v8536_v1  ;;  %vm4730_vm1 = vc.u32 %v4722_v62, %v4726_v61  ;;  %vm8615_vm6 = vmand %vm5710_vm0, %vm5674_vm15 }
 0x210   : > { %v982_v3 = vpop.f32.mrf.mxu1  ;;  %v4732_v43 = vadd.s32 %v4726_v61, %v4722_v62  ;;  %v8595_v45 = vpop.f32.mrf.mxu3  ;;  %v4712_v38 = vmul.u32 18, %v4711_v8  ;;  %v4727_v40 = vshrl.u32 %v4723_v10, 16  ;;  %v4731_v13 = vsel %vm4730_vm1, 1, %v9646_v49  ;;  %v9667_v8 = vld [vmem:[#allocation3_spill] sm:$0xff] }
 0x211   : > { %v8588_v32 = vadd.f32 %v8397_v6, %v1512_v59  ;;  %v4748_v18 = vand.u32 65535, %v8583_v42  ;;  %v4729_v44 = vshrl.u32 %v8574_v46, 16  ;;  %v4733_v41 = vadd.s32 %v4731_v13, %v4725_v0  ;;  %v8636_v13 = vld [vmem:[%s7596_s6 + $0x60] sm:$0xff] }
 0x212   : > { %vm4734_vm2 = vc.u32 %v4732_v43, %v4728_v36  ;;  %v4749_v6 = vshrl.u32 %v8583_v42, 16  ;;  %v8602_v59 = vsub.s32 %v8450_v7, %v4712_v38  ;;  %v8604_v62 = vor.u32 %v3760_v19, %v3757_v22 }
 0x213   : > { %9665 = vst [vmem:[#allocation27_spill] sm:$0xff] %v8588_v32  ;;  %v8590_v29 = vpop.f32.mrf.mxu0  ;;  %v4735_v61 = vsel %vm4734_vm2, 1, %v9646_v49  ;;  %v8608_v10 = vadd.s32 40, %v8372_v21  ;;  %v8619_v7 = vmul.u32 58254, %v4748_v18  ;;  %v9670_v19 = vrot.slane %v8511_v35, 2 }
 0x214   : > { %9666 = vst [vmem:[#allocation28_spill] sm:$0xff] %v8590_v29  ;;  %v1056_v29 = vadd.f32 %v982_v3, %v9667_v8  ;;  %v4737_v46 = vadd.s32 %v4735_v61, %v4733_v41  ;;  %v8621_v22 = vmul.u32 14564, %v4749_v6  ;;  %v9671_v43 = vrot.slane %v8462_v57, 2  ;;  %v8639_v41 = vld [vmem:[%s7596_s6 + $0x68] sm:$0xff] }
 0x215   : > { %vm5675_vm7 = vcmp.ne.s32.totalorder %v8602_v59, 0  ;;  %vm5711_vm8 = vcmp.lt.s32.totalorder %v8602_v59, 0  ;;  %v8633_v38 = vadd.s32 18, %v8602_v59  ;;  %v4751_v32 = vmul.u32 14564, %v4748_v18  ;;  %v8661_v18 = vld [vmem:[%s7596_s6 + $0x68] sm:$0xff] }
 0x216   : > { %v1439_v0 = vpop.f32.mrf.mxu2  ;;  %v8628_v3 = vsel %vm2742_vm4, %v9671_v43, %v9670_v19  ;;  %vm8641_vm9 = vmand %vm5711_vm8, %vm5675_vm7  ;;  %v4738_v57 = vadd.s32 %v4737_v46, %v4727_v40  ;;  %v4755_v19 = vshll.u32 %v8619_v7, 16  ;;  %v5818_v20 = vsel %vm8615_vm6, %v8593_v56, %v8536_v1 }
 0x217   : > { %v1513_v61 = vadd.f32 %v1439_v0, %v1056_v29  ;;  %v9674_v5 = vrot.slane %v8539_v55, 3  ;;  %v3762_v40 = vsel %vm3655_vm3, %v8505_v16, %v8604_v62  ;;  %v4777_v46 = vand.u32 65535, %v8608_v10 }
 0x218   : > { %v2855_v43 = vpop.f32.mrf.mxu1  ;;  %v4739_v1 = vadd.s32 %v4738_v57, %v4729_v44  ;;  %v4754_v56 = vmul.u32 58254, %v4749_v6  ;;  %v4757_v30 = vshll.u32 %v8621_v22, 16  ;;  %v8672_v4 = vpop.f32.mrf.mxu3  ;;  %vm4759_vm10 = vc.u32 %v4751_v32, %v4755_v19  ;;  %v9677_v57 = vld [vmem:[#allocation4_spill] sm:$0xff] }
 0x219   : > { %v8655_v29 = vsel %vm4245_vm5, %v9675_v26, %v9674_v5  ;;  %v8665_v0 = vadd.f32 %v8444_v37, %v1513_v61  ;;  %v4756_v37 = vshrl.u32 %v8619_v7, 16  ;;  %v4761_v6 = vadd.s32 %v4755_v19, %v4751_v32  ;;  %v7343_v32 = vld [vmem:[%s7596_s6 + $0x70] sm:$0xff] }
 0x21a   : > { %v4740_v44 = vshrl.u32 %v4739_v1, 4  ;;  %v4778_v61 = vshrl.u32 %v8608_v10, 16  ;;  %v2981_v26 = vadd.f32 %v2855_v43, %v9677_v57  ;;  %v9678_v5 = vsel %vm8519_vm13, %v8503_v54, %v8482_v27 }
 0x21b   : > { %9676 = vst [vmem:[#allocation3_spill] sm:$0xff] %v8665_v0  ;;  %v4358_v36 = vpop.f32.mrf.mxu0  ;;  %2894 = vmatmul.bf16.gmra.mxu1 %v8533_v39  ;;  %3350 = vmatmul.bf16.gmra.mxu2 %v8547_v23  ;;  %vm8687_vm11 = vcmp.lt.s32.totalorder %v9678_v5, 16  ;;  %v4760_v23 = vsel %vm4759_vm10, 1, %v9646_v49  ;;  %v8694_v19 = vmul.u32 58254, %v4777_v46  ;;  %vm4763_vm12 = vc.u32 %v4761_v6, %v4757_v30 }
 0x21c   : > { %v4741_v1 = vmul.u32 18, %v4740_v44  ;;  %v4762_v43 = vadd.s32 %v4760_v23, %v4754_v56  ;;  %v4764_v57 = vsel %vm4763_vm12, 1, %v9646_v49  ;;  %v3764_v27 = vshrl.u32 %v7343_v32, 16 }
 0x21d   : > { %v3767_v54 = vshll.u32 %v7343_v32, 16  ;;  %v4780_v5 = vmul.u32 14564, %v4777_v46  ;;  %3950 = vmatmul.bf16.gmra.mxu3 %v3762_v40  ;;  %v4784_v63 = vshll.u32 %v8694_v19, 16  ;;  %v9681_v56 = vrot.slane %v8636_v13, 2 }
 0x21e   : > { %4397 = vmatmul.bf16.gmra.mxu0 %v8554_v2  ;;  %v8696_v2 = vmul.u32 14564, %v4778_v61  ;;  %v3311_v25 = vpop.f32.mrf.mxu2  ;;  %v8700_v39 = vsub.s32 %v8496_v31, %v4741_v1  ;;  %v4766_v0 = vadd.s32 %v4764_v57, %v4762_v43  ;;  %v9682_v30 = vrot.slane %v8508_v12, 2 }
 0x21f   : > { %v3437_v16 = vadd.f32 %v3311_v25, %v2981_v26  ;;  %v9683_v6 = vrot.slane %v8639_v41, 2  ;;  %v9684_v46 = vrot.slane %v8511_v35, 2  ;;  %v4758_v31 = vshrl.u32 %v8621_v22, 16 }
 0x220   : > { %v2857_v50 = vpop.f32.mrf.mxu1  ;;  %v8708_v44 = vsel %vm2742_vm4, %v9682_v30, %v9681_v56  ;;  %v4783_v26 = vmul.u32 58254, %v4778_v61  ;;  %v3766_v1 = vrot.slane %v3764_v27, 2  ;;  %v3769_v43 = vrot.slane %v3767_v54, 3  ;;  %v8726_v35 = vpop.f32.mrf.mxu3 }
 0x221   : > { %v8715_v40 = vsel %vm2742_vm4, %v9684_v46, %v9683_v6  ;;  %v4027_v23 = vadd.f32 %v8490_v51, %v3437_v16  ;;  %v4786_v12 = vshll.u32 %v8696_v2, 16  ;;  %vm8720_vm13 = vcmp.lt.s32.totalorder %v5818_v20, 16  ;;  %v9689_v6 = vld [vmem:[#allocation5_spill] sm:$0xff] }
 0x222   : > { %vm5676_vm14 = vcmp.ne.s32.totalorder %v8700_v39, 0  ;;  %vm5712_vm15 = vcmp.lt.s32.totalorder %v8700_v39, 0  ;;  %v9687_v22 = vrot.slane %v8661_v18, 3  ;;  %v9688_v61 = vrot.slane %v8539_v55, 3 }
 0x223   : > { %v4360_v32 = vpop.f32.mrf.mxu0  ;;  %v4767_v16 = vadd.s32 %v4766_v0, %v4756_v37  ;;  %v8735_v57 = vadd.f32 %v4358_v36, %v4027_v23  ;;  %vm4788_vm0 = vc.u32 %v4780_v5, %v4784_v63  ;;  %v4790_v20 = vadd.s32 %v4784_v63, %v4780_v5  ;;  %vm8746_vm1 = vmand %vm5712_vm15, %vm5676_vm14  ;;  %v8755_v23 = vld [vmem:[%s7596_s6 + $0x68] sm:$0xff] }
 0x224   : > { %v8733_v51 = vsel %vm4245_vm5, %v9688_v61, %v9687_v22  ;;  %v8738_v27 = vadd.s32 48, %v8372_v21  ;;  %v8741_v54 = vadd.s32 18, %v8700_v39  ;;  %v4785_v30 = vshrl.u32 %v8694_v19, 16  ;;  %v8758_v22 = vld [vmem:[%s7596_s6 + $0x70] sm:$0xff] }
 0x225   : > { %v4768_v56 = vadd.s32 %v4767_v16, %v4758_v31  ;;  %v4789_v55 = vsel %vm4788_vm0, 1, %v9646_v49  ;;  %v2982_v46 = vadd.f32 %v2857_v50, %v9689_v6  ;;  %v8750_v63 = vor.u32 %v3769_v43, %v3766_v1 }
 0x226   : > { %v4791_v36 = vadd.s32 %v4789_v55, %v4783_v26  ;;  %vm4792_vm2 = vc.u32 %v4790_v20, %v4786_v12  ;;  %v3313_v37 = vpop.f32.mrf.mxu2  ;;  %v4787_v31 = vshrl.u32 %v8696_v2, 16  ;;  %v4806_v50 = vand.u32 65535, %v8738_v27  ;;  %v8773_v55 = vld [vmem:[%s7596_s6 + $0x70] sm:$0xff] }
 0x227   : > { %v4769_v5 = vshrl.u32 %v4768_v56, 4  ;;  %v4793_v19 = vsel %vm4792_vm2, 1, %v9646_v49  ;;  %v5889_v1 = vsel %vm8687_vm11, %v8735_v57, 0.0  ;;  %v3438_v43 = vadd.f32 %v3313_v37, %v2982_v46 }
 0x228   : > { %v4795_v26 = vadd.s32 %v4793_v19, %v4791_v36  ;;  %v4807_v12 = vshrl.u32 %v8738_v27, 16  ;;  %v2860_v61 = vpop.f32.mrf.mxu1  ;;  %v5820_v2 = vsel %vm8746_vm1, %v8741_v54, %v8700_v39  ;;  %v2766_v20 = vrot.slane %v8755_v23, 2 }
 0x229   : > { %v4770_v16 = vmul.u32 18, %v4769_v5  ;;  %v3222_v56 = vrot.slane %v8758_v22, 2  ;;  %v4028_v7 = vadd.f32 %v8556_v15, %v3438_v43  ;;  %v3771_v46 = vsel %vm3655_vm3, %v8604_v62, %v8750_v63  ;;  %v8794_v5 = vpop.f32.mrf.mxu3 }
 0x22a   : > { %v4796_v36 = vadd.s32 %v4795_v26, %v4785_v30  ;;  %v8779_v37 = vmul.u32 58254, %v4806_v50  ;;  %v5967_v0 = vmul.f32 %v5889_v1, %v8735_v57  ;;  %v9692_v39 = vsel %vm8641_vm9, %v8633_v38, %v8602_v59 }
 0x22b   : > { %v4363_v6 = vpop.f32.mrf.mxu0  ;;  %vm8787_vm6 = vcmp.lt.s32.totalorder %v9692_v39, 16  ;;  %v8792_v15 = vsub.s32 %v8583_v42, %v4770_v16  ;;  %v4809_v62 = vmul.u32 14564, %v4806_v50  ;;  %v8797_v30 = vadd.s32 56, %v8372_v21  ;;  %2899 = vmatmul.bf16.gmra.mxu1 %v8571_v14  ;;  %3355 = vmatmul.bf16.gmra.mxu2 %v8628_v3 }
 0x22c   : > { %v4485_v19 = vadd.f32 %v4360_v32, %v4028_v7  ;;  %v2983_v43 = vadd.f32 %v2860_v61, %v7986_v24  ;;  %v4797_v59 = vadd.s32 %v4796_v36, %v4787_v31  ;;  %v8802_v38 = vmul.u32 14564, %v4807_v12 }
 0x22d   : > { %v9695_v24 = vrot.slane %v8636_v13, 2  ;;  %v9696_v42 = vrot.slane %v8639_v41, 2  ;;  %v4269_v8 = vrot.slane %v8773_v55, 3  ;;  %v4812_v32 = vmul.u32 58254, %v4807_v12  ;;  %v7344_v41 = vld [vmem:[%s7596_s6 + $0x78] sm:$0xff]  ;;  %3955 = vmatmul.bf16.gmra.mxu3 %v3771_v46 }
 0x22e   : > { %4402 = vmatmul.bf16.gmra.mxu0 %v8655_v29  ;;  %v5890_v29 = vsel %vm8720_vm13, %v4485_v19, 0.0  ;;  %v7386_v31 = vpack.c.bf16 %v4485_v19, %v8735_v57  ;;  %v4798_v50 = vshrl.u32 %v4797_v59, 4  ;;  %v4813_v13 = vshll.u32 %v8779_v37, 16  ;;  %v3316_v16 = vpop.f32.mrf.mxu2 }
 0x22f   : > { %v8815_v14 = vsel %vm2742_vm4, %v9695_v24, %v2766_v20  ;;  %v8822_v3 = vsel %vm2742_vm4, %v9696_v42, %v3222_v56  ;;  %v5925_v26 = vadd.f32 %v5890_v29, %v5889_v1  ;;  %v5968_v61 = vmul.f32 %v5890_v29, %v4485_v19 }
 0x230   : > { %vm5677_vm7 = vcmp.ne.s32.totalorder %v8792_v15, 0  ;;  %vm5713_vm8 = vcmp.lt.s32.totalorder %v8792_v15, 0  ;;  %7387 = vst [vmem:[%s8807_s20] sm:$0xff] %v7386_v31   ;;  %v3439_v7 = vadd.f32 %v3316_v16, %v2983_v43  ;;  %v5785_v12 = vadd.s32 18, %v8792_v15  ;;  %v2862_v39 = vpop.f32.mrf.mxu1 }
 0x231   : > { %v4799_v25 = vmul.u32 18, %v4798_v50  ;;  %v4815_v36 = vshll.u32 %v8802_v38, 16  ;;  %v6003_v57 = vadd.f32 %v5968_v61, %v5967_v0  ;;  %v4814_v59 = vshrl.u32 %v8779_v37, 16  ;;  %v8846_v0 = vpop.f32.mrf.mxu3  ;;  %vm8854_vm12 = vmand %vm5713_vm8, %vm5677_vm7 }
 0x232   : > { %vm4817_vm9 = vc.u32 %v4809_v62, %v4813_v13  ;;  %v4819_v1 = vadd.s32 %v4813_v13, %v4809_v62  ;;  %v4029_v19 = vadd.f32 %v8595_v45, %v3439_v7  ;;  %v4816_v43 = vshrl.u32 %v8802_v38, 16 }
 0x233   : > { %v4365_v24 = vpop.f32.mrf.mxu0  ;;  %v8838_v42 = vsub.s32 %v8608_v10, %v4799_v25  ;;  %v4818_v29 = vsel %vm4817_vm9, 1, %v9646_v49  ;;  %vm8842_vm10 = vcmp.lt.s32.totalorder %v5820_v2, 16  ;;  %v3773_v37 = vshrl.u32 %v7344_v41, 16 }
 0x234   : > { %v4820_v31 = vadd.s32 %v4818_v29, %v4812_v32  ;;  %vm4821_vm11 = vc.u32 %v4819_v1, %v4815_v36  ;;  %v3776_v62 = vshll.u32 %v7344_v41, 16  ;;  %v8848_v50 = vadd.f32 %v4363_v6, %v4029_v19  ;;  %v8881_v29 = vld [vmem:[%s7596_s6 + $0x70] sm:$0xff] }
 0x235   : > { %vm5678_vm13 = vcmp.ne.s32.totalorder %v8838_v42, 0  ;;  %vm5714_vm14 = vcmp.lt.s32.totalorder %v8838_v42, 0  ;;  %v8861_v10 = vadd.s32 18, %v8838_v42  ;;  %v4822_v2 = vsel %vm4821_vm11, 1, %v9646_v49 }
 0x236   : > { %v3775_v6 = vrot.slane %v3773_v37, 2  ;;  %v3778_v38 = vrot.slane %v3776_v62, 3  ;;  %v4835_v32 = vand.u32 65535, %v8797_v30  ;;  %v5891_v13 = vsel %vm8787_vm6, %v8848_v50, 0.0  ;;  %vm8869_vm15 = vmand %vm5714_vm14, %vm5678_vm13  ;;  %v3318_v1 = vpop.f32.mrf.mxu2 }
 0x237   : > { %v2984_v61 = vadd.f32 %v2862_v39, %v8001_v48  ;;  %v4824_v41 = vadd.s32 %v4822_v2, %v4820_v31  ;;  %v4836_v7 = vshrl.u32 %v8797_v30, 16  ;;  %v5926_v25 = vadd.f32 %v5925_v26, %v5891_v13 }
 0x238   : > { %v5969_v36 = vmul.f32 %v5891_v13, %v8848_v50  ;;  %v5821_v19 = vsel %vm8854_vm12, %v5785_v12, %v8792_v15  ;;  %v8878_v54 = vor.u32 %v3778_v38, %v3775_v6  ;;  %v4838_v37 = vmul.u32 14564, %v4835_v32  ;;  %v2865_v2 = vpop.f32.mrf.mxu1 }
 0x239   : > { %v3440_v48 = vadd.f32 %v3318_v1, %v2984_v61  ;;  %v4825_v39 = vadd.s32 %v4824_v41, %v4814_v59  ;;  %v4839_v62 = vmul.u32 58254, %v4835_v32  ;;  %v5822_v26 = vsel %vm8869_vm15, %v8861_v10, %v8838_v42  ;;  %v8897_v59 = vld [vmem:[%s7596_s6 + $0x78] sm:$0xff] }
 0x23a   : > { %v6004_v31 = vadd.f32 %v6003_v57, %v5969_v36  ;;  %v9703_v15 = vrot.slane %v8661_v18, 3  ;;  %v8894_v45 = vmul.u32 14564, %v4836_v7  ;;  %v4841_v32 = vmul.u32 58254, %v4836_v7  ;;  %v8905_v18 = vpop.f32.mrf.mxu3 }
 0x23b   : > { %v4030_v57 = vadd.f32 %v8672_v4, %v3440_v48  ;;  %v4368_v6 = vpop.f32.mrf.mxu0  ;;  %v4826_v38 = vadd.s32 %v4825_v39, %v4816_v43  ;;  %v4842_v13 = vshll.u32 %v4839_v62, 16  ;;  %v2985_v61 = vadd.f32 %v2865_v2, %v8014_v33  ;;  %v8913_v43 = vld [vmem:[%s7596_s6 + $0x78] sm:$0xff]  ;;  %2904 = vmatmul.bf16.gmra.mxu1 %v8708_v44  ;;  %3360 = vmatmul.bf16.gmra.mxu2 %v8715_v40  ;;  %v8922_v48 = vld [vmem:[%s7596_s6 + $0x80] sm:$0xff] }
 0x23c   : > { %v8892_v12 = vsel %vm4245_vm5, %v9703_v15, %v4269_v8  ;;  %vm8901_vm0 = vcmp.lt.s32.totalorder %v5821_v19, 16  ;;  %v3780_v10 = vsel %vm3655_vm3, %v8750_v63, %v8878_v54  ;;  %v4844_v16 = vshll.u32 %v8894_v45, 16 }
 0x23d   : > { %v2768_v4 = vrot.slane %v8881_v29, 2  ;;  %v4487_v41 = vadd.f32 %v4365_v24, %v4030_v57  ;;  %v4827_v33 = vshrl.u32 %v4826_v38, 4  ;;  %vm4846_vm1 = vc.u32 %v4838_v37, %v4842_v13  ;;  %3960 = vmatmul.bf16.gmra.mxu3 %v3780_v10 }
 0x23e   : > { %v4848_v7 = vadd.s32 %v4842_v13, %v4838_v37  ;;  %4407 = vmatmul.bf16.gmra.mxu0 %v8733_v51  ;;  %v4843_v36 = vshrl.u32 %v4839_v62, 16  ;;  %v4845_v63 = vshrl.u32 %v8894_v45, 16  ;;  %v4847_v1 = vsel %vm4846_vm1, 1, %v9646_v49  ;;  %v3321_v15 = vpop.f32.mrf.mxu2 }
 0x23f   : > { %v3224_v19 = vrot.slane %v8897_v59, 2  ;;  %v5892_v44 = vsel %vm8842_vm10, %v4487_v41, 0.0  ;;  %v7391_v40 = vpack.c.bf16 %v4487_v41, %v8848_v50  ;;  %v4828_v24 = vmul.u32 18, %v4827_v33 }
 0x240   : > { %v4849_v39 = vadd.s32 %v4847_v1, %v4841_v32  ;;  %v5927_v37 = vadd.f32 %v5926_v25, %v5892_v44  ;;  %v5970_v2 = vmul.f32 %v5892_v44, %v4487_v41  ;;  %vm4850_vm2 = vc.u32 %v4848_v7, %v4844_v16  ;;  %v2867_v25 = vpop.f32.mrf.mxu1 }
 0x241   : > { %v4271_v51 = vrot.slane %v8913_v43, 3  ;;  %7473 = vst [vmem:[%s8807_s20 + $0x8] sm:$0xff] %v7391_v40   ;;  %v3441_v62 = vadd.f32 %v3321_v15, %v2985_v61  ;;  %v4829_v45 = vsub.s32 %v8738_v27, %v4828_v24  ;;  %v4851_v57 = vsel %vm4850_vm2, 1, %v9646_v49 }
 0x242   : > { %v8936_v46 = vsel %vm2742_vm4, %v2766_v20, %v2768_v4  ;;  %v6005_v50 = vadd.f32 %v6004_v31, %v5970_v2  ;;  %v4853_v38 = vadd.s32 %v4851_v57, %v4849_v39  ;;  %v8939_v32 = vadd.s32 64, %v8372_v21  ;;  %v8954_v10 = vpop.f32.mrf.mxu3 }
 0x243   : > { %v3782_v13 = vshrl.u32 %v8922_v48, 16  ;;  %v4031_v27 = vadd.f32 %v8726_v35, %v3441_v62  ;;  %v4370_v61 = vpop.f32.mrf.mxu0  ;;  %vm5679_vm6 = vcmp.ne.s32.totalorder %v4829_v45, 0  ;;  %vm5715_vm7 = vcmp.lt.s32.totalorder %v4829_v45, 0 }
 0x244   : > { %v8948_v23 = vsel %vm2742_vm4, %v3222_v56, %v3224_v19  ;;  %vm8950_vm8 = vcmp.lt.s32.totalorder %v5822_v26, 16  ;;  %v4854_v31 = vadd.s32 %v4853_v38, %v4843_v36  ;;  %v8961_v35 = vsel %vm4245_vm5, %v4269_v8, %v4271_v51  ;;  %vm8966_vm9 = vmand %vm5715_vm7, %vm5679_vm6 }
 0x245   : > { %v4864_v16 = vand.u32 65535, %v8939_v32  ;;  %v4865_v22 = vshrl.u32 %v8939_v32, 16  ;;  %v4488_v56 = vadd.f32 %v4368_v6, %v4031_v27  ;;  %v2986_v26 = vadd.f32 %v2867_v25, %v8028_v52 }
 0x246   : > { %v5787_v41 = vadd.s32 18, %v4829_v45  ;;  %v3784_v33 = vrot.slane %v3782_v13, 2  ;;  %v4855_v36 = vadd.s32 %v4854_v31, %v4845_v63  ;;  %v3785_v55 = vshll.u32 %v8922_v48, 16  ;;  %v3323_v2 = vpop.f32.mrf.mxu2 }
 0x247   : > { %v4867_v1 = vmul.u32 14564, %v4864_v16  ;;  %v4868_v44 = vmul.u32 58254, %v4864_v16  ;;  %v5893_v8 = vsel %vm8901_vm0, %v4488_v56, 0.0  ;;  %v4869_v40 = vmul.u32 14564, %v4865_v22 }
 0x248   : > { %v4870_v24 = vmul.u32 58254, %v4865_v22  ;;  %v8974_v6 = vadd.s32 72, %v8372_v21  ;;  %v5928_v52 = vadd.f32 %v5927_v37, %v5893_v8  ;;  %v5971_v39 = vmul.f32 %v5893_v8, %v4488_v56  ;;  %v2870_v13 = vpop.f32.mrf.mxu1 }
 0x249   : > { %v4856_v15 = vshrl.u32 %v4855_v36, 4  ;;  %v4871_v62 = vshll.u32 %v4868_v44, 16  ;;  %v3442_v57 = vadd.f32 %v3323_v2, %v2986_v26  ;;  %v5823_v63 = vsel %vm8966_vm9, %v5787_v41, %v4829_v45 }
 0x24a   : > { %v4872_v25 = vshrl.u32 %v4868_v44, 16  ;;  %v4873_v38 = vshll.u32 %v4869_v40, 16  ;;  %v6006_v48 = vadd.f32 %v6005_v50, %v5971_v39  ;;  %v4874_v22 = vshrl.u32 %v4869_v40, 16  ;;  %v8985_v50 = vpop.f32.mrf.mxu3  ;;  %v8996_v40 = vld [vmem:[%s7596_s6 + $0x78] sm:$0xff] }
 0x24b   : > { %v4857_v42 = vmul.u32 18, %v4856_v15  ;;  %vm4875_vm10 = vc.u32 %v4867_v1, %v4871_v62  ;;  %v4877_v27 = vadd.s32 %v4871_v62, %v4867_v1  ;;  %v4032_v31 = vadd.f32 %v8794_v5, %v3442_v57  ;;  %v4373_v16 = vpop.f32.mrf.mxu0  ;;  %2909 = vmatmul.bf16.gmra.mxu1 %v8815_v14  ;;  %3365 = vmatmul.bf16.gmra.mxu2 %v8822_v3 }
 0x24c   : > { %v4876_v37 = vsel %vm4875_vm10, 1, %v9646_v49  ;;  %v3787_v8 = vrot.slane %v3785_v55, 3  ;;  %vm8980_vm11 = vcmp.lt.s32.totalorder %v5823_v63, 16  ;;  %v4893_v41 = vand.u32 65535, %v8974_v6  ;;  %v9012_v63 = vld [vmem:[%s7596_s6 + $0x80] sm:$0xff] }
 0x24d   : > { %v4858_v45 = vsub.s32 %v8797_v30, %v4857_v42  ;;  %v4878_v26 = vadd.s32 %v4876_v37, %v4870_v24  ;;  %vm4879_vm12 = vc.u32 %v4877_v27, %v4873_v38  ;;  %v4489_v7 = vadd.f32 %v4370_v61, %v4032_v31  ;;  %v9016_v27 = vld [vmem:[%s7596_s6 + $0x80] sm:$0xff] }
 0x24e   : > { %v4880_v5 = vsel %vm4879_vm12, 1, %v9646_v49  ;;  %v8991_v1 = vor.u32 %v3787_v8, %v3784_v33  ;;  %v4894_v44 = vshrl.u32 %v8974_v6, 16  ;;  %4412 = vmatmul.bf16.gmra.mxu0 %v8892_v12  ;;  %v2987_v61 = vadd.f32 %v2870_v13, %v8049_v9  ;;  %v3326_v2 = vpop.f32.mrf.mxu2 }
 0x24f   : > { %vm5680_vm13 = vcmp.ne.s32.totalorder %v4858_v45, 0  ;;  %vm5716_vm14 = vcmp.lt.s32.totalorder %v4858_v45, 0  ;;  %v5788_v30 = vadd.s32 18, %v4858_v45  ;;  %v4882_v55 = vadd.s32 %v4880_v5, %v4878_v26 }
 0x250   : > { %v5894_v14 = vsel %vm8950_vm8, %v4489_v7, 0.0  ;;  %v7396_v3 = vpack.c.bf16 %v4489_v7, %v4488_v56  ;;  %vm9001_vm15 = vmand %vm5716_vm14, %vm5680_vm13  ;;  %v3789_v12 = vsel %vm3655_vm3, %v8878_v54, %v8991_v1  ;;  %v4896_v62 = vmul.u32 14564, %v4893_v41  ;;  %v2872_v13 = vpop.f32.mrf.mxu1 }
 0x251   : > { %v5929_v24 = vadd.f32 %v5928_v52, %v5894_v14  ;;  %v5972_v39 = vmul.f32 %v5894_v14, %v4489_v7  ;;  %v4883_v15 = vadd.s32 %v4882_v55, %v4872_v25  ;;  %v3443_v20 = vadd.f32 %v3326_v2, %v2987_v61  ;;  %3965 = vmatmul.bf16.gmra.mxu3 %v3789_v12 }
 0x252   : > { %7474 = vst [vmem:[%s8807_s20 + $0x10] sm:$0xff] %v7396_v3   ;;  %v5824_v56 = vsel %vm9001_vm15, %v5788_v30, %v4858_v45  ;;  %v4897_v9 = vmul.u32 58254, %v4893_v41  ;;  %v4898_v57 = vmul.u32 14564, %v4894_v44  ;;  %v4899_v54 = vmul.u32 58254, %v4894_v44  ;;  %v9033_v55 = vpop.f32.mrf.mxu3 }
 0x253   : > { %v6007_v38 = vadd.f32 %v6006_v48, %v5972_v39  ;;  %v4884_v42 = vadd.s32 %v4883_v15, %v4874_v22  ;;  %v2770_v52 = vrot.slane %v8996_v40, 2  ;;  %v4033_v25 = vadd.f32 %v8846_v0, %v3443_v20  ;;  %v4375_v37 = vpop.f32.mrf.mxu0  ;;  %v7346_v15 = vld [vmem:[%s7596_s6 + $0x88] sm:$0xff] }
 0x254   : > { %v2988_v31 = vadd.f32 %v2872_v13, %v8067_v11  ;;  %v4900_v8 = vshll.u32 %v4897_v9, 16  ;;  %v4901_v45 = vshrl.u32 %v4897_v9, 16  ;;  %vm9020_vm0 = vcmp.lt.s32.totalorder %v5824_v56, 16 }
 0x255   : > { %v4885_v41 = vshrl.u32 %v4884_v42, 4  ;;  %v4902_v48 = vshll.u32 %v4898_v57, 16  ;;  %v4903_v7 = vshrl.u32 %v4898_v57, 16  ;;  %v9029_v22 = vsel %vm2742_vm4, %v2768_v4, %v2770_v52 }
 0x256   : > { %v4490_v0 = vadd.f32 %v4373_v16, %v4033_v25  ;;  %vm4904_vm1 = vc.u32 %v4896_v62, %v4900_v8  ;;  %v4906_v11 = vadd.s32 %v4900_v8, %v4896_v62  ;;  %v3226_v5 = vrot.slane %v9012_v63, 2  ;;  %v3328_v12 = vpop.f32.mrf.mxu2 }
 0x257   : > { %v4886_v44 = vmul.u32 18, %v4885_v41  ;;  %v4905_v30 = vsel %vm4904_vm1, 1, %v9646_v49  ;;  %v4273_v14 = vrot.slane %v9016_v27, 3  ;;  %v9037_v3 = vadd.s32 80, %v8372_v21 }
 0x258   : > { %v5895_v29 = vsel %vm8980_vm11, %v4490_v0, 0.0  ;;  %v4907_v4 = vadd.s32 %v4905_v30, %v4899_v54  ;;  %vm4908_vm2 = vc.u32 %v4906_v11, %v4902_v48  ;;  %v9046_v16 = vsel %vm2742_vm4, %v3224_v19, %v3226_v5 }
 0x259   : > { %v5930_v61 = vadd.f32 %v5929_v24, %v5895_v29  ;;  %v5973_v33 = vmul.f32 %v5895_v29, %v4490_v0  ;;  %v4887_v39 = vsub.s32 %v8939_v32, %v4886_v44  ;;  %v4909_v2 = vsel %vm4908_vm2, 1, %v9646_v49  ;;  %v2875_v24 = vpop.f32.mrf.mxu1 }
 0x25a   : > { %v3444_v62 = vadd.f32 %v3328_v12, %v2988_v31  ;;  %v4911_v36 = vadd.s32 %v4909_v2, %v4907_v4  ;;  %v9056_v20 = vsel %vm4245_vm5, %v4271_v51, %v4273_v14  ;;  %v4922_v59 = vand.u32 65535, %v9037_v3  ;;  %v9075_v4 = vpop.f32.mrf.mxu3 }
 0x25b   : > { %v6008_v19 = vadd.f32 %v6007_v38, %v5973_v33  ;;  %vm5681_vm6 = vcmp.ne.s32.totalorder %v4887_v39, 0  ;;  %vm5717_vm7 = vcmp.lt.s32.totalorder %v4887_v39, 0  ;;  %v5789_v56 = vadd.s32 18, %v4887_v39  ;;  %v4378_v57 = vpop.f32.mrf.mxu0  ;;  %2914 = vmatmul.bf16.gmra.mxu1 %v8936_v46  ;;  %3370 = vmatmul.bf16.gmra.mxu2 %v8948_v23 }
 0x25c   : > { %v4034_v32 = vadd.f32 %v8905_v18, %v3444_v62  ;;  %v2989_v9 = vadd.f32 %v2875_v24, %v8080_v47  ;;  %vm5753_vm8 = vmand %vm5717_vm7, %vm5681_vm6  ;;  %v4912_v13 = vadd.s32 %v4911_v36, %v4901_v45  ;;  %v4923_v42 = vshrl.u32 %v9037_v3, 16 }
 0x25d   : > { %v5825_v43 = vsel %vm5753_vm8, %v5789_v56, %v4887_v39  ;;  %v4925_v54 = vmul.u32 14564, %v4922_v59  ;;  %v4926_v51 = vmul.u32 58254, %v4922_v59  ;;  %v3791_v25 = vshrl.u32 %v7346_v15, 16  ;;  %v9718_v59 = vld [vmem:[#allocation6_spill] sm:$0xff] }
 0x25e   : > { %v4491_v31 = vadd.f32 %v4375_v37, %v4034_v32  ;;  %vm9064_vm9 = vcmp.lt.s32.totalorder %v5825_v43, 16  ;;  %v4913_v18 = vadd.s32 %v4912_v13, %v4903_v7  ;;  %v9068_v47 = vmul.u32 14564, %v4923_v42  ;;  %4417 = vmatmul.bf16.gmra.mxu0 %v8961_v35  ;;  %v3331_v29 = vpop.f32.mrf.mxu2 }
 0x25f   : > { %v4928_v8 = vmul.u32 58254, %v4923_v42  ;;  %v4929_v45 = vshll.u32 %v4926_v51, 16  ;;  %v4930_v41 = vshrl.u32 %v4926_v51, 16  ;;  %v3793_v48 = vrot.slane %v3791_v25, 2 }
 0x260   : > { %v5896_v37 = vsel %vm9020_vm0, %v4491_v31, 0.0  ;;  %v7401_v46 = vpack.c.bf16 %v4491_v31, %v4490_v0  ;;  %v4914_v11 = vshrl.u32 %v4913_v18, 4  ;;  %v4931_v23 = vshll.u32 %v9068_v47, 16 }
 0x261   : > { %v5931_v44 = vadd.f32 %v5930_v61, %v5896_v37  ;;  %v5974_v30 = vmul.f32 %v5896_v37, %v4491_v31  ;;  %v4932_v7 = vshrl.u32 %v9068_v47, 16  ;;  %vm4933_vm10 = vc.u32 %v4925_v54, %v4929_v45  ;;  %v2877_v2 = vpop.f32.mrf.mxu1 }
 0x262   : > { %7475 = vst [vmem:[%s8807_s20 + $0x18] sm:$0xff] %v7401_v46   ;;  %v3445_v35 = vadd.f32 %v3331_v29, %v2989_v9  ;;  %v4915_v33 = vmul.u32 18, %v4914_v11  ;;  %v4934_v12 = vsel %vm4933_vm10, 1, %v9646_v49  ;;  %v4935_v39 = vadd.s32 %v4929_v45, %v4925_v54  ;;  %v9102_v11 = vld [vmem:[%s7596_s6 + $0x88] sm:$0xff] }
 0x263   : > { %v6009_v26 = vadd.f32 %v6008_v19, %v5974_v30  ;;  %v4936_v0 = vadd.s32 %v4934_v12, %v4928_v8  ;;  %v3794_v62 = vshll.u32 %v7346_v15, 16  ;;  %v9080_v36 = vadd.s32 88, %v8372_v21  ;;  %v4380_v56 = vpop.f32.mrf.mxu0 }
 0x264   : > { %v4035_v61 = vadd.f32 %v8954_v10, %v3445_v35  ;;  %v2990_v24 = vadd.f32 %v2877_v2, %v9718_v59  ;;  %v4916_v32 = vsub.s32 %v8974_v6, %v4915_v33  ;;  %vm4937_vm11 = vc.u32 %v4935_v39, %v4931_v23  ;;  %v9108_v35 = vld [vmem:[%s7596_s6 + $0x88] sm:$0xff]  ;;  %v9112_v2 = vpop.f32.mrf.mxu3 }
 0x265   : > { %v4938_v9 = vsel %vm4937_vm11, 1, %v9646_v49  ;;  %v3796_v13 = vrot.slane %v3794_v62, 3  ;;  %v4951_v42 = vand.u32 65535, %v9080_v36  ;;  %v4952_v19 = vshrl.u32 %v9080_v36, 16  ;;  %v9721_v62 = vld [vmem:[#allocation7_spill] sm:$0xff] }
 0x266   : > { %v4492_v43 = vadd.f32 %v4378_v57, %v4035_v61  ;;  %vm5682_vm12 = vcmp.ne.s32.totalorder %v4916_v32, 0  ;;  %vm5718_vm13 = vcmp.lt.s32.totalorder %v4916_v32, 0  ;;  %v5790_v15 = vadd.s32 18, %v4916_v32  ;;  %v3333_v45 = vpop.f32.mrf.mxu2 }
 0x267   : > { %vm5754_vm14 = vmand %vm5718_vm13, %vm5682_vm12  ;;  %v4940_v10 = vadd.s32 %v4938_v9, %v4936_v0  ;;  %v9088_v54 = vor.u32 %v3796_v13, %v3793_v48  ;;  %v4954_v51 = vmul.u32 14564, %v4951_v42  ;;  %v4955_v6 = vmul.u32 58254, %v4951_v42  ;;  %v9099_v48 = vld [vmem:[%s7596_s6 + $0x80] sm:$0xff]  ;;  %v7347_v42 = vld [vmem:[%s7596_s6 + $0x90] sm:$0xff] }
 0x268   : > { %v5897_v25 = vsel %vm9064_vm9, %v4492_v43, 0.0  ;;  %v5826_v31 = vsel %vm5754_vm14, %v5790_v15, %v4916_v32  ;;  %v9092_v18 = vmul.u32 14564, %v4952_v19  ;;  %v4957_v47 = vmul.u32 58254, %v4952_v19 }
 0x269   : > { %v5932_v57 = vadd.f32 %v5931_v44, %v5897_v25  ;;  %v5975_v8 = vmul.f32 %v5897_v25, %v4492_v43  ;;  %vm9094_vm15 = vcmp.lt.s32.totalorder %v5826_v31, 16  ;;  %v4941_v46 = vadd.s32 %v4940_v10, %v4930_v41  ;;  %v2880_v33 = vpop.f32.mrf.mxu1 }
 0x26a   : > { %v3446_v23 = vadd.f32 %v3333_v45, %v2990_v24  ;;  %v3798_v38 = vsel %vm3655_vm3, %v8991_v1, %v9088_v54  ;;  %v4958_v30 = vshll.u32 %v4955_v6, 16  ;;  %v4959_v29 = vshrl.u32 %v4955_v6, 16 }
 0x26b   : > { %v6010_v44 = vadd.f32 %v6009_v26, %v5975_v8  ;;  %v4942_v12 = vadd.s32 %v4941_v46, %v4932_v7  ;;  %3970 = vmatmul.bf16.gmra.mxu3 %v3798_v38  ;;  %v4960_v39 = vshll.u32 %v9092_v18, 16  ;;  %v4961_v41 = vshrl.u32 %v9092_v18, 16  ;;  %v4383_v1 = vpop.f32.mrf.mxu0  ;;  %2919 = vmatmul.bf16.gmra.mxu1 %v9029_v22  ;;  %v9722_v8 = vld [vmem:[#allocation8_spill] sm:$0xff] }
 0x26c   : > { %v4036_v0 = vadd.f32 %v8985_v50, %v3446_v23  ;;  %v2991_v61 = vadd.f32 %v2880_v33, %v9721_v62  ;;  %vm4962_vm0 = vc.u32 %v4954_v51, %v4958_v30  ;;  %v4964_v59 = vadd.s32 %v4958_v30, %v4954_v51  ;;  %3375 = vmatmul.bf16.gmra.mxu2 %v9046_v16  ;;  %v9157_v23 = vld [vmem:[%s7596_s6 + $0x88] sm:$0xff] }
 0x26d   : > { %v4943_v24 = vshrl.u32 %v4942_v12, 4  ;;  %v4963_v26 = vsel %vm4962_vm0, 1, %v9646_v49  ;;  %v2772_v7 = vrot.slane %v9099_v48, 2  ;;  %v3228_v32 = vrot.slane %v9102_v11, 2 }
 0x26e   : > { %v4493_v9 = vadd.f32 %v4380_v56, %v4036_v0  ;;  %v4965_v13 = vadd.s32 %v4963_v26, %v4957_v47  ;;  %vm4966_vm1 = vc.u32 %v4964_v59, %v4960_v39  ;;  %v4275_v50 = vrot.slane %v9108_v35, 3  ;;  %4422 = vmatmul.bf16.gmra.mxu0 %v9056_v20  ;;  %v3336_v6 = vpop.f32.mrf.mxu2 }
 0x26f   : > { %v4944_v19 = vmul.u32 18, %v4943_v24  ;;  %v4967_v15 = vsel %vm4966_vm1, 1, %v9646_v49  ;;  %v9130_v56 = vsel %vm2742_vm4, %v2770_v52, %v2772_v7  ;;  %v9137_v22 = vsel %vm2742_vm4, %v3226_v5, %v3228_v32 }
 0x270   : > { %v5898_v16 = vsel %vm9094_vm15, %v4493_v9, 0.0  ;;  %v7406_v20 = vpack.c.bf16 %v4493_v9, %v4492_v43  ;;  %v4969_v10 = vadd.s32 %v4967_v15, %v4965_v13  ;;  %v9146_v40 = vsel %vm4245_vm5, %v4273_v14, %v4275_v50 }
 0x271   : > { %v5933_v52 = vadd.f32 %v5932_v57, %v5898_v16  ;;  %v5976_v51 = vmul.f32 %v5898_v16, %v4493_v9  ;;  %v4945_v63 = vsub.s32 %v9037_v3, %v4944_v19  ;;  %v9150_v5 = vadd.s32 96, %v8372_v21  ;;  %v2882_v14 = vpop.f32.mrf.mxu1 }
 0x272   : > { %7476 = vst [vmem:[%s8807_s20 + $0x20] sm:$0xff] %v7406_v20   ;;  %v3447_v25 = vadd.f32 %v3336_v6, %v2991_v61  ;;  %v4970_v43 = vadd.s32 %v4969_v10, %v4959_v29  ;;  %v3800_v31 = vshrl.u32 %v7347_v42, 16  ;;  %v3803_v18 = vshll.u32 %v7347_v42, 16  ;;  %v9160_v29 = vpop.f32.mrf.mxu3 }
 0x273   : > { %v6011_v47 = vadd.f32 %v6010_v44, %v5976_v51  ;;  %vm5683_vm2 = vcmp.ne.s32.totalorder %v4945_v63, 0  ;;  %vm5719_vm6 = vcmp.lt.s32.totalorder %v4945_v63, 0  ;;  %v5791_v27 = vadd.s32 18, %v4945_v63  ;;  %v4385_v3 = vpop.f32.mrf.mxu0 }
 0x274   : > { %v4037_v57 = vadd.f32 %v9033_v55, %v3447_v25  ;;  %vm5755_vm7 = vmand %vm5719_vm6, %vm5683_vm2  ;;  %v2992_v45 = vadd.f32 %v2882_v14, %v9722_v8  ;;  %v4971_v37 = vadd.s32 %v4970_v43, %v4961_v41  ;;  %v4980_v46 = vand.u32 65535, %v9150_v5 }
 0x275   : > { %v5827_v38 = vsel %vm5755_vm7, %v5791_v27, %v4945_v63  ;;  %v4981_v30 = vshrl.u32 %v9150_v5, 16  ;;  %v3802_v44 = vrot.slane %v3800_v31, 2  ;;  %v3805_v33 = vrot.slane %v3803_v18, 3 }
 0x276   : > { %v4494_v12 = vadd.f32 %v4383_v1, %v4037_v57  ;;  %vm5863_vm8 = vcmp.lt.s32.totalorder %v5827_v38, 16  ;;  %v4972_v39 = vshrl.u32 %v4971_v37, 4  ;;  %v4983_v55 = vmul.u32 14564, %v4980_v46  ;;  %v3338_v19 = vpop.f32.mrf.mxu2 }
 0x277   : > { %v4984_v0 = vmul.u32 58254, %v4980_v46  ;;  %v9162_v62 = vmul.u32 14564, %v4981_v30  ;;  %v4986_v61 = vmul.u32 58254, %v4981_v30  ;;  %v9164_v41 = vor.u32 %v3805_v33, %v3802_v44 }
 0x278   : > { %v5899_v59 = vsel %vm5863_vm8, %v4494_v12, 0.0  ;;  %v4973_v24 = vmul.u32 18, %v4972_v39  ;;  %v9167_v26 = vadd.s32 104, %v8372_v21  ;;  %v2774_v9 = vrot.slane %v9157_v23, 2 }
 0x279   : > { %v5934_v13 = vadd.f32 %v5933_v52, %v5899_v59  ;;  %v5977_v42 = vmul.f32 %v5899_v59, %v4494_v12  ;;  %v4987_v1 = vshll.u32 %v4984_v0, 16  ;;  %v4988_v15 = vshrl.u32 %v4984_v0, 16  ;;  %v2885_v63 = vpop.f32.mrf.mxu1 }
 0x27a   : > { %v3448_v16 = vadd.f32 %v3338_v19, %v2992_v45  ;;  %v4974_v20 = vsub.s32 %v9080_v36, %v4973_v24  ;;  %v4989_v10 = vshll.u32 %v9162_v62, 16  ;;  %v4990_v51 = vshrl.u32 %v9162_v62, 16  ;;  %v9723_v36 = vld [vmem:[#allocation9_spill] sm:$0xff]  ;;  %v9185_v38 = vpop.f32.mrf.mxu3 }
 0x27b   : > { %v6012_v6 = vadd.f32 %v6011_v47, %v5977_v42  ;;  %vm4991_vm9 = vc.u32 %v4983_v55, %v4987_v1  ;;  %v4993_v25 = vadd.s32 %v4987_v1, %v4983_v55  ;;  %v3807_v43 = vsel %vm3655_vm3, %v9088_v54, %v9164_v41  ;;  %v4388_v18 = vpop.f32.mrf.mxu0  ;;  %2924 = vmatmul.bf16.gmra.mxu1 %v9130_v56  ;;  %v9200_v62 = vld [vmem:[%s7596_s6 + $0x90] sm:$0xff]  ;;  %v7348_v1 = vld [vmem:[%s7596_s6 + $0x98] sm:$0xff] }
 0x27c   : > { %v4038_v52 = vadd.f32 %v9075_v4, %v3448_v16  ;;  %vm5684_vm10 = vcmp.ne.s32.totalorder %v4974_v20, 0  ;;  %vm5720_vm11 = vcmp.lt.s32.totalorder %v4974_v20, 0  ;;  %v5792_v31 = vadd.s32 18, %v4974_v20  ;;  %3975 = vmatmul.bf16.gmra.mxu3 %v3807_v43  ;;  %3380 = vmatmul.bf16.gmra.mxu2 %v9137_v22 }
 0x27d   : > { %vm5756_vm12 = vmand %vm5720_vm11, %vm5684_vm10  ;;  %v2993_v27 = vadd.f32 %v2885_v63, %v9723_v36  ;;  %v4992_v47 = vsel %vm4991_vm9, 1, %v9646_v49  ;;  %vm4995_vm13 = vc.u32 %v4993_v25, %v4989_v10  ;;  %v5009_v14 = vand.u32 65535, %v9167_v26  ;;  %v9724_v10 = vld [vmem:[#allocation10_spill] sm:$0xff] }
 0x27e   : > { %v4495_v57 = vadd.f32 %v4385_v3, %v4038_v52  ;;  %v5828_v8 = vsel %vm5756_vm12, %v5792_v31, %v4974_v20  ;;  %v4994_v4 = vadd.s32 %v4992_v47, %v4986_v61  ;;  %v4996_v54 = vsel %vm4995_vm13, 1, %v9646_v49  ;;  %4427 = vmatmul.bf16.gmra.mxu0 %v9146_v40  ;;  %v9188_v3 = vld [vmem:[%s7596_s6 + $0x90] sm:$0xff]  ;;  %v3341_v39 = vpop.f32.mrf.mxu2 }
 0x27f   : > { %vm5864_vm14 = vcmp.lt.s32.totalorder %v5828_v8, 16  ;;  %v5010_v45 = vshrl.u32 %v9167_v26, 16  ;;  %v5012_v37 = vmul.u32 14564, %v5009_v14  ;;  %v5013_v46 = vmul.u32 58254, %v5009_v14 }
 0x280   : > { %v5900_v30 = vsel %vm5864_vm14, %v4495_v57, 0.0  ;;  %v7411_v56 = vpack.c.bf16 %v4495_v57, %v4494_v12  ;;  %v4998_v44 = vadd.s32 %v4996_v54, %v4994_v4  ;;  %v9195_v22 = vsel %vm2742_vm4, %v2772_v7, %v2774_v9 }
 0x281   : > { %v9197_v40 = vadd.f32 %v5934_v13, %v5900_v30  ;;  %v5978_v33 = vmul.f32 %v5900_v30, %v4495_v57  ;;  %v5014_v55 = vmul.u32 14564, %v5010_v45  ;;  %v5015_v0 = vmul.u32 58254, %v5010_v45  ;;  %v2887_v48 = vpop.f32.mrf.mxu1 }
 0x282   : > { %7477 = vst [vmem:[%s8807_s20 + $0x28] sm:$0xff] %v7411_v56   ;;  %v3449_v61 = vadd.f32 %v3341_v39, %v2993_v27  ;;  %v4999_v12 = vadd.s32 %v4998_v44, %v4988_v15  ;;  %v5016_v59 = vshll.u32 %v5013_v46, 16  ;;  %v5017_v24 = vshrl.u32 %v5013_v46, 16  ;;  %v9227_v54 = vpop.f32.mrf.mxu3 }
 0x283   : > { %v9203_v42 = vadd.f32 %v6012_v6, %v5978_v33  ;;  %v5018_v19 = vshll.u32 %v5014_v55, 16  ;;  %v5019_v7 = vshrl.u32 %v5014_v55, 16  ;;  %v3230_v13 = vrot.slane %v9188_v3, 2  ;;  %v4390_v25 = vpop.f32.mrf.mxu0 }
 0x284   : > { %v4039_v16 = vadd.f32 %v9112_v2, %v3449_v61  ;;  %v5000_v20 = vadd.s32 %v4999_v12, %v4990_v51  ;;  %v2994_v63 = vadd.f32 %v2887_v48, %v9724_v10  ;;  %vm5020_vm15 = vc.u32 %v5012_v37, %v5016_v59 }
 0x285   : > { %v5021_v43 = vsel %vm5020_vm15, 1, %v9646_v49  ;;  %v5022_v15 = vadd.s32 %v5016_v59, %v5012_v37  ;;  %v3231_v6 = vsel %vm2742_vm4, %v3228_v32, %v3230_v13  ;;  %v4277_v52 = vrot.slane %v9200_v62, 3 }
 0x286   : > { %v4496_v31 = vadd.f32 %v4388_v18, %v4039_v16  ;;  %v5001_v36 = vshrl.u32 %v5000_v20, 4  ;;  %v5023_v27 = vadd.s32 %v5021_v43, %v5015_v0  ;;  %v9217_v2 = vadd.s32 112, %v8372_v21  ;;  %v3343_v8 = vpop.f32.mrf.mxu2 }
 0x287   : > { %vm5024_vm0 = vc.u32 %v5022_v15, %v5018_v19  ;;  %v4278_v51 = vsel %vm4245_vm5, %v4275_v50, %v4277_v52  ;;  %v3809_v47 = vshrl.u32 %v7348_v1, 16  ;;  %v3812_v14 = vshll.u32 %v7348_v1, 16 }
 0x288   : > { %v5002_v11 = vmul.u32 18, %v5001_v36  ;;  %v5025_v32 = vsel %vm5024_vm0, 1, %v9646_v49  ;;  %v5038_v57 = vand.u32 65535, %v9217_v2  ;;  %v5039_v18 = vshrl.u32 %v9217_v2, 16 }
 0x289   : > { %v5027_v4 = vadd.s32 %v5025_v32, %v5023_v27  ;;  %v3811_v45 = vrot.slane %v3809_v47, 2  ;;  %v3814_v37 = vrot.slane %v3812_v14, 3  ;;  %v9230_v46 = vadd.s32 120, %v8372_v21  ;;  %v2890_v33 = vpop.f32.mrf.mxu1 }
 0x28a   : > { %v5003_v35 = vsub.s32 %v9150_v5, %v5002_v11  ;;  %v3450_v50 = vadd.f32 %v3343_v8, %v2994_v63  ;;  %v5041_v30 = vmul.u32 14564, %v5038_v57  ;;  %v5042_v56 = vmul.u32 58254, %v5038_v57 }
 0x28b   : > { %v5028_v44 = vadd.s32 %v5027_v4, %v5017_v24  ;;  %v9233_v39 = vmul.u32 14564, %v5039_v18  ;;  %v5044_v55 = vmul.u32 58254, %v5039_v18  ;;  %v9235_v0 = vor.u32 %v3814_v37, %v3811_v45  ;;  %v4393_v59 = vpop.f32.mrf.mxu0  ;;  %2929 = vmatmul.bf16.gmra.mxu1 %v9195_v22 }
 0x28c   : > { %vm5685_vm1 = vcmp.ne.s32.totalorder %v5003_v35, 0  ;;  %vm5721_vm2 = vcmp.lt.s32.totalorder %v5003_v35, 0  ;;  %v5793_v61 = vadd.s32 18, %v5003_v35  ;;  %v4040_v12 = vadd.f32 %v9160_v29, %v3450_v50  ;;  %3385 = vmatmul.bf16.gmra.mxu2 %v3231_v6 }
 0x28d   : > { %vm5757_vm6 = vmand %vm5721_vm2, %vm5685_vm1  ;;  %v5029_v48 = vadd.s32 %v5028_v44, %v5019_v7  ;;  %v2995_v5 = vadd.f32 %v2890_v33, %v8189_v34  ;;  %v5045_v19 = vshll.u32 %v5042_v56, 16  ;;  %v5046_v1 = vshrl.u32 %v5042_v56, 16  ;;  %v9243_v7 = vld [vmem:[%s7596_s6 + $0x90] sm:$0xff] }
 0x28e   : > { %v5829_v24 = vsel %vm5757_vm6, %v5793_v61, %v5003_v35  ;;  %v4497_v16 = vadd.f32 %v4390_v25, %v4040_v12  ;;  %v5047_v20 = vshll.u32 %v9233_v39, 16  ;;  %v5048_v10 = vshrl.u32 %v9233_v39, 16  ;;  %4432 = vmatmul.bf16.gmra.mxu0 %v4278_v51  ;;  %v3346_v27 = vpop.f32.mrf.mxu2  ;;  %v9272_v61 = vld [vmem:[%s7596_s6 + $0x98] sm:$0xff] }
 0x28f   : > { %vm5865_vm7 = vcmp.lt.s32.totalorder %v5829_v24, 16  ;;  %v5030_v29 = vshrl.u32 %v5029_v48, 4  ;;  %vm5049_vm8 = vc.u32 %v5041_v30, %v5045_v19  ;;  %v5051_v63 = vadd.s32 %v5045_v19, %v5041_v30 }
 0x290   : > { %v5901_v34 = vsel %vm5865_vm7, %v4496_v31, 0.0  ;;  %v7416_v43 = vpack.c.bf16 %v4497_v16, %v4496_v31  ;;  %v5050_v15 = vsel %vm5049_vm8, 1, %v9646_v49  ;;  %v3816_v22 = vsel %vm3655_vm3, %v9164_v41, %v9235_v0 }
 0x291   : > { %v5936_v25 = vadd.f32 %v9197_v40, %v5901_v34  ;;  %v5979_v6 = vmul.f32 %v5901_v34, %v4496_v31  ;;  %v5031_v36 = vmul.u32 18, %v5030_v29  ;;  %v5052_v47 = vadd.s32 %v5050_v15, %v5044_v55  ;;  %3980 = vmatmul.bf16.gmra.mxu3 %v3816_v22  ;;  %v2892_v40 = vpop.f32.mrf.mxu1  ;;  %v9256_v31 = vpop.f32.mrf.mxu3  ;;  %v3545_v15 = vld [vmem:[%s7596_s6 + $0xa0] sm:$0x7] }
 0x292   : > { %7478 = vst [vmem:[%s8807_s20 + $0x30] sm:$0xff] %v7416_v43   ;;  %v3451_v51 = vadd.f32 %v3346_v27, %v2995_v5  ;;  %vm5053_vm9 = vc.u32 %v5051_v63, %v5047_v20  ;;  %v5067_v14 = vand.u32 65535, %v9230_v46  ;;  %v5068_v11 = vshrl.u32 %v9230_v46, 16  ;;  %v9285_v27 = vld [vmem:[%s7596_s6 + $0x98] sm:$0x3] }
 0x293   : > { %v6014_v32 = vadd.f32 %v9203_v42, %v5979_v6  ;;  %v5032_v57 = vsub.s32 %v9167_v26, %v5031_v36  ;;  %v5054_v41 = vsel %vm5053_vm9, 1, %v9646_v49  ;;  %v2776_v18 = vrot.slane %v9243_v7, 2  ;;  %v4395_v37 = vpop.f32.mrf.mxu0  ;;  %v9262_v26 = vld [vmem:[%s7596_s6 + $0x98] sm:$0xff] }
 0x294   : > { %v4041_v8 = vadd.f32 %v9185_v38, %v3451_v51  ;;  %v5056_v4 = vadd.s32 %v5054_v41, %v5052_v47  ;;  %v2996_v45 = vadd.f32 %v2892_v40, %v8203_v58  ;;  %v5070_v35 = vmul.u32 14564, %v5067_v14 }
 0x295   : > { %vm5686_vm10 = vcmp.ne.s32.totalorder %v5032_v57, 0  ;;  %vm5722_vm11 = vcmp.lt.s32.totalorder %v5032_v57, 0  ;;  %v5794_v42 = vadd.s32 18, %v5032_v57  ;;  %v5071_v50 = vmul.u32 58254, %v5067_v14 }
 0x296   : > { %vm5758_vm12 = vmand %vm5722_vm11, %vm5686_vm10  ;;  %v9264_v30 = vadd.f32 %v4393_v59, %v4041_v8  ;;  %v5057_v56 = vadd.s32 %v5056_v4, %v5046_v1  ;;  %v5072_v44 = vmul.u32 14564, %v5068_v11  ;;  %v5073_v33 = vmul.u32 58254, %v5068_v11  ;;  %v3348_v19 = vpop.f32.mrf.mxu2 }
 0x297   : > { %v5830_v39 = vsel %vm5758_vm12, %v5794_v42, %v5032_v57  ;;  %v5074_v38 = vshll.u32 %v5071_v50, 16  ;;  %v5075_v55 = vshrl.u32 %v5071_v50, 16  ;;  %v2777_v58 = vsel %vm2742_vm4, %v2774_v9, %v2776_v18 }
 0x298   : > { %vm5866_vm13 = vcmp.lt.s32.totalorder %v5830_v39, 16  ;;  %v5058_v12 = vadd.s32 %v5057_v56, %v5048_v10  ;;  %v5076_v48 = vshll.u32 %v5072_v44, 16  ;;  %v5077_v59 = vshrl.u32 %v5072_v44, 16 }
 0x299   : > { %v5902_v5 = vsel %vm5866_vm13, %v4497_v16, 0.0  ;;  %vm5078_vm14 = vc.u32 %v5070_v35, %v5074_v38  ;;  %v5080_v1 = vadd.s32 %v5074_v38, %v5070_v35  ;;  %v3232_v24 = vrot.slane %v9262_v26, 2  ;;  %v2895_v34 = vpop.f32.mrf.mxu1  ;;  %v9297_v14 = vpop.f32.mrf.mxu3 }
 0x29a   : > { %v5937_v20 = vadd.f32 %v5936_v25, %v5902_v5  ;;  %v5980_v29 = vmul.f32 %v5902_v5, %v4497_v16  ;;  %v5059_v63 = vshrl.u32 %v5058_v12, 4  ;;  %v3452_v23 = vadd.f32 %v3348_v19, %v2996_v45 }
 0x29b   : > { %v5079_v9 = vsel %vm5078_vm14, 1, %v9646_v49  ;;  %vm5082_vm15 = vc.u32 %v5080_v1, %v5076_v48  ;;  %v3233_v10 = vsel %vm2742_vm4, %v3230_v13, %v3232_v24  ;;  %v4279_v43 = vrot.slane %v9272_v61, 3  ;;  %v4398_v36 = vpop.f32.mrf.mxu0  ;;  %2934 = vmatmul.bf16.gmra.mxu1 %v2777_v58 }
 0x29c   : > { %v6015_v22 = vadd.f32 %v6014_v32, %v5980_v29  ;;  %v5060_v6 = vmul.u32 18, %v5059_v63  ;;  %v4042_v25 = vadd.f32 %v9227_v54, %v3452_v23  ;;  %v5081_v16 = vadd.s32 %v5079_v9, %v5073_v33  ;;  %3390 = vmatmul.bf16.gmra.mxu2 %v3233_v10 }
 0x29d   : > { %v5083_v47 = vsel %vm5082_vm15, 1, %v9646_v49  ;;  %v2997_v51 = vadd.f32 %v2895_v34, %v8212_v53  ;;  %v4280_v3 = vsel %vm4245_vm5, %v4277_v52, %v4279_v43  ;;  %v9295_v13 = vadd.s32 128, %v8372_v21 }
 0x29e   : > { %v5061_v54 = vsub.s32 %v9217_v2, %v5060_v6  ;;  %v9300_v11 = vadd.f32 %v4395_v37, %v4042_v25  ;;  %v5085_v32 = vadd.s32 %v5083_v47, %v5081_v16  ;;  %v3635_v57 = vunpack.c.l.b16 %v3545_v15  ;;  %4437 = vmatmul.bf16.gmra.mxu0 %v4280_v3  ;;  %v3351_v4 = vpop.f32.mrf.mxu2 }
 0x29f   : > { %v5096_v53 = vand.u32 65535, %v9295_v13  ;;  %v5097_v62 = vshrl.u32 %v9295_v13, 16  ;;  %v9305_v52 = vadd.s32 136, %v8372_v21  ;;  %v2722_v41 = vunpack.c.l.b16 %v9285_v27 }
 0x2a0   : > { %vm5687_vm0 = vcmp.ne.s32.totalorder %v5061_v54, 0  ;;  %vm5723_vm1 = vcmp.lt.s32.totalorder %v5061_v54, 0  ;;  %v5795_v2 = vadd.s32 18, %v5061_v54  ;;  %v5086_v40 = vadd.s32 %v5085_v32, %v5075_v55 }
 0x2a1   : > { %vm5759_vm2 = vmand %vm5723_vm1, %vm5687_vm0  ;;  %v7421_v8 = vpack.c.bf16 %v9300_v11, %v9264_v30  ;;  %v5099_v45 = vmul.u32 14564, %v5096_v53  ;;  %v5100_v37 = vmul.u32 58254, %v5096_v53  ;;  %v5101_v35 = vmul.u32 14564, %v5097_v62  ;;  %v2897_v58 = vpop.f32.mrf.mxu1  ;;  %v9318_v25 = vpop.f32.mrf.mxu3 }
 0x2a2   : > { %v5831_v42 = vsel %vm5759_vm2, %v5795_v2, %v5061_v54  ;;  %v5087_v50 = vadd.s32 %v5086_v40, %v5077_v59  ;;  %v3453_v56 = vadd.f32 %v3351_v4, %v2997_v51  ;;  %v5102_v44 = vmul.u32 58254, %v5097_v62 }
 0x2a3   : > { %vm5867_vm6 = vcmp.lt.s32.totalorder %v5831_v42, 16  ;;  %7479 = vst [vmem:[%s8807_s20 + $0x38] sm:$0xff] %v7421_v8   ;;  %v5103_v33 = vshll.u32 %v5100_v37, 16  ;;  %v5104_v39 = vshrl.u32 %v5100_v37, 16  ;;  %v5105_v38 = vshll.u32 %v5101_v35, 16  ;;  %v4400_v19 = vpop.f32.mrf.mxu0 }
 0x2a4   : > { %v5903_v55 = vsel %vm5867_vm6, %v9264_v30, 0.0  ;;  %v5088_v12 = vshrl.u32 %v5087_v50, 4  ;;  %v4043_v48 = vadd.f32 %v9256_v31, %v3453_v56  ;;  %v5106_v5 = vshrl.u32 %v5101_v35, 16 }
 0x2a5   : > { %v5938_v1 = vadd.f32 %v5937_v20, %v5903_v55  ;;  %v5981_v29 = vmul.f32 %v5903_v55, %v9264_v30  ;;  %vm5107_vm7 = vc.u32 %v5099_v45, %v5103_v33  ;;  %v5109_v59 = vadd.s32 %v5103_v33, %v5099_v45 }
 0x2a6   : > { %v5089_v63 = vmul.u32 18, %v5088_v12  ;;  %v9314_v23 = vadd.f32 %v4398_v36, %v4043_v48  ;;  %v5108_v9 = vsel %vm5107_vm7, 1, %v9646_v49  ;;  %v2998_v34 = vadd.f32 %v2897_v58, %v8223_v17  ;;  %v3353_v51 = vpop.f32.mrf.mxu2  ;;  %v3089_v12 = vld [vmem:[%s7596_s6 + $0xa0] sm:$0x3] }
 0x2a7   : > { %v6016_v10 = vadd.f32 %v6015_v22, %v5981_v29  ;;  %v5110_v15 = vadd.s32 %v5108_v9, %v5102_v44  ;;  %vm5111_vm8 = vc.u32 %v5109_v59, %v5105_v38  ;;  %v3654_v6 = vpack.c.b16 %v3635_v57, %v3635_v57  ;;  %v4135_v48 = vld [vmem:[%s7596_s6 + $0xa0] sm:$0x7]  ;;  %s6210_s6 = sshll.u32 %s9745_s13, 1 }
 0x2a8   : > { %v5090_v31 = vsub.s32 %v9230_v46, %v5089_v63  ;;  %v5112_v20 = vsel %vm5111_vm8, 1, %v9646_v49  ;;  %v5125_v30 = vand.u32 65535, %v9305_v52  ;;  %v5126_v16 = vshrl.u32 %v9305_v52, 16  ;;  %s181_s23 = scalar_lea.vmem %s9618_s3, %s6210_s6 }
 0x2a9   : > { %v5114_v36 = vadd.s32 %v5112_v20, %v5110_v15  ;;  %v3818_v27 = vshrl.u32 %v3654_v6, 16  ;;  %v3821_v47 = vshll.u32 %v3654_v6, 16  ;;  %v2741_v3 = vpack.c.b16 %v2722_v41, %v2722_v41  ;;  %v2900_v53 = vpop.f32.mrf.mxu1  ;;  %v3948_v59 = vpop.f32.mrf.mxu3 }
 0x2aa   : > { %vm5688_vm9 = vcmp.ne.s32.totalorder %v5090_v31, 0  ;;  %vm5724_vm10 = vcmp.lt.s32.totalorder %v5090_v31, 0  ;;  %v5796_v17 = vadd.s32 18, %v5090_v31  ;;  %v3454_v22 = vadd.f32 %v3353_v51, %v2998_v34 }
 0x2ab   : > { %vm5760_vm11 = vmand %vm5724_vm10, %vm5688_vm9  ;;  %v5115_v54 = vadd.s32 %v5114_v36, %v5104_v39  ;;  %v3820_v32 = vrot.slane %v3818_v27, 2  ;;  %v3823_v57 = vrot.slane %v3821_v47, 3  ;;  %v5128_v46 = vmul.u32 14564, %v5125_v30  ;;  %v4403_v4 = vpop.f32.mrf.mxu0 }
 0x2ac   : > { %v5832_v62 = vsel %vm5760_vm11, %v5796_v17, %v5090_v31  ;;  %v4044_v2 = vadd.f32 %v9297_v14, %v3454_v22  ;;  %v5129_v40 = vmul.u32 58254, %v5125_v30  ;;  %v5130_v8 = vmul.u32 14564, %v5126_v16 }
 0x2ad   : > { %vm5868_vm12 = vcmp.lt.s32.totalorder %v5832_v62, 16  ;;  %v5116_v45 = vadd.s32 %v5115_v54, %v5106_v5  ;;  %v3824_v41 = vor.u32 %v3823_v57, %v3820_v32  ;;  %v5131_v37 = vmul.u32 58254, %v5126_v16 }
 0x2ae   : > { %v5904_v35 = vsel %vm5868_vm12, %v9300_v11, 0.0  ;;  %v9326_v42 = vadd.f32 %v4400_v19, %v4044_v2  ;;  %v5132_v50 = vshll.u32 %v5129_v40, 16  ;;  %v5133_v56 = vshrl.u32 %v5129_v40, 16 }
 0x2af   : > { %v5939_v44 = vadd.f32 %v5938_v1, %v5904_v35  ;;  %v5982_v33 = vmul.f32 %v5904_v35, %v9300_v11  ;;  %v5117_v39 = vshrl.u32 %v5116_v45, 4  ;;  %v3825_v14 = vsel %vm3655_vm3, %v9235_v0, %v3824_v41  ;;  %v3356_v11 = vpop.f32.mrf.mxu2 }
 0x2b0   : > { %3985 = vmatmul.bf16.gmra.mxu3 %v3825_v14  ;;  %v5134_v38 = vshll.u32 %v5130_v8, 16  ;;  %v5135_v58 = vshrl.u32 %v5130_v8, 16  ;;  %vm5136_vm13 = vc.u32 %v5128_v46, %v5132_v50  ;;  %v5138_v55 = vadd.s32 %v5132_v50, %v5128_v46 }
 0x2b1   : > { %v6017_v5 = vadd.f32 %v6016_v10, %v5982_v33  ;;  %v5118_v19 = vmul.u32 18, %v5117_v39  ;;  %v5137_v29 = vsel %vm5136_vm13, 1, %v9646_v49  ;;  %v7426_v1 = vpack.c.bf16 %v9326_v42, %v9314_v23  ;;  %v2902_v31 = vpop.f32.mrf.mxu1 }
 0x2b2   : > { %v5139_v63 = vadd.s32 %v5137_v29, %v5131_v37  ;;  %vm5140_vm14 = vc.u32 %v5138_v55, %v5134_v38  ;;  %v2999_v0 = vadd.f32 %v2900_v53, %v8245_v60  ;;  %v2778_v9 = vrot.slane %v2741_v3, 2 }
 0x2b3   : > { %v5119_v34 = vsub.s32 %v9295_v13, %v5118_v19  ;;  %v5141_v15 = vsel %vm5140_vm14, 1, %v9646_v49  ;;  %7480 = vst [vmem:[%s8807_s20 + $0x40] sm:$0xff] %v7426_v1   ;;  %v3179_v6 = vunpack.c.l.b16 %v3089_v12  ;;  %v4225_v10 = vunpack.c.l.b16 %v4135_v48  ;;  %v4405_v27 = vpop.f32.mrf.mxu0  ;;  %v9725_v19 = vld [vmem:[#allocation11_spill] sm:$0xff] }
 0x2b4   : > { %v5143_v20 = vadd.s32 %v5141_v15, %v5139_v63  ;;  %v2779_v30 = vsel %vm2742_vm4, %v2776_v18, %v2778_v9  ;;  %v3455_v16 = vadd.f32 %v3356_v11, %v2999_v0  ;;  %v9344_v36 = vadd.s32 144, %v8372_v21 }
 0x2b5   : > { %vm5689_vm3 = vcmp.ne.s32.totalorder %v5119_v34, 0  ;;  %vm5725_vm15 = vcmp.lt.s32.totalorder %v5119_v34, 0  ;;  %v5797_v60 = vadd.s32 18, %v5119_v34  ;;  %2939 = vmatmul.bf16.gmra.mxu1 %v2779_v30  ;;  %v3198_v13 = vpack.c.b16 %v3179_v6, %v3179_v6 }
 0x2b6   : > { %vm5761_vm0 = vmand %vm5725_vm15, %vm5689_vm3  ;;  %v5144_v47 = vadd.s32 %v5143_v20, %v5133_v56  ;;  %v4244_v51 = vpack.c.b16 %v4225_v10, %v4225_v10  ;;  %v4045_v3 = vadd.f32 %v9318_v25, %v3455_v16  ;;  %v5154_v17 = vand.u32 65535, %v9344_v36  ;;  %v3951_v56 = vpop.f32.mrf.mxu3 }
 0x2b7   : > { %v5833_v7 = vsel %vm5761_vm0, %v5797_v60, %v5119_v34  ;;  %v3234_v22 = vrot.slane %v3198_v13, 2  ;;  %v5155_v18 = vshrl.u32 %v9344_v36, 16  ;;  %v3000_v54 = vadd.f32 %v2902_v31, %v8255_v28  ;;  %v3358_v40 = vpop.f32.mrf.mxu2 }
 0x2b8   : > { %vm5869_vm1 = vcmp.lt.s32.totalorder %v5833_v7, 16  ;;  %v5145_v32 = vadd.s32 %v5144_v47, %v5135_v58  ;;  %v4281_v57 = vrot.slane %v4244_v51, 3  ;;  %v9350_v46 = vadd.f32 %v4403_v4, %v4045_v3 }
 0x2b9   : > { %v5905_v53 = vsel %vm5869_vm1, %v9314_v23, 0.0  ;;  %v3235_v62 = vsel %vm2742_vm4, %v3232_v24, %v3234_v22  ;;  %v5157_v25 = vmul.u32 14564, %v5154_v17  ;;  %v5158_v2 = vmul.u32 58254, %v5154_v17  ;;  %v2905_v26 = vpop.f32.mrf.mxu1 }
 0x2ba   : > { %v5940_v8 = vadd.f32 %v5939_v44, %v5905_v53  ;;  %v5983_v45 = vmul.f32 %v5905_v53, %v9314_v23  ;;  %v5146_v41 = vshrl.u32 %v5145_v32, 4  ;;  %3395 = vmatmul.bf16.gmra.mxu2 %v3235_v62  ;;  %v4282_v28 = vsel %vm4245_vm5, %v4279_v43, %v4281_v57 }
 0x2bb   : > { %4442 = vmatmul.bf16.gmra.mxu0 %v4282_v28  ;;  %v5159_v4 = vmul.u32 14564, %v5155_v18  ;;  %v5160_v37 = vmul.u32 58254, %v5155_v18  ;;  %v5161_v35 = vshll.u32 %v5158_v2, 16  ;;  %v5162_v50 = vshrl.u32 %v5158_v2, 16  ;;  %v4408_v61 = vpop.f32.mrf.mxu0 }
 0x2bc   : > { %v6018_v24 = vadd.f32 %v6017_v5, %v5983_v45  ;;  %v5147_v33 = vmul.u32 18, %v5146_v41  ;;  %v3456_v39 = vadd.f32 %v3358_v40, %v3000_v54  ;;  %v9361_v44 = vadd.s32 152, %v8372_v21 }
 0x2bd   : > { %v5163_v23 = vshll.u32 %v5159_v4, 16  ;;  %v5164_v14 = vshrl.u32 %v5159_v4, 16  ;;  %vm5165_vm4 = vc.u32 %v5157_v25, %v5161_v35  ;;  %v5167_v38 = vadd.s32 %v5161_v35, %v5157_v25  ;;  %v9726_v25 = vld [vmem:[#allocation12_spill] sm:$0xff] }
 0x2be   : > { %v5148_v43 = vsub.s32 %v9305_v52, %v5147_v33  ;;  %v5166_v58 = vsel %vm5165_vm4, 1, %v9646_v49  ;;  %v4046_v55 = vadd.f32 %v3948_v59, %v3456_v39  ;;  %v5183_v12 = vand.u32 65535, %v9361_v44  ;;  %v3953_v7 = vpop.f32.mrf.mxu3 }
 0x2bf   : > { %v5168_v48 = vadd.s32 %v5166_v58, %v5160_v37  ;;  %vm5169_vm5 = vc.u32 %v5167_v38, %v5163_v23  ;;  %v5184_v5 = vshrl.u32 %v9361_v44, 16  ;;  %v3001_v29 = vadd.f32 %v2905_v26, %v9725_v19  ;;  %v3361_v59 = vpop.f32.mrf.mxu2 }
 0x2c0   : > { %vm5690_vm2 = vcmp.ne.s32.totalorder %v5148_v43, 0  ;;  %vm5726_vm6 = vcmp.lt.s32.totalorder %v5148_v43, 0  ;;  %v5798_v1 = vadd.s32 18, %v5148_v43  ;;  %v5170_v11 = vsel %vm5169_vm5, 1, %v9646_v49 }
 0x2c1   : > { %vm5762_vm7 = vmand %vm5726_vm6, %vm5690_vm2  ;;  %v5172_v63 = vadd.s32 %v5170_v11, %v5168_v48  ;;  %v9369_v0 = vadd.f32 %v4405_v27, %v4046_v55  ;;  %v5186_v52 = vmul.u32 14564, %v5183_v12  ;;  %v5187_v9 = vmul.u32 58254, %v5183_v12  ;;  %v2907_v16 = vpop.f32.mrf.mxu1 }
 0x2c2   : > { %v5834_v34 = vsel %vm5762_vm7, %v5798_v1, %v5148_v43  ;;  %v5188_v15 = vmul.u32 14564, %v5184_v5  ;;  %v5189_v6 = vmul.u32 58254, %v5184_v5  ;;  %v3457_v10 = vadd.f32 %v3361_v59, %v3001_v29 }
 0x2c3   : > { %vm5870_vm8 = vcmp.lt.s32.totalorder %v5834_v34, 16  ;;  %v5173_v31 = vadd.s32 %v5172_v63, %v5162_v50  ;;  %v5190_v20 = vshll.u32 %v5187_v9, 16  ;;  %v5191_v30 = vshrl.u32 %v5187_v9, 16  ;;  %v4410_v40 = vpop.f32.mrf.mxu0 }
 0x2c4   : > { %v5906_v60 = vsel %vm5870_vm8, %v9326_v42, 0.0  ;;  %v5192_v13 = vshll.u32 %v5188_v15, 16  ;;  %v5193_v47 = vshrl.u32 %v5188_v15, 16  ;;  %v7431_v27 = vpack.c.bf16 %v9369_v0, %v9350_v46 }
 0x2c5   : > { %v5941_v51 = vadd.f32 %v5940_v8, %v5906_v60  ;;  %v5984_v3 = vmul.f32 %v5906_v60, %v9326_v42  ;;  %v5174_v17 = vadd.s32 %v5173_v31, %v5164_v14  ;;  %vm5194_vm9 = vc.u32 %v5186_v52, %v5190_v20 }
 0x2c6   : > { %v5195_v22 = vsel %vm5194_vm9, 1, %v9646_v49  ;;  %v5196_v18 = vadd.s32 %v5190_v20, %v5186_v52  ;;  %7481 = vst [vmem:[%s8807_s20 + $0x48] sm:$0xff] %v7431_v27   ;;  %v4047_v54 = vadd.f32 %v3951_v56, %v3457_v10  ;;  %v9378_v32 = vadd.s32 160, %v8372_v21  ;;  %v3956_v52 = vpop.f32.mrf.mxu3 }
 0x2c7   : > { %v6019_v57 = vadd.f32 %v6018_v24, %v5984_v3  ;;  %v5175_v53 = vshrl.u32 %v5174_v17, 4  ;;  %v5197_v62 = vadd.s32 %v5195_v22, %v5189_v6  ;;  %v3002_v2 = vadd.f32 %v2907_v16, %v9726_v25  ;;  %v3363_v4 = vpop.f32.mrf.mxu2 }
 0x2c8   : > { %vm5198_vm10 = vc.u32 %v5196_v18, %v5192_v13  ;;  %v9381_v8 = vadd.f32 %v4408_v61, %v4047_v54  ;;  %v5212_v42 = vand.u32 65535, %v9378_v32  ;;  %v5213_v45 = vshrl.u32 %v9378_v32, 16 }
 0x2c9   : > { %v5176_v41 = vmul.u32 18, %v5175_v53  ;;  %v5199_v28 = vsel %vm5198_vm10, 1, %v9646_v49  ;;  %v9387_v37 = vadd.s32 168, %v8372_v21  ;;  %v9390_v35 = vadd.s32 176, %v8372_v21  ;;  %v2910_v38 = vpop.f32.mrf.mxu1 }
 0x2ca   : > { %v5201_v50 = vadd.s32 %v5199_v28, %v5197_v62  ;;  %v5215_v26 = vmul.u32 14564, %v5212_v42  ;;  %v5216_v56 = vmul.u32 58254, %v5212_v42  ;;  %v5217_v24 = vmul.u32 14564, %v5213_v45 }
 0x2cb   : > { %v5177_v33 = vsub.s32 %v9344_v36, %v5176_v41  ;;  %v5218_v39 = vmul.u32 58254, %v5213_v45  ;;  %v3458_v23 = vadd.f32 %v3363_v4, %v3002_v2  ;;  %v5241_v14 = vand.u32 65535, %v9387_v37  ;;  %v4413_v31 = vpop.f32.mrf.mxu0 }
 0x2cc   : > { %v5202_v61 = vadd.s32 %v5201_v50, %v5191_v30  ;;  %v5219_v43 = vshll.u32 %v5216_v56, 16  ;;  %v5220_v58 = vshrl.u32 %v5216_v56, 16  ;;  %v5221_v55 = vshll.u32 %v5217_v24, 16 }
 0x2cd   : > { %vm5691_vm11 = vcmp.ne.s32.totalorder %v5177_v33, 0  ;;  %vm5727_vm12 = vcmp.lt.s32.totalorder %v5177_v33, 0  ;;  %v5799_v12 = vadd.s32 18, %v5177_v33  ;;  %v5222_v48 = vshrl.u32 %v5217_v24, 16 }
 0x2ce   : > { %vm5763_vm13 = vmand %vm5727_vm12, %vm5691_vm11  ;;  %v5203_v5 = vadd.s32 %v5202_v61, %v5193_v47  ;;  %vm5223_vm14 = vc.u32 %v5215_v26, %v5219_v43  ;;  %v5225_v19 = vadd.s32 %v5219_v43, %v5215_v26  ;;  %v4048_v29 = vadd.f32 %v3953_v7, %v3458_v23  ;;  %v3958_v24 = vpop.f32.mrf.mxu3 }
 0x2cf   : > { %v5835_v1 = vsel %vm5763_vm13, %v5799_v12, %v5177_v33  ;;  %v5224_v36 = vsel %vm5223_vm14, 1, %v9646_v49  ;;  %v5242_v11 = vshrl.u32 %v9387_v37, 16  ;;  %v5244_v63 = vmul.u32 14564, %v5241_v14  ;;  %v3366_v20 = vpop.f32.mrf.mxu2 }
 0x2d0   : > { %vm5871_vm3 = vcmp.lt.s32.totalorder %v5835_v1, 16  ;;  %v5204_v9 = vshrl.u32 %v5203_v5, 4  ;;  %v5226_v59 = vadd.s32 %v5224_v36, %v5218_v39  ;;  %vm5227_vm15 = vc.u32 %v5225_v19, %v5221_v55 }
 0x2d1   : > { %v5907_v34 = vsel %vm5871_vm3, %v9350_v46, 0.0  ;;  %v5228_v15 = vsel %vm5227_vm15, 1, %v9646_v49  ;;  %v9398_v6 = vadd.f32 %v4410_v40, %v4048_v29  ;;  %v5245_v10 = vmul.u32 58254, %v5241_v14  ;;  %v2912_v7 = vpop.f32.mrf.mxu1 }
 0x2d2   : > { %v5942_v30 = vadd.f32 %v5941_v51, %v5907_v34  ;;  %v5985_v16 = vmul.f32 %v5907_v34, %v9350_v46  ;;  %v5205_v60 = vmul.u32 18, %v5204_v9  ;;  %v5230_v13 = vadd.s32 %v5228_v15, %v5226_v59  ;;  %v9728_v15 = vld [vmem:[#allocation14_spill] sm:$0xff] }
 0x2d3   : > { %v5246_v47 = vmul.u32 14564, %v5242_v11  ;;  %v5247_v27 = vmul.u32 58254, %v5242_v11  ;;  %v5248_v3 = vshll.u32 %v5245_v10, 16  ;;  %v5249_v17 = vshrl.u32 %v5245_v10, 16  ;;  %v4415_v12 = vpop.f32.mrf.mxu0 }
 0x2d4   : > { %v6020_v22 = vadd.f32 %v6019_v57, %v5985_v16  ;;  %v5206_v18 = vsub.s32 %v9361_v44, %v5205_v60  ;;  %v5231_v54 = vadd.s32 %v5230_v13, %v5220_v58  ;;  %v7436_v53 = vpack.c.bf16 %v9398_v6, %v9381_v8  ;;  %v9727_v57 = vld [vmem:[#allocation13_spill] sm:$0xff] }
 0x2d5   : > { %v5250_v62 = vshll.u32 %v5246_v47, 16  ;;  %v5251_v25 = vshrl.u32 %v5246_v47, 16  ;;  %vm5252_vm0 = vc.u32 %v5244_v63, %v5248_v3  ;;  %v5254_v51 = vadd.s32 %v5248_v3, %v5244_v63 }
 0x2d6   : > { %vm5692_vm1 = vcmp.ne.s32.totalorder %v5206_v18, 0  ;;  %vm5728_vm4 = vcmp.lt.s32.totalorder %v5206_v18, 0  ;;  %v5800_v46 = vadd.s32 18, %v5206_v18  ;;  %v5232_v2 = vadd.s32 %v5231_v54, %v5222_v48  ;;  %7482 = vst [vmem:[%s8807_s20 + $0x50] sm:$0xff] %v7436_v53   ;;  %v3961_v53 = vpop.f32.mrf.mxu3 }
 0x2d7   : > { %vm5764_vm5 = vmand %vm5728_vm4, %vm5692_vm1  ;;  %v5253_v40 = vsel %vm5252_vm0, 1, %v9646_v49  ;;  %vm5256_vm2 = vc.u32 %v5254_v51, %v5250_v62  ;;  %v3003_v42 = vadd.f32 %v2910_v38, %v9727_v57  ;;  %v5270_v44 = vand.u32 65535, %v9390_v35  ;;  %v3368_v33 = vpop.f32.mrf.mxu2 }
 0x2d8   : > { %v5836_v45 = vsel %vm5764_vm5, %v5800_v46, %v5206_v18  ;;  %v5233_v41 = vshrl.u32 %v5232_v2, 4  ;;  %v5255_v28 = vadd.s32 %v5253_v40, %v5247_v27  ;;  %v5257_v4 = vsel %vm5256_vm2, 1, %v9646_v49 }
 0x2d9   : > { %vm5872_vm6 = vcmp.lt.s32.totalorder %v5836_v45, 16  ;;  %v3459_v50 = vadd.f32 %v3366_v20, %v3003_v42  ;;  %v5271_v26 = vshrl.u32 %v9390_v35, 16  ;;  %v5273_v56 = vmul.u32 14564, %v5270_v44  ;;  %v2915_v48 = vpop.f32.mrf.mxu1  ;;  %v9729_v42 = vld [vmem:[#allocation15_spill] sm:$0xff] }
 0x2da   : > { %v5908_v39 = vsel %vm5872_vm6, %v9369_v0, 0.0  ;;  %v5234_v23 = vmul.u32 18, %v5233_v41  ;;  %v5259_v14 = vadd.s32 %v5257_v4, %v5255_v28  ;;  %v5274_v61 = vmul.u32 58254, %v5270_v44 }
 0x2db   : > { %v5943_v38 = vadd.f32 %v5942_v30, %v5908_v39  ;;  %v5986_v43 = vmul.f32 %v5908_v39, %v9369_v0  ;;  %v4049_v58 = vadd.f32 %v3956_v52, %v3459_v50  ;;  %v5275_v55 = vmul.u32 14564, %v5271_v26  ;;  %v4418_v45 = vpop.f32.mrf.mxu0 }
 0x2dc   : > { %v5235_v5 = vsub.s32 %v9378_v32, %v5234_v23  ;;  %v5260_v19 = vadd.s32 %v5259_v14, %v5249_v17  ;;  %v5276_v29 = vmul.u32 58254, %v5271_v26  ;;  %v5277_v1 = vshll.u32 %v5274_v61, 16 }
 0x2dd   : > { %v6021_v36 = vadd.f32 %v6020_v22, %v5986_v43  ;;  %v9413_v11 = vadd.f32 %v4413_v31, %v4049_v58  ;;  %v5278_v63 = vshrl.u32 %v5274_v61, 16  ;;  %v5279_v9 = vshll.u32 %v5275_v55, 16 }
 0x2de   : > { %vm5693_vm7 = vcmp.ne.s32.totalorder %v5235_v5, 0  ;;  %vm5729_vm8 = vcmp.lt.s32.totalorder %v5235_v5, 0  ;;  %v5801_v59 = vadd.s32 18, %v5235_v5  ;;  %v5261_v34 = vadd.s32 %v5260_v19, %v5251_v25 }
 0x2df   : > { %vm5765_vm9 = vmand %vm5729_vm8, %vm5693_vm7  ;;  %v5280_v0 = vshrl.u32 %v5275_v55, 16  ;;  %vm5281_vm10 = vc.u32 %v5273_v56, %v5277_v1  ;;  %v5283_v52 = vadd.s32 %v5277_v1, %v5273_v56  ;;  %v3004_v10 = vadd.f32 %v2912_v7, %v9728_v15  ;;  %v3371_v13 = vpop.f32.mrf.mxu2 }
 0x2e0   : > { %v5837_v20 = vsel %vm5765_vm9, %v5801_v59, %v5235_v5  ;;  %v5262_v32 = vshrl.u32 %v5261_v34, 4  ;;  %v5282_v30 = vsel %vm5281_vm10, 1, %v9646_v49  ;;  %v9418_v16 = vadd.s32 184, %v8372_v21  ;;  %v9730_v34 = vld [vmem:[#allocation16_spill] sm:$0xff] }
 0x2e1   : > { %vm5873_vm11 = vcmp.lt.s32.totalorder %v5837_v20, 16  ;;  %v5284_v31 = vadd.s32 %v5282_v30, %v5276_v29  ;;  %vm5285_vm12 = vc.u32 %v5283_v52, %v5279_v9  ;;  %v3460_v60 = vadd.f32 %v3368_v33, %v3004_v10  ;;  %v2917_v41 = vpop.f32.mrf.mxu1  ;;  %v3963_v52 = vpop.f32.mrf.mxu3 }
 0x2e2   : > { %v5909_v47 = vsel %vm5873_vm11, %v9381_v8, 0.0  ;;  %v5263_v27 = vmul.u32 18, %v5262_v32  ;;  %v5286_v3 = vsel %vm5285_vm12, 1, %v9646_v49  ;;  %v5299_v17 = vand.u32 65535, %v9418_v16 }
 0x2e3   : > { %v5944_v7 = vadd.f32 %v5943_v38, %v5909_v47  ;;  %v5987_v22 = vmul.f32 %v5909_v47, %v9381_v8  ;;  %v5288_v18 = vadd.s32 %v5286_v3, %v5284_v31  ;;  %v4050_v54 = vadd.f32 %v3958_v24, %v3460_v60  ;;  %v4420_v31 = vpop.f32.mrf.mxu0 }
 0x2e4   : > { %v5264_v62 = vsub.s32 %v9387_v37, %v5263_v27  ;;  %v5300_v25 = vshrl.u32 %v9418_v16, 16  ;;  %v5302_v51 = vmul.u32 14564, %v5299_v17  ;;  %v5303_v46 = vmul.u32 58254, %v5299_v17 }
 0x2e5   : > { %v6022_v2 = vadd.f32 %v6021_v36, %v5987_v22  ;;  %v5289_v40 = vadd.s32 %v5288_v18, %v5278_v63  ;;  %v9426_v57 = vadd.f32 %v4415_v12, %v4050_v54  ;;  %v3005_v44 = vadd.f32 %v2915_v48, %v9729_v42 }
 0x2e6   : > { %vm5694_vm13 = vcmp.ne.s32.totalorder %v5264_v62, 0  ;;  %vm5730_vm14 = vcmp.lt.s32.totalorder %v5264_v62, 0  ;;  %v5802_v8 = vadd.s32 18, %v5264_v62  ;;  %v5304_v28 = vmul.u32 14564, %v5300_v25 }
 0x2e7   : > { %vm5766_vm3 = vmand %vm5730_vm14, %vm5694_vm13  ;;  %v5290_v4 = vadd.s32 %v5289_v40, %v5280_v0  ;;  %v5305_v37 = vmul.u32 58254, %v5300_v25  ;;  %v5306_v50 = vshll.u32 %v5303_v46, 16  ;;  %v5307_v26 = vshrl.u32 %v5303_v46, 16  ;;  %v3373_v61 = vpop.f32.mrf.mxu2 }
 0x2e8   : > { %v5838_v56 = vsel %vm5766_vm3, %v5802_v8, %v5264_v62  ;;  %v5308_v24 = vshll.u32 %v5304_v28, 16  ;;  %v5309_v33 = vshrl.u32 %v5304_v28, 16  ;;  %v7441_v39 = vpack.c.bf16 %v9426_v57, %v9413_v11 }
 0x2e9   : > { %vm5874_vm15 = vcmp.lt.s32.totalorder %v5838_v56, 16  ;;  %v5291_v23 = vshrl.u32 %v5290_v4, 4  ;;  %vm5310_vm0 = vc.u32 %v5302_v51, %v5306_v50  ;;  %v5312_v14 = vadd.s32 %v5306_v50, %v5302_v51  ;;  %v2920_v60 = vpop.f32.mrf.mxu1  ;;  %v9731_v50 = vld [vmem:[#allocation17_spill] sm:$0xff] }
 0x2ea   : > { %v5910_v38 = vsel %vm5874_vm15, %v9398_v6, 0.0  ;;  %v5311_v43 = vsel %vm5310_vm0, 1, %v9646_v49  ;;  %7483 = vst [vmem:[%s8807_s20 + $0x58] sm:$0xff] %v7441_v39   ;;  %v3461_v58 = vadd.f32 %v3371_v13, %v3005_v44  ;;  %v9435_v55 = vadd.s32 192, %v8372_v21 }
 0x2eb   : > { %v5945_v12 = vadd.f32 %v5944_v7, %v5910_v38  ;;  %v5988_v48 = vmul.f32 %v5910_v38, %v9398_v6  ;;  %v5292_v5 = vmul.u32 18, %v5291_v23  ;;  %v5313_v19 = vadd.s32 %v5311_v43, %v5305_v37 }
 0x2ec   : > { %vm5314_vm1 = vc.u32 %v5312_v14, %v5308_v24  ;;  %v4051_v29 = vadd.f32 %v3961_v53, %v3461_v58  ;;  %v5328_v1 = vand.u32 65535, %v9435_v55  ;;  %v5329_v36 = vshrl.u32 %v9435_v55, 16 }
 0x2ed   : > { %v6023_v63 = vadd.f32 %v6022_v2, %v5988_v48  ;;  %v5293_v9 = vsub.s32 %v9390_v35, %v5292_v5  ;;  %v5315_v59 = vsel %vm5314_vm1, 1, %v9646_v49  ;;  %v3006_v0 = vadd.f32 %v2917_v41, %v9730_v34  ;;  %v4423_v5 = vpop.f32.mrf.mxu0 }
 0x2ee   : > { %v5317_v15 = vadd.s32 %v5315_v59, %v5313_v19  ;;  %v9443_v10 = vadd.f32 %v4418_v45, %v4051_v29  ;;  %v5331_v6 = vmul.u32 14564, %v5328_v1  ;;  %v5332_v20 = vmul.u32 58254, %v5328_v1 }
 0x2ef   : > { %vm5695_vm4 = vcmp.ne.s32.totalorder %v5293_v9, 0  ;;  %vm5731_vm5 = vcmp.lt.s32.totalorder %v5293_v9, 0  ;;  %v5803_v32 = vadd.s32 18, %v5293_v9  ;;  %v5333_v30 = vmul.u32 14564, %v5329_v36  ;;  %v3376_v18 = vpop.f32.mrf.mxu2 }
 0x2f0   : > { %vm5767_vm2 = vmand %vm5731_vm5, %vm5695_vm4  ;;  %v5318_v13 = vadd.s32 %v5317_v15, %v5307_v26  ;;  %v5334_v47 = vmul.u32 58254, %v5329_v36  ;;  %v5335_v35 = vshll.u32 %v5332_v20, 16  ;;  %v5336_v27 = vshrl.u32 %v5332_v20, 16 }
 0x2f1   : > { %v5839_v3 = vsel %vm5767_vm2, %v5803_v32, %v5293_v9  ;;  %v5337_v17 = vshll.u32 %v5333_v30, 16  ;;  %v5338_v7 = vshrl.u32 %v5333_v30, 16  ;;  %v3462_v22 = vadd.f32 %v3373_v61, %v3006_v0  ;;  %v2922_v19 = vpop.f32.mrf.mxu1 }
 0x2f2   : > { %vm5875_vm6 = vcmp.lt.s32.totalorder %v5839_v3, 16  ;;  %v5319_v54 = vadd.s32 %v5318_v13, %v5309_v33  ;;  %vm5339_vm7 = vc.u32 %v5331_v6, %v5335_v35  ;;  %v5341_v53 = vadd.s32 %v5335_v35, %v5331_v6 }
 0x2f3   : > { %v5911_v62 = vsel %vm5875_vm6, %v9413_v11, 0.0  ;;  %v5340_v25 = vsel %vm5339_vm7, 1, %v9646_v49  ;;  %v4052_v51 = vadd.f32 %v3963_v52, %v3462_v22  ;;  %v9448_v46 = vadd.s32 200, %v8372_v21  ;;  %v9732_v52 = vld [vmem:[#allocation18_spill] sm:$0xff] }
 0x2f4   : > { %v5946_v2 = vadd.f32 %v5945_v12, %v5911_v62  ;;  %v5989_v40 = vmul.f32 %v5911_v62, %v9413_v11  ;;  %v5320_v42 = vshrl.u32 %v5319_v54, 4  ;;  %v5342_v44 = vadd.s32 %v5340_v25, %v5334_v47  ;;  %v3966_v11 = vpop.f32.mrf.mxu3 }
 0x2f5   : > { %vm5343_vm8 = vc.u32 %v5341_v53, %v5337_v17  ;;  %v9451_v45 = vadd.f32 %v4420_v31, %v4052_v51  ;;  %v5357_v41 = vand.u32 65535, %v9448_v46  ;;  %v5358_v8 = vshrl.u32 %v9448_v46, 16 }
 0x2f6   : > { %v6024_v28 = vadd.f32 %v6023_v63, %v5989_v40  ;;  %v5321_v4 = vmul.u32 18, %v5320_v42  ;;  %v5344_v37 = vsel %vm5343_vm8, 1, %v9646_v49  ;;  %v3007_v26 = vadd.f32 %v2920_v60, %v9731_v50 }
 0x2f7   : > { %v5346_v56 = vadd.s32 %v5344_v37, %v5342_v44  ;;  %v5360_v24 = vmul.u32 14564, %v5357_v41  ;;  %v5361_v33 = vmul.u32 58254, %v5357_v41  ;;  %v5362_v39 = vmul.u32 14564, %v5358_v8  ;;  %v3378_v9 = vpop.f32.mrf.mxu2  ;;  %v4425_v41 = vpop.f32.mrf.mxu0 }
 0x2f8   : > { %v5322_v23 = vsub.s32 %v9418_v16, %v5321_v4  ;;  %v5363_v14 = vmul.u32 58254, %v5358_v8  ;;  %v7446_v61 = vpack.c.bf16 %v9451_v45, %v9443_v10  ;;  %v3463_v38 = vadd.f32 %v3376_v18, %v3007_v26 }
 0x2f9   : > { %v5347_v43 = vadd.s32 %v5346_v56, %v5336_v27  ;;  %v5364_v58 = vshll.u32 %v5361_v33, 16  ;;  %v5365_v12 = vshrl.u32 %v5361_v33, 16  ;;  %v5366_v48 = vshll.u32 %v5362_v39, 16  ;;  %v2925_v8 = vpop.f32.mrf.mxu1 }
 0x2fa   : > { %vm5696_vm9 = vcmp.ne.s32.totalorder %v5322_v23, 0  ;;  %vm5732_vm10 = vcmp.lt.s32.totalorder %v5322_v23, 0  ;;  %v5804_v29 = vadd.s32 18, %v5322_v23  ;;  %v5367_v1 = vshrl.u32 %v5362_v39, 16  ;;  %7484 = vst [vmem:[%s8807_s20 + $0x60] sm:$0xff] %v7446_v61  }
 0x2fb   : > { %vm5768_vm11 = vmand %vm5732_vm10, %vm5696_vm9  ;;  %v5348_v36 = vadd.s32 %v5347_v43, %v5338_v7  ;;  %vm5368_vm12 = vc.u32 %v5360_v24, %v5364_v58  ;;  %v5370_v16 = vadd.s32 %v5364_v58, %v5360_v24  ;;  %v4053_v63 = vadd.f32 %v3966_v11, %v3463_v38 }
 0x2fc   : > { %v5840_v59 = vsel %vm5768_vm11, %v5804_v29, %v5322_v23  ;;  %v5369_v34 = vsel %vm5368_vm12, 1, %v9646_v49  ;;  %v9463_v0 = vadd.s32 208, %v8372_v21  ;;  %v3008_v15 = vadd.f32 %v2922_v19, %v9732_v52  ;;  %v3968_v62 = vpop.f32.mrf.mxu3 }
 0x2fd   : > { %vm5876_vm13 = vcmp.lt.s32.totalorder %v5840_v59, 16  ;;  %v5349_v6 = vshrl.u32 %v5348_v36, 4  ;;  %v5371_v20 = vadd.s32 %v5369_v34, %v5363_v14  ;;  %vm5372_vm14 = vc.u32 %v5370_v16, %v5366_v48 }
 0x2fe   : > { %v5912_v32 = vsel %vm5876_vm13, %v9426_v57, 0.0  ;;  %v5373_v30 = vsel %vm5372_vm14, 1, %v9646_v49  ;;  %v9468_v31 = vadd.f32 %v4423_v5, %v4053_v63  ;;  %v5386_v60 = vand.u32 65535, %v9463_v0 }
 0x2ff   : > { %v5947_v13 = vadd.f32 %v5946_v2, %v5912_v32  ;;  %v5990_v47 = vmul.f32 %v5912_v32, %v9426_v57  ;;  %v5350_v35 = vmul.u32 18, %v5349_v6  ;;  %v5375_v27 = vadd.s32 %v5373_v30, %v5371_v20  ;;  %v3381_v24 = vpop.f32.mrf.mxu2  ;;  %v9733_v32 = vld [vmem:[#allocation19_spill] sm:$0xff] }
 0x300   : > { %v5387_v3 = vshrl.u32 %v9463_v0, 16  ;;  %v5389_v17 = vmul.u32 14564, %v5386_v60  ;;  %v5390_v7 = vmul.u32 58254, %v5386_v60  ;;  %v3464_v22 = vadd.f32 %v3378_v9, %v3008_v15  ;;  %v4428_v60 = vpop.f32.mrf.mxu0 }
 0x301   : > { %v6025_v18 = vadd.f32 %v6024_v28, %v5990_v47  ;;  %v5351_v54 = vsub.s32 %v9435_v55, %v5350_v35  ;;  %v5376_v53 = vadd.s32 %v5375_v27, %v5365_v12  ;;  %v9475_v25 = vadd.s32 216, %v8372_v21 }
 0x302   : > { %v5391_v51 = vmul.u32 14564, %v5387_v3  ;;  %v5392_v40 = vmul.u32 58254, %v5387_v3  ;;  %v5393_v2 = vshll.u32 %v5390_v7, 16  ;;  %v5394_v42 = vshrl.u32 %v5390_v7, 16 }
 0x303   : > { %vm5697_vm3 = vcmp.ne.s32.totalorder %v5351_v54, 0  ;;  %vm5733_vm15 = vcmp.lt.s32.totalorder %v5351_v54, 0  ;;  %v5805_v57 = vadd.s32 18, %v5351_v54  ;;  %v5377_v44 = vadd.s32 %v5376_v53, %v5367_v1 }
 0x304   : > { %vm5769_vm0 = vmand %vm5733_vm15, %vm5697_vm3  ;;  %v5395_v4 = vshll.u32 %v5391_v51, 16  ;;  %v5396_v28 = vshrl.u32 %v5391_v51, 16  ;;  %vm5397_vm1 = vc.u32 %v5389_v17, %v5393_v2  ;;  %v5399_v55 = vadd.s32 %v5393_v2, %v5389_v17 }
 0x305   : > { %v5841_v37 = vsel %vm5769_vm0, %v5805_v57, %v5351_v54  ;;  %v5378_v50 = vshrl.u32 %v5377_v44, 4  ;;  %v5398_v26 = vsel %vm5397_vm1, 1, %v9646_v49  ;;  %v4054_v56 = vadd.f32 %v3968_v62, %v3464_v22 }
 0x306   : > { %vm5877_vm4 = vcmp.lt.s32.totalorder %v5841_v37, 16  ;;  %v5400_v33 = vadd.s32 %v5398_v26, %v5392_v40  ;;  %vm5401_vm5 = vc.u32 %v5399_v55, %v5395_v4  ;;  %v5415_v39 = vand.u32 65535, %v9475_v25 }
 0x307   : > { %v5913_v11 = vsel %vm5877_vm4, %v9443_v10, 0.0  ;;  %v5379_v23 = vmul.u32 18, %v5378_v50  ;;  %v5402_v14 = vsel %vm5401_vm5, 1, %v9646_v49  ;;  %v9481_v61 = vadd.f32 %v4425_v41, %v4054_v56  ;;  %v3383_v22 = vpop.f32.mrf.mxu2  ;;  %v9734_v41 = vld [vmem:[#allocation20_spill] sm:$0xff] }
 0x308   : > { %v5948_v38 = vadd.f32 %v5947_v13, %v5913_v11  ;;  %v5991_v43 = vmul.f32 %v5913_v11, %v9443_v10  ;;  %v5404_v58 = vadd.s32 %v5402_v14, %v5400_v33  ;;  %v5416_v12 = vshrl.u32 %v9475_v25, 16  ;;  %v3971_v10 = vpop.f32.mrf.mxu3  ;;  %v2927_v13 = vpop.f32.mrf.mxu1 }
 0x309   : > { %v5380_v48 = vsub.s32 %v9448_v46, %v5379_v23  ;;  %v5418_v5 = vmul.u32 14564, %v5415_v39  ;;  %v5419_v19 = vmul.u32 58254, %v5415_v39  ;;  %v7451_v29 = vpack.c.bf16 %v9481_v61, %v9468_v31 }
 0x30a   : > { %v6026_v1 = vadd.f32 %v6025_v18, %v5991_v43  ;;  %v5405_v36 = vadd.s32 %v5404_v58, %v5394_v42  ;;  %v5420_v16 = vmul.u32 14564, %v5416_v12  ;;  %v5421_v63 = vmul.u32 58254, %v5416_v12  ;;  %v4430_v12 = vpop.f32.mrf.mxu0 }
 0x30b   : > { %vm5698_vm2 = vcmp.ne.s32.totalorder %v5380_v48, 0  ;;  %vm5734_vm6 = vcmp.lt.s32.totalorder %v5380_v48, 0  ;;  %v5806_v9 = vadd.s32 18, %v5380_v48  ;;  %v5422_v59 = vshll.u32 %v5419_v19, 16  ;;  %7485 = vst [vmem:[%s8807_s20 + $0x68] sm:$0xff] %v7451_v29  }
 0x30c   : > { %vm5770_vm7 = vmand %vm5734_vm6, %vm5698_vm2  ;;  %v5406_v34 = vadd.s32 %v5405_v36, %v5396_v28  ;;  %v5423_v52 = vshrl.u32 %v5419_v19, 16  ;;  %v5424_v15 = vshll.u32 %v5420_v16, 16  ;;  %v5425_v46 = vshrl.u32 %v5420_v16, 16 }
 0x30d   : > { %v5842_v6 = vsel %vm5770_vm7, %v5806_v9, %v5380_v48  ;;  %vm5426_vm8 = vc.u32 %v5418_v5, %v5422_v59  ;;  %v5428_v20 = vadd.s32 %v5422_v59, %v5418_v5  ;;  %v3009_v30 = vadd.f32 %v2925_v8, %v9733_v32 }
 0x30e   : > { %vm5878_vm9 = vcmp.lt.s32.totalorder %v5842_v6, 16  ;;  %v5407_v47 = vshrl.u32 %v5406_v34, 4  ;;  %v5427_v35 = vsel %vm5426_vm8, 1, %v9646_v49  ;;  %v9492_v27 = vadd.s32 224, %v8372_v21 }
 0x30f   : > { %v5914_v3 = vsel %vm5878_vm9, %v9451_v45, 0.0  ;;  %v5429_v17 = vadd.s32 %v5427_v35, %v5421_v63  ;;  %vm5430_vm10 = vc.u32 %v5428_v20, %v5424_v15  ;;  %v3465_v7 = vadd.f32 %v3381_v24, %v3009_v30  ;;  %v3386_v59 = vpop.f32.mrf.mxu2 }
 0x310   : > { %v5949_v18 = vadd.f32 %v5948_v38, %v5914_v3  ;;  %v5992_v54 = vmul.f32 %v5914_v3, %v9451_v45  ;;  %v5408_v53 = vmul.u32 18, %v5407_v47  ;;  %v5431_v62 = vsel %vm5430_vm10, 1, %v9646_v49  ;;  %v2930_v48 = vpop.f32.mrf.mxu1 }
 0x311   : > { %v5433_v51 = vadd.s32 %v5431_v62, %v5429_v17  ;;  %v4055_v40 = vadd.f32 %v3971_v10, %v3465_v7  ;;  %v5444_v2 = vand.u32 65535, %v9492_v27  ;;  %v5445_v42 = vshrl.u32 %v9492_v27, 16 }
 0x312   : > { %v6027_v57 = vadd.f32 %v6026_v1, %v5992_v54  ;;  %v5409_v44 = vsub.s32 %v9463_v0, %v5408_v53  ;;  %v3010_v8 = vadd.f32 %v2927_v13, %v9734_v41  ;;  %v9502_v4 = vadd.s32 232, %v8372_v21  ;;  %v3973_v0 = vpop.f32.mrf.mxu3 }
 0x313   : > { %v5434_v28 = vadd.s32 %v5433_v51, %v5423_v52  ;;  %v9504_v55 = vadd.f32 %v4428_v60, %v4055_v40  ;;  %v5447_v45 = vmul.u32 14564, %v5444_v2  ;;  %v5448_v37 = vmul.u32 58254, %v5444_v2 }
 0x314   : > { %vm5699_vm11 = vcmp.ne.s32.totalorder %v5409_v44, 0  ;;  %vm5735_vm12 = vcmp.lt.s32.totalorder %v5409_v44, 0  ;;  %v5807_v50 = vadd.s32 18, %v5409_v44  ;;  %v5449_v26 = vmul.u32 14564, %v5445_v42 }
 0x315   : > { %vm5771_vm13 = vmand %vm5735_vm12, %vm5699_vm11  ;;  %v5435_v56 = vadd.s32 %v5434_v28, %v5425_v46  ;;  %v5450_v24 = vmul.u32 58254, %v5445_v42  ;;  %v5451_v33 = vshll.u32 %v5448_v37, 16  ;;  %v5452_v39 = vshrl.u32 %v5448_v37, 16 }
 0x316   : > { %v5843_v11 = vsel %vm5771_vm13, %v5807_v50, %v5409_v44  ;;  %v5453_v23 = vshll.u32 %v5449_v26, 16  ;;  %v5454_v14 = vshrl.u32 %v5449_v26, 16  ;;  %v3466_v38 = vadd.f32 %v3383_v22, %v3010_v8 }
 0x317   : > { %vm5879_vm14 = vcmp.lt.s32.totalorder %v5843_v11, 16  ;;  %v5436_v43 = vshrl.u32 %v5435_v56, 4  ;;  %vm5455_vm3 = vc.u32 %v5447_v45, %v5451_v33  ;;  %v5457_v58 = vadd.s32 %v5451_v33, %v5447_v45  ;;  %v3388_v33 = vpop.f32.mrf.mxu2  ;;  %v9736_v11 = vld [vmem:[#allocation23_spill] sm:$0xff] }
 0x318   : > { %v5915_v5 = vsel %vm5879_vm14, %v9468_v31, 0.0  ;;  %v5456_v19 = vsel %vm5455_vm3, 1, %v9646_v49  ;;  %v4056_v29 = vadd.f32 %v3973_v0, %v3466_v38  ;;  %v5473_v1 = vand.u32 65535, %v9502_v4  ;;  %v2932_v41 = vpop.f32.mrf.mxu1 }
 0x319   : > { %v5950_v36 = vadd.f32 %v5949_v18, %v5915_v5  ;;  %v5993_v16 = vmul.f32 %v5915_v5, %v9468_v31  ;;  %v5437_v63 = vmul.u32 18, %v5436_v43  ;;  %v5458_v9 = vadd.s32 %v5456_v19, %v5450_v24  ;;  %v9735_v18 = vld [vmem:[#allocation21_spill] sm:$0xff] }
 0x31a   : > { %vm5459_vm15 = vc.u32 %v5457_v58, %v5453_v23  ;;  %v9510_v10 = vadd.f32 %v4430_v12, %v4056_v29  ;;  %v5474_v34 = vshrl.u32 %v9502_v4, 16  ;;  %v5476_v52 = vmul.u32 14564, %v5473_v1  ;;  %v3976_v53 = vpop.f32.mrf.mxu3 }
 0x31b   : > { %v6028_v15 = vadd.f32 %v6027_v57, %v5993_v16  ;;  %v5438_v46 = vsub.s32 %v9475_v25, %v5437_v63  ;;  %v5460_v6 = vsel %vm5459_vm15, 1, %v9646_v49  ;;  %v5477_v20 = vmul.u32 58254, %v5473_v1  ;;  %v4433_v57 = vpop.f32.mrf.mxu0 }
 0x31c   : > { %v5462_v32 = vadd.s32 %v5460_v6, %v5458_v9  ;;  %v5478_v30 = vmul.u32 14564, %v5474_v34  ;;  %v5479_v60 = vmul.u32 58254, %v5474_v34  ;;  %v7456_v31 = vpack.c.bf16 %v9510_v10, %v9504_v55 }
 0x31d   : > { %vm5700_vm0 = vcmp.ne.s32.totalorder %v5438_v46, 0  ;;  %vm5736_vm1 = vcmp.lt.s32.totalorder %v5438_v46, 0  ;;  %v5808_v13 = vadd.s32 18, %v5438_v46  ;;  %v5480_v47 = vshll.u32 %v5477_v20, 16 }
 0x31e   : > { %vm5772_vm4 = vmand %vm5736_vm1, %vm5700_vm0  ;;  %v5463_v35 = vadd.s32 %v5462_v32, %v5452_v39  ;;  %v5481_v3 = vshrl.u32 %v5477_v20, 16  ;;  %v5482_v17 = vshll.u32 %v5478_v30, 16  ;;  %v5483_v7 = vshrl.u32 %v5478_v30, 16  ;;  %7486 = vst [vmem:[%s8807_s20 + $0x70] sm:$0xff] %v7456_v31  }
 0x31f   : > { %v5844_v25 = vsel %vm5772_vm4, %v5808_v13, %v5438_v46  ;;  %vm5484_vm5 = vc.u32 %v5476_v52, %v5480_v47  ;;  %v5486_v22 = vadd.s32 %v5480_v47, %v5476_v52  ;;  %v3011_v54 = vadd.f32 %v2930_v48, %v9735_v18 }
 0x320   : > { %vm5880_vm2 = vcmp.lt.s32.totalorder %v5844_v25, 16  ;;  %v5464_v62 = vadd.s32 %v5463_v35, %v5454_v14  ;;  %v5485_v51 = vsel %vm5484_vm5, 1, %v9646_v49  ;;  %v9521_v40 = vadd.s32 240, %v8372_v21  ;;  %v2935_v35 = vpop.f32.mrf.mxu1 }
 0x321   : > { %v5916_v2 = vsel %vm5880_vm2, %v9481_v61, 0.0  ;;  %v5487_v42 = vadd.s32 %v5485_v51, %v5479_v60  ;;  %vm5488_vm6 = vc.u32 %v5486_v22, %v5482_v17  ;;  %v3467_v44 = vadd.f32 %v3386_v59, %v3011_v54 }
 0x322   : > { %v5951_v8 = vadd.f32 %v5950_v36, %v5916_v2  ;;  %v5994_v28 = vmul.f32 %v5916_v2, %v9481_v61  ;;  %v5465_v45 = vshrl.u32 %v5464_v62, 4  ;;  %v5489_v37 = vsel %vm5488_vm6, 1, %v9646_v49  ;;  %v3978_v34 = vpop.f32.mrf.mxu3  ;;  %v3391_v62 = vpop.f32.mrf.mxu2 }
 0x323   : > { %v5491_v50 = vadd.s32 %v5489_v37, %v5487_v42  ;;  %v4057_v26 = vadd.f32 %v3976_v53, %v3467_v44  ;;  %v5502_v56 = vand.u32 65535, %v9521_v40  ;;  %v5503_v24 = vshrl.u32 %v9521_v40, 16  ;;  %v4435_v30 = vpop.f32.mrf.mxu0 }
 0x324   : > { %v6029_v39 = vadd.f32 %v6028_v15, %v5994_v28  ;;  %v5466_v0 = vmul.u32 18, %v5465_v45  ;;  %v3012_v23 = vadd.f32 %v2932_v41, %v9736_v11  ;;  %v9530_v58 = vadd.s32 248, %v8372_v21 }
 0x325   : > { %v5492_v14 = vadd.s32 %v5491_v50, %v5481_v3  ;;  %v5505_v38 = vmul.u32 14564, %v5502_v56  ;;  %v5506_v43 = vmul.u32 58254, %v5502_v56  ;;  %v9533_v12 = vadd.f32 %v4433_v57, %v4057_v26 }
 0x326   : > { %v5467_v61 = vsub.s32 %v9492_v27, %v5466_v0  ;;  %v5507_v48 = vmul.u32 14564, %v5503_v24  ;;  %v3468_v5 = vadd.f32 %v3388_v33, %v3012_v23  ;;  %v5508_v29 = vmul.u32 58254, %v5503_v24 }
 0x327   : > { %v5493_v19 = vadd.s32 %v5492_v14, %v5483_v7  ;;  %v5509_v1 = vshll.u32 %v5506_v43, 16  ;;  %v5510_v36 = vshrl.u32 %v5506_v43, 16  ;;  %v5531_v52 = vand.u32 65535, %v9530_v58 }
 0x328   : > { %vm5701_vm7 = vcmp.ne.s32.totalorder %v5467_v61, 0  ;;  %vm5737_vm8 = vcmp.lt.s32.totalorder %v5467_v61, 0  ;;  %v5809_v16 = vadd.s32 18, %v5467_v61  ;;  %v5511_v63 = vshll.u32 %v5507_v48, 16 }
 0x329   : > { %vm5773_vm9 = vmand %vm5737_vm8, %vm5701_vm7  ;;  %v5494_v9 = vshrl.u32 %v5493_v19, 4  ;;  %vm5513_vm10 = vc.u32 %v5505_v38, %v5509_v1  ;;  %v5515_v59 = vadd.s32 %v5509_v1, %v5505_v38  ;;  %v4058_v46 = vadd.f32 %v3978_v34, %v3468_v5  ;;  %v2937_v1 = vpop.f32.mrf.mxu1 }
 0x32a   : > { %v5845_v27 = vsel %vm5773_vm9, %v5809_v16, %v5467_v61  ;;  %v5514_v15 = vsel %vm5513_vm10, 1, %v9646_v49  ;;  %v5532_v6 = vshrl.u32 %v9530_v58, 16  ;;  %v5512_v31 = vshrl.u32 %v5507_v48, 16  ;;  %v3981_v14 = vpop.f32.mrf.mxu3 }
 0x32b   : > { %vm5881_vm11 = vcmp.lt.s32.totalorder %v5845_v27, 16  ;;  %v5495_v20 = vmul.u32 18, %v5494_v9  ;;  %v5516_v32 = vadd.s32 %v5514_v15, %v5508_v29  ;;  %vm5517_vm12 = vc.u32 %v5515_v59, %v5511_v63  ;;  %v4438_v16 = vpop.f32.mrf.mxu0  ;;  %v9738_v27 = vld [vmem:[#allocation24_spill] sm:$0xff]  ;;  %v9739_v15 = vld [vmem:[#allocation22_spill] sm:$0xff] }
 0x32c   : > { %v5917_v60 = vsel %vm5881_vm11, %v9504_v55, 0.0  ;;  %v5518_v13 = vsel %vm5517_vm12, 1, %v9646_v49  ;;  %v9540_v47 = vadd.f32 %v4435_v30, %v4058_v46  ;;  %v5534_v22 = vmul.u32 14564, %v5531_v52 }
 0x32d   : > { %v5952_v3 = vadd.f32 %v5951_v8, %v5917_v60  ;;  %v5995_v17 = vmul.f32 %v5917_v60, %v9504_v55  ;;  %v5496_v7 = vsub.s32 %v9502_v4, %v5495_v20  ;;  %v5520_v25 = vadd.s32 %v5518_v13, %v5516_v32  ;;  %v9737_v8 = vld [vmem:[#allocation26_spill] sm:$0xff] }
 0x32e   : > { %v5535_v18 = vmul.u32 58254, %v5531_v52  ;;  %v5536_v54 = vmul.u32 14564, %v5532_v6  ;;  %v7461_v53 = vpack.c.bf16 %v9540_v47, %v9533_v12  ;;  %v5537_v57 = vmul.u32 58254, %v5532_v6  ;;  %v3393_v6 = vpop.f32.mrf.mxu2 }
 0x32f   : > { %v6030_v51 = vadd.f32 %v6029_v39, %v5995_v17  ;;  %vm5702_vm13 = vcmp.ne.s32.totalorder %v5496_v7, 0  ;;  %vm5738_vm14 = vcmp.lt.s32.totalorder %v5496_v7, 0  ;;  %v5810_v2 = vadd.s32 18, %v5496_v7 }
 0x330   : > { %vm5774_vm3 = vmand %vm5738_vm14, %vm5702_vm13  ;;  %v5521_v42 = vadd.s32 %v5520_v25, %v5510_v36  ;;  %v5538_v44 = vshll.u32 %v5535_v18, 16  ;;  %v5539_v55 = vshrl.u32 %v5535_v18, 16  ;;  %7487 = vst [vmem:[%s8807_s20 + $0x78] sm:$0xff] %v7461_v53   ;;  %v5540_v41 = vshll.u32 %v5536_v54, 16 }
 0x331   : > { %v5846_v4 = vsel %vm5774_vm3, %v5810_v2, %v5496_v7  ;;  %v3013_v28 = vadd.f32 %v2935_v35, %v9737_v8  ;;  %v9549_v45 = vadd.s32 256, %v8372_v21  ;;  %v5541_v38 = vshrl.u32 %v5536_v54, 16 }
 0x332   : > { %vm5882_vm15 = vcmp.lt.s32.totalorder %v5846_v4, 16  ;;  %v5522_v37 = vadd.s32 %v5521_v42, %v5512_v31  ;;  %vm5542_vm0 = vc.u32 %v5534_v22, %v5538_v44  ;;  %v5544_v50 = vadd.s32 %v5538_v44, %v5534_v22 }
 0x333   : > { %v5918_v26 = vsel %vm5882_vm15, %v9510_v10, 0.0  ;;  %v5543_v56 = vsel %vm5542_vm0, 1, %v9646_v49  ;;  %v3469_v24 = vadd.f32 %v3391_v62, %v3013_v28  ;;  %v5560_v33 = vand.u32 65535, %v9549_v45 }
 0x334   : > { %v5953_v39 = vadd.f32 %v5952_v3, %v5918_v26  ;;  %v5996_v0 = vmul.f32 %v5918_v26, %v9510_v10  ;;  %v5523_v11 = vshrl.u32 %v5522_v37, 4  ;;  %v5545_v23 = vadd.s32 %v5543_v56, %v5537_v57  ;;  %v2940_v37 = vpop.f32.mrf.mxu1 }
 0x335   : > { %vm5546_vm1 = vc.u32 %v5544_v50, %v5540_v41  ;;  %v5561_v43 = vshrl.u32 %v9549_v45, 16  ;;  %v5563_v61 = vmul.u32 14564, %v5560_v33  ;;  %v5564_v29 = vmul.u32 58254, %v5560_v33 }
 0x336   : > { %v6031_v48 = vadd.f32 %v6030_v51, %v5996_v0  ;;  %v5524_v5 = vmul.u32 18, %v5523_v11  ;;  %v5547_v19 = vsel %vm5546_vm1, 1, %v9646_v49  ;;  %v4059_v63 = vadd.f32 %v3981_v14, %v3469_v24  ;;  %v3983_v51 = vpop.f32.mrf.mxu3  ;;  %v4440_v24 = vpop.f32.mrf.mxu0 }
 0x337   : > { %v5549_v36 = vadd.s32 %v5547_v19, %v5545_v23  ;;  %v5565_v9 = vmul.u32 14564, %v5561_v43  ;;  %v5566_v59 = vmul.u32 58254, %v5561_v43  ;;  %v5567_v34 = vshll.u32 %v5564_v29, 16 }
 0x338   : > { %v5525_v10 = vsub.s32 %v9521_v40, %v5524_v5  ;;  %v5568_v52 = vshrl.u32 %v5564_v29, 16  ;;  %v2557_v46 = vadd.f32 %v9739_v15, %v9738_v27  ;;  %v9561_v60 = vadd.s32 264, %v8372_v21 }
 0x339   : > { %v5550_v20 = vadd.s32 %v5549_v36, %v5539_v55  ;;  %v5569_v32 = vshll.u32 %v5565_v9, 16  ;;  %v5570_v30 = vshrl.u32 %v5565_v9, 16  ;;  %vm5571_vm2 = vc.u32 %v5563_v61, %v5567_v34  ;;  %v9741_v36 = vld [vmem:[#allocation25_spill] sm:$0xff] }
 0x33a   : > { %vm5703_vm4 = vcmp.ne.s32.totalorder %v5525_v10, 0  ;;  %vm5739_vm5 = vcmp.lt.s32.totalorder %v5525_v10, 0  ;;  %v5811_v31 = vadd.s32 18, %v5525_v10  ;;  %v5572_v40 = vsel %vm5571_vm2, 1, %v9646_v49 }
 0x33b   : > { %vm5775_vm6 = vmand %vm5739_vm5, %vm5703_vm4  ;;  %v5551_v13 = vadd.s32 %v5550_v20, %v5541_v38  ;;  %v5573_v35 = vadd.s32 %v5567_v34, %v5563_v61  ;;  %v3014_v3 = vadd.f32 %v2937_v1, %v2557_v46  ;;  %v5574_v7 = vadd.s32 %v5572_v40, %v5566_v59  ;;  %v9740_v1 = vld [vmem:[#allocation27_spill] sm:$0xff] }
 0x33c   : > { %v5847_v17 = vsel %vm5775_vm6, %v5811_v31, %v5525_v10  ;;  %v5589_v25 = vand.u32 65535, %v9561_v60  ;;  %v5590_v22 = vshrl.u32 %v9561_v60, 16  ;;  %v9570_v0 = vadd.f32 %v4438_v16, %v4059_v63 }
 0x33d   : > { %vm5883_vm7 = vcmp.lt.s32.totalorder %v5847_v17, 16  ;;  %v5552_v18 = vshrl.u32 %v5551_v13, 4  ;;  %vm5575_vm8 = vc.u32 %v5573_v35, %v5569_v32  ;;  %v3470_v54 = vadd.f32 %v3393_v6, %v3014_v3  ;;  %v9742_v35 = vld [vmem:[#allocation3_spill] sm:$0xff]  ;;  %v9743_v3 = vld [vmem:[#allocation28_spill] sm:$0xff] }
 0x33e   : > { %v5919_v53 = vsel %vm5883_vm7, %v9533_v12, 0.0  ;;  %v5576_v62 = vsel %vm5575_vm8, 1, %v9646_v49  ;;  %v5592_v2 = vmul.u32 14564, %v5589_v25  ;;  %v5593_v42 = vmul.u32 58254, %v5589_v25  ;;  %v3986_v46 = vpop.f32.mrf.mxu3 }
 0x33f   : > { %v5954_v57 = vadd.f32 %v5953_v39, %v5919_v53  ;;  %v5997_v44 = vmul.f32 %v5919_v53, %v9533_v12  ;;  %v5553_v55 = vmul.u32 18, %v5552_v18  ;;  %v5578_v4 = vadd.s32 %v5576_v62, %v5574_v7  ;;  %v3396_v39 = vpop.f32.mrf.mxu2  ;;  %v2942_v7 = vpop.f32.mrf.mxu1 }
 0x340   : > { %v4060_v41 = vadd.f32 %v3983_v51, %v3470_v54  ;;  %v5594_v8 = vmul.u32 14564, %v5590_v22  ;;  %v5596_v28 = vshll.u32 %v5593_v42, 16  ;;  %v5595_v33 = vmul.u32 58254, %v5590_v22  ;;  %v4443_v62 = vpop.f32.mrf.mxu0 }
 0x341   : > { %v6032_v50 = vadd.f32 %v6031_v48, %v5997_v44  ;;  %v5554_v26 = vsub.s32 %v9530_v58, %v5553_v55  ;;  %v5579_v56 = vadd.s32 %v5578_v4, %v5568_v52  ;;  %v9578_v19 = vadd.s32 272, %v8372_v21 }
 0x342   : > { %v9572_v11 = vadd.f32 %v4440_v24, %v4060_v41  ;;  %v5598_v23 = vshll.u32 %v5594_v8, 16  ;;  %vm5600_vm9 = vc.u32 %v5592_v2, %v5596_v28  ;;  %v5602_v43 = vadd.s32 %v5596_v28, %v5592_v2 }
 0x343   : > { %vm5704_vm10 = vcmp.ne.s32.totalorder %v5554_v26, 0  ;;  %vm5740_vm11 = vcmp.lt.s32.totalorder %v5554_v26, 0  ;;  %v5812_v12 = vadd.s32 18, %v5554_v26  ;;  %v5580_v14 = vadd.s32 %v5579_v56, %v5570_v30 }
 0x344   : > { %vm5776_vm12 = vmand %vm5740_vm11, %vm5704_vm10  ;;  %v5601_v38 = vsel %vm5600_vm9, 1, %v9646_v49  ;;  %v7466_v58 = vpack.c.bf16 %v9572_v11, %v9570_v0  ;;  %v5597_v29 = vshrl.u32 %v5593_v42, 16  ;;  %vm5604_vm14 = vc.u32 %v5602_v43, %v5598_v23 }
 0x345   : > { %v5848_v61 = vsel %vm5776_vm12, %v5812_v12, %v5554_v26  ;;  %v5581_v48 = vshrl.u32 %v5580_v14, 4  ;;  %v5603_v5 = vadd.s32 %v5601_v38, %v5595_v33  ;;  %v2558_v16 = vadd.f32 %v9741_v36, %v9740_v1 }
 0x346   : > { %vm5884_vm13 = vcmp.lt.s32.totalorder %v5848_v61, 16  ;;  %7488 = vst [vmem:[%s8807_s20 + $0x80] sm:$0xff] %v7466_v58   ;;  %v5605_v59 = vsel %vm5604_vm14, 1, %v9646_v49  ;;  %v5618_v10 = vand.u32 65535, %v9578_v19  ;;  %v5599_v27 = vshrl.u32 %v5594_v8, 16  ;;  %v3988_v38 = vpop.f32.mrf.mxu3 }
 0x347   : > { %v5920_v63 = vsel %vm5884_vm13, %v9540_v47, 0.0  ;;  %v5582_v9 = vmul.u32 18, %v5581_v48  ;;  %v5607_v15 = vadd.s32 %v5605_v59, %v5603_v5  ;;  %v3015_v20 = vadd.f32 %v2940_v37, %v2558_v16 }
 0x348   : > { %v5955_v34 = vadd.f32 %v5954_v57, %v5920_v63  ;;  %v5998_v52 = vmul.f32 %v5920_v63, %v9540_v47  ;;  %v5619_v32 = vshrl.u32 %v9578_v19, 16  ;;  %v5622_v30 = vmul.u32 58254, %v5618_v10 }
 0x349   : > { %v5583_v6 = vsub.s32 %v9549_v45, %v5582_v9  ;;  %v5608_v13 = vadd.s32 %v5607_v15, %v5597_v29  ;;  %v5621_v40 = vmul.u32 14564, %v5618_v10  ;;  %v2559_v17 = vadd.f32 %v9743_v3, %v9742_v35  ;;  %v3398_v45 = vpop.f32.mrf.mxu2  ;;  %v4445_v9 = vpop.f32.mrf.mxu0 }
 0x34a   : > { %v6033_v31 = vadd.f32 %v6032_v50, %v5998_v52  ;;  %v5623_v47 = vmul.u32 14564, %v5619_v32  ;;  %v5624_v18 = vmul.u32 58254, %v5619_v32  ;;  %v5625_v54 = vshll.u32 %v5622_v30, 16 }
 0x34b   : > { %vm5705_vm3 = vcmp.ne.s32.totalorder %v5583_v6, 0  ;;  %vm5741_vm15 = vcmp.lt.s32.totalorder %v5583_v6, 0  ;;  %v5813_v25 = vadd.s32 18, %v5583_v6  ;;  %v5609_v22 = vadd.s32 %v5608_v13, %v5599_v27 }
 0x34c   : > { %vm5777_vm0 = vmand %vm5741_vm15, %vm5705_vm3  ;;  %v3471_v51 = vadd.f32 %v3396_v39, %v3015_v20  ;;  %v5627_v2 = vshll.u32 %v5623_v47, 16  ;;  %v3016_v42 = vadd.f32 %v2942_v7, %v2559_v17  ;;  %vm5629_vm4 = vc.u32 %v5621_v40, %v5625_v54 }
 0x34d   : > { %v5849_v53 = vsel %vm5777_vm0, %v5813_v25, %v5583_v6  ;;  %v5610_v57 = vshrl.u32 %v5609_v22, 4  ;;  %v5631_v44 = vadd.s32 %v5625_v54, %v5621_v40  ;;  %v5630_v4 = vsel %vm5629_vm4, 1, %v9646_v49 }
 0x34e   : > { %vm5885_vm1 = vcmp.lt.s32.totalorder %v5849_v53, 16  ;;  %v3472_v41 = vadd.f32 %v3398_v45, %v3016_v42  ;;  %v9594_v8 = vadd.s32 280, %v8372_v21  ;;  %v5632_v26 = vadd.s32 %v5630_v4, %v5624_v18 }
 0x34f   : > { %v5921_v55 = vsel %vm5885_vm1, %v9570_v0, 0.0  ;;  %v5611_v50 = vmul.u32 18, %v5610_v57  ;;  %v5626_v56 = vshrl.u32 %v5622_v30, 16  ;;  %vm5633_vm5 = vc.u32 %v5631_v44, %v5627_v2 }
 0x350   : > { %v5956_v28 = vadd.f32 %v5955_v34, %v5921_v55  ;;  %v5999_v37 = vmul.f32 %v5921_v55, %v9570_v0  ;;  %v5647_v24 = vand.u32 65535, %v9594_v8  ;;  %v5648_v33 = vshrl.u32 %v9594_v8, 16 }
 0x351   : > { %v5612_v39 = vsub.s32 %v9561_v60, %v5611_v50  ;;  %v5628_v12 = vshrl.u32 %v5623_v47, 16  ;;  %v5634_v14 = vsel %vm5633_vm5, 1, %v9646_v49  ;;  %v4062_v43 = vadd.f32 %v3988_v38, %v3472_v41 }
 0x352   : > { %v6034_v23 = vadd.f32 %v6033_v31, %v5999_v37  ;;  %v5636_v21 = vadd.s32 %v5634_v14, %v5632_v26  ;;  %v5650_v58 = vmul.u32 14564, %v5647_v24  ;;  %v5651_v61 = vmul.u32 58254, %v5647_v24 }
 0x353   : > { %vm5706_vm2 = vcmp.ne.s32.totalorder %v5612_v39, 0  ;;  %vm5742_vm6 = vcmp.lt.s32.totalorder %v5612_v39, 0  ;;  %v5814_v0 = vadd.s32 18, %v5612_v39  ;;  %v5652_v48 = vmul.u32 14564, %v5648_v33 }
 0x354   : > { %vm5778_vm7 = vmand %vm5742_vm6, %vm5706_vm2  ;;  %v5637_v5 = vadd.s32 %v5636_v21, %v5626_v56  ;;  %v5653_v29 = vmul.u32 58254, %v5648_v33  ;;  %v5654_v1 = vshll.u32 %v5651_v61, 16  ;;  %v4061_v16 = vadd.f32 %v3986_v46, %v3471_v51 }
 0x355   : > { %v5850_v36 = vsel %vm5778_vm7, %v5814_v0, %v5612_v39  ;;  %v5656_v63 = vshll.u32 %v5652_v48, 16  ;;  %v4519_v34 = vadd.f32 %v4445_v9, %v4062_v43  ;;  %v5655_v32 = vshrl.u32 %v5651_v61, 16 }
 0x356   : > { %vm5886_vm8 = vcmp.lt.s32.totalorder %v5850_v36, 16  ;;  %v5638_v60 = vadd.s32 %v5637_v5, %v5628_v12  ;;  %vm5658_vm9 = vc.u32 %v5650_v58, %v5654_v1  ;;  %v5660_v59 = vadd.s32 %v5654_v1, %v5650_v58 }
 0x357   : > { %v5922_v10 = vsel %vm5886_vm8, %v9572_v11, 0.0  ;;  %v5659_v52 = vsel %vm5658_vm9, 1, %v9646_v49  ;;  %v4518_v30 = vadd.f32 %v4443_v62, %v4061_v16  ;;  %v5657_v40 = vshrl.u32 %v5652_v48, 16 }
 0x358   : > { %v5957_v27 = vadd.f32 %v5956_v28, %v5922_v10  ;;  %v6000_v15 = vmul.f32 %v5922_v10, %v9572_v11  ;;  %v5639_v6 = vshrl.u32 %v5638_v60, 4  ;;  %v5661_v20 = vadd.s32 %v5659_v52, %v5653_v29 }
 0x359   : > { %vm5662_vm10 = vc.u32 %v5660_v59, %v5656_v63  ;;  %v7471_v17 = vpack.c.bf16 %v4519_v34, %v4518_v30 }
 0x35a   : > { %v6035_v46 = vadd.f32 %v6034_v23, %v6000_v15  ;;  %v5640_v31 = vmul.u32 18, %v5639_v6  ;;  %v5663_v13 = vsel %vm5662_vm10, 1, %v9646_v49 }
 0x35b   : > { %v5665_v35 = vadd.s32 %v5663_v13, %v5661_v20  ;;  %7489 = vst [vmem:[%s8807_s20 + $0x88] sm:$0xff] %v7471_v17  }
 0x35c   : > { %v5641_v3 = vsub.s32 %v9578_v19, %v5640_v31 }
 0x35d   : > { %v5666_v7 = vadd.s32 %v5665_v35, %v5655_v32 }
 0x35e   : > { %vm5707_vm11 = vcmp.ne.s32.totalorder %v5641_v3, 0  ;;  %vm5743_vm12 = vcmp.lt.s32.totalorder %v5641_v3, 0  ;;  %v5815_v25 = vadd.s32 18, %v5641_v3 }
 0x35f   : > { %vm5779_vm13 = vmand %vm5743_vm12, %vm5707_vm11  ;;  %v5667_v11 = vadd.s32 %v5666_v7, %v5657_v40 }
 0x360   : > { %v5851_v47 = vsel %vm5779_vm13, %v5815_v25, %v5641_v3 }
 0x361   : > { %vm5887_vm14 = vcmp.lt.s32.totalorder %v5851_v47, 16  ;;  %v5668_v22 = vshrl.u32 %v5667_v11, 4 }
 0x362   : > { %v5923_v18 = vsel %vm5887_vm14, %v4518_v30, 0.0 }
 0x363   : > { %v5958_v54 = vadd.f32 %v5957_v27, %v5923_v18  ;;  %v6001_v45 = vmul.f32 %v5923_v18, %v4518_v30  ;;  %v5669_v53 = vmul.u32 18, %v5668_v22 }
 0x365   : > { %v6036_v49 = vadd.f32 %v6035_v46, %v6001_v45  ;;  %v5670_v62 = vsub.s32 %v9594_v8, %v5669_v53 }
 0x367   : > { %vm5708_vm3 = vcmp.ne.s32.totalorder %v5670_v62, 0  ;;  %vm5744_vm15 = vcmp.lt.s32.totalorder %v5670_v62, 0  ;;  %v5816_v19 = vadd.s32 18, %v5670_v62 }
 0x368   : > { %vm5780_vm0 = vmand %vm5744_vm15, %vm5708_vm3 }
 0x369   : > { %v5852_v51 = vsel %vm5780_vm0, %v5816_v19, %v5670_v62 }
 0x36a   : > { %vm5888_vm1 = vcmp.lt.s32.totalorder %v5852_v51, 16 }
 0x36b   : > { %v5924_v2 = vsel %vm5888_vm1, %v4519_v34, 0.0 }
 0x36c   : > { %v5959_v42 = vadd.f32 %v5958_v54, %v5924_v2  ;;  %v6002_v57 = vmul.f32 %v5924_v2, %v4519_v34 }
 0x36e   : > { %v5960_v44 = vrot.slane %v5959_v42, 4  ;;  %v6037_v55 = vadd.f32 %v6036_v49, %v6002_v57 }
 0x370   : > { %v5961_v4 = vadd.f32 %v5960_v44, %v5959_v42  ;;  %v6038_v41 = vrot.slane %v6037_v55, 4 }
 0x372   : > { %v5962_v28 = vrot.slane %v5961_v4, 2  ;;  %v6039_v37 = vadd.f32 %v6038_v41, %v6037_v55 }
 0x374   : > { %v5963_v50 = vadd.f32 %v5962_v28, %v5961_v4  ;;  %v6040_v26 = vrot.slane %v6039_v37, 2 }
 0x376   : > { %v5964_v8 = vrot.slane %v5963_v50, 1  ;;  %v6041_v56 = vadd.f32 %v6040_v26, %v6039_v37 }
 0x378   : > { %v5965_v24 = vadd.f32 %v5964_v8, %v5963_v50  ;;  %v6042_v33 = vrot.slane %v6041_v56, 1 }
 0x37a   : > { %5966 = vst [vmem:[%s181_s23] sm:$0x1] %v5965_v24  ;;  %v6043_v23 = vadd.f32 %v6042_v33, %v6041_v56 }
 0x37c   : > { %6044 = vst [vmem:[%s181_s23 + $0x1] sm:$0x1] %v6043_v23 }
 0x37d PF: > { %s14_s12 = sadd.s32 1, %s7531_s12  }
 0x37e   : > { %p11_p4 = scmp.ge.s32.totalorder %s14_s12, 4  }
 0x380   :  { %13 = sbr.rel (!%p11_p4) target bundleno = 1 (0x1), region = 70 }

</bundles_post_ra>
